<compile_context>
chip_gen: v6e
topology: v6e:2x2x1
jax: 0.10.0
libtpu: 0.0.40
codegen_flags: <defaults>
</compile_context>

<pallas_src>
import functools

import jax
import jax.numpy as jnp
from jax import lax
from jax.experimental import pallas as pl
from jax.experimental.pallas import tpu as pltpu

BN_EPS = 1e-5


# ---------------------------------------------------------------------------
# Pallas kernels
# ---------------------------------------------------------------------------
def _bn_prelu_matmul_kernel(x_ref, scale_ref, shift_ref, alpha_ref, w_ref,
                            b_ref, o_ref):
  """Fused BN + PReLU + 1x1x1 conv (per-voxel GEMM) on a (tm, Cin) row tile."""
  xn = x_ref[...] * scale_ref[...] + shift_ref[...]
  a = alpha_ref[0]                                   # SMEM scalar
  act = jnp.where(xn >= 0.0, xn, a * xn)
  o_ref[...] = (jnp.dot(act, w_ref[...], preferred_element_type=jnp.float32)
                + b_ref[...]).astype(o_ref.dtype)


def _bn_prelu_conv3d_kernel(x_ref, scale_ref, shift_ref, alpha_ref, w_ref,
                            b_ref, o_ref, *, k, td, Ho, Wo, Cin, Cout):
  """Fused BN + PReLU + k^3 conv for one batch element and one D-slab.

  x_ref: (Dp, Hp, Wp, Cin) sentinel-padded raw input (whole batch element;
         re-used across D tiles of the same n without re-DMA).
  o_ref: (td, Ho, Wo, Cout) output slab for this grid step.
  """
  d_tile = pl.program_id(1)
  start = pl.multiple_of(d_tile * td, td)
  # Only the (td + k - 1)-deep slab needed by this output tile is activated,
  # keeping live ranges bounded regardless of the full volume depth.
  slab = x_ref[pl.ds(start, td + k - 1), :, :, :]
  xn = slab * scale_ref[...] + shift_ref[...]
  a = alpha_ref[0]                                   # SMEM scalar
  act = jnp.where(xn >= 0.0, xn, a * xn)             # halo -> ~0 (sentinel pad)

  acc = jnp.zeros((td * Ho * Wo, Cout), jnp.float32)
  t = 0
  for kd in range(k):
    for kh in range(k):
      for kw in range(k):
        patch = act[kd:kd + td, kh:kh + Ho, kw:kw + Wo, :].reshape(
            td * Ho * Wo, Cin)
        acc = acc + jnp.dot(patch, w_ref[t],
                            preferred_element_type=jnp.float32)
        t += 1
  o_ref[...] = (acc + b_ref[...]).reshape(td, Ho, Wo, Cout).astype(o_ref.dtype)


# ---------------------------------------------------------------------------
# pallas_call wrappers
# ---------------------------------------------------------------------------
def _pick_row_tile(m):
  # Large row tiles: per-grid-step overhead dominates tiny blocks; a
  # (4096, C) f32 tile is still only a few hundred KB of VMEM.
  for t in (4096, 2048, 1024, 512, 256, 128, 64, 32, 16, 8):
    if m % t == 0:
      return t
  return m  # full extent is always a legal block


def _pick_d_tile(do):
  # Largest tile that still leaves >= 2 grid steps along D (keeps both v7x
  # TensorCores busy, bounds per-step live ranges).
  for t in (128, 64, 32, 16, 8, 4, 2, 1):
    if do % t == 0 and do // t >= 2:
      return t
  return do


def _fused_pointwise(x, scale, shift, alpha, w, b):
  M, Cin = x.shape
  Cout = w.shape[1]
  tm = _pick_row_tile(M)
  assert tm == M or tm % 8 == 0
  return pl.pallas_call(
      _bn_prelu_matmul_kernel,
      out_shape=jax.ShapeDtypeStruct((M, Cout), jnp.float32),
      grid=(M // tm,),
      in_specs=[
          pl.BlockSpec((tm, Cin), lambda i: (i, 0)),
          pl.BlockSpec((1, Cin), lambda i: (0, 0)),
          pl.BlockSpec((1, Cin), lambda i: (0, 0)),
          pl.BlockSpec(memory_space=pltpu.MemorySpace.SMEM),
          pl.BlockSpec((Cin, Cout), lambda i: (0, 0)),
          pl.BlockSpec((1, Cout), lambda i: (0, 0)),
      ],
      out_specs=pl.BlockSpec((tm, Cout), lambda i: (i, 0)),
      compiler_params=pltpu.CompilerParams(dimension_semantics=("parallel",)),
  )(x, scale, shift, alpha, w, b)


def _fused_conv3d(xp, scale, shift, alpha, w_taps, b, *, k, td, Do, Ho, Wo,
                  Cin, Cout):
  N, Dp, Hp, Wp, _ = xp.shape
  kern = functools.partial(_bn_prelu_conv3d_kernel, k=k, td=td, Ho=Ho, Wo=Wo,
                           Cin=Cin, Cout=Cout)
  return pl.pallas_call(
      kern,
      out_shape=jax.ShapeDtypeStruct((N, Do, Ho, Wo, Cout), jnp.float32),
      grid=(N, Do // td),
      in_specs=[
          pl.BlockSpec((None, Dp, Hp, Wp, Cin), lambda n, d: (n, 0, 0, 0, 0)),
          pl.BlockSpec((1, 1, 1, Cin), lambda n, d: (0, 0, 0, 0)),
          pl.BlockSpec((1, 1, 1, Cin), lambda n, d: (0, 0, 0, 0)),
          pl.BlockSpec(memory_space=pltpu.MemorySpace.SMEM),
          pl.BlockSpec((k ** 3, Cin, Cout), lambda n, d: (0, 0, 0)),
          pl.BlockSpec((1, Cout), lambda n, d: (0, 0)),
      ],
      out_specs=pl.BlockSpec((None, td, Ho, Wo, Cout),
                             lambda n, d: (n, d, 0, 0, 0)),
      compiler_params=pltpu.CompilerParams(
          dimension_semantics=("parallel", "parallel")),
  )(xp, scale, shift, alpha, w_taps, b)


# ---------------------------------------------------------------------------
# ConvLayer forward (Pallas path) and pure-JAX reference
# ---------------------------------------------------------------------------
def conv_layer_forward(x, params, *, kernel=1, padding=0):
  """x: (N, Cin, D, H, W) PyTorch NCDHW -> (N, Cout, Do, Ho, Wo)."""
  N, Cin, D, H, W = x.shape
  Cout = params["conv_w"].shape[0]
  k, p = kernel, padding

  xt = jnp.transpose(x, (0, 2, 3, 4, 1)).astype(jnp.float32)   # NDHWC

  # BatchNorm train-mode batch stats folded into per-channel scale/shift.
  mean = jnp.mean(xt, axis=(0, 1, 2, 3))
  var = jnp.var(xt, axis=(0, 1, 2, 3))
  scale = params["bn_gamma"].astype(jnp.float32) / jnp.sqrt(var + BN_EPS)
  shift = params["bn_beta"].astype(jnp.float32) - mean * scale
  alpha = params["prelu"].reshape(1).astype(jnp.float32)       # SMEM scalar

  if k == 1 and p == 0:
    w = params["conv_w"].reshape(Cout, Cin).T.astype(jnp.float32)
    b = params["conv_b"].reshape(1, Cout).astype(jnp.float32)
    M = N * D * H * W
    out_flat = _fused_pointwise(xt.reshape(M, Cin), scale.reshape(1, Cin),
                                shift.reshape(1, Cin), alpha, w, b)
    out = out_flat.reshape(N, D, H, W, Cout)
  else:
    Do = D + 2 * p - k + 1
    Ho = H + 2 * p - k + 1
    Wo = W + 2 * p - k + 1
    if p > 0:
      # Sentinel pad: BN(-shift/scale) ~= 0, PReLU(~0) ~= 0, i.e. exactly
      # PyTorch's zero padding of the activated conv input (up to fp noise).
      pad_val = -shift / scale
      xp = jnp.broadcast_to(pad_val,
                            (N, D + 2 * p, H + 2 * p, W + 2 * p, Cin))
      xp = xp.at[:, p:p + D, p:p + H, p:p + W, :].set(xt)
    else:
      xp = xt
    w_taps = jnp.transpose(params["conv_w"], (2, 3, 4, 1, 0)).reshape(
        k ** 3, Cin, Cout).astype(jnp.float32)
    b = params["conv_b"].reshape(1, Cout).astype(jnp.float32)
    td = _pick_d_tile(Do)
    out = _fused_conv3d(xp, scale.reshape(1, 1, 1, Cin),
                        shift.reshape(1, 1, 1, Cin), alpha, w_taps, b,
                        k=k, td=td, Do=Do, Ho=Ho, Wo=Wo, Cin=Cin, Cout=Cout)
  return jnp.transpose(out, (0, 4, 1, 2, 3))


def conv_layer_reference(x, params, *, kernel=1, padding=0):
  """Independent pure-JAX reference (lax.conv_general_dilated)."""
  xt = jnp.transpose(x, (0, 2, 3, 4, 1)).astype(jnp.float32)
  m = jnp.mean(xt, axis=(0, 1, 2, 3))
  v = jnp.var(xt, axis=(0, 1, 2, 3))
  xn = (xt - m) / jnp.sqrt(v + BN_EPS) * params["bn_gamma"] + params["bn_beta"]
  act = jnp.where(xn >= 0, xn, params["prelu"] * xn)
  Kc = jnp.transpose(params["conv_w"], (2, 3, 4, 1, 0))        # DHWIO
  out = lax.conv_general_dilated(
      act, Kc, window_strides=(1, 1, 1), padding=[(padding, padding)] * 3,
      dimension_numbers=("NDHWC", "DHWIO", "NDHWC")) + params["conv_b"]
  return jnp.transpose(out, (0, 4, 1, 2, 3))


# ---------------------------------------------------------------------------
if __name__ == "__main__":
  N, D, H, W = 2, 16, 16, 16
  key = jax.random.PRNGKey(0)
  ks = jax.random.split(key, 10)

  def make_params(cin, cout, k, kk):
    return {
        "bn_gamma": 1.0 + 0.1 * jax.random.normal(kk[0], (cin,), jnp.float32),
        "bn_beta": 0.1 * jax.random.normal(kk[1], (cin,), jnp.float32),
        "prelu": jnp.full((1,), 0.25, jnp.float32),    # nn.PReLU() default
        "conv_w": 0.1 * jax.random.normal(kk[2], (cout, cin, k, k, k),
                                          jnp.float32),
        "conv_b": 0.05 * jax.random.normal(kk[3], (cout,), jnp.float32),
    }

  def check(name, out, ref, expect_shape):
    assert out.shape == expect_shape, (name, out.shape)
    if not jnp.allclose(out, ref, rtol=2e-4, atol=2e-4):
      err = float(jnp.max(jnp.abs(out - ref)))
      raise AssertionError(f"{name}: Pallas mismatch, max abs err = {err}")

  # Config A: module defaults -> ConvLayer(8, 16) i.e. kernel=1, padding=0.
  pA = make_params(8, 16, 1, ks[0:4])
  xA = jax.random.normal(ks[8], (N, 8, D, H, W), jnp.float32)
  fA = jax.jit(functools.partial(conv_layer_forward, kernel=1, padding=0))
  outA = jax.block_until_ready(fA(xA, pA))
  refA = jax.block_until_ready(
      conv_layer_reference(xA, pA, kernel=1, padding=0))
  check("k1p0", outA, refA, (N, 16, D, H, W))

  # Config B: ConvLayer(8, 8, kernel=3, padding=1).
  pB = make_params(8, 8, 3, ks[4:8])
  xB = jax.random.normal(ks[9], (N, 8, D, H, W), jnp.float32)
  fB = jax.jit(functools.partial(conv_layer_forward, kernel=3, padding=1))
  outB = jax.block_until_ready(fB(xB, pB))
  refB = jax.block_until_ready(
      conv_layer_reference(xB, pB, kernel=3, padding=1))
  check("k3p1", outB, refB, (N, 8, D, H, W))

  print("KERNEL_OK")
</pallas_src>

<mosaic_0001>
module attributes {stable_mosaic.version = 11 : i64} {
  func.func @_bn_prelu_matmul_kernel(%arg0: i32, %arg1: memref<4096x8xf32, #tpu.memory_space<vmem>>, %arg2: memref<1x8xf32, #tpu.memory_space<vmem>>, %arg3: memref<1x8xf32, #tpu.memory_space<vmem>>, %arg4: memref<1xf32, #tpu.memory_space<smem>>, %arg5: memref<8x16xf32, #tpu.memory_space<vmem>>, %arg6: memref<1x16xf32, #tpu.memory_space<vmem>>, %arg7: memref<4096x16xf32, #tpu.memory_space<vmem>>) attributes {dimension_semantics = [#tpu.dimension_semantics<parallel>], iteration_bounds = array<i64: 2>, scalar_prefetch = 0 : i64, scratch_operands = 0 : i64, tpu.core_type = #tpu.core_type<tc>, window_params = [{transform_indices = @transform_0, window_bounds = array<i64: 4096, 8>}, {pipeline_mode = #tpu.pipeline_mode<synchronous>, transform_indices = @transform_1, window_bounds = array<i64: 1, 8>}, {pipeline_mode = #tpu.pipeline_mode<synchronous>, transform_indices = @transform_2, window_bounds = array<i64: 1, 8>}, {transform_indices = @transform_3, window_bounds = array<i64: 1>}, {pipeline_mode = #tpu.pipeline_mode<synchronous>, transform_indices = @transform_4, window_bounds = array<i64: 8, 16>}, {pipeline_mode = #tpu.pipeline_mode<synchronous>, transform_indices = @transform_5, window_bounds = array<i64: 1, 16>}, {transform_indices = @transform_6, window_bounds = array<i64: 4096, 16>}]} {
    %c0 = arith.constant 0 : index
    %c0_0 = arith.constant 0 : index
    %0 = vector.load %arg1[%c0, %c0_0] : memref<4096x8xf32, #tpu.memory_space<vmem>>, vector<4096x8xf32>
    %c0_1 = arith.constant 0 : index
    %c0_2 = arith.constant 0 : index
    %1 = vector.load %arg2[%c0_1, %c0_2] : memref<1x8xf32, #tpu.memory_space<vmem>>, vector<1x8xf32>
    %2 = vector.broadcast %1 : vector<1x8xf32> to vector<4096x8xf32>
    %3 = arith.mulf %0, %2 : vector<4096x8xf32>
    %c0_3 = arith.constant 0 : index
    %c0_4 = arith.constant 0 : index
    %4 = vector.load %arg3[%c0_3, %c0_4] : memref<1x8xf32, #tpu.memory_space<vmem>>, vector<1x8xf32>
    %5 = vector.broadcast %4 : vector<1x8xf32> to vector<4096x8xf32>
    %6 = arith.addf %3, %5 : vector<4096x8xf32>
    %c0_5 = arith.constant 0 : index
    %7 = memref.load %arg4[%c0_5] : memref<1xf32, #tpu.memory_space<smem>>
    %cst = arith.constant 0.000000e+00 : f32
    %8 = vector.broadcast %cst : f32 to vector<4096x8xf32>
    %9 = arith.cmpf oge, %6, %8 : vector<4096x8xf32>
    %10 = vector.broadcast %7 : f32 to vector<4096x8xf32>
    %11 = arith.mulf %10, %6 : vector<4096x8xf32>
    %12 = arith.select %9, %6, %11 : vector<4096x8xi1>, vector<4096x8xf32>
    %c0_6 = arith.constant 0 : index
    %c0_7 = arith.constant 0 : index
    %13 = vector.load %arg5[%c0_6, %c0_7] : memref<8x16xf32, #tpu.memory_space<vmem>>, vector<8x16xf32>
    %cst_8 = arith.constant dense<0.000000e+00> : vector<4096x16xf32>
    %14 = tpu.matmul %12, %13, %cst_8 {dimension_numbers = #tpu.dot_dimension_numbers<[1], [0], [0], [1], [0, 0, 1, 1], [], []>} : vector<4096x8xf32>, vector<8x16xf32>, vector<4096x16xf32> -> vector<4096x16xf32>
    %c0_9 = arith.constant 0 : index
    %c0_10 = arith.constant 0 : index
    %15 = vector.load %arg6[%c0_9, %c0_10] : memref<1x16xf32, #tpu.memory_space<vmem>>, vector<1x16xf32>
    %16 = vector.broadcast %15 : vector<1x16xf32> to vector<4096x16xf32>
    %17 = arith.addf %14, %16 : vector<4096x16xf32>
    %c0_11 = arith.constant 0 : index
    %c0_12 = arith.constant 0 : index
    %18 = vector.load %arg7[%c0_11, %c0_12] : memref<4096x16xf32, #tpu.memory_space<vmem>>, vector<4096x16xf32>
    tpu.vector_store %arg7[%c0_11, %c0_12], %17 {strides = array<i32>} : memref<4096x16xf32, #tpu.memory_space<vmem>>, vector<4096x16xf32>,
    return
  }
  func.func @transform_0(%arg0: i32) -> (i32, i32) {
    %c0_i32 = arith.constant 0 : i32
    %c0_i32_0 = arith.constant 0 : i32
    return %arg0, %c0_i32 : i32, i32
  }
  func.func @transform_1(%arg0: i32) -> (i32, i32) {
    %c0_i32 = arith.constant 0 : i32
    %c0_i32_0 = arith.constant 0 : i32
    %c0_i32_1 = arith.constant 0 : i32
    return %c0_i32, %c0_i32_0 : i32, i32
  }
  func.func @transform_2(%arg0: i32) -> (i32, i32) {
    %c0_i32 = arith.constant 0 : i32
    %c0_i32_0 = arith.constant 0 : i32
    %c0_i32_1 = arith.constant 0 : i32
    return %c0_i32, %c0_i32_0 : i32, i32
  }
  func.func @transform_3(%arg0: i32) -> i32 {
    %c0_i32 = arith.constant 0 : i32
    %c0_i32_0 = arith.constant 0 : i32
    return %c0_i32 : i32
  }
  func.func @transform_4(%arg0: i32) -> (i32, i32) {
    %c0_i32 = arith.constant 0 : i32
    %c0_i32_0 = arith.constant 0 : i32
    %c0_i32_1 = arith.constant 0 : i32
    return %c0_i32, %c0_i32_0 : i32, i32
  }
  func.func @transform_5(%arg0: i32) -> (i32, i32) {
    %c0_i32 = arith.constant 0 : i32
    %c0_i32_0 = arith.constant 0 : i32
    %c0_i32_1 = arith.constant 0 : i32
    return %c0_i32, %c0_i32_0 : i32, i32
  }
  func.func @transform_6(%arg0: i32) -> (i32, i32) {
    %c0_i32 = arith.constant 0 : i32
    %c0_i32_0 = arith.constant 0 : i32
    return %arg0, %c0_i32 : i32, i32
  }
}

</mosaic_0001>

<bundles_post_ra>
// kernel: conv_layer_forward.1
= control target key start
LH: loop header
LB: loop body
LE: loop exit
PB: predicated region body
PF: predicated region fallthrough
CT: control target
= control target key end

     0   :  { %s9971_s23 = smov 0   ;;  %s15545_s0 = inlined_call_operand.vmem [shape: f32[8192,8], index: 0, kind: input, shape index: {}]   ;;  %s15546_s1 = inlined_call_operand.vmem [shape: f32[1,8], index: 1, kind: input, shape index: {}]   ;;  %s15547_s2 = inlined_call_operand.vmem [shape: f32[1,8], index: 2, kind: input, shape index: {}]   ;;  %s15548_s3 = inlined_call_operand.<no memory space> [shape: f32[1], index: 3, kind: input, shape index: {}]   ;;  %s15549_s4 = inlined_call_operand.vmem [shape: f32[8,16], index: 4, kind: input, shape index: {}]   ;;  %s15550_s5 = inlined_call_operand.vmem [shape: f32[1,16], index: 5, kind: input, shape index: {}]   ;;  %s15551_s6 = inlined_call_operand.vmem [shape: f32[8192,16], index: 6, kind: output, shape index: {}]  }
   0x1   :  { %11 = sst [smem:[#allocation2]] %s15548_s3 }
   0x2 LB: > { %s8083_s24 = sadd.s32 4294967295, %s9931_s23   ;;  %p8087_p0 = scmp.ge.s32.totalorder %s9931_s23, 1  ;;  %s9931_s23 = sphi %s9971_s23, %s17_s23  }
   0x3   : > { %p214_p1 = scmp.lt.s32.totalorder %s9931_s23, 3 }
   0x5   : > { %p215_p2 = pnand %p8087_p0, %p214_p1 }
   0x7   : > { %218 = sbr.rel (%p215_p2) target bundleno = 972 (0x3cc), region = 44 }
   0xc   : > { %v3344_v0 = vld [vmem:[%s15549_s4] sm:$0xff]  ;;  %s8088_s3 = sshll.u32 %s8083_s24, 9  ;;  %s1806_s27 = sld [smem:[#allocation2]]  ;;  %vm3352_vm0 = vcmask 64512  }
   0xd   : > { %9122 = vmatprep.subr.mxu0 %v3344_v0  ;;  %9892 = vmatprep.subr.mxu1 %v3344_v0  ;;  %p245_p3 = scmp.lt.s32.totalorder %s8088_s3, 1023  ;;  %v9988_v1 = vld [vmem:[%s15546_s1] ss:$0 sm:$0xff] }
   0xe   : > { %9123 = vmatpush3.msra.mxu0 %v3344_v0  ;;  %9893 = vmatpush3.msra.mxu1 %v3344_v0  ;;  %v10000_v2 = vld [vmem:[%s15547_s2] ss:$0 sm:$0xff] }
   0xf   : > { %s15721_s3 = smov (!%p245_p3, %s8088_s3), 1023 }
  0x10   : > { %s8089_s28 = sshll.u32 %s15721_s3, 3 }
  0x11   : > { %s9995_s9 = scalar_lea.vmem %s15545_s0, %s8089_s28  ;;  %s11070_s25 = scalar_lea.vmem %s15551_s6, %s8089_s28 }
  0x12   : > { %v256_v3 = vld [vmem:[%s9995_s9] sm:$0xff]  ;;  %v257_v5 = vld [vmem:[%s9995_s9 + $0x8] sm:$0xff]  ;;  %v258_v10 = vld [vmem:[%s9995_s9 + $0x10] sm:$0xff]  ;;  %v10011_v12 = vstv %s1806_s27 }
  0x13   : > { %v512_v4 = vld [vmem:[%s9995_s9 + $0x800] sm:$0xff]  ;;  %v775_v6 = vmul.f32 %v9988_v1, %v256_v3  ;;  %v776_v8 = vmul.f32 %v9988_v1, %v257_v5  ;;  %v513_v9 = vld [vmem:[%s9995_s9 + $0x808] sm:$0xff]  ;;  %v514_v11 = vld [vmem:[%s9995_s9 + $0x810] sm:$0xff]  ;;  %v777_v14 = vmul.f32 %v9988_v1, %v258_v10 }
  0x14   : > { %v1031_v7 = vmul.f32 %v9988_v1, %v512_v4  ;;  %v1032_v13 = vmul.f32 %v9988_v1, %v513_v9  ;;  %v1033_v15 = vmul.f32 %v9988_v1, %v514_v11  ;;  %v259_v16 = vld [vmem:[%s9995_s9 + $0x18] sm:$0xff]  ;;  %v260_v33 = vld [vmem:[%s9995_s9 + $0x20] sm:$0xff]  ;;  %v261_v35 = vld [vmem:[%s9995_s9 + $0x28] sm:$0xff] }
  0x15   : > { %v515_v17 = vld [vmem:[%s9995_s9 + $0x818] sm:$0xff]  ;;  %v1294_v18 = vadd.f32 %v10000_v2, %v775_v6  ;;  %v1295_v20 = vadd.f32 %v10000_v2, %v776_v8  ;;  %v778_v21 = vmul.f32 %v9988_v1, %v259_v16  ;;  %v1296_v23 = vadd.f32 %v10000_v2, %v777_v14  ;;  %v516_v34 = vld [vmem:[%s9995_s9 + $0x820] sm:$0xff]  ;;  %v517_v42 = vld [vmem:[%s9995_s9 + $0x828] sm:$0xff] }
  0x16   : > { %v1550_v19 = vadd.f32 %v10000_v2, %v1031_v7  ;;  %v1551_v22 = vadd.f32 %v10000_v2, %v1032_v13  ;;  %v1552_v24 = vadd.f32 %v10000_v2, %v1033_v15  ;;  %v1034_v25 = vmul.f32 %v9988_v1, %v515_v17  ;;  %v262_v47 = vld [vmem:[%s9995_s9 + $0x30] sm:$0xff]  ;;  %v263_v59 = vld [vmem:[%s9995_s9 + $0x38] sm:$0xff]  ;;  %v264_v8 = vld [vmem:[%s9995_s9 + $0x40] sm:$0xff] }
  0x17   : > { %vm1807_vm1 = vcmp.ge.f32.partialorder %v1294_v18, 0.0  ;;  %v2320_v26 = vmul.f32 %v10011_v12, %v1294_v18  ;;  %vm1808_vm3 = vcmp.ge.f32.partialorder %v1295_v20, 0.0  ;;  %v2321_v28 = vmul.f32 %v10011_v12, %v1295_v20  ;;  %v518_v48 = vld [vmem:[%s9995_s9 + $0x830] sm:$0xff]  ;;  %v519_v7 = vld [vmem:[%s9995_s9 + $0x838] sm:$0xff]  ;;  %v520_v9 = vld [vmem:[%s9995_s9 + $0x840] sm:$0xff] }
  0x18   : > { %vm2063_vm2 = vcmp.ge.f32.partialorder %v1550_v19, 0.0  ;;  %v2576_v27 = vmul.f32 %v10011_v12, %v1550_v19  ;;  %vm2064_vm4 = vcmp.ge.f32.partialorder %v1551_v22, 0.0  ;;  %v2577_v29 = vmul.f32 %v10011_v12, %v1551_v22 }
  0x19   : > { %v2832_v30 = vsel %vm1807_vm1, %v1294_v18, %v2320_v26  ;;  %vm1809_vm5 = vcmp.ge.f32.partialorder %v1296_v23, 0.0  ;;  %v2322_v32 = vmul.f32 %v10011_v12, %v1296_v23  ;;  %v2833_v36 = vsel %vm1808_vm3, %v1295_v20, %v2321_v28  ;;  %v265_v20 = vld [vmem:[%s9995_s9 + $0x48] sm:$0xff] }
  0x1a   : > { %v3088_v31 = vsel %vm2063_vm2, %v1550_v19, %v2576_v27  ;;  %9124 = vmatprep.mubr.msk.f32.mxu0 %vm3352_vm0, %v2832_v30  ;;  %v3089_v37 = vsel %vm2064_vm4, %v1551_v22, %v2577_v29  ;;  %vm2065_vm6 = vcmp.ge.f32.partialorder %v1552_v24, 0.0  ;;  %v2578_v38 = vmul.f32 %v10011_v12, %v1552_v24  ;;  %v266_v22 = vld [vmem:[%s9995_s9 + $0x50] sm:$0xff] }
  0x1b   : > { %9508 = vmatprep.mubr.msk.f32.mxu1 %vm3352_vm0, %v3088_v31  ;;  %9125 = vmatmul.mubr.msk.f32.vlgmr.msra.gmra.mxu0 %vm3352_vm0, %v2833_v36  ;;  %v2834_v39 = vsel %vm1809_vm5, %v1296_v23, %v2322_v32  ;;  %v1297_v40 = vadd.f32 %v10000_v2, %v778_v21  ;;  %v1553_v41 = vadd.f32 %v10000_v2, %v1034_v25  ;;  %v521_v21 = vld [vmem:[%s9995_s9 + $0x848] sm:$0xff] }
  0x1c   : > { %9509 = vmatmul.mubr.msk.f32.vlgmr.msra.gmra.mxu1 %vm3352_vm0, %v3089_v37  ;;  %9127 = vmatprep.mubr.msk.f32.mxu0 %vm3352_vm0, %v2834_v39  ;;  %v3090_v43 = vsel %vm2065_vm6, %v1552_v24, %v2578_v38  ;;  %v779_v44 = vmul.f32 %v9988_v1, %v260_v33  ;;  %v1035_v45 = vmul.f32 %v9988_v1, %v516_v34  ;;  %v522_v33 = vld [vmem:[%s9995_s9 + $0x850] sm:$0xff] }
  0x1d   : > { %v780_v46 = vmul.f32 %v9988_v1, %v261_v35  ;;  %9511 = vmatprep.mubr.msk.f32.mxu1 %vm3352_vm0, %v3090_v43  ;;  %vm1810_vm7 = vcmp.ge.f32.partialorder %v1297_v40, 0.0  ;;  %v2323_v49 = vmul.f32 %v10011_v12, %v1297_v40  ;;  %vm2066_vm8 = vcmp.ge.f32.partialorder %v1553_v41, 0.0  ;;  %v267_v43 = vld [vmem:[%s9995_s9 + $0x58] sm:$0xff] }
  0x1e   : > { %v2579_v50 = vmul.f32 %v10011_v12, %v1553_v41  ;;  %v1298_v51 = vadd.f32 %v10000_v2, %v779_v44  ;;  %v1554_v52 = vadd.f32 %v10000_v2, %v1035_v45  ;;  %v1036_v54 = vmul.f32 %v9988_v1, %v517_v42  ;;  %v523_v44 = vld [vmem:[%s9995_s9 + $0x858] sm:$0xff]  ;;  %v268_v45 = vld [vmem:[%s9995_s9 + $0x60] sm:$0xff] }
  0x1f   : > { %v1299_v53 = vadd.f32 %v10000_v2, %v780_v46  ;;  %v2835_v55 = vsel %vm1810_vm7, %v1297_v40, %v2323_v49  ;;  %v781_v57 = vmul.f32 %v9988_v1, %v262_v47  ;;  %v1037_v58 = vmul.f32 %v9988_v1, %v518_v48 }
  0x20   : > { %v3091_v56 = vsel %vm2066_vm8, %v1553_v41, %v2579_v50  ;;  %9128 = vmatmul.mubr.msk.f32.gmra.mxu0 %vm3352_vm0, %v2835_v55  ;;  %vm1811_vm9 = vcmp.ge.f32.partialorder %v1298_v51, 0.0  ;;  %v2324_v60 = vmul.f32 %v10011_v12, %v1298_v51  ;;  %vm2067_vm10 = vcmp.ge.f32.partialorder %v1554_v52, 0.0  ;;  %v524_v55 = vld [vmem:[%s9995_s9 + $0x860] sm:$0xff] }
  0x21   : > { %9512 = vmatmul.mubr.msk.f32.gmra.mxu1 %vm3352_vm0, %v3091_v56  ;;  %v2580_v61 = vmul.f32 %v10011_v12, %v1554_v52  ;;  %vm1812_vm11 = vcmp.ge.f32.partialorder %v1299_v53, 0.0  ;;  %v2325_v62 = vmul.f32 %v10011_v12, %v1299_v53  ;;  %v1555_v63 = vadd.f32 %v10000_v2, %v1036_v54  ;;  %v269_v56 = vld [vmem:[%s9995_s9 + $0x68] sm:$0xff] }
  0x22   : > { %v1300_v0 = vadd.f32 %v10000_v2, %v781_v57  ;;  %v2836_v3 = vsel %vm1811_vm9, %v1298_v51, %v2324_v60  ;;  %v1556_v5 = vadd.f32 %v10000_v2, %v1037_v58  ;;  %v782_v6 = vmul.f32 %v9988_v1, %v263_v59  ;;  %v525_v57 = vld [vmem:[%s9995_s9 + $0x868] sm:$0xff] }
  0x23   : > { %v3092_v4 = vsel %vm2067_vm10, %v1554_v52, %v2580_v61  ;;  %9130 = vmatprep.mubr.msk.f32.mxu0 %vm3352_vm0, %v2836_v3  ;;  %v2837_v10 = vsel %vm1812_vm11, %v1299_v53, %v2325_v62  ;;  %vm2068_vm12 = vcmp.ge.f32.partialorder %v1555_v63, 0.0  ;;  %v2581_v11 = vmul.f32 %v10011_v12, %v1555_v63 }
  0x24   : > { %9514 = vmatprep.mubr.msk.f32.mxu1 %vm3352_vm0, %v3092_v4  ;;  %vm1813_vm13 = vcmp.ge.f32.partialorder %v1300_v0, 0.0  ;;  %9131 = vmatmul.mubr.msk.f32.gmra.mxu0 %vm3352_vm0, %v2837_v10  ;;  %v2326_v13 = vmul.f32 %v10011_v12, %v1300_v0  ;;  %vm2069_vm14 = vcmp.ge.f32.partialorder %v1556_v5, 0.0  ;;  %v2582_v14 = vmul.f32 %v10011_v12, %v1556_v5 }
  0x25   : > { %v1301_v15 = vadd.f32 %v10000_v2, %v782_v6  ;;  %v3093_v16 = vsel %vm2068_vm12, %v1555_v63, %v2581_v11  ;;  %v1038_v17 = vmul.f32 %v9988_v1, %v519_v7  ;;  %v783_v18 = vmul.f32 %v9988_v1, %v264_v8  ;;  %v270_v6 = vld [vmem:[%s9995_s9 + $0x70] sm:$0xff] }
  0x26   : > { %v1039_v19 = vmul.f32 %v9988_v1, %v520_v9  ;;  %9515 = vmatmul.mubr.msk.f32.gmra.mxu1 %vm3352_vm0, %v3093_v16  ;;  %v2838_v23 = vsel %vm1813_vm13, %v1300_v0, %v2326_v13  ;;  %v3094_v24 = vsel %vm2069_vm14, %v1556_v5, %v2582_v14  ;;  %v784_v30 = vmul.f32 %v9988_v1, %v265_v20 }
  0x27   : > { %vm1814_vm15 = vcmp.ge.f32.partialorder %v1301_v15, 0.0  ;;  %v2327_v25 = vmul.f32 %v10011_v12, %v1301_v15  ;;  %9133 = vmatprep.mubr.msk.f32.mxu0 %vm3352_vm0, %v2838_v23  ;;  %9517 = vmatprep.mubr.msk.f32.mxu1 %vm3352_vm0, %v3094_v24  ;;  %v1557_v26 = vadd.f32 %v10000_v2, %v1038_v17  ;;  %v1302_v27 = vadd.f32 %v10000_v2, %v783_v18  ;;  %v526_v17 = vld [vmem:[%s9995_s9 + $0x870] sm:$0xff]  ;;  %v271_v18 = vld [vmem:[%s9995_s9 + $0x78] sm:$0xff] }
  0x28   : > { %v1558_v28 = vadd.f32 %v10000_v2, %v1039_v19  ;;  %v1040_v31 = vmul.f32 %v9988_v1, %v521_v21  ;;  %v785_v32 = vmul.f32 %v9988_v1, %v266_v22  ;;  %v1303_v37 = vadd.f32 %v10000_v2, %v784_v30  ;;  %v527_v19 = vld [vmem:[%s9995_s9 + $0x878] sm:$0xff]  ;;  %v528_v30 = vld [vmem:[%s9995_s9 + $0x880] sm:$0xff] }
  0x29   : > { %v2839_v29 = vsel %vm1814_vm15, %v1301_v15, %v2327_v25  ;;  %vm2070_vm1 = vcmp.ge.f32.partialorder %v1557_v26, 0.0  ;;  %v2583_v34 = vmul.f32 %v10011_v12, %v1557_v26  ;;  %vm1815_vm2 = vcmp.ge.f32.partialorder %v1302_v27, 0.0 }
  0x2a   : > { %9134 = vmatmul.mubr.msk.f32.gmra.mxu0 %vm3352_vm0, %v2839_v29  ;;  %v2328_v35 = vmul.f32 %v10011_v12, %v1302_v27  ;;  %vm2071_vm3 = vcmp.ge.f32.partialorder %v1558_v28, 0.0  ;;  %v2584_v36 = vmul.f32 %v10011_v12, %v1558_v28  ;;  %v1559_v38 = vadd.f32 %v10000_v2, %v1040_v31  ;;  %v272_v29 = vld [vmem:[%s9995_s9 + $0x80] sm:$0xff]  ;;  %v273_v31 = vld [vmem:[%s9995_s9 + $0x88] sm:$0xff] }
  0x2b   : > { %v3095_v39 = vsel %vm2070_vm1, %v1557_v26, %v2583_v34  ;;  %v1304_v41 = vadd.f32 %v10000_v2, %v785_v32  ;;  %v1041_v42 = vmul.f32 %v9988_v1, %v522_v33  ;;  %vm1816_vm4 = vcmp.ge.f32.partialorder %v1303_v37, 0.0 }
  0x2c   : > { %v2840_v40 = vsel %vm1815_vm2, %v1302_v27, %v2328_v35  ;;  %9518 = vmatmul.mubr.msk.f32.gmra.mxu1 %vm3352_vm0, %v3095_v39  ;;  %v3096_v46 = vsel %vm2071_vm3, %v1558_v28, %v2584_v36  ;;  %v2329_v47 = vmul.f32 %v10011_v12, %v1303_v37  ;;  %vm2072_vm5 = vcmp.ge.f32.partialorder %v1559_v38, 0.0 }
  0x2d   : > { %9136 = vmatprep.mubr.msk.f32.mxu0 %vm3352_vm0, %v2840_v40  ;;  %9520 = vmatprep.mubr.msk.f32.mxu1 %vm3352_vm0, %v3096_v46  ;;  %v2585_v48 = vmul.f32 %v10011_v12, %v1559_v38  ;;  %vm1817_vm6 = vcmp.ge.f32.partialorder %v1304_v41, 0.0  ;;  %v2330_v49 = vmul.f32 %v10011_v12, %v1304_v41  ;;  %v1560_v50 = vadd.f32 %v10000_v2, %v1041_v42  ;;  %v529_v42 = vld [vmem:[%s9995_s9 + $0x888] sm:$0xff] }
  0x2e   : > { %v2841_v51 = vsel %vm1816_vm4, %v1303_v37, %v2329_v47  ;;  %v786_v52 = vmul.f32 %v9988_v1, %v267_v43  ;;  %v1042_v53 = vmul.f32 %v9988_v1, %v523_v44  ;;  %v787_v54 = vmul.f32 %v9988_v1, %v268_v45 }
  0x2f   : > { %9137 = vmatmul.mubr.msk.f32.gmra.mxu0 %vm3352_vm0, %v2841_v51  ;;  %v3097_v58 = vsel %vm2072_vm5, %v1559_v38, %v2585_v48  ;;  %v2842_v59 = vsel %vm1817_vm6, %v1304_v41, %v2330_v49  ;;  %vm2073_vm7 = vcmp.ge.f32.partialorder %v1560_v50, 0.0  ;;  %v2586_v60 = vmul.f32 %v10011_v12, %v1560_v50 }
  0x30   : > { %9521 = vmatmul.mubr.msk.f32.gmra.mxu1 %vm3352_vm0, %v3097_v58  ;;  %9139 = vmatprep.mubr.msk.f32.mxu0 %vm3352_vm0, %v2842_v59  ;;  %v1305_v61 = vadd.f32 %v10000_v2, %v786_v52  ;;  %v1561_v62 = vadd.f32 %v10000_v2, %v1042_v53  ;;  %v1306_v63 = vadd.f32 %v10000_v2, %v787_v54  ;;  %v274_v52 = vld [vmem:[%s9995_s9 + $0x90] sm:$0xff]  ;;  %v275_v54 = vld [vmem:[%s9995_s9 + $0x98] sm:$0xff] }
  0x31   : > { %v3098_v0 = vsel %vm2073_vm7, %v1560_v50, %v2586_v60  ;;  %v1043_v3 = vmul.f32 %v9988_v1, %v524_v55  ;;  %v788_v4 = vmul.f32 %v9988_v1, %v269_v56  ;;  %v1044_v5 = vmul.f32 %v9988_v1, %v525_v57  ;;  %v530_v53 = vld [vmem:[%s9995_s9 + $0x890] sm:$0xff] }
  0x32   : > { %9523 = vmatprep.mubr.msk.f32.mxu1 %vm3352_vm0, %v3098_v0  ;;  %vm1818_vm8 = vcmp.ge.f32.partialorder %v1305_v61, 0.0  ;;  %v2331_v7 = vmul.f32 %v10011_v12, %v1305_v61  ;;  %vm2074_vm9 = vcmp.ge.f32.partialorder %v1561_v62, 0.0  ;;  %v2587_v8 = vmul.f32 %v10011_v12, %v1561_v62  ;;  %v531_v0 = vld [vmem:[%s9995_s9 + $0x898] sm:$0xff] }
  0x33   : > { %vm1819_vm10 = vcmp.ge.f32.partialorder %v1306_v63, 0.0  ;;  %v2332_v9 = vmul.f32 %v10011_v12, %v1306_v63  ;;  %v1562_v10 = vadd.f32 %v10000_v2, %v1043_v3  ;;  %v1307_v11 = vadd.f32 %v10000_v2, %v788_v4  ;;  %v276_v3 = vld [vmem:[%s9995_s9 + $0xa0] sm:$0xff] }
  0x34   : > { %v2843_v13 = vsel %vm1818_vm8, %v1305_v61, %v2331_v7  ;;  %v3099_v14 = vsel %vm2074_vm9, %v1561_v62, %v2587_v8  ;;  %v1563_v15 = vadd.f32 %v10000_v2, %v1044_v5  ;;  %v789_v16 = vmul.f32 %v9988_v1, %v270_v6  ;;  %v532_v4 = vld [vmem:[%s9995_s9 + $0x8a0] sm:$0xff] }
  0x35   : > { %9140 = vmatmul.mubr.msk.f32.gmra.mxu0 %vm3352_vm0, %v2843_v13  ;;  %9524 = vmatmul.mubr.msk.f32.gmra.mxu1 %vm3352_vm0, %v3099_v14  ;;  %v2844_v20 = vsel %vm1819_vm10, %v1306_v63, %v2332_v9  ;;  %vm2075_vm11 = vcmp.ge.f32.partialorder %v1562_v10, 0.0  ;;  %v2588_v21 = vmul.f32 %v10011_v12, %v1562_v10  ;;  %vm1820_vm12 = vcmp.ge.f32.partialorder %v1307_v11, 0.0 }
  0x36   : > { %9142 = vmatprep.mubr.msk.f32.mxu0 %vm3352_vm0, %v2844_v20  ;;  %v2333_v22 = vmul.f32 %v10011_v12, %v1307_v11  ;;  %vm2076_vm13 = vcmp.ge.f32.partialorder %v1563_v15, 0.0  ;;  %v2589_v23 = vmul.f32 %v10011_v12, %v1563_v15  ;;  %v1308_v24 = vadd.f32 %v10000_v2, %v789_v16  ;;  %v277_v16 = vld [vmem:[%s9995_s9 + $0xa8] sm:$0xff] }
  0x37   : > { %v3100_v25 = vsel %vm2075_vm11, %v1562_v10, %v2588_v21  ;;  %v1045_v26 = vmul.f32 %v9988_v1, %v526_v17  ;;  %v790_v27 = vmul.f32 %v9988_v1, %v271_v18  ;;  %v1046_v28 = vmul.f32 %v9988_v1, %v527_v19 }
  0x38   : > { %9526 = vmatprep.mubr.msk.f32.mxu1 %vm3352_vm0, %v3100_v25  ;;  %v2845_v32 = vsel %vm1820_vm12, %v1307_v11, %v2333_v22  ;;  %v3101_v33 = vsel %vm2076_vm13, %v1563_v15, %v2589_v23  ;;  %vm1821_vm14 = vcmp.ge.f32.partialorder %v1308_v24, 0.0  ;;  %v2334_v34 = vmul.f32 %v10011_v12, %v1308_v24 }
  0x39   : > { %9143 = vmatmul.mubr.msk.f32.gmra.mxu0 %vm3352_vm0, %v2845_v32  ;;  %9527 = vmatmul.mubr.msk.f32.gmra.mxu1 %vm3352_vm0, %v3101_v33  ;;  %v1564_v35 = vadd.f32 %v10000_v2, %v1045_v26  ;;  %v1309_v36 = vadd.f32 %v10000_v2, %v790_v27  ;;  %v1565_v37 = vadd.f32 %v10000_v2, %v1046_v28  ;;  %v533_v26 = vld [vmem:[%s9995_s9 + $0x8a8] sm:$0xff]  ;;  %v278_v27 = vld [vmem:[%s9995_s9 + $0xb0] sm:$0xff] }
  0x3a   : > { %v2846_v38 = vsel %vm1821_vm14, %v1308_v24, %v2334_v34  ;;  %v791_v39 = vmul.f32 %v9988_v1, %v272_v29  ;;  %v1047_v40 = vmul.f32 %v9988_v1, %v528_v30  ;;  %v792_v41 = vmul.f32 %v9988_v1, %v273_v31  ;;  %v534_v28 = vld [vmem:[%s9995_s9 + $0x8b0] sm:$0xff] }
  0x3b   : > { %9145 = vmatprep.mubr.msk.f32.mxu0 %vm3352_vm0, %v2846_v38  ;;  %vm2077_vm15 = vcmp.ge.f32.partialorder %v1564_v35, 0.0  ;;  %v2590_v43 = vmul.f32 %v10011_v12, %v1564_v35  ;;  %vm1822_vm1 = vcmp.ge.f32.partialorder %v1309_v36, 0.0  ;;  %v2335_v44 = vmul.f32 %v10011_v12, %v1309_v36  ;;  %v279_v38 = vld [vmem:[%s9995_s9 + $0xb8] sm:$0xff] }
  0x3c   : > { %vm2078_vm2 = vcmp.ge.f32.partialorder %v1565_v37, 0.0  ;;  %v2591_v45 = vmul.f32 %v10011_v12, %v1565_v37  ;;  %v1310_v46 = vadd.f32 %v10000_v2, %v791_v39  ;;  %v1566_v47 = vadd.f32 %v10000_v2, %v1047_v40  ;;  %v535_v39 = vld [vmem:[%s9995_s9 + $0x8b8] sm:$0xff]  ;;  %v280_v40 = vld [vmem:[%s9995_s9 + $0xc0] sm:$0xff] }
  0x3d   : > { %v3102_v48 = vsel %vm2077_vm15, %v1564_v35, %v2590_v43  ;;  %v2847_v49 = vsel %vm1822_vm1, %v1309_v36, %v2335_v44  ;;  %v1311_v50 = vadd.f32 %v10000_v2, %v792_v41  ;;  %v1048_v51 = vmul.f32 %v9988_v1, %v529_v42 }
  0x3e   : > { %9529 = vmatprep.mubr.msk.f32.mxu1 %vm3352_vm0, %v3102_v48  ;;  %9146 = vmatmul.mubr.msk.f32.gmra.mxu0 %vm3352_vm0, %v2847_v49  ;;  %v3103_v55 = vsel %vm2078_vm2, %v1565_v37, %v2591_v45  ;;  %vm1823_vm3 = vcmp.ge.f32.partialorder %v1310_v46, 0.0  ;;  %v2336_v56 = vmul.f32 %v10011_v12, %v1310_v46  ;;  %vm2079_vm4 = vcmp.ge.f32.partialorder %v1566_v47, 0.0 }
  0x3f   : > { %9530 = vmatmul.mubr.msk.f32.gmra.mxu1 %vm3352_vm0, %v3103_v55  ;;  %v2592_v57 = vmul.f32 %v10011_v12, %v1566_v47  ;;  %vm1824_vm5 = vcmp.ge.f32.partialorder %v1311_v50, 0.0  ;;  %v2337_v58 = vmul.f32 %v10011_v12, %v1311_v50  ;;  %v1567_v59 = vadd.f32 %v10000_v2, %v1048_v51  ;;  %v536_v51 = vld [vmem:[%s9995_s9 + $0x8c0] sm:$0xff] }
  0x40   : > { %v2848_v60 = vsel %vm1823_vm3, %v1310_v46, %v2336_v56  ;;  %v793_v61 = vmul.f32 %v9988_v1, %v274_v52  ;;  %v1049_v62 = vmul.f32 %v9988_v1, %v530_v53  ;;  %v794_v63 = vmul.f32 %v9988_v1, %v275_v54 }
  0x41   : > { %9148 = vmatprep.mubr.msk.f32.mxu0 %vm3352_vm0, %v2848_v60  ;;  %v3104_v5 = vsel %vm2079_vm4, %v1566_v47, %v2592_v57  ;;  %v2849_v6 = vsel %vm1824_vm5, %v1311_v50, %v2337_v58  ;;  %vm2080_vm6 = vcmp.ge.f32.partialorder %v1567_v59, 0.0  ;;  %v2593_v7 = vmul.f32 %v10011_v12, %v1567_v59 }
  0x42   : > { %9532 = vmatprep.mubr.msk.f32.mxu1 %vm3352_vm0, %v3104_v5  ;;  %9149 = vmatmul.mubr.msk.f32.gmra.mxu0 %vm3352_vm0, %v2849_v6  ;;  %v1312_v8 = vadd.f32 %v10000_v2, %v793_v61  ;;  %v1568_v9 = vadd.f32 %v10000_v2, %v1049_v62  ;;  %v1313_v10 = vadd.f32 %v10000_v2, %v794_v63  ;;  %v281_v61 = vld [vmem:[%s9995_s9 + $0xc8] sm:$0xff]  ;;  %v282_v63 = vld [vmem:[%s9995_s9 + $0xd0] sm:$0xff] }
  0x43   : > { %v3105_v11 = vsel %vm2080_vm6, %v1567_v59, %v2593_v7  ;;  %v1050_v13 = vmul.f32 %v9988_v1, %v531_v0  ;;  %v795_v14 = vmul.f32 %v9988_v1, %v276_v3  ;;  %v1051_v15 = vmul.f32 %v9988_v1, %v532_v4  ;;  %v537_v62 = vld [vmem:[%s9995_s9 + $0x8c8] sm:$0xff] }
  0x44   : > { %9533 = vmatmul.mubr.msk.f32.gmra.mxu1 %vm3352_vm0, %v3105_v11  ;;  %vm1825_vm7 = vcmp.ge.f32.partialorder %v1312_v8, 0.0  ;;  %v2338_v17 = vmul.f32 %v10011_v12, %v1312_v8  ;;  %vm2081_vm8 = vcmp.ge.f32.partialorder %v1568_v9, 0.0  ;;  %v2594_v18 = vmul.f32 %v10011_v12, %v1568_v9  ;;  %v538_v11 = vld [vmem:[%s9995_s9 + $0x8d0] sm:$0xff] }
  0x45   : > { %vm1826_vm9 = vcmp.ge.f32.partialorder %v1313_v10, 0.0  ;;  %v2339_v19 = vmul.f32 %v10011_v12, %v1313_v10  ;;  %v1569_v20 = vadd.f32 %v10000_v2, %v1050_v13  ;;  %v1314_v21 = vadd.f32 %v10000_v2, %v795_v14  ;;  %v283_v13 = vld [vmem:[%s9995_s9 + $0xd8] sm:$0xff] }
  0x46   : > { %v2850_v22 = vsel %vm1825_vm7, %v1312_v8, %v2338_v17  ;;  %v3106_v23 = vsel %vm2081_vm8, %v1568_v9, %v2594_v18  ;;  %v1570_v24 = vadd.f32 %v10000_v2, %v1051_v15  ;;  %v796_v25 = vmul.f32 %v9988_v1, %v277_v16  ;;  %v539_v14 = vld [vmem:[%s9995_s9 + $0x8d8] sm:$0xff] }
  0x47   : > { %9151 = vmatprep.mubr.msk.f32.mxu0 %vm3352_vm0, %v2850_v22  ;;  %9535 = vmatprep.mubr.msk.f32.mxu1 %vm3352_vm0, %v3106_v23  ;;  %v2851_v29 = vsel %vm1826_vm9, %v1313_v10, %v2339_v19  ;;  %vm2082_vm10 = vcmp.ge.f32.partialorder %v1569_v20, 0.0  ;;  %v2595_v30 = vmul.f32 %v10011_v12, %v1569_v20  ;;  %vm1827_vm11 = vcmp.ge.f32.partialorder %v1314_v21, 0.0 }
  0x48   : > { %9152 = vmatmul.mubr.msk.f32.gmra.mxu0 %vm3352_vm0, %v2851_v29  ;;  %v2340_v31 = vmul.f32 %v10011_v12, %v1314_v21  ;;  %vm2083_vm12 = vcmp.ge.f32.partialorder %v1570_v24, 0.0  ;;  %v2596_v32 = vmul.f32 %v10011_v12, %v1570_v24  ;;  %v1315_v33 = vadd.f32 %v10000_v2, %v796_v25  ;;  %v284_v25 = vld [vmem:[%s9995_s9 + $0xe0] sm:$0xff] }
  0x49   : > { %v3107_v34 = vsel %vm2082_vm10, %v1569_v20, %v2595_v30  ;;  %v1052_v35 = vmul.f32 %v9988_v1, %v533_v26  ;;  %v797_v36 = vmul.f32 %v9988_v1, %v278_v27  ;;  %v1053_v37 = vmul.f32 %v9988_v1, %v534_v28 }
  0x4a   : > { %9536 = vmatmul.mubr.msk.f32.gmra.mxu1 %vm3352_vm0, %v3107_v34  ;;  %v2852_v41 = vsel %vm1827_vm11, %v1314_v21, %v2340_v31  ;;  %v3108_v42 = vsel %vm2083_vm12, %v1570_v24, %v2596_v32  ;;  %vm1828_vm13 = vcmp.ge.f32.partialorder %v1315_v33, 0.0  ;;  %v2341_v43 = vmul.f32 %v10011_v12, %v1315_v33 }
  0x4b   : > { %9154 = vmatprep.mubr.msk.f32.mxu0 %vm3352_vm0, %v2852_v41  ;;  %9538 = vmatprep.mubr.msk.f32.mxu1 %vm3352_vm0, %v3108_v42  ;;  %v1571_v44 = vadd.f32 %v10000_v2, %v1052_v35  ;;  %v1316_v45 = vadd.f32 %v10000_v2, %v797_v36  ;;  %v1572_v46 = vadd.f32 %v10000_v2, %v1053_v37  ;;  %v540_v35 = vld [vmem:[%s9995_s9 + $0x8e0] sm:$0xff]  ;;  %v285_v36 = vld [vmem:[%s9995_s9 + $0xe8] sm:$0xff] }
  0x4c   : > { %v2853_v47 = vsel %vm1828_vm13, %v1315_v33, %v2341_v43  ;;  %v798_v48 = vmul.f32 %v9988_v1, %v279_v38  ;;  %v1054_v49 = vmul.f32 %v9988_v1, %v535_v39  ;;  %v799_v50 = vmul.f32 %v9988_v1, %v280_v40  ;;  %v541_v37 = vld [vmem:[%s9995_s9 + $0x8e8] sm:$0xff] }
  0x4d   : > { %9155 = vmatmul.mubr.msk.f32.gmra.mxu0 %vm3352_vm0, %v2853_v47  ;;  %vm2084_vm14 = vcmp.ge.f32.partialorder %v1571_v44, 0.0  ;;  %v2597_v52 = vmul.f32 %v10011_v12, %v1571_v44  ;;  %vm1829_vm15 = vcmp.ge.f32.partialorder %v1316_v45, 0.0  ;;  %v2342_v53 = vmul.f32 %v10011_v12, %v1316_v45  ;;  %v286_v47 = vld [vmem:[%s9995_s9 + $0xf0] sm:$0xff] }
  0x4e   : > { %vm2085_vm1 = vcmp.ge.f32.partialorder %v1572_v46, 0.0  ;;  %v2598_v54 = vmul.f32 %v10011_v12, %v1572_v46  ;;  %v1317_v55 = vadd.f32 %v10000_v2, %v798_v48  ;;  %v1573_v56 = vadd.f32 %v10000_v2, %v1054_v49  ;;  %v542_v48 = vld [vmem:[%s9995_s9 + $0x8f0] sm:$0xff]  ;;  %v287_v49 = vld [vmem:[%s9995_s9 + $0xf8] sm:$0xff] }
  0x4f   : > { %v3109_v57 = vsel %vm2084_vm14, %v1571_v44, %v2597_v52  ;;  %v2854_v58 = vsel %vm1829_vm15, %v1316_v45, %v2342_v53  ;;  %v1318_v59 = vadd.f32 %v10000_v2, %v799_v50  ;;  %v1055_v60 = vmul.f32 %v9988_v1, %v536_v51 }
  0x50   : > { %9539 = vmatmul.mubr.msk.f32.gmra.mxu1 %vm3352_vm0, %v3109_v57  ;;  %9157 = vmatprep.mubr.msk.f32.mxu0 %vm3352_vm0, %v2854_v58  ;;  %v3110_v0 = vsel %vm2085_vm1, %v1572_v46, %v2598_v54  ;;  %vm1830_vm2 = vcmp.ge.f32.partialorder %v1317_v55, 0.0  ;;  %v2343_v3 = vmul.f32 %v10011_v12, %v1317_v55  ;;  %vm2086_vm3 = vcmp.ge.f32.partialorder %v1573_v56, 0.0 }
  0x51   : > { %9541 = vmatprep.mubr.msk.f32.mxu1 %vm3352_vm0, %v3110_v0  ;;  %v2599_v4 = vmul.f32 %v10011_v12, %v1573_v56  ;;  %vm1831_vm4 = vcmp.ge.f32.partialorder %v1318_v59, 0.0  ;;  %v2344_v5 = vmul.f32 %v10011_v12, %v1318_v59  ;;  %v1574_v6 = vadd.f32 %v10000_v2, %v1055_v60  ;;  %v543_v60 = vld [vmem:[%s9995_s9 + $0x8f8] sm:$0xff] }
  0x52   : > { %v2855_v7 = vsel %vm1830_vm2, %v1317_v55, %v2343_v3  ;;  %v800_v8 = vmul.f32 %v9988_v1, %v281_v61  ;;  %v1056_v9 = vmul.f32 %v9988_v1, %v537_v62  ;;  %v801_v10 = vmul.f32 %v9988_v1, %v282_v63 }
  0x53   : > { %9158 = vmatmul.mubr.msk.f32.gmra.mxu0 %vm3352_vm0, %v2855_v7  ;;  %v3111_v15 = vsel %vm2086_vm3, %v1573_v56, %v2599_v4  ;;  %v2856_v16 = vsel %vm1831_vm4, %v1318_v59, %v2344_v5  ;;  %vm2087_vm5 = vcmp.ge.f32.partialorder %v1574_v6, 0.0  ;;  %v2600_v17 = vmul.f32 %v10011_v12, %v1574_v6 }
  0x54   : > { %9542 = vmatmul.mubr.msk.f32.gmra.mxu1 %vm3352_vm0, %v3111_v15  ;;  %9160 = vmatprep.mubr.msk.f32.mxu0 %vm3352_vm0, %v2856_v16  ;;  %v1319_v18 = vadd.f32 %v10000_v2, %v800_v8  ;;  %v1575_v19 = vadd.f32 %v10000_v2, %v1056_v9  ;;  %v1320_v20 = vadd.f32 %v10000_v2, %v801_v10  ;;  %v288_v8 = vld [vmem:[%s9995_s9 + $0x100] sm:$0xff]  ;;  %v289_v10 = vld [vmem:[%s9995_s9 + $0x108] sm:$0xff] }
  0x55   : > { %v3112_v21 = vsel %vm2087_vm5, %v1574_v6, %v2600_v17  ;;  %v1057_v22 = vmul.f32 %v9988_v1, %v538_v11  ;;  %v802_v23 = vmul.f32 %v9988_v1, %v283_v13  ;;  %v1058_v24 = vmul.f32 %v9988_v1, %v539_v14  ;;  %v544_v9 = vld [vmem:[%s9995_s9 + $0x900] sm:$0xff] }
  0x56   : > { %9544 = vmatprep.mubr.msk.f32.mxu1 %vm3352_vm0, %v3112_v21  ;;  %vm1832_vm6 = vcmp.ge.f32.partialorder %v1319_v18, 0.0  ;;  %v2345_v26 = vmul.f32 %v10011_v12, %v1319_v18  ;;  %vm2088_vm7 = vcmp.ge.f32.partialorder %v1575_v19, 0.0  ;;  %v2601_v27 = vmul.f32 %v10011_v12, %v1575_v19  ;;  %v545_v21 = vld [vmem:[%s9995_s9 + $0x908] sm:$0xff] }
  0x57   : > { %vm1833_vm8 = vcmp.ge.f32.partialorder %v1320_v20, 0.0  ;;  %v2346_v28 = vmul.f32 %v10011_v12, %v1320_v20  ;;  %v1576_v29 = vadd.f32 %v10000_v2, %v1057_v22  ;;  %v1321_v30 = vadd.f32 %v10000_v2, %v802_v23  ;;  %v290_v22 = vld [vmem:[%s9995_s9 + $0x110] sm:$0xff] }
  0x58   : > { %v2857_v31 = vsel %vm1832_vm6, %v1319_v18, %v2345_v26  ;;  %v3113_v32 = vsel %vm2088_vm7, %v1575_v19, %v2601_v27  ;;  %v1577_v33 = vadd.f32 %v10000_v2, %v1058_v24  ;;  %v803_v34 = vmul.f32 %v9988_v1, %v284_v25  ;;  %v546_v23 = vld [vmem:[%s9995_s9 + $0x910] sm:$0xff] }
  0x59   : > { %9161 = vmatmul.mubr.msk.f32.gmra.mxu0 %vm3352_vm0, %v2857_v31  ;;  %9545 = vmatmul.mubr.msk.f32.gmra.mxu1 %vm3352_vm0, %v3113_v32  ;;  %v2858_v38 = vsel %vm1833_vm8, %v1320_v20, %v2346_v28  ;;  %vm2089_vm9 = vcmp.ge.f32.partialorder %v1576_v29, 0.0  ;;  %v2602_v39 = vmul.f32 %v10011_v12, %v1576_v29  ;;  %vm1834_vm10 = vcmp.ge.f32.partialorder %v1321_v30, 0.0 }
  0x5a   : > { %9163 = vmatprep.mubr.msk.f32.mxu0 %vm3352_vm0, %v2858_v38  ;;  %v2347_v40 = vmul.f32 %v10011_v12, %v1321_v30  ;;  %vm2090_vm11 = vcmp.ge.f32.partialorder %v1577_v33, 0.0  ;;  %v2603_v41 = vmul.f32 %v10011_v12, %v1577_v33  ;;  %v1322_v42 = vadd.f32 %v10000_v2, %v803_v34  ;;  %v291_v34 = vld [vmem:[%s9995_s9 + $0x118] sm:$0xff] }
  0x5b   : > { %v3114_v43 = vsel %vm2089_vm9, %v1576_v29, %v2602_v39  ;;  %v1059_v44 = vmul.f32 %v9988_v1, %v540_v35  ;;  %v804_v45 = vmul.f32 %v9988_v1, %v285_v36  ;;  %v1060_v46 = vmul.f32 %v9988_v1, %v541_v37 }
  0x5c   : > { %9547 = vmatprep.mubr.msk.f32.mxu1 %vm3352_vm0, %v3114_v43  ;;  %v2859_v50 = vsel %vm1834_vm10, %v1321_v30, %v2347_v40  ;;  %v3115_v51 = vsel %vm2090_vm11, %v1577_v33, %v2603_v41  ;;  %vm1835_vm12 = vcmp.ge.f32.partialorder %v1322_v42, 0.0  ;;  %v2348_v52 = vmul.f32 %v10011_v12, %v1322_v42 }
  0x5d   : > { %9164 = vmatmul.mubr.msk.f32.gmra.mxu0 %vm3352_vm0, %v2859_v50  ;;  %9548 = vmatmul.mubr.msk.f32.gmra.mxu1 %vm3352_vm0, %v3115_v51  ;;  %v1578_v53 = vadd.f32 %v10000_v2, %v1059_v44  ;;  %v1323_v54 = vadd.f32 %v10000_v2, %v804_v45  ;;  %v1579_v55 = vadd.f32 %v10000_v2, %v1060_v46  ;;  %v547_v44 = vld [vmem:[%s9995_s9 + $0x918] sm:$0xff]  ;;  %v292_v45 = vld [vmem:[%s9995_s9 + $0x120] sm:$0xff] }
  0x5e   : > { %v2860_v56 = vsel %vm1835_vm12, %v1322_v42, %v2348_v52  ;;  %v805_v57 = vmul.f32 %v9988_v1, %v286_v47  ;;  %v1061_v58 = vmul.f32 %v9988_v1, %v542_v48  ;;  %v806_v59 = vmul.f32 %v9988_v1, %v287_v49  ;;  %v548_v46 = vld [vmem:[%s9995_s9 + $0x920] sm:$0xff] }
  0x5f   : > { %9166 = vmatprep.mubr.msk.f32.mxu0 %vm3352_vm0, %v2860_v56  ;;  %vm2091_vm13 = vcmp.ge.f32.partialorder %v1578_v53, 0.0  ;;  %v2604_v61 = vmul.f32 %v10011_v12, %v1578_v53  ;;  %vm1836_vm14 = vcmp.ge.f32.partialorder %v1323_v54, 0.0  ;;  %v2349_v62 = vmul.f32 %v10011_v12, %v1323_v54  ;;  %v293_v56 = vld [vmem:[%s9995_s9 + $0x128] sm:$0xff] }
  0x60   : > { %vm2092_vm15 = vcmp.ge.f32.partialorder %v1579_v55, 0.0  ;;  %v2605_v63 = vmul.f32 %v10011_v12, %v1579_v55  ;;  %v1324_v0 = vadd.f32 %v10000_v2, %v805_v57  ;;  %v1580_v3 = vadd.f32 %v10000_v2, %v1061_v58  ;;  %v549_v57 = vld [vmem:[%s9995_s9 + $0x928] sm:$0xff]  ;;  %v294_v58 = vld [vmem:[%s9995_s9 + $0x130] sm:$0xff] }
  0x61   : > { %v3116_v4 = vsel %vm2091_vm13, %v1578_v53, %v2604_v61  ;;  %v2861_v5 = vsel %vm1836_vm14, %v1323_v54, %v2349_v62  ;;  %v1325_v6 = vadd.f32 %v10000_v2, %v806_v59  ;;  %v1062_v7 = vmul.f32 %v9988_v1, %v543_v60 }
  0x62   : > { %9550 = vmatprep.mubr.msk.f32.mxu1 %vm3352_vm0, %v3116_v4  ;;  %9167 = vmatmul.mubr.msk.f32.gmra.mxu0 %vm3352_vm0, %v2861_v5  ;;  %v3117_v11 = vsel %vm2092_vm15, %v1579_v55, %v2605_v63  ;;  %vm1837_vm1 = vcmp.ge.f32.partialorder %v1324_v0, 0.0  ;;  %v2350_v13 = vmul.f32 %v10011_v12, %v1324_v0  ;;  %vm2093_vm2 = vcmp.ge.f32.partialorder %v1580_v3, 0.0 }
  0x63   : > { %9551 = vmatmul.mubr.msk.f32.gmra.mxu1 %vm3352_vm0, %v3117_v11  ;;  %v2606_v14 = vmul.f32 %v10011_v12, %v1580_v3  ;;  %vm1838_vm3 = vcmp.ge.f32.partialorder %v1325_v6, 0.0  ;;  %v2351_v15 = vmul.f32 %v10011_v12, %v1325_v6  ;;  %v1581_v16 = vadd.f32 %v10000_v2, %v1062_v7  ;;  %v550_v7 = vld [vmem:[%s9995_s9 + $0x930] sm:$0xff] }
  0x64   : > { %v2862_v17 = vsel %vm1837_vm1, %v1324_v0, %v2350_v13  ;;  %v807_v18 = vmul.f32 %v9988_v1, %v288_v8  ;;  %v1063_v19 = vmul.f32 %v9988_v1, %v544_v9  ;;  %v808_v20 = vmul.f32 %v9988_v1, %v289_v10  ;;  %v10386_v10 = vld [vmem:[%s15547_s2] ss:$0 sm:$0xff] }
  0x65   : > { %9169 = vmatprep.mubr.msk.f32.mxu0 %vm3352_vm0, %v2862_v17  ;;  %v3118_v24 = vsel %vm2093_vm2, %v1580_v3, %v2606_v14  ;;  %v2863_v25 = vsel %vm1838_vm3, %v1325_v6, %v2351_v15  ;;  %vm2094_vm4 = vcmp.ge.f32.partialorder %v1581_v16, 0.0  ;;  %v2607_v26 = vmul.f32 %v10011_v12, %v1581_v16  ;;  %v10373_v3 = vld [vmem:[%s15546_s1] ss:$0 sm:$0xff] }
  0x66   : > { %9553 = vmatprep.mubr.msk.f32.mxu1 %vm3352_vm0, %v3118_v24  ;;  %9170 = vmatmul.mubr.msk.f32.gmra.mxu0 %vm3352_vm0, %v2863_v25  ;;  %v1326_v27 = vadd.f32 %v10000_v2, %v807_v18  ;;  %v1582_v28 = vadd.f32 %v10000_v2, %v1063_v19  ;;  %v1327_v29 = vadd.f32 %v10000_v2, %v808_v20  ;;  %v295_v18 = vld [vmem:[%s9995_s9 + $0x138] sm:$0xff]  ;;  %v296_v20 = vld [vmem:[%s9995_s9 + $0x140] sm:$0xff] }
  0x67   : > { %v3119_v30 = vsel %vm2094_vm4, %v1581_v16, %v2607_v26  ;;  %v1064_v31 = vmul.f32 %v9988_v1, %v545_v21  ;;  %v809_v32 = vmul.f32 %v9988_v1, %v290_v22  ;;  %v1065_v33 = vmul.f32 %v9988_v1, %v546_v23  ;;  %v551_v19 = vld [vmem:[%s9995_s9 + $0x938] sm:$0xff] }
  0x68   : > { %9554 = vmatmul.mubr.msk.f32.gmra.mxu1 %vm3352_vm0, %v3119_v30  ;;  %vm1839_vm5 = vcmp.ge.f32.partialorder %v1326_v27, 0.0  ;;  %v2352_v35 = vmul.f32 %v10011_v12, %v1326_v27  ;;  %vm2095_vm6 = vcmp.ge.f32.partialorder %v1582_v28, 0.0  ;;  %v2608_v36 = vmul.f32 %v10011_v12, %v1582_v28  ;;  %v552_v30 = vld [vmem:[%s9995_s9 + $0x940] sm:$0xff] }
  0x69   : > { %vm1840_vm7 = vcmp.ge.f32.partialorder %v1327_v29, 0.0  ;;  %v2353_v37 = vmul.f32 %v10011_v12, %v1327_v29  ;;  %v1583_v38 = vadd.f32 %v10000_v2, %v1064_v31  ;;  %v1328_v39 = vadd.f32 %v10000_v2, %v809_v32  ;;  %v297_v31 = vld [vmem:[%s9995_s9 + $0x148] sm:$0xff] }
  0x6a   : > { %v2864_v40 = vsel %vm1839_vm5, %v1326_v27, %v2352_v35  ;;  %v3120_v41 = vsel %vm2095_vm6, %v1582_v28, %v2608_v36  ;;  %v1584_v42 = vadd.f32 %v10000_v2, %v1065_v33  ;;  %v810_v43 = vmul.f32 %v9988_v1, %v291_v34  ;;  %v553_v32 = vld [vmem:[%s9995_s9 + $0x948] sm:$0xff] }
  0x6b   : > { %9172 = vmatprep.mubr.msk.f32.mxu0 %vm3352_vm0, %v2864_v40  ;;  %9556 = vmatprep.mubr.msk.f32.mxu1 %vm3352_vm0, %v3120_v41  ;;  %v2865_v47 = vsel %vm1840_vm7, %v1327_v29, %v2353_v37  ;;  %vm2096_vm8 = vcmp.ge.f32.partialorder %v1583_v38, 0.0  ;;  %v2609_v48 = vmul.f32 %v10011_v12, %v1583_v38  ;;  %vm1841_vm9 = vcmp.ge.f32.partialorder %v1328_v39, 0.0 }
  0x6c   : > { %9173 = vmatmul.mubr.msk.f32.gmra.mxu0 %vm3352_vm0, %v2865_v47  ;;  %v2354_v49 = vmul.f32 %v10011_v12, %v1328_v39  ;;  %vm2097_vm10 = vcmp.ge.f32.partialorder %v1584_v42, 0.0  ;;  %v2610_v50 = vmul.f32 %v10011_v12, %v1584_v42  ;;  %v1329_v51 = vadd.f32 %v10000_v2, %v810_v43  ;;  %v298_v43 = vld [vmem:[%s9995_s9 + $0x150] sm:$0xff] }
  0x6d   : > { %v3121_v52 = vsel %vm2096_vm8, %v1583_v38, %v2609_v48  ;;  %v1066_v53 = vmul.f32 %v9988_v1, %v547_v44  ;;  %v811_v54 = vmul.f32 %v9988_v1, %v292_v45  ;;  %v1067_v55 = vmul.f32 %v9988_v1, %v548_v46 }
  0x6e   : > { %9557 = vmatmul.mubr.msk.f32.gmra.mxu1 %vm3352_vm0, %v3121_v52  ;;  %v2866_v59 = vsel %vm1841_vm9, %v1328_v39, %v2354_v49  ;;  %v3122_v60 = vsel %vm2097_vm10, %v1584_v42, %v2610_v50  ;;  %vm1842_vm11 = vcmp.ge.f32.partialorder %v1329_v51, 0.0  ;;  %v2355_v61 = vmul.f32 %v10011_v12, %v1329_v51 }
  0x6f   : > { %9175 = vmatprep.mubr.msk.f32.mxu0 %vm3352_vm0, %v2866_v59  ;;  %9559 = vmatprep.mubr.msk.f32.mxu1 %vm3352_vm0, %v3122_v60  ;;  %v1585_v62 = vadd.f32 %v10000_v2, %v1066_v53  ;;  %v1330_v63 = vadd.f32 %v10000_v2, %v811_v54  ;;  %v1586_v1 = vadd.f32 %v10000_v2, %v1067_v55  ;;  %v554_v53 = vld [vmem:[%s9995_s9 + $0x950] sm:$0xff]  ;;  %v299_v54 = vld [vmem:[%s9995_s9 + $0x158] sm:$0xff] }
  0x70   : > { %v2867_v0 = vsel %vm1842_vm11, %v1329_v51, %v2355_v61  ;;  %v812_v4 = vmul.f32 %v10373_v3, %v293_v56  ;;  %v1068_v5 = vmul.f32 %v10373_v3, %v549_v57  ;;  %v813_v6 = vmul.f32 %v10373_v3, %v294_v58  ;;  %v555_v55 = vld [vmem:[%s9995_s9 + $0x958] sm:$0xff] }
  0x71   : > { %9176 = vmatmul.mubr.msk.f32.gmra.mxu0 %vm3352_vm0, %v2867_v0  ;;  %vm2098_vm12 = vcmp.ge.f32.partialorder %v1585_v62, 0.0  ;;  %v2611_v2 = vmul.f32 %v10011_v12, %v1585_v62  ;;  %vm1843_vm13 = vcmp.ge.f32.partialorder %v1330_v63, 0.0  ;;  %v2356_v8 = vmul.f32 %v10011_v12, %v1330_v63  ;;  %v300_v0 = vld [vmem:[%s9995_s9 + $0x160] sm:$0xff] }
  0x72   : > { %vm2099_vm14 = vcmp.ge.f32.partialorder %v1586_v1, 0.0  ;;  %v2612_v9 = vmul.f32 %v10011_v12, %v1586_v1  ;;  %v1331_v11 = vadd.f32 %v10386_v10, %v812_v4  ;;  %v1587_v13 = vadd.f32 %v10386_v10, %v1068_v5  ;;  %v556_v4 = vld [vmem:[%s9995_s9 + $0x960] sm:$0xff]  ;;  %v301_v5 = vld [vmem:[%s9995_s9 + $0x168] sm:$0xff] }
  0x73   : > { %v3123_v14 = vsel %vm2098_vm12, %v1585_v62, %v2611_v2  ;;  %v2868_v15 = vsel %vm1843_vm13, %v1330_v63, %v2356_v8  ;;  %v1332_v16 = vadd.f32 %v10386_v10, %v813_v6  ;;  %v1069_v17 = vmul.f32 %v10373_v3, %v550_v7 }
  0x74   : > { %9560 = vmatmul.mubr.msk.f32.gmra.mxu1 %vm3352_vm0, %v3123_v14  ;;  %9178 = vmatprep.mubr.msk.f32.mxu0 %vm3352_vm0, %v2868_v15  ;;  %v3124_v21 = vsel %vm2099_vm14, %v1586_v1, %v2612_v9  ;;  %vm1844_vm15 = vcmp.ge.f32.partialorder %v1331_v11, 0.0  ;;  %v2357_v22 = vmul.f32 %v10011_v12, %v1331_v11  ;;  %vm2100_vm1 = vcmp.ge.f32.partialorder %v1587_v13, 0.0 }
  0x75   : > { %9562 = vmatprep.mubr.msk.f32.mxu1 %vm3352_vm0, %v3124_v21  ;;  %v2613_v23 = vmul.f32 %v10011_v12, %v1587_v13  ;;  %vm1845_vm2 = vcmp.ge.f32.partialorder %v1332_v16, 0.0  ;;  %v2358_v24 = vmul.f32 %v10011_v12, %v1332_v16  ;;  %v1588_v25 = vadd.f32 %v10386_v10, %v1069_v17  ;;  %v557_v17 = vld [vmem:[%s9995_s9 + $0x968] sm:$0xff] }
  0x76   : > { %v2869_v26 = vsel %vm1844_vm15, %v1331_v11, %v2357_v22  ;;  %v814_v27 = vmul.f32 %v10373_v3, %v295_v18  ;;  %v1070_v28 = vmul.f32 %v10373_v3, %v551_v19  ;;  %v815_v29 = vmul.f32 %v10373_v3, %v296_v20 }
  0x77   : > { %9179 = vmatmul.mubr.msk.f32.gmra.mxu0 %vm3352_vm0, %v2869_v26  ;;  %v3125_v33 = vsel %vm2100_vm1, %v1587_v13, %v2613_v23  ;;  %v2870_v34 = vsel %vm1845_vm2, %v1332_v16, %v2358_v24  ;;  %vm2101_vm3 = vcmp.ge.f32.partialorder %v1588_v25, 0.0  ;;  %v2614_v35 = vmul.f32 %v10011_v12, %v1588_v25 }
  0x78   : > { %9563 = vmatmul.mubr.msk.f32.gmra.mxu1 %vm3352_vm0, %v3125_v33  ;;  %9181 = vmatprep.mubr.msk.f32.mxu0 %vm3352_vm0, %v2870_v34  ;;  %v1333_v36 = vadd.f32 %v10386_v10, %v814_v27  ;;  %v1589_v37 = vadd.f32 %v10386_v10, %v1070_v28  ;;  %v1334_v38 = vadd.f32 %v10386_v10, %v815_v29  ;;  %v302_v27 = vld [vmem:[%s9995_s9 + $0x170] sm:$0xff]  ;;  %v303_v29 = vld [vmem:[%s9995_s9 + $0x178] sm:$0xff] }
  0x79   : > { %v3126_v39 = vsel %vm2101_vm3, %v1588_v25, %v2614_v35  ;;  %v1071_v40 = vmul.f32 %v10373_v3, %v552_v30  ;;  %v816_v41 = vmul.f32 %v10373_v3, %v297_v31  ;;  %v1072_v42 = vmul.f32 %v10373_v3, %v553_v32  ;;  %v558_v28 = vld [vmem:[%s9995_s9 + $0x970] sm:$0xff] }
  0x7a   : > { %9565 = vmatprep.mubr.msk.f32.mxu1 %vm3352_vm0, %v3126_v39  ;;  %vm1846_vm4 = vcmp.ge.f32.partialorder %v1333_v36, 0.0  ;;  %v2359_v44 = vmul.f32 %v10011_v12, %v1333_v36  ;;  %vm2102_vm5 = vcmp.ge.f32.partialorder %v1589_v37, 0.0  ;;  %v2615_v45 = vmul.f32 %v10011_v12, %v1589_v37  ;;  %v559_v39 = vld [vmem:[%s9995_s9 + $0x978] sm:$0xff] }
  0x7b   : > { %vm1847_vm6 = vcmp.ge.f32.partialorder %v1334_v38, 0.0  ;;  %v2360_v46 = vmul.f32 %v10011_v12, %v1334_v38  ;;  %v1590_v47 = vadd.f32 %v10386_v10, %v1071_v40  ;;  %v1335_v48 = vadd.f32 %v10386_v10, %v816_v41  ;;  %v304_v40 = vld [vmem:[%s9995_s9 + $0x180] sm:$0xff] }
  0x7c   : > { %v2871_v49 = vsel %vm1846_vm4, %v1333_v36, %v2359_v44  ;;  %v3127_v50 = vsel %vm2102_vm5, %v1589_v37, %v2615_v45  ;;  %v1591_v51 = vadd.f32 %v10386_v10, %v1072_v42  ;;  %v817_v52 = vmul.f32 %v10373_v3, %v298_v43  ;;  %v560_v41 = vld [vmem:[%s9995_s9 + $0x980] sm:$0xff] }
  0x7d   : > { %9182 = vmatmul.mubr.msk.f32.gmra.mxu0 %vm3352_vm0, %v2871_v49  ;;  %9566 = vmatmul.mubr.msk.f32.gmra.mxu1 %vm3352_vm0, %v3127_v50  ;;  %v2872_v56 = vsel %vm1847_vm6, %v1334_v38, %v2360_v46  ;;  %vm2103_vm7 = vcmp.ge.f32.partialorder %v1590_v47, 0.0  ;;  %v2616_v57 = vmul.f32 %v10011_v12, %v1590_v47  ;;  %vm1848_vm8 = vcmp.ge.f32.partialorder %v1335_v48, 0.0 }
  0x7e   : > { %9184 = vmatprep.mubr.msk.f32.mxu0 %vm3352_vm0, %v2872_v56  ;;  %v2361_v58 = vmul.f32 %v10011_v12, %v1335_v48  ;;  %vm2104_vm9 = vcmp.ge.f32.partialorder %v1591_v51, 0.0  ;;  %v2617_v59 = vmul.f32 %v10011_v12, %v1591_v51  ;;  %v1336_v60 = vadd.f32 %v10386_v10, %v817_v52  ;;  %v305_v52 = vld [vmem:[%s9995_s9 + $0x188] sm:$0xff] }
  0x7f   : > { %v3128_v61 = vsel %vm2103_vm7, %v1590_v47, %v2616_v57  ;;  %v1073_v62 = vmul.f32 %v10373_v3, %v554_v53  ;;  %v818_v63 = vmul.f32 %v10373_v3, %v299_v54  ;;  %v1074_v1 = vmul.f32 %v10373_v3, %v555_v55 }
  0x80   : > { %9568 = vmatprep.mubr.msk.f32.mxu1 %vm3352_vm0, %v3128_v61  ;;  %v2873_v6 = vsel %vm1848_vm8, %v1335_v48, %v2361_v58  ;;  %v3129_v7 = vsel %vm2104_vm9, %v1591_v51, %v2617_v59  ;;  %vm1849_vm10 = vcmp.ge.f32.partialorder %v1336_v60, 0.0  ;;  %v2362_v2 = vmul.f32 %v10011_v12, %v1336_v60 }
  0x81   : > { %9185 = vmatmul.mubr.msk.f32.gmra.mxu0 %vm3352_vm0, %v2873_v6  ;;  %9569 = vmatmul.mubr.msk.f32.gmra.mxu1 %vm3352_vm0, %v3129_v7  ;;  %v1592_v8 = vadd.f32 %v10386_v10, %v1073_v62  ;;  %v1337_v9 = vadd.f32 %v10386_v10, %v818_v63  ;;  %v1593_v11 = vadd.f32 %v10386_v10, %v1074_v1  ;;  %v561_v62 = vld [vmem:[%s9995_s9 + $0x988] sm:$0xff]  ;;  %v306_v63 = vld [vmem:[%s9995_s9 + $0x190] sm:$0xff] }
  0x82   : > { %v2874_v13 = vsel %vm1849_vm10, %v1336_v60, %v2362_v2  ;;  %v819_v14 = vmul.f32 %v10373_v3, %v300_v0  ;;  %v1075_v15 = vmul.f32 %v10373_v3, %v556_v4  ;;  %v820_v16 = vmul.f32 %v10373_v3, %v301_v5  ;;  %v562_v1 = vld [vmem:[%s9995_s9 + $0x990] sm:$0xff] }
  0x83   : > { %9187 = vmatprep.mubr.msk.f32.mxu0 %vm3352_vm0, %v2874_v13  ;;  %vm2105_vm11 = vcmp.ge.f32.partialorder %v1592_v8, 0.0  ;;  %v2618_v18 = vmul.f32 %v10011_v12, %v1592_v8  ;;  %vm1850_vm12 = vcmp.ge.f32.partialorder %v1337_v9, 0.0  ;;  %v2363_v19 = vmul.f32 %v10011_v12, %v1337_v9  ;;  %v307_v13 = vld [vmem:[%s9995_s9 + $0x198] sm:$0xff] }
  0x84   : > { %vm2106_vm13 = vcmp.ge.f32.partialorder %v1593_v11, 0.0  ;;  %v2619_v20 = vmul.f32 %v10011_v12, %v1593_v11  ;;  %v1338_v21 = vadd.f32 %v10386_v10, %v819_v14  ;;  %v1594_v22 = vadd.f32 %v10386_v10, %v1075_v15  ;;  %v563_v14 = vld [vmem:[%s9995_s9 + $0x998] sm:$0xff]  ;;  %v308_v15 = vld [vmem:[%s9995_s9 + $0x1a0] sm:$0xff] }
  0x85   : > { %v3130_v23 = vsel %vm2105_vm11, %v1592_v8, %v2618_v18  ;;  %v2875_v24 = vsel %vm1850_vm12, %v1337_v9, %v2363_v19  ;;  %v1339_v25 = vadd.f32 %v10386_v10, %v820_v16  ;;  %v1076_v26 = vmul.f32 %v10373_v3, %v557_v17 }
  0x86   : > { %9571 = vmatprep.mubr.msk.f32.mxu1 %vm3352_vm0, %v3130_v23  ;;  %9188 = vmatmul.mubr.msk.f32.gmra.mxu0 %vm3352_vm0, %v2875_v24  ;;  %v3131_v30 = vsel %vm2106_vm13, %v1593_v11, %v2619_v20  ;;  %vm1851_vm14 = vcmp.ge.f32.partialorder %v1338_v21, 0.0  ;;  %v2364_v31 = vmul.f32 %v10011_v12, %v1338_v21  ;;  %vm2107_vm15 = vcmp.ge.f32.partialorder %v1594_v22, 0.0 }
  0x87   : > { %9572 = vmatmul.mubr.msk.f32.gmra.mxu1 %vm3352_vm0, %v3131_v30  ;;  %v2620_v32 = vmul.f32 %v10011_v12, %v1594_v22  ;;  %vm1852_vm1 = vcmp.ge.f32.partialorder %v1339_v25, 0.0  ;;  %v2365_v33 = vmul.f32 %v10011_v12, %v1339_v25  ;;  %v1595_v34 = vadd.f32 %v10386_v10, %v1076_v26  ;;  %v564_v26 = vld [vmem:[%s9995_s9 + $0x9a0] sm:$0xff] }
  0x88   : > { %v2876_v35 = vsel %vm1851_vm14, %v1338_v21, %v2364_v31  ;;  %v821_v36 = vmul.f32 %v10373_v3, %v302_v27  ;;  %v1077_v37 = vmul.f32 %v10373_v3, %v558_v28  ;;  %v822_v38 = vmul.f32 %v10373_v3, %v303_v29 }
  0x89   : > { %9190 = vmatprep.mubr.msk.f32.mxu0 %vm3352_vm0, %v2876_v35  ;;  %v3132_v42 = vsel %vm2107_vm15, %v1594_v22, %v2620_v32  ;;  %v2877_v43 = vsel %vm1852_vm1, %v1339_v25, %v2365_v33  ;;  %vm2108_vm2 = vcmp.ge.f32.partialorder %v1595_v34, 0.0  ;;  %v2621_v44 = vmul.f32 %v10011_v12, %v1595_v34 }
  0x8a   : > { %9574 = vmatprep.mubr.msk.f32.mxu1 %vm3352_vm0, %v3132_v42  ;;  %9191 = vmatmul.mubr.msk.f32.gmra.mxu0 %vm3352_vm0, %v2877_v43  ;;  %v1340_v45 = vadd.f32 %v10386_v10, %v821_v36  ;;  %v1596_v46 = vadd.f32 %v10386_v10, %v1077_v37  ;;  %v1341_v47 = vadd.f32 %v10386_v10, %v822_v38  ;;  %v309_v36 = vld [vmem:[%s9995_s9 + $0x1a8] sm:$0xff]  ;;  %v310_v38 = vld [vmem:[%s9995_s9 + $0x1b0] sm:$0xff] }
  0x8b   : > { %v3133_v48 = vsel %vm2108_vm2, %v1595_v34, %v2621_v44  ;;  %v1078_v49 = vmul.f32 %v10373_v3, %v559_v39  ;;  %v823_v50 = vmul.f32 %v10373_v3, %v304_v40  ;;  %v1079_v51 = vmul.f32 %v10373_v3, %v560_v41  ;;  %v565_v37 = vld [vmem:[%s9995_s9 + $0x9a8] sm:$0xff] }
  0x8c   : > { %9575 = vmatmul.mubr.msk.f32.gmra.mxu1 %vm3352_vm0, %v3133_v48  ;;  %vm1853_vm3 = vcmp.ge.f32.partialorder %v1340_v45, 0.0  ;;  %v2366_v53 = vmul.f32 %v10011_v12, %v1340_v45  ;;  %vm2109_vm4 = vcmp.ge.f32.partialorder %v1596_v46, 0.0  ;;  %v2622_v54 = vmul.f32 %v10011_v12, %v1596_v46  ;;  %v566_v48 = vld [vmem:[%s9995_s9 + $0x9b0] sm:$0xff] }
  0x8d   : > { %vm1854_vm5 = vcmp.ge.f32.partialorder %v1341_v47, 0.0  ;;  %v2367_v55 = vmul.f32 %v10011_v12, %v1341_v47  ;;  %v1597_v56 = vadd.f32 %v10386_v10, %v1078_v49  ;;  %v1342_v57 = vadd.f32 %v10386_v10, %v823_v50  ;;  %v311_v49 = vld [vmem:[%s9995_s9 + $0x1b8] sm:$0xff] }
  0x8e   : > { %v2878_v58 = vsel %vm1853_vm3, %v1340_v45, %v2366_v53  ;;  %v3134_v59 = vsel %vm2109_vm4, %v1596_v46, %v2622_v54  ;;  %v1598_v60 = vadd.f32 %v10386_v10, %v1079_v51  ;;  %v824_v61 = vmul.f32 %v10373_v3, %v305_v52  ;;  %v567_v50 = vld [vmem:[%s9995_s9 + $0x9b8] sm:$0xff] }
  0x8f   : > { %9193 = vmatprep.mubr.msk.f32.mxu0 %vm3352_vm0, %v2878_v58  ;;  %9577 = vmatprep.mubr.msk.f32.mxu1 %vm3352_vm0, %v3134_v59  ;;  %v2879_v0 = vsel %vm1854_vm5, %v1341_v47, %v2367_v55  ;;  %vm2110_vm6 = vcmp.ge.f32.partialorder %v1597_v56, 0.0  ;;  %v2623_v4 = vmul.f32 %v10011_v12, %v1597_v56  ;;  %vm1855_vm7 = vcmp.ge.f32.partialorder %v1342_v57, 0.0 }
  0x90   : > { %9194 = vmatmul.mubr.msk.f32.gmra.mxu0 %vm3352_vm0, %v2879_v0  ;;  %v2368_v5 = vmul.f32 %v10011_v12, %v1342_v57  ;;  %vm2111_vm8 = vcmp.ge.f32.partialorder %v1598_v60, 0.0  ;;  %v2624_v6 = vmul.f32 %v10011_v12, %v1598_v60  ;;  %v1343_v7 = vadd.f32 %v10386_v10, %v824_v61  ;;  %v312_v61 = vld [vmem:[%s9995_s9 + $0x1c0] sm:$0xff] }
  0x91   : > { %v3135_v2 = vsel %vm2110_vm6, %v1597_v56, %v2623_v4  ;;  %v1080_v8 = vmul.f32 %v10373_v3, %v561_v62  ;;  %v825_v9 = vmul.f32 %v10373_v3, %v306_v63  ;;  %v1081_v11 = vmul.f32 %v10373_v3, %v562_v1 }
  0x92   : > { %9578 = vmatmul.mubr.msk.f32.gmra.mxu1 %vm3352_vm0, %v3135_v2  ;;  %v2880_v16 = vsel %vm1855_vm7, %v1342_v57, %v2368_v5  ;;  %v3136_v17 = vsel %vm2111_vm8, %v1598_v60, %v2624_v6  ;;  %vm1856_vm9 = vcmp.ge.f32.partialorder %v1343_v7, 0.0  ;;  %v2369_v18 = vmul.f32 %v10011_v12, %v1343_v7 }
  0x93   : > { %9196 = vmatprep.mubr.msk.f32.mxu0 %vm3352_vm0, %v2880_v16  ;;  %9580 = vmatprep.mubr.msk.f32.mxu1 %vm3352_vm0, %v3136_v17  ;;  %v1599_v19 = vadd.f32 %v10386_v10, %v1080_v8  ;;  %v1344_v20 = vadd.f32 %v10386_v10, %v825_v9  ;;  %v1600_v21 = vadd.f32 %v10386_v10, %v1081_v11  ;;  %v568_v8 = vld [vmem:[%s9995_s9 + $0x9c0] sm:$0xff]  ;;  %v313_v9 = vld [vmem:[%s9995_s9 + $0x1c8] sm:$0xff] }
  0x94   : > { %v2881_v22 = vsel %vm1856_vm9, %v1343_v7, %v2369_v18  ;;  %v826_v23 = vmul.f32 %v10373_v3, %v307_v13  ;;  %v1082_v24 = vmul.f32 %v10373_v3, %v563_v14  ;;  %v827_v25 = vmul.f32 %v10373_v3, %v308_v15  ;;  %v569_v11 = vld [vmem:[%s9995_s9 + $0x9c8] sm:$0xff] }
  0x95   : > { %9197 = vmatmul.mubr.msk.f32.gmra.mxu0 %vm3352_vm0, %v2881_v22  ;;  %vm2112_vm10 = vcmp.ge.f32.partialorder %v1599_v19, 0.0  ;;  %v2625_v27 = vmul.f32 %v10011_v12, %v1599_v19  ;;  %vm1857_vm11 = vcmp.ge.f32.partialorder %v1344_v20, 0.0  ;;  %v2370_v28 = vmul.f32 %v10011_v12, %v1344_v20  ;;  %v314_v22 = vld [vmem:[%s9995_s9 + $0x1d0] sm:$0xff] }
  0x96   : > { %vm2113_vm12 = vcmp.ge.f32.partialorder %v1600_v21, 0.0  ;;  %v2626_v29 = vmul.f32 %v10011_v12, %v1600_v21  ;;  %v1345_v30 = vadd.f32 %v10386_v10, %v826_v23  ;;  %v1601_v31 = vadd.f32 %v10386_v10, %v1082_v24  ;;  %v570_v23 = vld [vmem:[%s9995_s9 + $0x9d0] sm:$0xff]  ;;  %v315_v24 = vld [vmem:[%s9995_s9 + $0x1d8] sm:$0xff] }
  0x97   : > { %v3137_v32 = vsel %vm2112_vm10, %v1599_v19, %v2625_v27  ;;  %v2882_v33 = vsel %vm1857_vm11, %v1344_v20, %v2370_v28  ;;  %v1346_v34 = vadd.f32 %v10386_v10, %v827_v25  ;;  %v1083_v35 = vmul.f32 %v10373_v3, %v564_v26 }
  0x98   : > { %9581 = vmatmul.mubr.msk.f32.gmra.mxu1 %vm3352_vm0, %v3137_v32  ;;  %9199 = vmatprep.mubr.msk.f32.mxu0 %vm3352_vm0, %v2882_v33  ;;  %v3138_v39 = vsel %vm2113_vm12, %v1600_v21, %v2626_v29  ;;  %vm1858_vm13 = vcmp.ge.f32.partialorder %v1345_v30, 0.0  ;;  %v2371_v40 = vmul.f32 %v10011_v12, %v1345_v30  ;;  %vm2114_vm14 = vcmp.ge.f32.partialorder %v1601_v31, 0.0 }
  0x99   : > { %9583 = vmatprep.mubr.msk.f32.mxu1 %vm3352_vm0, %v3138_v39  ;;  %v2627_v41 = vmul.f32 %v10011_v12, %v1601_v31  ;;  %vm1859_vm15 = vcmp.ge.f32.partialorder %v1346_v34, 0.0  ;;  %v2372_v42 = vmul.f32 %v10011_v12, %v1346_v34  ;;  %v1602_v43 = vadd.f32 %v10386_v10, %v1083_v35  ;;  %v571_v35 = vld [vmem:[%s9995_s9 + $0x9d8] sm:$0xff] }
  0x9a   : > { %v2883_v44 = vsel %vm1858_vm13, %v1345_v30, %v2371_v40  ;;  %v828_v45 = vmul.f32 %v10373_v3, %v309_v36  ;;  %v1084_v46 = vmul.f32 %v10373_v3, %v565_v37  ;;  %v829_v47 = vmul.f32 %v10373_v3, %v310_v38 }
  0x9b   : > { %9200 = vmatmul.mubr.msk.f32.gmra.mxu0 %vm3352_vm0, %v2883_v44  ;;  %v3139_v51 = vsel %vm2114_vm14, %v1601_v31, %v2627_v41  ;;  %v2884_v52 = vsel %vm1859_vm15, %v1346_v34, %v2372_v42  ;;  %vm2115_vm1 = vcmp.ge.f32.partialorder %v1602_v43, 0.0  ;;  %v2628_v53 = vmul.f32 %v10011_v12, %v1602_v43 }
  0x9c   : > { %9584 = vmatmul.mubr.msk.f32.gmra.mxu1 %vm3352_vm0, %v3139_v51  ;;  %9202 = vmatprep.mubr.msk.f32.mxu0 %vm3352_vm0, %v2884_v52  ;;  %v1347_v54 = vadd.f32 %v10386_v10, %v828_v45  ;;  %v1603_v55 = vadd.f32 %v10386_v10, %v1084_v46  ;;  %v1348_v56 = vadd.f32 %v10386_v10, %v829_v47  ;;  %v316_v45 = vld [vmem:[%s9995_s9 + $0x1e0] sm:$0xff]  ;;  %v317_v47 = vld [vmem:[%s9995_s9 + $0x1e8] sm:$0xff] }
  0x9d   : > { %v3140_v57 = vsel %vm2115_vm1, %v1602_v43, %v2628_v53  ;;  %v1085_v58 = vmul.f32 %v10373_v3, %v566_v48  ;;  %v830_v59 = vmul.f32 %v10373_v3, %v311_v49  ;;  %v1086_v60 = vmul.f32 %v10373_v3, %v567_v50  ;;  %v572_v46 = vld [vmem:[%s9995_s9 + $0x9e0] sm:$0xff] }
  0x9e   : > { %9586 = vmatprep.mubr.msk.f32.mxu1 %vm3352_vm0, %v3140_v57  ;;  %vm1860_vm2 = vcmp.ge.f32.partialorder %v1347_v54, 0.0  ;;  %v2373_v62 = vmul.f32 %v10011_v12, %v1347_v54  ;;  %vm2116_vm3 = vcmp.ge.f32.partialorder %v1603_v55, 0.0  ;;  %v2629_v63 = vmul.f32 %v10011_v12, %v1603_v55  ;;  %v573_v57 = vld [vmem:[%s9995_s9 + $0x9e8] sm:$0xff] }
  0x9f   : > { %vm1861_vm4 = vcmp.ge.f32.partialorder %v1348_v56, 0.0  ;;  %v2374_v1 = vmul.f32 %v10011_v12, %v1348_v56  ;;  %v1604_v0 = vadd.f32 %v10386_v10, %v1085_v58  ;;  %v1349_v4 = vadd.f32 %v10386_v10, %v830_v59  ;;  %v318_v58 = vld [vmem:[%s9995_s9 + $0x1f0] sm:$0xff] }
  0xa0   : > { %v2885_v5 = vsel %vm1860_vm2, %v1347_v54, %v2373_v62  ;;  %v3141_v6 = vsel %vm2116_vm3, %v1603_v55, %v2629_v63  ;;  %v1605_v7 = vadd.f32 %v10386_v10, %v1086_v60  ;;  %v831_v2 = vmul.f32 %v10373_v3, %v312_v61  ;;  %v574_v59 = vld [vmem:[%s9995_s9 + $0x9f0] sm:$0xff] }
  0xa1   : > { %9203 = vmatmul.mubr.msk.f32.gmra.mxu0 %vm3352_vm0, %v2885_v5  ;;  %9587 = vmatmul.mubr.msk.f32.gmra.mxu1 %vm3352_vm0, %v3141_v6  ;;  %v2886_v13 = vsel %vm1861_vm4, %v1348_v56, %v2374_v1  ;;  %vm2117_vm5 = vcmp.ge.f32.partialorder %v1604_v0, 0.0  ;;  %v2630_v14 = vmul.f32 %v10011_v12, %v1604_v0  ;;  %vm1862_vm6 = vcmp.ge.f32.partialorder %v1349_v4, 0.0 }
  0xa2   : > { %9205 = vmatprep.mubr.msk.f32.mxu0 %vm3352_vm0, %v2886_v13  ;;  %v2375_v15 = vmul.f32 %v10011_v12, %v1349_v4  ;;  %vm2118_vm7 = vcmp.ge.f32.partialorder %v1605_v7, 0.0  ;;  %v2631_v16 = vmul.f32 %v10011_v12, %v1605_v7  ;;  %v1350_v17 = vadd.f32 %v10386_v10, %v831_v2  ;;  %v319_v2 = vld [vmem:[%s9995_s9 + $0x1f8] sm:$0xff] }
  0xa3   : > { %v3142_v18 = vsel %vm2117_vm5, %v1604_v0, %v2630_v14  ;;  %v1087_v19 = vmul.f32 %v10373_v3, %v568_v8  ;;  %v832_v20 = vmul.f32 %v10373_v3, %v313_v9  ;;  %v1088_v21 = vmul.f32 %v10373_v3, %v569_v11 }
  0xa4   : > { %9589 = vmatprep.mubr.msk.f32.mxu1 %vm3352_vm0, %v3142_v18  ;;  %v2887_v25 = vsel %vm1862_vm6, %v1349_v4, %v2375_v15  ;;  %v3143_v26 = vsel %vm2118_vm7, %v1605_v7, %v2631_v16  ;;  %vm1863_vm8 = vcmp.ge.f32.partialorder %v1350_v17, 0.0  ;;  %v2376_v27 = vmul.f32 %v10011_v12, %v1350_v17 }
  0xa5   : > { %9206 = vmatmul.mubr.msk.f32.gmra.mxu0 %vm3352_vm0, %v2887_v25  ;;  %9590 = vmatmul.mubr.msk.f32.gmra.mxu1 %vm3352_vm0, %v3143_v26  ;;  %v1606_v28 = vadd.f32 %v10386_v10, %v1087_v19  ;;  %v1351_v29 = vadd.f32 %v10386_v10, %v832_v20  ;;  %v1607_v30 = vadd.f32 %v10386_v10, %v1088_v21  ;;  %v575_v19 = vld [vmem:[%s9995_s9 + $0x9f8] sm:$0xff]  ;;  %v320_v20 = vld [vmem:[%s9995_s9 + $0x200] sm:$0xff] }
  0xa6   : > { %v2888_v31 = vsel %vm1863_vm8, %v1350_v17, %v2376_v27  ;;  %v833_v32 = vmul.f32 %v10373_v3, %v314_v22  ;;  %v1089_v33 = vmul.f32 %v10373_v3, %v570_v23  ;;  %v834_v34 = vmul.f32 %v10373_v3, %v315_v24  ;;  %v576_v21 = vld [vmem:[%s9995_s9 + $0xa00] sm:$0xff] }
  0xa7   : > { %9208 = vmatprep.mubr.msk.f32.mxu0 %vm3352_vm0, %v2888_v31  ;;  %vm2119_vm9 = vcmp.ge.f32.partialorder %v1606_v28, 0.0  ;;  %v2632_v36 = vmul.f32 %v10011_v12, %v1606_v28  ;;  %vm1864_vm10 = vcmp.ge.f32.partialorder %v1351_v29, 0.0  ;;  %v2377_v37 = vmul.f32 %v10011_v12, %v1351_v29  ;;  %v321_v31 = vld [vmem:[%s9995_s9 + $0x208] sm:$0xff] }
  0xa8   : > { %vm2120_vm11 = vcmp.ge.f32.partialorder %v1607_v30, 0.0  ;;  %v2633_v38 = vmul.f32 %v10011_v12, %v1607_v30  ;;  %v1352_v39 = vadd.f32 %v10386_v10, %v833_v32  ;;  %v1608_v40 = vadd.f32 %v10386_v10, %v1089_v33  ;;  %v577_v32 = vld [vmem:[%s9995_s9 + $0xa08] sm:$0xff]  ;;  %v322_v33 = vld [vmem:[%s9995_s9 + $0x210] sm:$0xff] }
  0xa9   : > { %v3144_v41 = vsel %vm2119_vm9, %v1606_v28, %v2632_v36  ;;  %v2889_v42 = vsel %vm1864_vm10, %v1351_v29, %v2377_v37  ;;  %v1353_v43 = vadd.f32 %v10386_v10, %v834_v34  ;;  %v1090_v44 = vmul.f32 %v10373_v3, %v571_v35 }
  0xaa   : > { %9592 = vmatprep.mubr.msk.f32.mxu1 %vm3352_vm0, %v3144_v41  ;;  %9209 = vmatmul.mubr.msk.f32.gmra.mxu0 %vm3352_vm0, %v2889_v42  ;;  %v3145_v48 = vsel %vm2120_vm11, %v1607_v30, %v2633_v38  ;;  %vm1865_vm12 = vcmp.ge.f32.partialorder %v1352_v39, 0.0  ;;  %v2378_v49 = vmul.f32 %v10011_v12, %v1352_v39  ;;  %vm2121_vm13 = vcmp.ge.f32.partialorder %v1608_v40, 0.0 }
  0xab   : > { %9593 = vmatmul.mubr.msk.f32.gmra.mxu1 %vm3352_vm0, %v3145_v48  ;;  %v2634_v50 = vmul.f32 %v10011_v12, %v1608_v40  ;;  %vm1866_vm14 = vcmp.ge.f32.partialorder %v1353_v43, 0.0  ;;  %v2379_v51 = vmul.f32 %v10011_v12, %v1353_v43  ;;  %v1609_v52 = vadd.f32 %v10386_v10, %v1090_v44  ;;  %v578_v44 = vld [vmem:[%s9995_s9 + $0xa10] sm:$0xff] }
  0xac   : > { %v2890_v53 = vsel %vm1865_vm12, %v1352_v39, %v2378_v49  ;;  %v835_v54 = vmul.f32 %v10373_v3, %v316_v45  ;;  %v1091_v55 = vmul.f32 %v10373_v3, %v572_v46  ;;  %v836_v56 = vmul.f32 %v10373_v3, %v317_v47 }
  0xad   : > { %9211 = vmatprep.mubr.msk.f32.mxu0 %vm3352_vm0, %v2890_v53  ;;  %v3146_v60 = vsel %vm2121_vm13, %v1608_v40, %v2634_v50  ;;  %v2891_v61 = vsel %vm1866_vm14, %v1353_v43, %v2379_v51  ;;  %vm2122_vm15 = vcmp.ge.f32.partialorder %v1609_v52, 0.0  ;;  %v2635_v62 = vmul.f32 %v10011_v12, %v1609_v52 }
  0xae   : > { %9595 = vmatprep.mubr.msk.f32.mxu1 %vm3352_vm0, %v3146_v60  ;;  %9212 = vmatmul.mubr.msk.f32.gmra.mxu0 %vm3352_vm0, %v2891_v61  ;;  %v1354_v63 = vadd.f32 %v10386_v10, %v835_v54  ;;  %v1610_v1 = vadd.f32 %v10386_v10, %v1091_v55  ;;  %v1355_v0 = vadd.f32 %v10386_v10, %v836_v56  ;;  %v323_v54 = vld [vmem:[%s9995_s9 + $0x218] sm:$0xff]  ;;  %v324_v56 = vld [vmem:[%s9995_s9 + $0x220] sm:$0xff] }
  0xaf   : > { %v3147_v4 = vsel %vm2122_vm15, %v1609_v52, %v2635_v62  ;;  %v1092_v5 = vmul.f32 %v10373_v3, %v573_v57  ;;  %v837_v6 = vmul.f32 %v10373_v3, %v318_v58  ;;  %v1093_v7 = vmul.f32 %v10373_v3, %v574_v59  ;;  %v579_v55 = vld [vmem:[%s9995_s9 + $0xa18] sm:$0xff] }
  0xb0   : > { %9596 = vmatmul.mubr.msk.f32.gmra.mxu1 %vm3352_vm0, %v3147_v4  ;;  %vm1867_vm1 = vcmp.ge.f32.partialorder %v1354_v63, 0.0  ;;  %v2380_v8 = vmul.f32 %v10011_v12, %v1354_v63  ;;  %vm2123_vm2 = vcmp.ge.f32.partialorder %v1610_v1, 0.0  ;;  %v2636_v9 = vmul.f32 %v10011_v12, %v1610_v1  ;;  %v580_v4 = vld [vmem:[%s9995_s9 + $0xa20] sm:$0xff] }
  0xb1   : > { %vm1868_vm3 = vcmp.ge.f32.partialorder %v1355_v0, 0.0  ;;  %v2381_v11 = vmul.f32 %v10011_v12, %v1355_v0  ;;  %v1611_v13 = vadd.f32 %v10386_v10, %v1092_v5  ;;  %v1356_v14 = vadd.f32 %v10386_v10, %v837_v6  ;;  %v325_v5 = vld [vmem:[%s9995_s9 + $0x228] sm:$0xff] }
  0xb2   : > { %v2892_v15 = vsel %vm1867_vm1, %v1354_v63, %v2380_v8  ;;  %v3148_v16 = vsel %vm2123_vm2, %v1610_v1, %v2636_v9  ;;  %v1612_v17 = vadd.f32 %v10386_v10, %v1093_v7  ;;  %v838_v18 = vmul.f32 %v10373_v3, %v319_v2  ;;  %v581_v6 = vld [vmem:[%s9995_s9 + $0xa28] sm:$0xff] }
  0xb3   : > { %9214 = vmatprep.mubr.msk.f32.mxu0 %vm3352_vm0, %v2892_v15  ;;  %9598 = vmatprep.mubr.msk.f32.mxu1 %vm3352_vm0, %v3148_v16  ;;  %v2893_v22 = vsel %vm1868_vm3, %v1355_v0, %v2381_v11  ;;  %vm2124_vm4 = vcmp.ge.f32.partialorder %v1611_v13, 0.0  ;;  %v2637_v23 = vmul.f32 %v10011_v12, %v1611_v13  ;;  %vm1869_vm5 = vcmp.ge.f32.partialorder %v1356_v14, 0.0 }
  0xb4   : > { %9215 = vmatmul.mubr.msk.f32.gmra.mxu0 %vm3352_vm0, %v2893_v22  ;;  %v2382_v24 = vmul.f32 %v10011_v12, %v1356_v14  ;;  %vm2125_vm6 = vcmp.ge.f32.partialorder %v1612_v17, 0.0  ;;  %v2638_v25 = vmul.f32 %v10011_v12, %v1612_v17  ;;  %v1357_v26 = vadd.f32 %v10386_v10, %v838_v18  ;;  %v326_v18 = vld [vmem:[%s9995_s9 + $0x230] sm:$0xff] }
  0xb5   : > { %v3149_v27 = vsel %vm2124_vm4, %v1611_v13, %v2637_v23  ;;  %v1094_v28 = vmul.f32 %v10373_v3, %v575_v19  ;;  %v839_v29 = vmul.f32 %v10373_v3, %v320_v20  ;;  %v1095_v30 = vmul.f32 %v10373_v3, %v576_v21 }
  0xb6   : > { %9599 = vmatmul.mubr.msk.f32.gmra.mxu1 %vm3352_vm0, %v3149_v27  ;;  %v2894_v34 = vsel %vm1869_vm5, %v1356_v14, %v2382_v24  ;;  %v3150_v35 = vsel %vm2125_vm6, %v1612_v17, %v2638_v25  ;;  %vm1870_vm7 = vcmp.ge.f32.partialorder %v1357_v26, 0.0  ;;  %v2383_v36 = vmul.f32 %v10011_v12, %v1357_v26 }
  0xb7   : > { %9217 = vmatprep.mubr.msk.f32.mxu0 %vm3352_vm0, %v2894_v34  ;;  %9601 = vmatprep.mubr.msk.f32.mxu1 %vm3352_vm0, %v3150_v35  ;;  %v1613_v37 = vadd.f32 %v10386_v10, %v1094_v28  ;;  %v1358_v38 = vadd.f32 %v10386_v10, %v839_v29  ;;  %v1614_v39 = vadd.f32 %v10386_v10, %v1095_v30  ;;  %v582_v28 = vld [vmem:[%s9995_s9 + $0xa30] sm:$0xff]  ;;  %v327_v29 = vld [vmem:[%s9995_s9 + $0x238] sm:$0xff] }
  0xb8   : > { %v2895_v40 = vsel %vm1870_vm7, %v1357_v26, %v2383_v36  ;;  %v840_v41 = vmul.f32 %v10373_v3, %v321_v31  ;;  %v1096_v42 = vmul.f32 %v10373_v3, %v577_v32  ;;  %v841_v43 = vmul.f32 %v10373_v3, %v322_v33  ;;  %v583_v30 = vld [vmem:[%s9995_s9 + $0xa38] sm:$0xff] }
  0xb9   : > { %9218 = vmatmul.mubr.msk.f32.gmra.mxu0 %vm3352_vm0, %v2895_v40  ;;  %vm2126_vm8 = vcmp.ge.f32.partialorder %v1613_v37, 0.0  ;;  %v2639_v45 = vmul.f32 %v10011_v12, %v1613_v37  ;;  %vm1871_vm9 = vcmp.ge.f32.partialorder %v1358_v38, 0.0  ;;  %v2384_v46 = vmul.f32 %v10011_v12, %v1358_v38  ;;  %v328_v40 = vld [vmem:[%s9995_s9 + $0x240] sm:$0xff] }
  0xba   : > { %vm2127_vm10 = vcmp.ge.f32.partialorder %v1614_v39, 0.0  ;;  %v2640_v47 = vmul.f32 %v10011_v12, %v1614_v39  ;;  %v1359_v48 = vadd.f32 %v10386_v10, %v840_v41  ;;  %v1615_v49 = vadd.f32 %v10386_v10, %v1096_v42  ;;  %v584_v41 = vld [vmem:[%s9995_s9 + $0xa40] sm:$0xff]  ;;  %v329_v42 = vld [vmem:[%s9995_s9 + $0x248] sm:$0xff] }
  0xbb   : > { %v3151_v50 = vsel %vm2126_vm8, %v1613_v37, %v2639_v45  ;;  %v2896_v51 = vsel %vm1871_vm9, %v1358_v38, %v2384_v46  ;;  %v1360_v52 = vadd.f32 %v10386_v10, %v841_v43  ;;  %v1097_v53 = vmul.f32 %v10373_v3, %v578_v44 }
  0xbc   : > { %9602 = vmatmul.mubr.msk.f32.gmra.mxu1 %vm3352_vm0, %v3151_v50  ;;  %9220 = vmatprep.mubr.msk.f32.mxu0 %vm3352_vm0, %v2896_v51  ;;  %v3152_v57 = vsel %vm2127_vm10, %v1614_v39, %v2640_v47  ;;  %vm1872_vm11 = vcmp.ge.f32.partialorder %v1359_v48, 0.0  ;;  %v2385_v58 = vmul.f32 %v10011_v12, %v1359_v48  ;;  %vm2128_vm12 = vcmp.ge.f32.partialorder %v1615_v49, 0.0 }
  0xbd   : > { %9604 = vmatprep.mubr.msk.f32.mxu1 %vm3352_vm0, %v3152_v57  ;;  %v2641_v59 = vmul.f32 %v10011_v12, %v1615_v49  ;;  %vm1873_vm13 = vcmp.ge.f32.partialorder %v1360_v52, 0.0  ;;  %v2386_v60 = vmul.f32 %v10011_v12, %v1360_v52  ;;  %v1616_v61 = vadd.f32 %v10386_v10, %v1097_v53  ;;  %v585_v53 = vld [vmem:[%s9995_s9 + $0xa48] sm:$0xff] }
  0xbe   : > { %v2897_v62 = vsel %vm1872_vm11, %v1359_v48, %v2385_v58  ;;  %v842_v63 = vmul.f32 %v10373_v3, %v323_v54  ;;  %v1098_v1 = vmul.f32 %v10373_v3, %v579_v55  ;;  %v843_v0 = vmul.f32 %v10373_v3, %v324_v56 }
  0xbf   : > { %9221 = vmatmul.mubr.msk.f32.gmra.mxu0 %vm3352_vm0, %v2897_v62  ;;  %v3153_v7 = vsel %vm2128_vm12, %v1615_v49, %v2641_v59  ;;  %v2898_v2 = vsel %vm1873_vm13, %v1360_v52, %v2386_v60  ;;  %vm2129_vm14 = vcmp.ge.f32.partialorder %v1616_v61, 0.0  ;;  %v2642_v8 = vmul.f32 %v10011_v12, %v1616_v61 }
  0xc0   : > { %9605 = vmatmul.mubr.msk.f32.gmra.mxu1 %vm3352_vm0, %v3153_v7  ;;  %9223 = vmatprep.mubr.msk.f32.mxu0 %vm3352_vm0, %v2898_v2  ;;  %v1361_v9 = vadd.f32 %v10386_v10, %v842_v63  ;;  %v1617_v11 = vadd.f32 %v10386_v10, %v1098_v1  ;;  %v1362_v13 = vadd.f32 %v10386_v10, %v843_v0  ;;  %v330_v63 = vld [vmem:[%s9995_s9 + $0x250] sm:$0xff]  ;;  %v331_v0 = vld [vmem:[%s9995_s9 + $0x258] sm:$0xff] }
  0xc1   : > { %v3154_v14 = vsel %vm2129_vm14, %v1616_v61, %v2642_v8  ;;  %v1099_v15 = vmul.f32 %v10373_v3, %v580_v4  ;;  %v844_v16 = vmul.f32 %v10373_v3, %v325_v5  ;;  %v1100_v17 = vmul.f32 %v10373_v3, %v581_v6  ;;  %v586_v1 = vld [vmem:[%s9995_s9 + $0xa50] sm:$0xff]  ;;  %v10755_v8 = vld [vmem:[%s15546_s1] ss:$0 sm:$0xff] }
  0xc2   : > { %9607 = vmatprep.mubr.msk.f32.mxu1 %vm3352_vm0, %v3154_v14  ;;  %vm1874_vm15 = vcmp.ge.f32.partialorder %v1361_v9, 0.0  ;;  %v2387_v19 = vmul.f32 %v10011_v12, %v1361_v9  ;;  %vm2130_vm1 = vcmp.ge.f32.partialorder %v1617_v11, 0.0  ;;  %v2643_v20 = vmul.f32 %v10011_v12, %v1617_v11  ;;  %v587_v14 = vld [vmem:[%s9995_s9 + $0xa58] sm:$0xff] }
  0xc3   : > { %vm1875_vm2 = vcmp.ge.f32.partialorder %v1362_v13, 0.0  ;;  %v2388_v21 = vmul.f32 %v10011_v12, %v1362_v13  ;;  %v1618_v22 = vadd.f32 %v10386_v10, %v1099_v15  ;;  %v1363_v23 = vadd.f32 %v10386_v10, %v844_v16  ;;  %v332_v15 = vld [vmem:[%s9995_s9 + $0x260] sm:$0xff] }
  0xc4   : > { %v2899_v24 = vsel %vm1874_vm15, %v1361_v9, %v2387_v19  ;;  %v3155_v25 = vsel %vm2130_vm1, %v1617_v11, %v2643_v20  ;;  %v1619_v26 = vadd.f32 %v10386_v10, %v1100_v17  ;;  %v845_v27 = vmul.f32 %v10373_v3, %v326_v18  ;;  %v588_v16 = vld [vmem:[%s9995_s9 + $0xa60] sm:$0xff] }
  0xc5   : > { %9224 = vmatmul.mubr.msk.f32.gmra.mxu0 %vm3352_vm0, %v2899_v24  ;;  %9608 = vmatmul.mubr.msk.f32.gmra.mxu1 %vm3352_vm0, %v3155_v25  ;;  %v2900_v31 = vsel %vm1875_vm2, %v1362_v13, %v2388_v21  ;;  %vm2131_vm3 = vcmp.ge.f32.partialorder %v1618_v22, 0.0  ;;  %v2644_v32 = vmul.f32 %v10011_v12, %v1618_v22  ;;  %vm1876_vm4 = vcmp.ge.f32.partialorder %v1363_v23, 0.0  ;;  %v10770_v19 = vld [vmem:[%s15547_s2] ss:$0 sm:$0xff] }
  0xc6   : > { %9226 = vmatprep.mubr.msk.f32.mxu0 %vm3352_vm0, %v2900_v31  ;;  %v2389_v33 = vmul.f32 %v10011_v12, %v1363_v23  ;;  %vm2132_vm5 = vcmp.ge.f32.partialorder %v1619_v26, 0.0  ;;  %v2645_v34 = vmul.f32 %v10011_v12, %v1619_v26  ;;  %v1364_v35 = vadd.f32 %v10386_v10, %v845_v27  ;;  %v333_v27 = vld [vmem:[%s9995_s9 + $0x268] sm:$0xff] }
  0xc7   : > { %v3156_v36 = vsel %vm2131_vm3, %v1618_v22, %v2644_v32  ;;  %v1101_v37 = vmul.f32 %v10373_v3, %v582_v28  ;;  %v846_v38 = vmul.f32 %v10373_v3, %v327_v29  ;;  %v1102_v39 = vmul.f32 %v10373_v3, %v583_v30 }
  0xc8   : > { %9610 = vmatprep.mubr.msk.f32.mxu1 %vm3352_vm0, %v3156_v36  ;;  %v2901_v43 = vsel %vm1876_vm4, %v1363_v23, %v2389_v33  ;;  %v3157_v44 = vsel %vm2132_vm5, %v1619_v26, %v2645_v34  ;;  %vm1877_vm6 = vcmp.ge.f32.partialorder %v1364_v35, 0.0  ;;  %v2390_v45 = vmul.f32 %v10011_v12, %v1364_v35 }
  0xc9   : > { %9227 = vmatmul.mubr.msk.f32.gmra.mxu0 %vm3352_vm0, %v2901_v43  ;;  %9611 = vmatmul.mubr.msk.f32.gmra.mxu1 %vm3352_vm0, %v3157_v44  ;;  %v1620_v46 = vadd.f32 %v10386_v10, %v1101_v37  ;;  %v1365_v47 = vadd.f32 %v10386_v10, %v846_v38  ;;  %v1621_v48 = vadd.f32 %v10386_v10, %v1102_v39  ;;  %v589_v37 = vld [vmem:[%s9995_s9 + $0xa68] sm:$0xff]  ;;  %v334_v38 = vld [vmem:[%s9995_s9 + $0x270] sm:$0xff] }
  0xca   : > { %v2902_v49 = vsel %vm1877_vm6, %v1364_v35, %v2390_v45  ;;  %v847_v50 = vmul.f32 %v10373_v3, %v328_v40  ;;  %v1103_v51 = vmul.f32 %v10373_v3, %v584_v41  ;;  %v848_v52 = vmul.f32 %v10373_v3, %v329_v42  ;;  %v590_v39 = vld [vmem:[%s9995_s9 + $0xa70] sm:$0xff] }
  0xcb   : > { %9229 = vmatprep.mubr.msk.f32.mxu0 %vm3352_vm0, %v2902_v49  ;;  %vm2133_vm7 = vcmp.ge.f32.partialorder %v1620_v46, 0.0  ;;  %v2646_v54 = vmul.f32 %v10011_v12, %v1620_v46  ;;  %vm1878_vm8 = vcmp.ge.f32.partialorder %v1365_v47, 0.0  ;;  %v2391_v55 = vmul.f32 %v10011_v12, %v1365_v47  ;;  %v335_v49 = vld [vmem:[%s9995_s9 + $0x278] sm:$0xff] }
  0xcc   : > { %vm2134_vm9 = vcmp.ge.f32.partialorder %v1621_v48, 0.0  ;;  %v2647_v56 = vmul.f32 %v10011_v12, %v1621_v48  ;;  %v1366_v57 = vadd.f32 %v10386_v10, %v847_v50  ;;  %v1622_v58 = vadd.f32 %v10386_v10, %v1103_v51  ;;  %v591_v50 = vld [vmem:[%s9995_s9 + $0xa78] sm:$0xff]  ;;  %v336_v51 = vld [vmem:[%s9995_s9 + $0x280] sm:$0xff] }
  0xcd   : > { %v3158_v59 = vsel %vm2133_vm7, %v1620_v46, %v2646_v54  ;;  %v2903_v60 = vsel %vm1878_vm8, %v1365_v47, %v2391_v55  ;;  %v1367_v61 = vadd.f32 %v10386_v10, %v848_v52  ;;  %v1104_v62 = vmul.f32 %v10373_v3, %v585_v53 }
  0xce   : > { %9613 = vmatprep.mubr.msk.f32.mxu1 %vm3352_vm0, %v3158_v59  ;;  %9230 = vmatmul.mubr.msk.f32.gmra.mxu0 %vm3352_vm0, %v2903_v60  ;;  %v3159_v4 = vsel %vm2134_vm9, %v1621_v48, %v2647_v56  ;;  %vm1879_vm10 = vcmp.ge.f32.partialorder %v1366_v57, 0.0  ;;  %v2392_v5 = vmul.f32 %v10011_v12, %v1366_v57  ;;  %vm2135_vm11 = vcmp.ge.f32.partialorder %v1622_v58, 0.0 }
  0xcf   : > { %9614 = vmatmul.mubr.msk.f32.gmra.mxu1 %vm3352_vm0, %v3159_v4  ;;  %v2648_v6 = vmul.f32 %v10011_v12, %v1622_v58  ;;  %vm1880_vm12 = vcmp.ge.f32.partialorder %v1367_v61, 0.0  ;;  %v2393_v3 = vmul.f32 %v10011_v12, %v1367_v61  ;;  %v1623_v7 = vadd.f32 %v10386_v10, %v1104_v62 }
  0xd0   : > { %v2904_v2 = vsel %vm1879_vm10, %v1366_v57, %v2392_v5  ;;  %v849_v9 = vmul.f32 %v10755_v8, %v330_v63  ;;  %v1105_v11 = vmul.f32 %v10755_v8, %v586_v1  ;;  %v850_v13 = vmul.f32 %v10755_v8, %v331_v0  ;;  %v592_v1 = vld [vmem:[%s9995_s9 + $0xa80] sm:$0xff] }
  0xd1   : > { %9232 = vmatprep.mubr.msk.f32.mxu0 %vm3352_vm0, %v2904_v2  ;;  %v3160_v17 = vsel %vm2135_vm11, %v1622_v58, %v2648_v6  ;;  %v2905_v10 = vsel %vm1880_vm12, %v1367_v61, %v2393_v3  ;;  %vm2136_vm13 = vcmp.ge.f32.partialorder %v1623_v7, 0.0  ;;  %v2649_v18 = vmul.f32 %v10011_v12, %v1623_v7 }
  0xd2   : > { %9616 = vmatprep.mubr.msk.f32.mxu1 %vm3352_vm0, %v3160_v17  ;;  %9233 = vmatmul.mubr.msk.f32.gmra.mxu0 %vm3352_vm0, %v2905_v10  ;;  %v1368_v20 = vadd.f32 %v10770_v19, %v849_v9  ;;  %v1624_v21 = vadd.f32 %v10770_v19, %v1105_v11  ;;  %v1369_v22 = vadd.f32 %v10770_v19, %v850_v13  ;;  %v338_v17 = vld [vmem:[%s9995_s9 + $0x290] sm:$0xff] }
  0xd3   : > { %v3161_v23 = vsel %vm2136_vm13, %v1623_v7, %v2649_v18  ;;  %v1106_v24 = vmul.f32 %v10755_v8, %v587_v14  ;;  %v851_v25 = vmul.f32 %v10755_v8, %v332_v15  ;;  %v1107_v26 = vmul.f32 %v10755_v8, %v588_v16  ;;  %v337_v15 = vld [vmem:[%s9995_s9 + $0x288] sm:$0xff] }
  0xd4   : > { %9617 = vmatmul.mubr.msk.f32.gmra.mxu1 %vm3352_vm0, %v3161_v23  ;;  %vm1881_vm14 = vcmp.ge.f32.partialorder %v1368_v20, 0.0  ;;  %v2394_v28 = vmul.f32 %v10011_v12, %v1368_v20  ;;  %vm2137_vm15 = vcmp.ge.f32.partialorder %v1624_v21, 0.0  ;;  %v2650_v29 = vmul.f32 %v10011_v12, %v1624_v21  ;;  %v593_v16 = vld [vmem:[%s9995_s9 + $0xa88] sm:$0xff] }
  0xd5   : > { %vm1882_vm1 = vcmp.ge.f32.partialorder %v1369_v22, 0.0  ;;  %v2395_v30 = vmul.f32 %v10011_v12, %v1369_v22  ;;  %v1625_v31 = vadd.f32 %v10770_v19, %v1106_v24  ;;  %v1370_v32 = vadd.f32 %v10770_v19, %v851_v25 }
  0xd6   : > { %v2906_v33 = vsel %vm1881_vm14, %v1368_v20, %v2394_v28  ;;  %v3162_v34 = vsel %vm2137_vm15, %v1624_v21, %v2650_v29  ;;  %v1626_v35 = vadd.f32 %v10770_v19, %v1107_v26  ;;  %v852_v36 = vmul.f32 %v10755_v8, %v333_v27  ;;  %v594_v29 = vld [vmem:[%s9995_s9 + $0xa90] sm:$0xff] }
  0xd7   : > { %9235 = vmatprep.mubr.msk.f32.mxu0 %vm3352_vm0, %v2906_v33  ;;  %9619 = vmatprep.mubr.msk.f32.mxu1 %vm3352_vm0, %v3162_v34  ;;  %v2907_v40 = vsel %vm1882_vm1, %v1369_v22, %v2395_v30  ;;  %vm2138_vm2 = vcmp.ge.f32.partialorder %v1625_v31, 0.0  ;;  %v2651_v41 = vmul.f32 %v10011_v12, %v1625_v31  ;;  %vm1883_vm3 = vcmp.ge.f32.partialorder %v1370_v32, 0.0  ;;  %v339_v30 = vld [vmem:[%s9995_s9 + $0x298] sm:$0xff] }
  0xd8   : > { %9236 = vmatmul.mubr.msk.f32.gmra.mxu0 %vm3352_vm0, %v2907_v40  ;;  %v2396_v42 = vmul.f32 %v10011_v12, %v1370_v32  ;;  %vm2139_vm4 = vcmp.ge.f32.partialorder %v1626_v35, 0.0  ;;  %v2652_v43 = vmul.f32 %v10011_v12, %v1626_v35  ;;  %v1371_v44 = vadd.f32 %v10770_v19, %v852_v36 }
  0xd9   : > { %v3163_v45 = vsel %vm2138_vm2, %v1625_v31, %v2651_v41  ;;  %v1108_v46 = vmul.f32 %v10755_v8, %v589_v37  ;;  %v853_v47 = vmul.f32 %v10755_v8, %v334_v38  ;;  %v1109_v48 = vmul.f32 %v10755_v8, %v590_v39  ;;  %v595_v31 = vld [vmem:[%s9995_s9 + $0xa98] sm:$0xff] }
  0xda   : > { %9620 = vmatmul.mubr.msk.f32.gmra.mxu1 %vm3352_vm0, %v3163_v45  ;;  %v2908_v52 = vsel %vm1883_vm3, %v1370_v32, %v2396_v42  ;;  %v3164_v53 = vsel %vm2139_vm4, %v1626_v35, %v2652_v43  ;;  %vm1884_vm5 = vcmp.ge.f32.partialorder %v1371_v44, 0.0  ;;  %v2397_v54 = vmul.f32 %v10011_v12, %v1371_v44  ;;  %v340_v45 = vld [vmem:[%s9995_s9 + $0x2a0] sm:$0xff] }
  0xdb   : > { %9238 = vmatprep.mubr.msk.f32.mxu0 %vm3352_vm0, %v2908_v52  ;;  %9622 = vmatprep.mubr.msk.f32.mxu1 %vm3352_vm0, %v3164_v53  ;;  %v1627_v55 = vadd.f32 %v10770_v19, %v1108_v46  ;;  %v1372_v56 = vadd.f32 %v10770_v19, %v853_v47  ;;  %v1628_v57 = vadd.f32 %v10770_v19, %v1109_v48  ;;  %v10810_v58 = vpop.f32.mrf.mxu0 }
  0xdc   : > { %v10812_v59 = vpop.f32.mrf.mxu1  ;;  %v2909_v60 = vsel %vm1884_vm5, %v1371_v44, %v2397_v54  ;;  %v854_v61 = vmul.f32 %v10755_v8, %v335_v49  ;;  %v1110_v62 = vmul.f32 %v10755_v8, %v591_v50  ;;  %v855_v63 = vmul.f32 %v10755_v8, %v336_v51 }
  0xdd   : > { %9239 = vmatmul.mubr.msk.f32.gmra.mxu0 %vm3352_vm0, %v2909_v60  ;;  %vm2140_vm6 = vcmp.ge.f32.partialorder %v1627_v55, 0.0  ;;  %v2653_v0 = vmul.f32 %v10011_v12, %v1627_v55  ;;  %vm1885_vm7 = vcmp.ge.f32.partialorder %v1372_v56, 0.0  ;;  %v2398_v4 = vmul.f32 %v10011_v12, %v1372_v56  ;;  %v10821_v5 = vpop.f32.mrf.mxu0  ;;  %v341_v60 = vld [vmem:[%s9995_s9 + $0x2a8] sm:$0xff] }
  0xde   : > { %v10823_v6 = vpop.f32.mrf.mxu1  ;;  %vm2141_vm8 = vcmp.ge.f32.partialorder %v1628_v57, 0.0  ;;  %v2654_v3 = vmul.f32 %v10011_v12, %v1628_v57  ;;  %v1373_v7 = vadd.f32 %v10770_v19, %v854_v61  ;;  %v1629_v2 = vadd.f32 %v10770_v19, %v1110_v62  ;;  %v597_v61 = vld [vmem:[%s9995_s9 + $0xaa8] sm:$0xff] }
  0xdf   : > { %v3165_v9 = vsel %vm2140_vm6, %v1627_v55, %v2653_v0  ;;  %v2910_v11 = vsel %vm1885_vm7, %v1372_v56, %v2398_v4  ;;  %v1374_v13 = vadd.f32 %v10770_v19, %v855_v63  ;;  %v1111_v14 = vmul.f32 %v10755_v8, %v592_v1 }
  0xe0   : > { %9623 = vmatmul.mubr.msk.f32.gmra.mxu1 %vm3352_vm0, %v3165_v9  ;;  %9241 = vmatprep.mubr.msk.f32.mxu0 %vm3352_vm0, %v2910_v11  ;;  %v3166_v10 = vsel %vm2141_vm8, %v1628_v57, %v2654_v3  ;;  %vm1886_vm9 = vcmp.ge.f32.partialorder %v1373_v7, 0.0  ;;  %v2399_v18 = vmul.f32 %v10011_v12, %v1373_v7  ;;  %vm2142_vm10 = vcmp.ge.f32.partialorder %v1629_v2, 0.0  ;;  %v10836_v20 = vpop.f32.mrf.mxu0  ;;  %v596_v57 = vld [vmem:[%s9995_s9 + $0xaa0] sm:$0xff] }
  0xe1   : > { %v10838_v21 = vpop.f32.mrf.mxu1  ;;  %9625 = vmatprep.mubr.msk.f32.mxu1 %vm3352_vm0, %v3166_v10  ;;  %v2655_v22 = vmul.f32 %v10011_v12, %v1629_v2  ;;  %vm1887_vm11 = vcmp.ge.f32.partialorder %v1374_v13, 0.0  ;;  %v2400_v23 = vmul.f32 %v10011_v12, %v1374_v13  ;;  %v1630_v24 = vadd.f32 %v10770_v19, %v1111_v14  ;;  %v342_v14 = vld [vmem:[%s9995_s9 + $0x2b0] sm:$0xff] }
  0xe2   : > { %v2911_v25 = vsel %vm1886_vm9, %v1373_v7, %v2399_v18  ;;  %v856_v26 = vmul.f32 %v10755_v8, %v337_v15  ;;  %v1112_v27 = vmul.f32 %v10755_v8, %v593_v16  ;;  %v857_v28 = vmul.f32 %v10755_v8, %v338_v17  ;;  %v10850_v32 = vpop.f32.mrf.mxu0  ;;  %v598_v15 = vld [vmem:[%s9995_s9 + $0xab0] sm:$0xff]  ;;  %v343_v16 = vld [vmem:[%s9995_s9 + $0x2b8] sm:$0xff] }
  0xe3   : > { %v10852_v33 = vpop.f32.mrf.mxu1  ;;  %9242 = vmatmul.mubr.msk.f32.gmra.mxu0 %vm3352_vm0, %v2911_v25  ;;  %v3167_v34 = vsel %vm2142_vm10, %v1629_v2, %v2655_v22  ;;  %v2912_v35 = vsel %vm1887_vm11, %v1374_v13, %v2400_v23  ;;  %vm2143_vm12 = vcmp.ge.f32.partialorder %v1630_v24, 0.0  ;;  %v2656_v36 = vmul.f32 %v10011_v12, %v1630_v24 }
  0xe4   : > { %9626 = vmatmul.mubr.msk.f32.gmra.mxu1 %vm3352_vm0, %v3167_v34  ;;  %9244 = vmatprep.mubr.msk.f32.mxu0 %vm3352_vm0, %v2912_v35  ;;  %v1375_v37 = vadd.f32 %v10770_v19, %v856_v26  ;;  %v1631_v38 = vadd.f32 %v10770_v19, %v1112_v27  ;;  %v1376_v39 = vadd.f32 %v10770_v19, %v857_v28  ;;  %v10862_v40 = vpop.f32.mrf.mxu0 }
  0xe5   : > { %v3168_v41 = vsel %vm2143_vm12, %v1630_v24, %v2656_v36  ;;  %v1113_v42 = vmul.f32 %v10755_v8, %v594_v29  ;;  %v858_v43 = vmul.f32 %v10755_v8, %v339_v30  ;;  %v1114_v44 = vmul.f32 %v10755_v8, %v595_v31  ;;  %v599_v31 = vld [vmem:[%s9995_s9 + $0xab8] sm:$0xff] }
  0xe6   : > { %9628 = vmatprep.mubr.msk.f32.mxu1 %vm3352_vm0, %v3168_v41  ;;  %vm1888_vm13 = vcmp.ge.f32.partialorder %v1375_v37, 0.0  ;;  %v2401_v46 = vmul.f32 %v10011_v12, %v1375_v37  ;;  %vm2144_vm14 = vcmp.ge.f32.partialorder %v1631_v38, 0.0  ;;  %v2657_v47 = vmul.f32 %v10011_v12, %v1631_v38  ;;  %v10871_v48 = vpop.f32.mrf.mxu1  ;;  %v10873_v49 = vpop.f32.mrf.mxu0 }
  0xe7   : > { %vm1889_vm15 = vcmp.ge.f32.partialorder %v1376_v39, 0.0  ;;  %v2402_v50 = vmul.f32 %v10011_v12, %v1376_v39  ;;  %v1632_v51 = vadd.f32 %v10770_v19, %v1113_v42  ;;  %v1377_v52 = vadd.f32 %v10770_v19, %v858_v43 }
  0xe8   : > { %v2913_v53 = vsel %vm1888_vm13, %v1375_v37, %v2401_v46  ;;  %v3169_v54 = vsel %vm2144_vm14, %v1631_v38, %v2657_v47  ;;  %v1633_v55 = vadd.f32 %v10770_v19, %v1114_v44  ;;  %v859_v56 = vmul.f32 %v10755_v8, %v340_v45  ;;  %v10883_v62 = vpop.f32.mrf.mxu1  ;;  %v344_v47 = vld [vmem:[%s9995_s9 + $0x2c0] sm:$0xff] }
  0xe9   : > { %9245 = vmatmul.mubr.msk.f32.gmra.mxu0 %vm3352_vm0, %v2913_v53  ;;  %9629 = vmatmul.mubr.msk.f32.gmra.mxu1 %vm3352_vm0, %v3169_v54  ;;  %v2914_v63 = vsel %vm1889_vm15, %v1376_v39, %v2402_v50  ;;  %vm2145_vm1 = vcmp.ge.f32.partialorder %v1632_v51, 0.0  ;;  %v2658_v1 = vmul.f32 %v10011_v12, %v1632_v51  ;;  %vm1890_vm2 = vcmp.ge.f32.partialorder %v1377_v52, 0.0  ;;  %v600_v50 = vld [vmem:[%s9995_s9 + $0xac0] sm:$0xff] }
  0xea   : > { %v10888_v0 = vpop.f32.mrf.mxu0  ;;  %9247 = vmatprep.mubr.msk.f32.mxu0 %vm3352_vm0, %v2914_v63  ;;  %v2403_v4 = vmul.f32 %v10011_v12, %v1377_v52  ;;  %vm2146_vm3 = vcmp.ge.f32.partialorder %v1633_v55, 0.0  ;;  %v2659_v3 = vmul.f32 %v10011_v12, %v1633_v55  ;;  %v1378_v7 = vadd.f32 %v10770_v19, %v859_v56 }
  0xeb   : > { %v3170_v2 = vsel %vm2145_vm1, %v1632_v51, %v2658_v1  ;;  %v1115_v9 = vmul.f32 %v10755_v8, %v596_v57  ;;  %v860_v11 = vmul.f32 %v10755_v8, %v341_v60  ;;  %v1116_v13 = vmul.f32 %v10755_v8, %v597_v61  ;;  %v345_v51 = vld [vmem:[%s9995_s9 + $0x2c8] sm:$0xff] }
  0xec   : > { %v10900_v17 = vpop.f32.mrf.mxu0  ;;  %9631 = vmatprep.mubr.msk.f32.mxu1 %vm3352_vm0, %v3170_v2  ;;  %v2915_v10 = vsel %vm1890_vm2, %v1377_v52, %v2403_v4  ;;  %v3171_v18 = vsel %vm2146_vm3, %v1633_v55, %v2659_v3  ;;  %vm1891_vm4 = vcmp.ge.f32.partialorder %v1378_v7, 0.0  ;;  %v2404_v22 = vmul.f32 %v10011_v12, %v1378_v7  ;;  %v10905_v23 = vpop.f32.mrf.mxu1  ;;  %v601_v3 = vld [vmem:[%s9995_s9 + $0xac8] sm:$0xff]  ;;  %v602_v2 = vld [vmem:[%s9995_s9 + $0xad0] sm:$0xff] }
  0xed   : > { %9248 = vmatmul.mubr.msk.f32.gmra.mxu0 %vm3352_vm0, %v2915_v10  ;;  %9632 = vmatmul.mubr.msk.f32.gmra.mxu1 %vm3352_vm0, %v3171_v18  ;;  %v1634_v24 = vadd.f32 %v10770_v19, %v1115_v9  ;;  %v1379_v25 = vadd.f32 %v10770_v19, %v860_v11  ;;  %v1635_v26 = vadd.f32 %v10770_v19, %v1116_v13 }
  0xee   : > { %v2916_v27 = vsel %vm1891_vm4, %v1378_v7, %v2404_v22  ;;  %v861_v28 = vmul.f32 %v10755_v8, %v342_v14  ;;  %v1117_v29 = vmul.f32 %v10755_v8, %v598_v15  ;;  %v862_v30 = vmul.f32 %v10755_v8, %v343_v16  ;;  %v10916_v34 = vpop.f32.mrf.mxu1  ;;  %v346_v7 = vld [vmem:[%s9995_s9 + $0x2d0] sm:$0xff] }
  0xef   : > { %9250 = vmatprep.mubr.msk.f32.mxu0 %vm3352_vm0, %v2916_v27  ;;  %vm2147_vm5 = vcmp.ge.f32.partialorder %v1634_v24, 0.0  ;;  %v2660_v35 = vmul.f32 %v10011_v12, %v1634_v24  ;;  %vm1892_vm6 = vcmp.ge.f32.partialorder %v1379_v25, 0.0  ;;  %v2405_v36 = vmul.f32 %v10011_v12, %v1379_v25  ;;  %v10921_v37 = vpop.f32.mrf.mxu0  ;;  %v347_v27 = vld [vmem:[%s9995_s9 + $0x2d8] sm:$0xff] }
  0xf0   : > { %vm2148_vm7 = vcmp.ge.f32.partialorder %v1635_v26, 0.0  ;;  %v2661_v38 = vmul.f32 %v10011_v12, %v1635_v26  ;;  %v1380_v39 = vadd.f32 %v10770_v19, %v861_v28  ;;  %v1636_v41 = vadd.f32 %v10770_v19, %v1117_v29  ;;  %v10926_v42 = vpop.f32.mrf.mxu1 }
  0xf1   : > { %v3172_v43 = vsel %vm2147_vm5, %v1634_v24, %v2660_v35  ;;  %v2917_v44 = vsel %vm1892_vm6, %v1379_v25, %v2405_v36  ;;  %v1381_v45 = vadd.f32 %v10770_v19, %v862_v30  ;;  %v1118_v46 = vmul.f32 %v10755_v8, %v599_v31  ;;  %v10933_v52 = vpop.f32.mrf.mxu0 }
  0xf2   : > { %9634 = vmatprep.mubr.msk.f32.mxu1 %vm3352_vm0, %v3172_v43  ;;  %9251 = vmatmul.mubr.msk.f32.gmra.mxu0 %vm3352_vm0, %v2917_v44  ;;  %v3173_v53 = vsel %vm2148_vm7, %v1635_v26, %v2661_v38  ;;  %vm1893_vm8 = vcmp.ge.f32.partialorder %v1380_v39, 0.0  ;;  %v2406_v54 = vmul.f32 %v10011_v12, %v1380_v39  ;;  %vm2149_vm9 = vcmp.ge.f32.partialorder %v1636_v41, 0.0  ;;  %v10938_v55 = vpop.f32.mrf.mxu1 }
  0xf3   : > { %9635 = vmatmul.mubr.msk.f32.gmra.mxu1 %vm3352_vm0, %v3173_v53  ;;  %v2662_v56 = vmul.f32 %v10011_v12, %v1636_v41  ;;  %vm1894_vm10 = vcmp.ge.f32.partialorder %v1381_v45, 0.0  ;;  %v2407_v57 = vmul.f32 %v10011_v12, %v1381_v45  ;;  %v1637_v60 = vadd.f32 %v10770_v19, %v1118_v46 }
  0xf4   : > { %v2918_v61 = vsel %vm1893_vm8, %v1380_v39, %v2406_v54  ;;  %v863_v63 = vmul.f32 %v10755_v8, %v344_v47  ;;  %v1119_v1 = vmul.f32 %v10755_v8, %v600_v50  ;;  %v864_v4 = vmul.f32 %v10755_v8, %v345_v51  ;;  %v603_v47 = vld [vmem:[%s9995_s9 + $0xad8] sm:$0xff]  ;;  %v348_v50 = vld [vmem:[%s9995_s9 + $0x2e0] sm:$0xff] }
  0xf5   : > { %9253 = vmatprep.mubr.msk.f32.mxu0 %vm3352_vm0, %v2918_v61  ;;  %v3174_v9 = vsel %vm2149_vm9, %v1636_v41, %v2662_v56  ;;  %v2919_v11 = vsel %vm1894_vm10, %v1381_v45, %v2407_v57  ;;  %vm2150_vm11 = vcmp.ge.f32.partialorder %v1637_v60, 0.0  ;;  %v2663_v13 = vmul.f32 %v10011_v12, %v1637_v60  ;;  %v10952_v14 = vpop.f32.mrf.mxu0  ;;  %v10954_v15 = vpop.f32.mrf.mxu1  ;;  %v604_v51 = vld [vmem:[%s9995_s9 + $0xae0] sm:$0xff] }
  0xf6   : > { %9637 = vmatprep.mubr.msk.f32.mxu1 %vm3352_vm0, %v3174_v9  ;;  %9254 = vmatmul.mubr.msk.f32.gmra.mxu0 %vm3352_vm0, %v2919_v11  ;;  %v1382_v16 = vadd.f32 %v10770_v19, %v863_v63  ;;  %v1638_v10 = vadd.f32 %v10770_v19, %v1119_v1  ;;  %v1383_v18 = vadd.f32 %v10770_v19, %v864_v4  ;;  %v605_v9 = vld [vmem:[%s9995_s9 + $0xae8] sm:$0xff]  ;;  %v350_v11 = vld [vmem:[%s9995_s9 + $0x2f0] sm:$0xff] }
  0xf7   : > { %v3175_v22 = vsel %vm2150_vm11, %v1637_v60, %v2663_v13  ;;  %v1120_v24 = vmul.f32 %v10755_v8, %v601_v3  ;;  %v865_v25 = vmul.f32 %v10755_v8, %v346_v7  ;;  %v1121_v26 = vmul.f32 %v10755_v8, %v602_v2  ;;  %v10965_v28 = vpop.f32.mrf.mxu0  ;;  %v10967_v29 = vpop.f32.mrf.mxu1  ;;  %v349_v2 = vld [vmem:[%s9995_s9 + $0x2e8] sm:$0xff] }
  0xf8   : > { %9638 = vmatmul.mubr.msk.f32.gmra.mxu1 %vm3352_vm0, %v3175_v22  ;;  %vm1895_vm12 = vcmp.ge.f32.partialorder %v1382_v16, 0.0  ;;  %v2408_v30 = vmul.f32 %v10011_v12, %v1382_v16  ;;  %vm2151_vm13 = vcmp.ge.f32.partialorder %v1638_v10, 0.0  ;;  %v2664_v31 = vmul.f32 %v10011_v12, %v1638_v10 }
  0xf9   : > { %vm1896_vm14 = vcmp.ge.f32.partialorder %v1383_v18, 0.0  ;;  %v2409_v35 = vmul.f32 %v10011_v12, %v1383_v18  ;;  %v1639_v36 = vadd.f32 %v10770_v19, %v1120_v24  ;;  %v1384_v38 = vadd.f32 %v10770_v19, %v865_v25  ;;  %v10975_v39 = vpop.f32.mrf.mxu0  ;;  %v10977_v41 = vpop.f32.mrf.mxu1 }
  0xfa   : > { %v2920_v43 = vsel %vm1895_vm12, %v1382_v16, %v2408_v30  ;;  %v3176_v44 = vsel %vm2151_vm13, %v1638_v10, %v2664_v31  ;;  %v1640_v45 = vadd.f32 %v10770_v19, %v1121_v26  ;;  %v866_v46 = vmul.f32 %v10755_v8, %v347_v27 }
  0xfb   : > { %9256 = vmatprep.mubr.msk.f32.mxu0 %vm3352_vm0, %v2920_v43  ;;  %9640 = vmatprep.mubr.msk.f32.mxu1 %vm3352_vm0, %v3176_v44  ;;  %v2921_v53 = vsel %vm1896_vm14, %v1383_v18, %v2409_v35  ;;  %vm2152_vm15 = vcmp.ge.f32.partialorder %v1639_v36, 0.0  ;;  %v2665_v54 = vmul.f32 %v10011_v12, %v1639_v36  ;;  %vm1897_vm1 = vcmp.ge.f32.partialorder %v1384_v38, 0.0  ;;  %v10987_v56 = vpop.f32.mrf.mxu0  ;;  %v10989_v57 = vpop.f32.mrf.mxu1 }
  0xfc   : > { %9257 = vmatmul.mubr.msk.f32.gmra.mxu0 %vm3352_vm0, %v2921_v53  ;;  %v2410_v60 = vmul.f32 %v10011_v12, %v1384_v38  ;;  %vm2153_vm2 = vcmp.ge.f32.partialorder %v1640_v45, 0.0  ;;  %v2666_v61 = vmul.f32 %v10011_v12, %v1640_v45  ;;  %v1385_v63 = vadd.f32 %v10770_v19, %v866_v46 }
  0xfd   : > { %v3177_v1 = vsel %vm2152_vm15, %v1639_v36, %v2665_v54  ;;  %v1122_v4 = vmul.f32 %v10755_v8, %v603_v47  ;;  %v867_v3 = vmul.f32 %v10755_v8, %v348_v50  ;;  %v1123_v7 = vmul.f32 %v10755_v8, %v604_v51  ;;  %v606_v36 = vld [vmem:[%s9995_s9 + $0xaf0] sm:$0xff] }
  0xfe   : > { %9641 = vmatmul.mubr.msk.f32.gmra.mxu1 %vm3352_vm0, %v3177_v1  ;;  %v2922_v13 = vsel %vm1897_vm1, %v1384_v38, %v2410_v60  ;;  %v3178_v16 = vsel %vm2153_vm2, %v1640_v45, %v2666_v61  ;;  %vm1898_vm3 = vcmp.ge.f32.partialorder %v1385_v63, 0.0  ;;  %v2411_v10 = vmul.f32 %v10011_v12, %v1385_v63  ;;  %v11004_v18 = vpop.f32.mrf.mxu0  ;;  %v607_v1 = vld [vmem:[%s9995_s9 + $0xaf8] sm:$0xff] }
  0xff   : > { %9259 = vmatprep.mubr.msk.f32.mxu0 %vm3352_vm0, %v2922_v13  ;;  %9643 = vmatprep.mubr.msk.f32.mxu1 %vm3352_vm0, %v3178_v16  ;;  %v1641_v22 = vadd.f32 %v10770_v19, %v1122_v4  ;;  %v1386_v24 = vadd.f32 %v10770_v19, %v867_v3  ;;  %v1642_v25 = vadd.f32 %v10770_v19, %v1123_v7  ;;  %v11011_v26 = vpop.f32.mrf.mxu1  ;;  %v352_v4 = vld [vmem:[%s9995_s9 + $0x300] sm:$0xff]  ;;  %vm7514_vm11 = vcmask 130048  }
 0x100   : > { %v2923_v27 = vsel %vm1898_vm3, %v1385_v63, %v2411_v10  ;;  %v868_v30 = vmul.f32 %v10755_v8, %v349_v2  ;;  %v1124_v31 = vmul.f32 %v10755_v8, %v605_v9  ;;  %v869_v35 = vmul.f32 %v10755_v8, %v350_v11  ;;  %v11017_v38 = vpop.f32.mrf.mxu0  ;;  %v351_v63 = vld [vmem:[%s9995_s9 + $0x2f8] sm:$0xff] }
 0x101   : > { %9260 = vmatmul.mubr.msk.f32.gmra.mxu0 %vm3352_vm0, %v2923_v27  ;;  %vm2154_vm4 = vcmp.ge.f32.partialorder %v1641_v22, 0.0  ;;  %v2667_v43 = vmul.f32 %v10011_v12, %v1641_v22  ;;  %vm1899_vm5 = vcmp.ge.f32.partialorder %v1386_v24, 0.0  ;;  %v2412_v44 = vmul.f32 %v10011_v12, %v1386_v24  ;;  %v11022_v45 = vpop.f32.mrf.mxu1  ;;  %v608_v27 = vld [vmem:[%s9995_s9 + $0xb00] sm:$0xff] }
 0x102   : > { %vm2155_vm6 = vcmp.ge.f32.partialorder %v1642_v25, 0.0  ;;  %v2668_v46 = vmul.f32 %v10011_v12, %v1642_v25  ;;  %v1387_v47 = vadd.f32 %v10770_v19, %v868_v30  ;;  %v1643_v50 = vadd.f32 %v10770_v19, %v1124_v31  ;;  %v11027_v51 = vpop.f32.mrf.mxu0  ;;  %v11052_v30 = vld [vmem:[%s15550_s5] ss:$0 sm:$0xff]  ;;  %v353_v31 = vld [vmem:[%s9995_s9 + $0x308] sm:$0xff] }
 0x103   : > { %v3179_v53 = vsel %vm2154_vm4, %v1641_v22, %v2667_v43  ;;  %v2924_v54 = vsel %vm1899_vm5, %v1386_v24, %v2412_v44  ;;  %v1388_v60 = vadd.f32 %v10770_v19, %v869_v35  ;;  %v1125_v61 = vmul.f32 %v10755_v8, %v606_v36 }
 0x104   : > { %9644 = vmatmul.mubr.msk.f32.gmra.mxu1 %vm3352_vm0, %v3179_v53  ;;  %9262 = vmatprep.mubr.msk.f32.mxu0 %vm3352_vm0, %v2924_v54  ;;  %v3180_v3 = vsel %vm2155_vm6, %v1642_v25, %v2668_v46  ;;  %vm1900_vm7 = vcmp.ge.f32.partialorder %v1387_v47, 0.0  ;;  %v2413_v7 = vmul.f32 %v10011_v12, %v1387_v47  ;;  %vm2156_vm8 = vcmp.ge.f32.partialorder %v1643_v50, 0.0  ;;  %v11037_v2 = vpop.f32.mrf.mxu1  ;;  %v11039_v9 = vpop.f32.mrf.mxu0 }
 0x105   : > { %9646 = vmatprep.mubr.msk.f32.mxu1 %vm3352_vm0, %v3180_v3  ;;  %v2669_v11 = vmul.f32 %v10011_v12, %v1643_v50  ;;  %vm1901_vm9 = vcmp.ge.f32.partialorder %v1388_v60, 0.0  ;;  %v2414_v13 = vmul.f32 %v10011_v12, %v1388_v60  ;;  %v1644_v16 = vadd.f32 %v10770_v19, %v1125_v61 }
 0x106   : > { %v2925_v10 = vsel %vm1900_vm7, %v1387_v47, %v2413_v7  ;;  %v870_v22 = vmul.f32 %v10755_v8, %v351_v63  ;;  %v1126_v24 = vmul.f32 %v10755_v8, %v607_v1  ;;  %v871_v25 = vmul.f32 %v10755_v8, %v352_v4  ;;  %v11055_v35 = vpop.f32.mrf.mxu1  ;;  %v609_v1 = vld [vmem:[%s9995_s9 + $0xb08] sm:$0xff] }
 0x107   : > { %9263 = vmatmul.mubr.msk.f32.gmra.mxu0 %vm3352_vm0, %v2925_v10  ;;  %v3181_v36 = vsel %vm2156_vm8, %v1643_v50, %v2669_v11  ;;  %v2926_v43 = vsel %vm1901_vm9, %v1388_v60, %v2414_v13  ;;  %vm2157_vm10 = vcmp.ge.f32.partialorder %v1644_v16, 0.0  ;;  %v2670_v44 = vmul.f32 %v10011_v12, %v1644_v16 }
 0x108   : > { %9647 = vmatmul.mubr.msk.f32.gmra.mxu1 %vm3352_vm0, %v3181_v36  ;;  %9265 = vmatprep.mubr.msk.f32.mxu0 %vm3352_vm0, %v2926_v43  ;;  %v1389_v46 = vadd.f32 %v10770_v19, %v870_v22  ;;  %v1645_v47 = vadd.f32 %v10770_v19, %v1126_v24  ;;  %v1390_v53 = vadd.f32 %v10770_v19, %v871_v25  ;;  %v11072_v50 = vpop.f32.mrf.mxu0 }
 0x109   : > { %v3182_v54 = vsel %vm2157_vm10, %v1644_v16, %v2670_v44  ;;  %v1127_v60 = vmul.f32 %v10755_v8, %v608_v27  ;;  %v4961_v61 = vadd.f32 %v10810_v58, %v11052_v30  ;;  %v872_v63 = vmul.f32 %v10755_v8, %v353_v31  ;;  %v354_v27 = vld [vmem:[%s9995_s9 + $0x310] sm:$0xff] }
 0x10a   : > { %9649 = vmatprep.mubr.msk.f32.mxu1 %vm3352_vm0, %v3182_v54  ;;  %vm1902_vm12 = vcmp.ge.f32.partialorder %v1389_v46, 0.0  ;;  %v2415_v4 = vmul.f32 %v10011_v12, %v1389_v46  ;;  %vm2158_vm13 = vcmp.ge.f32.partialorder %v1645_v47, 0.0  ;;  %v2671_v3 = vmul.f32 %v10011_v12, %v1645_v47  ;;  %v11082_v7 = vpop.f32.mrf.mxu1  ;;  %v11084_v11 = vpop.f32.mrf.mxu0  ;;  %v610_v31 = vld [vmem:[%s9995_s9 + $0xb10] sm:$0xff] }
 0x10b   : > { %vm1903_vm14 = vcmp.ge.f32.partialorder %v1390_v53, 0.0  ;;  %v2416_v58 = vmul.f32 %v10011_v12, %v1390_v53  ;;  %v1646_v13 = vadd.f32 %v10770_v19, %v1127_v60  ;;  %7516 = vst.msk [vmem:[%s11070_s25 + $0x8] sm:$0xff] %vm7514_vm11, %v4961_v61  ;;  %v1391_v16 = vadd.f32 %v10770_v19, %v872_v63  ;;  %v611_v61 = vld [vmem:[%s9995_s9 + $0xb18] sm:$0xff] }
 0x10c   : > { %v2927_v10 = vsel %vm1902_vm12, %v1389_v46, %v2415_v4  ;;  %v3183_v22 = vsel %vm2158_vm13, %v1645_v47, %v2671_v3  ;;  %v6241_v24 = vadd.f32 %v10812_v59, %v11052_v30  ;;  %v1128_v25 = vmul.f32 %v10755_v8, %v609_v1  ;;  %v11096_v36 = vpop.f32.mrf.mxu1  ;;  %v355_v46 = vld [vmem:[%s9995_s9 + $0x318] sm:$0xff] }
 0x10d   : > { %9266 = vmatmul.mubr.msk.f32.gmra.mxu0 %vm3352_vm0, %v2927_v10  ;;  %9650 = vmatmul.mubr.msk.f32.gmra.mxu1 %vm3352_vm0, %v3183_v22  ;;  %v2928_v43 = vsel %vm1903_vm14, %v1390_v53, %v2416_v58  ;;  %vm2159_vm15 = vcmp.ge.f32.partialorder %v1646_v13, 0.0  ;;  %v2672_v44 = vmul.f32 %v10011_v12, %v1646_v13  ;;  %vm1904_vm1 = vcmp.ge.f32.partialorder %v1391_v16, 0.0  ;;  %v11102_v47 = vpop.f32.mrf.mxu0 }
 0x10e   : > { %9268 = vmatprep.mubr.msk.f32.mxu0 %vm3352_vm0, %v2928_v43  ;;  %v2417_v59 = vmul.f32 %v10011_v12, %v1391_v16  ;;  %7772 = vst.msk [vmem:[%s11070_s25 + $0x808] sm:$0xff] %vm7514_vm11, %v6241_v24  ;;  %v1647_v54 = vadd.f32 %v10770_v19, %v1128_v25  ;;  %v4956_v53 = vadd.f32 %v11052_v30, %v10821_v5  ;;  %v356_v25 = vld [vmem:[%s9995_s9 + $0x320] sm:$0xff] }
 0x10f   : > { %v6236_v60 = vadd.f32 %v11052_v30, %v10823_v6  ;;  %v3184_v63 = vsel %vm2159_vm15, %v1646_v13, %v2672_v44  ;;  %v873_v1 = vmul.f32 %v10755_v8, %v354_v27  ;;  %v1129_v4 = vmul.f32 %v10755_v8, %v610_v31  ;;  %v11118_v58 = vpop.f32.mrf.mxu0 }
 0x110   : > { %v4971_v3 = vadd.f32 %v10836_v20, %v11052_v30  ;;  %9652 = vmatprep.mubr.msk.f32.mxu1 %vm3352_vm0, %v3184_v63  ;;  %v2929_v5 = vsel %vm1904_vm1, %v1391_v16, %v2417_v59  ;;  %vm2160_vm2 = vcmp.ge.f32.partialorder %v1647_v54, 0.0  ;;  %v2673_v6 = vmul.f32 %v10011_v12, %v1647_v54  ;;  %7515 = vst.msk [vmem:[%s11070_s25] sm:$0xff] %vm7514_vm11, %v4956_v53  ;;  %v11128_v10 = vpop.f32.mrf.mxu1  ;;  %v613_v63 = vld [vmem:[%s9995_s9 + $0xb28] sm:$0xff] }
 0x111   : > { %7771 = vst.msk [vmem:[%s11070_s25 + $0x800] sm:$0xff] %vm7514_vm11, %v6236_v60  ;;  %v874_v13 = vmul.f32 %v10755_v8, %v355_v46  ;;  %9269 = vmatmul.mubr.msk.f32.gmra.mxu0 %vm3352_vm0, %v2929_v5  ;;  %v1392_v20 = vadd.f32 %v10770_v19, %v873_v1  ;;  %v1648_v22 = vadd.f32 %v10770_v19, %v1129_v4  ;;  %v612_v46 = vld [vmem:[%s9995_s9 + $0xb20] sm:$0xff] }
 0x112   : > { %7518 = vst.msk [vmem:[%s11070_s25 + $0x18] sm:$0xff] %vm7514_vm11, %v4971_v3  ;;  %v6251_v16 = vadd.f32 %v10838_v21, %v11052_v30  ;;  %v1130_v24 = vmul.f32 %v10755_v8, %v611_v61  ;;  %v3185_v27 = vsel %vm2160_vm2, %v1647_v54, %v2673_v6  ;;  %v4966_v43 = vadd.f32 %v11052_v30, %v10850_v32  ;;  %v11145_v59 = vpop.f32.mrf.mxu1  ;;  %v357_v61 = vld [vmem:[%s9995_s9 + $0x328] sm:$0xff] }
 0x113   : > { %v1393_v31 = vadd.f32 %v10770_v19, %v874_v13  ;;  %v6246_v44 = vadd.f32 %v11052_v30, %v10852_v33  ;;  %9653 = vmatmul.mubr.msk.f32.gmra.mxu1 %vm3352_vm0, %v3185_v27  ;;  %vm1905_vm3 = vcmp.ge.f32.partialorder %v1392_v20, 0.0  ;;  %v2418_v21 = vmul.f32 %v10011_v12, %v1392_v20  ;;  %v11152_v53 = vpop.f32.mrf.mxu0 }
 0x114   : > { %vm2161_vm4 = vcmp.ge.f32.partialorder %v1648_v22, 0.0  ;;  %v2674_v54 = vmul.f32 %v10011_v12, %v1648_v22  ;;  %7774 = vst.msk [vmem:[%s11070_s25 + $0x818] sm:$0xff] %vm7514_vm11, %v6251_v16  ;;  %v1649_v33 = vadd.f32 %v10770_v19, %v1130_v24  ;;  %7517 = vst.msk [vmem:[%s11070_s25 + $0x10] sm:$0xff] %vm7514_vm11, %v4966_v43  ;;  %v875_v60 = vmul.f32 %v10755_v8, %v356_v25  ;;  %v11163_v1 = vpop.f32.mrf.mxu1  ;;  %v358_v43 = vld [vmem:[%s9995_s9 + $0x330] sm:$0xff] }
 0x115   : > { %vm1906_vm5 = vcmp.ge.f32.partialorder %v1393_v31, 0.0  ;;  %v2419_v32 = vmul.f32 %v10011_v12, %v1393_v31  ;;  %7773 = vst.msk [vmem:[%s11070_s25 + $0x810] sm:$0xff] %vm7514_vm11, %v6246_v44  ;;  %v2930_v4 = vsel %vm1905_vm3, %v1392_v20, %v2418_v21  ;;  %v1131_v5 = vmul.f32 %v10755_v8, %v612_v46  ;;  %v11168_v13 = vpop.f32.mrf.mxu0  ;;  %v614_v44 = vld [vmem:[%s9995_s9 + $0xb30] sm:$0xff] }
 0x116   : > { %v3186_v3 = vsel %vm2161_vm4, %v1648_v22, %v2674_v54  ;;  %v4981_v6 = vadd.f32 %v10862_v40, %v11052_v30  ;;  %9271 = vmatprep.mubr.msk.f32.mxu0 %vm3352_vm0, %v2930_v4  ;;  %vm2162_vm6 = vcmp.ge.f32.partialorder %v1649_v33, 0.0  ;;  %v2675_v24 = vmul.f32 %v10011_v12, %v1649_v33  ;;  %v11175_v22 = vpop.f32.mrf.mxu1 }
 0x117   : > { %9655 = vmatprep.mubr.msk.f32.mxu1 %vm3352_vm0, %v3186_v3  ;;  %v2931_v16 = vsel %vm1906_vm5, %v1393_v31, %v2419_v32  ;;  %v1394_v20 = vadd.f32 %v10770_v19, %v875_v60  ;;  %v1650_v40 = vadd.f32 %v10770_v19, %v1131_v5  ;;  %v876_v25 = vmul.f32 %v10755_v8, %v357_v61  ;;  %v359_v5 = vld [vmem:[%s9995_s9 + $0x338] sm:$0xff] }
 0x118   : > { %9272 = vmatmul.mubr.msk.f32.gmra.mxu0 %vm3352_vm0, %v2931_v16  ;;  %7520 = vst.msk [vmem:[%s11070_s25 + $0x28] sm:$0xff] %vm7514_vm11, %v4981_v6  ;;  %v6261_v27 = vadd.f32 %v10871_v48, %v11052_v30  ;;  %v1132_v31 = vmul.f32 %v10755_v8, %v613_v63  ;;  %v3187_v46 = vsel %vm2162_vm6, %v1649_v33, %v2675_v24  ;;  %v615_v6 = vld [vmem:[%s9995_s9 + $0xb38] sm:$0xff] }
 0x119   : > { %vm1907_vm7 = vcmp.ge.f32.partialorder %v1394_v20, 0.0  ;;  %v2420_v21 = vmul.f32 %v10011_v12, %v1394_v20  ;;  %v4976_v54 = vadd.f32 %v11052_v30, %v10873_v49  ;;  %9656 = vmatmul.mubr.msk.f32.gmra.mxu1 %vm3352_vm0, %v3187_v46  ;;  %vm2163_vm8 = vcmp.ge.f32.partialorder %v1650_v40, 0.0  ;;  %v11196_v33 = vpop.f32.mrf.mxu0  ;;  %v11198_v61 = vpop.f32.mrf.mxu1 }
 0x11a   : > { %v2676_v32 = vmul.f32 %v10011_v12, %v1650_v40  ;;  %v1395_v48 = vadd.f32 %v10770_v19, %v876_v25  ;;  %7776 = vst.msk [vmem:[%s11070_s25 + $0x828] sm:$0xff] %vm7514_vm11, %v6261_v27  ;;  %v1651_v60 = vadd.f32 %v10770_v19, %v1132_v31  ;;  %v6256_v49 = vadd.f32 %v11052_v30, %v10883_v62 }
 0x11b   : > { %v2932_v63 = vsel %vm1907_vm7, %v1394_v20, %v2420_v21  ;;  %7519 = vst.msk [vmem:[%s11070_s25 + $0x20] sm:$0xff] %vm7514_vm11, %v4976_v54  ;;  %v877_v4 = vmul.f32 %v10755_v8, %v358_v43  ;;  %v1133_v3 = vmul.f32 %v10755_v8, %v614_v44  ;;  %v11210_v20 = vpop.f32.mrf.mxu0  ;;  %v11212_v25 = vpop.f32.mrf.mxu1  ;;  %v4991_v31 = vadd.f32 %v10888_v0, %v11052_v30  ;;  %v360_v54 = vld [vmem:[%s9995_s9 + $0x340] sm:$0xff] }
 0x11c   : > { %9274 = vmatprep.mubr.msk.f32.mxu0 %vm3352_vm0, %v2932_v63  ;;  %v3188_v16 = vsel %vm2163_vm8, %v1650_v40, %v2676_v32  ;;  %vm1908_vm9 = vcmp.ge.f32.partialorder %v1395_v48, 0.0  ;;  %v2421_v24 = vmul.f32 %v10011_v12, %v1395_v48  ;;  %vm2164_vm10 = vcmp.ge.f32.partialorder %v1651_v60, 0.0  ;;  %7775 = vst.msk [vmem:[%s11070_s25 + $0x820] sm:$0xff] %vm7514_vm11, %v6256_v49  ;;  %v616_v32 = vld [vmem:[%s9995_s9 + $0xb40] sm:$0xff] }
 0x11d   : > { %9658 = vmatprep.mubr.msk.f32.mxu1 %vm3352_vm0, %v3188_v16  ;;  %v2677_v62 = vmul.f32 %v10011_v12, %v1651_v60  ;;  %v1396_v27 = vadd.f32 %v10770_v19, %v877_v4  ;;  %v1652_v40 = vadd.f32 %v10770_v19, %v1133_v3  ;;  %v878_v44 = vmul.f32 %v10755_v8, %v359_v5  ;;  %v11228_v63 = vpop.f32.mrf.mxu0  ;;  %v11230_v49 = vpop.f32.mrf.mxu1 }
 0x11e   : > { %v2933_v43 = vsel %vm1908_vm9, %v1395_v48, %v2421_v24  ;;  %v6271_v46 = vadd.f32 %v10905_v23, %v11052_v30  ;;  %v1134_v21 = vmul.f32 %v10755_v8, %v615_v6  ;;  %7522 = vst.msk [vmem:[%s11070_s25 + $0x38] sm:$0xff] %vm7514_vm11, %v4991_v31  ;;  %v6266_v24 = vadd.f32 %v11052_v30, %v10916_v34 }
 0x11f   : > { %9275 = vmatmul.mubr.msk.f32.gmra.mxu0 %vm3352_vm0, %v2933_v43  ;;  %v3189_v4 = vsel %vm2164_vm10, %v1651_v60, %v2677_v62  ;;  %vm1909_vm12 = vcmp.ge.f32.partialorder %v1396_v27, 0.0  ;;  %v2422_v0 = vmul.f32 %v10011_v12, %v1396_v27  ;;  %vm2165_vm13 = vcmp.ge.f32.partialorder %v1652_v40, 0.0  ;;  %v11245_v5 = vpop.f32.mrf.mxu0  ;;  %v11247_v6 = vpop.f32.mrf.mxu1  ;;  %v361_v43 = vld [vmem:[%s9995_s9 + $0x348] sm:$0xff] }
 0x120   : > { %9659 = vmatmul.mubr.msk.f32.gmra.mxu1 %vm3352_vm0, %v3189_v4  ;;  %v2678_v23 = vmul.f32 %v10011_v12, %v1652_v40  ;;  %v1397_v48 = vadd.f32 %v10770_v19, %v878_v44  ;;  %7778 = vst.msk [vmem:[%s11070_s25 + $0x838] sm:$0xff] %vm7514_vm11, %v6271_v46  ;;  %v1653_v3 = vadd.f32 %v10770_v19, %v1134_v21  ;;  %v617_v44 = vld [vmem:[%s9995_s9 + $0xb48] sm:$0xff]  ;;  %7777 = vst.msk [vmem:[%s11070_s25 + $0x830] sm:$0xff] %vm7514_vm11, %v6266_v24 }
 0x121   : > { %v4986_v60 = vadd.f32 %v11052_v30, %v10900_v17  ;;  %v2934_v16 = vsel %vm1909_vm12, %v1396_v27, %v2422_v0  ;;  %v879_v62 = vmul.f32 %v10755_v8, %v360_v54  ;;  %v1135_v31 = vmul.f32 %v10755_v8, %v616_v32  ;;  %v11273_v32 = vld [vmem:[%s15546_s1] ss:$0 sm:$0xff] }
 0x122   : > { %9277 = vmatprep.mubr.msk.f32.mxu0 %vm3352_vm0, %v2934_v16  ;;  %v3190_v46 = vsel %vm2165_vm13, %v1652_v40, %v2678_v23  ;;  %vm1910_vm14 = vcmp.ge.f32.partialorder %v1397_v48, 0.0  ;;  %v2423_v17 = vmul.f32 %v10011_v12, %v1397_v48  ;;  %vm2166_vm15 = vcmp.ge.f32.partialorder %v1653_v3, 0.0  ;;  %v11268_v21 = vpop.f32.mrf.mxu0  ;;  %v362_v23 = vld [vmem:[%s9995_s9 + $0x350] sm:$0xff] }
 0x123   : > { %7521 = vst.msk [vmem:[%s11070_s25 + $0x30] sm:$0xff] %vm7514_vm11, %v4986_v60  ;;  %9661 = vmatprep.mubr.msk.f32.mxu1 %vm3352_vm0, %v3190_v46  ;;  %v2679_v34 = vmul.f32 %v10011_v12, %v1653_v3  ;;  %v1398_v8 = vadd.f32 %v10770_v19, %v879_v62  ;;  %v1654_v27 = vadd.f32 %v10770_v19, %v1135_v31  ;;  %v618_v60 = vld [vmem:[%s9995_s9 + $0xb50] sm:$0xff]  ;;  %v11281_v16 = vpop.f32.mrf.mxu1  ;;  %v11295_v62 = vld [vmem:[%s15547_s2] ss:$0 sm:$0xff] }
 0x124   : > { %v5001_v40 = vadd.f32 %v10921_v37, %v11052_v30  ;;  %v2935_v54 = vsel %vm1910_vm14, %v1397_v48, %v2423_v17  ;;  %v880_v4 = vmul.f32 %v11273_v32, %v361_v43  ;;  %v6281_v0 = vadd.f32 %v10926_v42, %v11052_v30  ;;  %v11288_v42 = vpop.f32.mrf.mxu0 }
 0x125   : > { %v1136_v19 = vmul.f32 %v11273_v32, %v617_v44  ;;  %9278 = vmatmul.mubr.msk.f32.gmra.mxu0 %vm3352_vm0, %v2935_v54  ;;  %v3191_v37 = vsel %vm2166_vm15, %v1653_v3, %v2679_v34  ;;  %vm1911_vm1 = vcmp.ge.f32.partialorder %v1398_v8, 0.0  ;;  %v2424_v48 = vmul.f32 %v10011_v12, %v1398_v8  ;;  %v11303_v44 = vpop.f32.mrf.mxu1  ;;  %v363_v54 = vld [vmem:[%s9995_s9 + $0x358] sm:$0xff] }
 0x126   : > { %vm2167_vm2 = vcmp.ge.f32.partialorder %v1654_v27, 0.0  ;;  %7524 = vst.msk [vmem:[%s11070_s25 + $0x48] sm:$0xff] %vm7514_vm11, %v5001_v40  ;;  %9662 = vmatmul.mubr.msk.f32.gmra.mxu1 %vm3352_vm0, %v3191_v37  ;;  %v2680_v24 = vmul.f32 %v10011_v12, %v1654_v27  ;;  %v1399_v3 = vadd.f32 %v11295_v62, %v880_v4  ;;  %7780 = vst.msk [vmem:[%s11070_s25 + $0x848] sm:$0xff] %vm7514_vm11, %v6281_v0  ;;  %v619_v4 = vld [vmem:[%s9995_s9 + $0xb58] sm:$0xff]  ;;  %v11311_v0 = vpop.f32.mrf.mxu0 }
 0x127   : > { %v1655_v31 = vadd.f32 %v11295_v62, %v1136_v19  ;;  %v4996_v43 = vadd.f32 %v11052_v30, %v10933_v52  ;;  %v2936_v46 = vsel %vm1911_vm1, %v1398_v8, %v2424_v48  ;;  %v6276_v17 = vadd.f32 %v11052_v30, %v10938_v55 }
 0x128   : > { %v881_v34 = vmul.f32 %v11273_v32, %v362_v23  ;;  %v1137_v40 = vmul.f32 %v11273_v32, %v618_v60  ;;  %9280 = vmatprep.mubr.msk.f32.mxu0 %vm3352_vm0, %v2936_v46  ;;  %v3192_v19 = vsel %vm2167_vm2, %v1654_v27, %v2680_v24  ;;  %vm1912_vm3 = vcmp.ge.f32.partialorder %v1399_v3, 0.0  ;;  %v11326_v60 = vpop.f32.mrf.mxu1  ;;  %v11328_v37 = vpop.f32.mrf.mxu0 }
 0x129   : > { %v2425_v52 = vmul.f32 %v10011_v12, %v1399_v3  ;;  %vm2168_vm4 = vcmp.ge.f32.partialorder %v1655_v31, 0.0  ;;  %7523 = vst.msk [vmem:[%s11070_s25 + $0x40] sm:$0xff] %vm7514_vm11, %v4996_v43  ;;  %9664 = vmatprep.mubr.msk.f32.mxu1 %vm3352_vm0, %v3192_v19  ;;  %v2681_v55 = vmul.f32 %v10011_v12, %v1655_v31  ;;  %7779 = vst.msk [vmem:[%s11070_s25 + $0x840] sm:$0xff] %vm7514_vm11, %v6276_v17  ;;  %v364_v17 = vld [vmem:[%s9995_s9 + $0x360] sm:$0xff] }
 0x12a   : > { %v1400_v8 = vadd.f32 %v11295_v62, %v881_v34  ;;  %v1656_v23 = vadd.f32 %v11295_v62, %v1137_v40  ;;  %v5011_v27 = vadd.f32 %v10952_v14, %v11052_v30  ;;  %v882_v24 = vmul.f32 %v11273_v32, %v363_v54  ;;  %v620_v34 = vld [vmem:[%s9995_s9 + $0xb60] sm:$0xff] }
 0x12b   : > { %v2937_v48 = vsel %vm1912_vm3, %v1399_v3, %v2425_v52  ;;  %v6291_v43 = vadd.f32 %v10954_v15, %v11052_v30  ;;  %v1138_v46 = vmul.f32 %v11273_v32, %v619_v4  ;;  %v3193_v40 = vsel %vm2168_vm4, %v1655_v31, %v2681_v55  ;;  %v11341_v3 = vpop.f32.mrf.mxu1 }
 0x12c   : > { %9281 = vmatmul.mubr.msk.f32.gmra.mxu0 %vm3352_vm0, %v2937_v48  ;;  %vm1913_vm5 = vcmp.ge.f32.partialorder %v1400_v8, 0.0  ;;  %v2426_v14 = vmul.f32 %v10011_v12, %v1400_v8  ;;  %vm2169_vm6 = vcmp.ge.f32.partialorder %v1656_v23, 0.0  ;;  %7526 = vst.msk [vmem:[%s11070_s25 + $0x58] sm:$0xff] %vm7514_vm11, %v5011_v27  ;;  %9665 = vmatmul.mubr.msk.f32.gmra.mxu1 %vm3352_vm0, %v3193_v40  ;;  %v2682_v15 = vmul.f32 %v10011_v12, %v1656_v23  ;;  %v365_v48 = vld [vmem:[%s9995_s9 + $0x368] sm:$0xff] }
 0x12d   : > { %v1401_v54 = vadd.f32 %v11295_v62, %v882_v24  ;;  %7782 = vst.msk [vmem:[%s11070_s25 + $0x858] sm:$0xff] %vm7514_vm11, %v6291_v43  ;;  %v1657_v31 = vadd.f32 %v11295_v62, %v1138_v46  ;;  %v5006_v4 = vadd.f32 %v11052_v30, %v10965_v28  ;;  %v6286_v52 = vadd.f32 %v11052_v30, %v10967_v29  ;;  %v621_v40 = vld [vmem:[%s9995_s9 + $0xb68] sm:$0xff]  ;;  %v11357_v24 = vpop.f32.mrf.mxu0 }
 0x12e   : > { %v2938_v19 = vsel %vm1913_vm5, %v1400_v8, %v2426_v14  ;;  %v883_v55 = vmul.f32 %v11273_v32, %v364_v17  ;;  %v1139_v27 = vmul.f32 %v11273_v32, %v620_v34  ;;  %v3194_v43 = vsel %vm2169_vm6, %v1656_v23, %v2682_v15  ;;  %v11372_v17 = vpop.f32.mrf.mxu1 }
 0x12f   : > { %9283 = vmatprep.mubr.msk.f32.mxu0 %vm3352_vm0, %v2938_v19  ;;  %vm1914_vm7 = vcmp.ge.f32.partialorder %v1401_v54, 0.0  ;;  %v2427_v28 = vmul.f32 %v10011_v12, %v1401_v54  ;;  %vm2170_vm8 = vcmp.ge.f32.partialorder %v1657_v31, 0.0  ;;  %7525 = vst.msk [vmem:[%s11070_s25 + $0x50] sm:$0xff] %vm7514_vm11, %v5006_v4  ;;  %9667 = vmatprep.mubr.msk.f32.mxu1 %vm3352_vm0, %v3194_v43  ;;  %v2683_v29 = vmul.f32 %v10011_v12, %v1657_v31  ;;  %v11374_v34 = vpop.f32.mrf.mxu0 }
 0x130   : > { %7781 = vst.msk [vmem:[%s11070_s25 + $0x850] sm:$0xff] %vm7514_vm11, %v6286_v52  ;;  %v1402_v8 = vadd.f32 %v11295_v62, %v883_v55  ;;  %v1658_v46 = vadd.f32 %v11295_v62, %v1139_v27  ;;  %v5021_v23 = vadd.f32 %v10975_v39, %v11052_v30  ;;  %v884_v15 = vmul.f32 %v11273_v32, %v365_v48  ;;  %v366_v52 = vld [vmem:[%s9995_s9 + $0x370] sm:$0xff] }
 0x131   : > { %v2939_v14 = vsel %vm1914_vm7, %v1401_v54, %v2427_v28  ;;  %v6301_v4 = vadd.f32 %v10977_v41, %v11052_v30  ;;  %v1140_v19 = vmul.f32 %v11273_v32, %v621_v40  ;;  %v622_v55 = vld [vmem:[%s9995_s9 + $0xb70] sm:$0xff]  ;;  %v3195_v27 = vsel %vm2170_vm8, %v1657_v31, %v2683_v29  ;;  %v11387_v54 = vpop.f32.mrf.mxu1  ;;  %v11397_v43 = vpop.f32.mrf.mxu0 }
 0x132   : > { %9284 = vmatmul.mubr.msk.f32.gmra.mxu0 %vm3352_vm0, %v2939_v14  ;;  %vm1915_vm9 = vcmp.ge.f32.partialorder %v1402_v8, 0.0  ;;  %v2428_v39 = vmul.f32 %v10011_v12, %v1402_v8  ;;  %vm2171_vm10 = vcmp.ge.f32.partialorder %v1658_v46, 0.0  ;;  %7528 = vst.msk [vmem:[%s11070_s25 + $0x68] sm:$0xff] %vm7514_vm11, %v5021_v23  ;;  %9668 = vmatmul.mubr.msk.f32.gmra.mxu1 %vm3352_vm0, %v3195_v27  ;;  %v2684_v41 = vmul.f32 %v10011_v12, %v1658_v46  ;;  %v623_v27 = vld [vmem:[%s9995_s9 + $0xb78] sm:$0xff] }
 0x133   : > { %v1403_v48 = vadd.f32 %v11295_v62, %v884_v15  ;;  %7784 = vst.msk [vmem:[%s11070_s25 + $0x868] sm:$0xff] %vm7514_vm11, %v6301_v4  ;;  %v1659_v31 = vadd.f32 %v11295_v62, %v1140_v19  ;;  %v5016_v40 = vadd.f32 %v11052_v30, %v10987_v56  ;;  %v6296_v29 = vadd.f32 %v11052_v30, %v10989_v57  ;;  %v367_v15 = vld [vmem:[%s9995_s9 + $0x378] sm:$0xff] }
 0x134   : > { %v2940_v28 = vsel %vm1915_vm9, %v1402_v8, %v2428_v39  ;;  %v885_v23 = vmul.f32 %v11273_v32, %v366_v52  ;;  %v1141_v14 = vmul.f32 %v11273_v32, %v622_v55  ;;  %v3196_v4 = vsel %vm2171_vm10, %v1658_v46, %v2684_v41  ;;  %v11410_v8 = vpop.f32.mrf.mxu0  ;;  %v11420_v55 = vpop.f32.mrf.mxu1 }
 0x135   : > { %9286 = vmatprep.mubr.msk.f32.mxu0 %vm3352_vm0, %v2940_v28  ;;  %vm1916_vm12 = vcmp.ge.f32.partialorder %v1403_v48, 0.0  ;;  %v2429_v56 = vmul.f32 %v10011_v12, %v1403_v48  ;;  %vm2172_vm13 = vcmp.ge.f32.partialorder %v1659_v31, 0.0  ;;  %7527 = vst.msk [vmem:[%s11070_s25 + $0x60] sm:$0xff] %vm7514_vm11, %v5016_v40  ;;  %9670 = vmatprep.mubr.msk.f32.mxu1 %vm3352_vm0, %v3196_v4  ;;  %v2685_v57 = vmul.f32 %v10011_v12, %v1659_v31  ;;  %v624_v4 = vld [vmem:[%s9995_s9 + $0xb80] sm:$0xff] }
 0x136   : > { %7783 = vst.msk [vmem:[%s11070_s25 + $0x860] sm:$0xff] %vm7514_vm11, %v6296_v29  ;;  %v1404_v19 = vadd.f32 %v11295_v62, %v885_v23  ;;  %v1660_v46 = vadd.f32 %v11295_v62, %v1141_v14  ;;  %v5031_v52 = vadd.f32 %v11004_v18, %v11052_v30  ;;  %v886_v41 = vmul.f32 %v11273_v32, %v367_v15  ;;  %v368_v29 = vld [vmem:[%s9995_s9 + $0x380] sm:$0xff] }
 0x137   : > { %v2941_v39 = vsel %vm1916_vm12, %v1403_v48, %v2429_v56  ;;  %v6311_v40 = vadd.f32 %v11011_v26, %v11052_v30  ;;  %v1142_v28 = vmul.f32 %v11273_v32, %v623_v27  ;;  %v3197_v23 = vsel %vm2172_vm13, %v1659_v31, %v2685_v57  ;;  %v11433_v48 = vpop.f32.mrf.mxu1  ;;  %v11443_v27 = vpop.f32.mrf.mxu0 }
 0x138   : > { %9287 = vmatmul.mubr.msk.f32.gmra.mxu0 %vm3352_vm0, %v2941_v39  ;;  %vm1917_vm14 = vcmp.ge.f32.partialorder %v1404_v19, 0.0  ;;  %v2430_v18 = vmul.f32 %v10011_v12, %v1404_v19  ;;  %vm2173_vm15 = vcmp.ge.f32.partialorder %v1660_v46, 0.0  ;;  %7530 = vst.msk [vmem:[%s11070_s25 + $0x78] sm:$0xff] %vm7514_vm11, %v5031_v52  ;;  %9671 = vmatmul.mubr.msk.f32.gmra.mxu1 %vm3352_vm0, %v3197_v23  ;;  %v2686_v26 = vmul.f32 %v10011_v12, %v1660_v46  ;;  %v625_v23 = vld [vmem:[%s9995_s9 + $0xb88] sm:$0xff] }
 0x139   : > { %v1405_v14 = vadd.f32 %v11295_v62, %v886_v41  ;;  %7786 = vst.msk [vmem:[%s11070_s25 + $0x878] sm:$0xff] %vm7514_vm11, %v6311_v40  ;;  %v1661_v31 = vadd.f32 %v11295_v62, %v1142_v28  ;;  %v5026_v15 = vadd.f32 %v11052_v30, %v11017_v38  ;;  %v6306_v57 = vadd.f32 %v11052_v30, %v11022_v45  ;;  %v369_v41 = vld [vmem:[%s9995_s9 + $0x388] sm:$0xff]  ;;  %v11451_v40 = vpop.f32.mrf.mxu1  ;;  %v11458_v45 = vpop.f32.mrf.mxu0 }
 0x13a   : > { %v2942_v56 = vsel %vm1917_vm14, %v1404_v19, %v2430_v18  ;;  %v887_v52 = vmul.f32 %v11273_v32, %v368_v29  ;;  %v1143_v39 = vmul.f32 %v11273_v32, %v624_v4  ;;  %v3198_v28 = vsel %vm2173_vm15, %v1660_v46, %v2686_v26  ;;  %15552 = vst [vmem:[#allocation3_spill] sm:$0xff] %v11458_v45  ;;  %v626_v45 = vld [vmem:[%s9995_s9 + $0xb90] sm:$0xff] }
 0x13b   : > { %9289 = vmatprep.mubr.msk.f32.mxu0 %vm3352_vm0, %v2942_v56  ;;  %vm1918_vm1 = vcmp.ge.f32.partialorder %v1405_v14, 0.0  ;;  %v2431_v38 = vmul.f32 %v10011_v12, %v1405_v14  ;;  %vm2174_vm2 = vcmp.ge.f32.partialorder %v1661_v31, 0.0  ;;  %7529 = vst.msk [vmem:[%s11070_s25 + $0x70] sm:$0xff] %vm7514_vm11, %v5026_v15  ;;  %9673 = vmatprep.mubr.msk.f32.mxu1 %vm3352_vm0, %v3198_v28  ;;  %v2687_v19 = vmul.f32 %v10011_v12, %v1661_v31  ;;  %v11468_v18 = vpop.f32.mrf.mxu1 }
 0x13c   : > { %7785 = vst.msk [vmem:[%s11070_s25 + $0x870] sm:$0xff] %vm7514_vm11, %v6306_v57  ;;  %v1406_v29 = vadd.f32 %v11295_v62, %v887_v52  ;;  %v1662_v46 = vadd.f32 %v11295_v62, %v1143_v39  ;;  %v5041_v4 = vadd.f32 %v11027_v51, %v11052_v30  ;;  %v888_v15 = vmul.f32 %v11273_v32, %v369_v41  ;;  %v370_v57 = vld [vmem:[%s9995_s9 + $0x390] sm:$0xff] }
 0x13d   : > { %v2943_v26 = vsel %vm1918_vm1, %v1405_v14, %v2431_v38  ;;  %v6321_v56 = vadd.f32 %v11037_v2, %v11052_v30  ;;  %v1144_v28 = vmul.f32 %v11273_v32, %v625_v23  ;;  %v3199_v52 = vsel %vm2174_vm2, %v1661_v31, %v2687_v19  ;;  %v11489_v41 = vpop.f32.mrf.mxu0  ;;  %v11491_v23 = vpop.f32.mrf.mxu1 }
 0x13e   : > { %9290 = vmatmul.mubr.msk.f32.gmra.mxu0 %vm3352_vm0, %v2943_v26  ;;  %vm1919_vm3 = vcmp.ge.f32.partialorder %v1406_v29, 0.0  ;;  %v2432_v51 = vmul.f32 %v10011_v12, %v1406_v29  ;;  %vm2175_vm4 = vcmp.ge.f32.partialorder %v1662_v46, 0.0  ;;  %7532 = vst.msk [vmem:[%s11070_s25 + $0x88] sm:$0xff] %vm7514_vm11, %v5041_v4  ;;  %9674 = vmatmul.mubr.msk.f32.gmra.mxu1 %vm3352_vm0, %v3199_v52  ;;  %v2688_v2 = vmul.f32 %v10011_v12, %v1662_v46 }
 0x13f   : > { %v1407_v14 = vadd.f32 %v11295_v62, %v888_v15  ;;  %7788 = vst.msk [vmem:[%s11070_s25 + $0x888] sm:$0xff] %vm7514_vm11, %v6321_v56  ;;  %v1663_v39 = vadd.f32 %v11295_v62, %v1144_v28  ;;  %v5036_v31 = vadd.f32 %v11052_v30, %v11039_v9  ;;  %v6316_v19 = vadd.f32 %v11052_v30, %v11055_v35  ;;  %v371_v15 = vld [vmem:[%s9995_s9 + $0x398] sm:$0xff]  ;;  %v11506_v35 = vpop.f32.mrf.mxu1 }
 0x140   : > { %v2944_v38 = vsel %vm1919_vm3, %v1406_v29, %v2432_v51  ;;  %v889_v4 = vmul.f32 %v11273_v32, %v370_v57  ;;  %v1145_v26 = vmul.f32 %v11273_v32, %v626_v45  ;;  %v627_v56 = vld [vmem:[%s9995_s9 + $0xb98] sm:$0xff]  ;;  %v3200_v28 = vsel %vm2175_vm4, %v1662_v46, %v2688_v2  ;;  %v11504_v29 = vpop.f32.mrf.mxu0  ;;  %15553 = vst [vmem:[#allocation4_spill] sm:$0xff] %v11506_v35  ;;  %v628_v35 = vld [vmem:[%s9995_s9 + $0xba0] sm:$0xff] }
 0x141   : > { %9292 = vmatprep.mubr.msk.f32.mxu0 %vm3352_vm0, %v2944_v38  ;;  %vm1920_vm5 = vcmp.ge.f32.partialorder %v1407_v14, 0.0  ;;  %v2433_v9 = vmul.f32 %v10011_v12, %v1407_v14  ;;  %vm2176_vm6 = vcmp.ge.f32.partialorder %v1663_v39, 0.0  ;;  %7531 = vst.msk [vmem:[%s11070_s25 + $0x80] sm:$0xff] %vm7514_vm11, %v5036_v31  ;;  %9676 = vmatprep.mubr.msk.f32.mxu1 %vm3352_vm0, %v3200_v28  ;;  %v2689_v45 = vmul.f32 %v10011_v12, %v1663_v39  ;;  %v372_v28 = vld [vmem:[%s9995_s9 + $0x3a0] sm:$0xff] }
 0x142   : > { %7787 = vst.msk [vmem:[%s11070_s25 + $0x880] sm:$0xff] %vm7514_vm11, %v6316_v19  ;;  %v1408_v46 = vadd.f32 %v11295_v62, %v889_v4  ;;  %v1664_v57 = vadd.f32 %v11295_v62, %v1145_v26  ;;  %v5051_v52 = vadd.f32 %v11072_v50, %v11052_v30  ;;  %v890_v2 = vmul.f32 %v11273_v32, %v371_v15  ;;  %v11522_v19 = vpop.f32.mrf.mxu0  ;;  %v11524_v4 = vpop.f32.mrf.mxu1 }
 0x143   : > { %v2945_v51 = vsel %vm1920_vm5, %v1407_v14, %v2433_v9  ;;  %v6331_v31 = vadd.f32 %v11082_v7, %v11052_v30  ;;  %v1146_v38 = vmul.f32 %v11273_v32, %v627_v56  ;;  %v3201_v26 = vsel %vm2176_vm6, %v1663_v39, %v2689_v45 }
 0x144   : > { %9293 = vmatmul.mubr.msk.f32.gmra.mxu0 %vm3352_vm0, %v2945_v51  ;;  %vm1921_vm7 = vcmp.ge.f32.partialorder %v1408_v46, 0.0  ;;  %v2434_v50 = vmul.f32 %v10011_v12, %v1408_v46  ;;  %vm2177_vm8 = vcmp.ge.f32.partialorder %v1664_v57, 0.0  ;;  %7534 = vst.msk [vmem:[%s11070_s25 + $0x98] sm:$0xff] %vm7514_vm11, %v5051_v52  ;;  %9677 = vmatmul.mubr.msk.f32.gmra.mxu1 %vm3352_vm0, %v3201_v26  ;;  %v2690_v7 = vmul.f32 %v10011_v12, %v1664_v57  ;;  %v11539_v56 = vpop.f32.mrf.mxu0  ;;  %v11541_v9 = vpop.f32.mrf.mxu1  ;;  %v629_v26 = vld [vmem:[%s9995_s9 + $0xba8] sm:$0xff] }
 0x145   : > { %v1409_v14 = vadd.f32 %v11295_v62, %v890_v2  ;;  %7790 = vst.msk [vmem:[%s11070_s25 + $0x898] sm:$0xff] %vm7514_vm11, %v6331_v31  ;;  %v1665_v15 = vadd.f32 %v11295_v62, %v1146_v38  ;;  %v5046_v39 = vadd.f32 %v11052_v30, %v11084_v11  ;;  %v6326_v52 = vadd.f32 %v11052_v30, %v11096_v36  ;;  %v373_v31 = vld [vmem:[%s9995_s9 + $0x3a8] sm:$0xff] }
 0x146   : > { %v2946_v45 = vsel %vm1921_vm7, %v1408_v46, %v2434_v50  ;;  %v891_v51 = vmul.f32 %v11273_v32, %v372_v28  ;;  %v1147_v2 = vmul.f32 %v11273_v32, %v628_v35  ;;  %v3202_v38 = vsel %vm2177_vm8, %v1664_v57, %v2690_v7  ;;  %v11562_v28 = vpop.f32.mrf.mxu0 }
 0x147   : > { %9295 = vmatprep.mubr.msk.f32.mxu0 %vm3352_vm0, %v2946_v45  ;;  %vm1922_vm9 = vcmp.ge.f32.partialorder %v1409_v14, 0.0  ;;  %v2435_v11 = vmul.f32 %v10011_v12, %v1409_v14  ;;  %vm2178_vm10 = vcmp.ge.f32.partialorder %v1665_v15, 0.0  ;;  %7533 = vst.msk [vmem:[%s11070_s25 + $0x90] sm:$0xff] %vm7514_vm11, %v5046_v39  ;;  %9679 = vmatprep.mubr.msk.f32.mxu1 %vm3352_vm0, %v3202_v38  ;;  %v2691_v36 = vmul.f32 %v10011_v12, %v1665_v15  ;;  %v630_v38 = vld [vmem:[%s9995_s9 + $0xbb0] sm:$0xff] }
 0x148   : > { %7789 = vst.msk [vmem:[%s11070_s25 + $0x890] sm:$0xff] %vm7514_vm11, %v6326_v52  ;;  %v1410_v35 = vadd.f32 %v11295_v62, %v891_v51  ;;  %v1666_v46 = vadd.f32 %v11295_v62, %v1147_v2  ;;  %v5061_v57 = vadd.f32 %v11102_v47, %v11052_v30  ;;  %v892_v7 = vmul.f32 %v11273_v32, %v373_v31  ;;  %v374_v52 = vld [vmem:[%s9995_s9 + $0x3b0] sm:$0xff]  ;;  %v11570_v51 = vpop.f32.mrf.mxu1 }
 0x149   : > { %v2947_v50 = vsel %vm1922_vm9, %v1409_v14, %v2435_v11  ;;  %v6341_v39 = vadd.f32 %v11128_v10, %v11052_v30  ;;  %v1148_v45 = vmul.f32 %v11273_v32, %v629_v26  ;;  %v3203_v2 = vsel %vm2178_vm10, %v1665_v15, %v2691_v36  ;;  %v11577_v14 = vpop.f32.mrf.mxu0 }
 0x14a   : > { %9296 = vmatmul.mubr.msk.f32.gmra.mxu0 %vm3352_vm0, %v2947_v50  ;;  %vm1923_vm12 = vcmp.ge.f32.partialorder %v1410_v35, 0.0  ;;  %v2436_v47 = vmul.f32 %v10011_v12, %v1410_v35  ;;  %vm2179_vm13 = vcmp.ge.f32.partialorder %v1666_v46, 0.0  ;;  %7536 = vst.msk [vmem:[%s11070_s25 + $0xa8] sm:$0xff] %vm7514_vm11, %v5061_v57  ;;  %15554 = vst [vmem:[#allocation5_spill] sm:$0xff] %v11577_v14  ;;  %9680 = vmatmul.mubr.msk.f32.gmra.mxu1 %vm3352_vm0, %v3203_v2  ;;  %v11587_v11 = vpop.f32.mrf.mxu1  ;;  %v631_v14 = vld [vmem:[%s9995_s9 + $0xbb8] sm:$0xff] }
 0x14b   : > { %v2692_v10 = vmul.f32 %v10011_v12, %v1666_v46  ;;  %v1411_v31 = vadd.f32 %v11295_v62, %v892_v7  ;;  %7792 = vst.msk [vmem:[%s11070_s25 + $0x8a8] sm:$0xff] %vm7514_vm11, %v6341_v39  ;;  %v1667_v15 = vadd.f32 %v11295_v62, %v1148_v45  ;;  %v5056_v26 = vadd.f32 %v11052_v30, %v11118_v58  ;;  %v375_v7 = vld [vmem:[%s9995_s9 + $0x3b8] sm:$0xff]  ;;  %v11595_v39 = vpop.f32.mrf.mxu0 }
 0x14c   : > { %v2948_v36 = vsel %vm1923_vm12, %v1410_v35, %v2436_v47  ;;  %v6336_v57 = vadd.f32 %v11052_v30, %v11145_v59  ;;  %v893_v50 = vmul.f32 %v11273_v32, %v374_v52  ;;  %v1149_v2 = vmul.f32 %v11273_v32, %v630_v38  ;;  %v11610_v38 = vpop.f32.mrf.mxu1 }
 0x14d   : > { %9298 = vmatprep.mubr.msk.f32.mxu0 %vm3352_vm0, %v2948_v36  ;;  %v3204_v45 = vsel %vm2179_vm13, %v1666_v46, %v2692_v10  ;;  %vm1924_vm14 = vcmp.ge.f32.partialorder %v1411_v31, 0.0  ;;  %v2437_v58 = vmul.f32 %v10011_v12, %v1411_v31  ;;  %vm2180_vm15 = vcmp.ge.f32.partialorder %v1667_v15, 0.0  ;;  %7535 = vst.msk [vmem:[%s11070_s25 + $0xa0] sm:$0xff] %vm7514_vm11, %v5056_v26  ;;  %v11612_v47 = vpop.f32.mrf.mxu0 }
 0x14e   : > { %9682 = vmatprep.mubr.msk.f32.mxu1 %vm3352_vm0, %v3204_v45  ;;  %v2693_v59 = vmul.f32 %v10011_v12, %v1667_v15  ;;  %7791 = vst.msk [vmem:[%s11070_s25 + $0x8a0] sm:$0xff] %vm7514_vm11, %v6336_v57  ;;  %v1412_v35 = vadd.f32 %v11295_v62, %v893_v50  ;;  %v1668_v52 = vadd.f32 %v11295_v62, %v1149_v2  ;;  %v376_v50 = vld [vmem:[%s9995_s9 + $0x3c0] sm:$0xff] }
 0x14f   : > { %v5071_v46 = vadd.f32 %v11152_v53, %v11052_v30  ;;  %v2949_v10 = vsel %vm1924_vm14, %v1411_v31, %v2437_v58  ;;  %v894_v26 = vmul.f32 %v11273_v32, %v375_v7  ;;  %v6351_v36 = vadd.f32 %v11163_v1, %v11052_v30  ;;  %v632_v45 = vld [vmem:[%s9995_s9 + $0xbc0] sm:$0xff]  ;;  %v11625_v31 = vpop.f32.mrf.mxu1 }
 0x150   : > { %v1150_v57 = vmul.f32 %v11273_v32, %v631_v14  ;;  %9299 = vmatmul.mubr.msk.f32.gmra.mxu0 %vm3352_vm0, %v2949_v10  ;;  %v3205_v2 = vsel %vm2180_vm15, %v1667_v15, %v2693_v59  ;;  %vm1925_vm1 = vcmp.ge.f32.partialorder %v1412_v35, 0.0  ;;  %v2438_v53 = vmul.f32 %v10011_v12, %v1412_v35  ;;  %15555 = vst [vmem:[#allocation6_spill] sm:$0xff] %v11625_v31  ;;  %v633_v31 = vld [vmem:[%s9995_s9 + $0xbc8] sm:$0xff] }
 0x151   : > { %vm2181_vm2 = vcmp.ge.f32.partialorder %v1668_v52, 0.0  ;;  %7538 = vst.msk [vmem:[%s11070_s25 + $0xb8] sm:$0xff] %vm7514_vm11, %v5071_v46  ;;  %9683 = vmatmul.mubr.msk.f32.gmra.mxu1 %vm3352_vm0, %v3205_v2  ;;  %v2694_v1 = vmul.f32 %v10011_v12, %v1668_v52  ;;  %v1413_v14 = vadd.f32 %v11295_v62, %v894_v26  ;;  %7794 = vst.msk [vmem:[%s11070_s25 + $0x8b8] sm:$0xff] %vm7514_vm11, %v6351_v36  ;;  %v377_v2 = vld [vmem:[%s9995_s9 + $0x3c8] sm:$0xff]  ;;  %v11641_v26 = vpop.f32.mrf.mxu0 }
 0x152   : > { %v1669_v15 = vadd.f32 %v11295_v62, %v1150_v57  ;;  %v5066_v7 = vadd.f32 %v11052_v30, %v11168_v13  ;;  %v2950_v58 = vsel %vm1925_vm1, %v1412_v35, %v2438_v53  ;;  %v6346_v59 = vadd.f32 %v11052_v30, %v11175_v22 }
 0x153   : > { %v895_v46 = vmul.f32 %v11273_v32, %v376_v50  ;;  %v1151_v10 = vmul.f32 %v11273_v32, %v632_v45  ;;  %9301 = vmatprep.mubr.msk.f32.mxu0 %vm3352_vm0, %v2950_v58  ;;  %v3206_v36 = vsel %vm2181_vm2, %v1668_v52, %v2694_v1  ;;  %vm1926_vm3 = vcmp.ge.f32.partialorder %v1413_v14, 0.0  ;;  %v11657_v52 = vld [vmem:[%s15550_s5] ss:$0 sm:$0xff]  ;;  %v11661_v50 = vpop.f32.mrf.mxu1  ;;  %v11663_v45 = vpop.f32.mrf.mxu0 }
 0x154   : > { %v2439_v13 = vmul.f32 %v10011_v12, %v1413_v14  ;;  %vm2182_vm4 = vcmp.ge.f32.partialorder %v1669_v15, 0.0  ;;  %7537 = vst.msk [vmem:[%s11070_s25 + $0xb0] sm:$0xff] %vm7514_vm11, %v5066_v7  ;;  %9685 = vmatprep.mubr.msk.f32.mxu1 %vm3352_vm0, %v3206_v36  ;;  %v2695_v30 = vmul.f32 %v10011_v12, %v1669_v15  ;;  %7793 = vst.msk [vmem:[%s11070_s25 + $0x8b0] sm:$0xff] %vm7514_vm11, %v6346_v59  ;;  %v378_v59 = vld [vmem:[%s9995_s9 + $0x3d0] sm:$0xff] }
 0x155   : > { %v1414_v22 = vadd.f32 %v11295_v62, %v895_v46  ;;  %v1670_v35 = vadd.f32 %v11295_v62, %v1151_v10  ;;  %v5081_v57 = vadd.f32 %v11657_v52, %v11196_v33  ;;  %v896_v1 = vmul.f32 %v11273_v32, %v377_v2  ;;  %v634_v46 = vld [vmem:[%s9995_s9 + $0xbd0] sm:$0xff]  ;;  %v11686_v36 = vpop.f32.mrf.mxu0 }
 0x156   : > { %v2951_v53 = vsel %vm1926_vm3, %v1413_v14, %v2439_v13  ;;  %v6361_v7 = vadd.f32 %v11657_v52, %v11198_v61  ;;  %v1152_v58 = vmul.f32 %v11273_v32, %v633_v31  ;;  %v3207_v10 = vsel %vm2182_vm4, %v1669_v15, %v2695_v30  ;;  %v11676_v14 = vpop.f32.mrf.mxu1 }
 0x157   : > { %9302 = vmatmul.mubr.msk.f32.gmra.mxu0 %vm3352_vm0, %v2951_v53  ;;  %vm1927_vm5 = vcmp.ge.f32.partialorder %v1414_v22, 0.0  ;;  %v2440_v33 = vmul.f32 %v10011_v12, %v1414_v22  ;;  %vm2183_vm6 = vcmp.ge.f32.partialorder %v1670_v35, 0.0  ;;  %7540 = vst.msk [vmem:[%s11070_s25 + $0xc8] sm:$0xff] %vm7514_vm11, %v5081_v57  ;;  %9686 = vmatmul.mubr.msk.f32.gmra.mxu1 %vm3352_vm0, %v3207_v10  ;;  %v2696_v61 = vmul.f32 %v10011_v12, %v1670_v35  ;;  %v635_v10 = vld [vmem:[%s9995_s9 + $0xbd8] sm:$0xff] }
 0x158   : > { %v1415_v31 = vadd.f32 %v11295_v62, %v896_v1  ;;  %7796 = vst.msk [vmem:[%s11070_s25 + $0x8c8] sm:$0xff] %vm7514_vm11, %v6361_v7  ;;  %v1671_v15 = vadd.f32 %v11295_v62, %v1152_v58  ;;  %v5076_v2 = vadd.f32 %v11657_v52, %v11210_v20  ;;  %v6356_v30 = vadd.f32 %v11657_v52, %v11212_v25  ;;  %v379_v1 = vld [vmem:[%s9995_s9 + $0x3d8] sm:$0xff] }
 0x159   : > { %v2952_v13 = vsel %vm1927_vm5, %v1414_v22, %v2440_v33  ;;  %v897_v57 = vmul.f32 %v11273_v32, %v378_v59  ;;  %v1153_v53 = vmul.f32 %v11273_v32, %v634_v46  ;;  %v3208_v7 = vsel %vm2183_vm6, %v1670_v35, %v2696_v61  ;;  %v11699_v22 = vpop.f32.mrf.mxu0  ;;  %v11709_v46 = vpop.f32.mrf.mxu1 }
 0x15a   : > { %9304 = vmatprep.mubr.msk.f32.mxu0 %vm3352_vm0, %v2952_v13  ;;  %vm1928_vm7 = vcmp.ge.f32.partialorder %v1415_v31, 0.0  ;;  %v2441_v20 = vmul.f32 %v10011_v12, %v1415_v31  ;;  %vm2184_vm8 = vcmp.ge.f32.partialorder %v1671_v15, 0.0  ;;  %7539 = vst.msk [vmem:[%s11070_s25 + $0xc0] sm:$0xff] %vm7514_vm11, %v5076_v2  ;;  %9688 = vmatprep.mubr.msk.f32.mxu1 %vm3352_vm0, %v3208_v7  ;;  %v2697_v25 = vmul.f32 %v10011_v12, %v1671_v15  ;;  %v636_v7 = vld [vmem:[%s9995_s9 + $0xbe0] sm:$0xff] }
 0x15b   : > { %7795 = vst.msk [vmem:[%s11070_s25 + $0x8c0] sm:$0xff] %vm7514_vm11, %v6356_v30  ;;  %v1416_v58 = vadd.f32 %v11295_v62, %v897_v57  ;;  %v1672_v35 = vadd.f32 %v11295_v62, %v1153_v53  ;;  %v5091_v59 = vadd.f32 %v11657_v52, %v11228_v63  ;;  %v898_v61 = vmul.f32 %v11273_v32, %v379_v1  ;;  %v380_v30 = vld [vmem:[%s9995_s9 + $0x3e0] sm:$0xff] }
 0x15c   : > { %v2953_v33 = vsel %vm1928_vm7, %v1415_v31, %v2441_v20  ;;  %v6371_v2 = vadd.f32 %v11657_v52, %v11230_v49  ;;  %v1154_v13 = vmul.f32 %v11273_v32, %v635_v10  ;;  %v3209_v57 = vsel %vm2184_vm8, %v1671_v15, %v2697_v25  ;;  %v11722_v31 = vpop.f32.mrf.mxu1  ;;  %v11732_v10 = vpop.f32.mrf.mxu0 }
 0x15d   : > { %9305 = vmatmul.mubr.msk.f32.gmra.mxu0 %vm3352_vm0, %v2953_v33  ;;  %vm1929_vm9 = vcmp.ge.f32.partialorder %v1416_v58, 0.0  ;;  %v2442_v63 = vmul.f32 %v10011_v12, %v1416_v58  ;;  %vm2185_vm10 = vcmp.ge.f32.partialorder %v1672_v35, 0.0  ;;  %7542 = vst.msk [vmem:[%s11070_s25 + $0xd8] sm:$0xff] %vm7514_vm11, %v5091_v59  ;;  %9689 = vmatmul.mubr.msk.f32.gmra.mxu1 %vm3352_vm0, %v3209_v57  ;;  %v2698_v49 = vmul.f32 %v10011_v12, %v1672_v35  ;;  %v637_v57 = vld [vmem:[%s9995_s9 + $0xbe8] sm:$0xff] }
 0x15e   : > { %v1417_v53 = vadd.f32 %v11295_v62, %v898_v61  ;;  %7798 = vst.msk [vmem:[%s11070_s25 + $0x8d8] sm:$0xff] %vm7514_vm11, %v6371_v2  ;;  %v1673_v15 = vadd.f32 %v11295_v62, %v1154_v13  ;;  %v5086_v1 = vadd.f32 %v11657_v52, %v11245_v5  ;;  %v6366_v25 = vadd.f32 %v11657_v52, %v11247_v6  ;;  %v381_v61 = vld [vmem:[%s9995_s9 + $0x3e8] sm:$0xff]  ;;  %v11740_v2 = vpop.f32.mrf.mxu1  ;;  %v11747_v6 = vpop.f32.mrf.mxu0 }
 0x15f   : > { %v2954_v20 = vsel %vm1929_vm9, %v1416_v58, %v2442_v63  ;;  %v899_v59 = vmul.f32 %v11273_v32, %v380_v30  ;;  %v1155_v33 = vmul.f32 %v11273_v32, %v636_v7  ;;  %v3210_v13 = vsel %vm2185_vm10, %v1672_v35, %v2698_v49  ;;  %15556 = vst [vmem:[#allocation7_spill] sm:$0xff] %v11747_v6  ;;  %v638_v6 = vld [vmem:[%s9995_s9 + $0xbf0] sm:$0xff] }
 0x160   : > { %9307 = vmatprep.mubr.msk.f32.mxu0 %vm3352_vm0, %v2954_v20  ;;  %vm1930_vm12 = vcmp.ge.f32.partialorder %v1417_v53, 0.0  ;;  %v2443_v5 = vmul.f32 %v10011_v12, %v1417_v53  ;;  %vm2186_vm13 = vcmp.ge.f32.partialorder %v1673_v15, 0.0  ;;  %7541 = vst.msk [vmem:[%s11070_s25 + $0xd0] sm:$0xff] %vm7514_vm11, %v5086_v1  ;;  %9691 = vmatprep.mubr.msk.f32.mxu1 %vm3352_vm0, %v3210_v13  ;;  %v2699_v58 = vmul.f32 %v10011_v12, %v1673_v15  ;;  %v11757_v63 = vpop.f32.mrf.mxu1 }
 0x161   : > { %7797 = vst.msk [vmem:[%s11070_s25 + $0x8d0] sm:$0xff] %vm7514_vm11, %v6366_v25  ;;  %v1418_v30 = vadd.f32 %v11295_v62, %v899_v59  ;;  %v1674_v35 = vadd.f32 %v11295_v62, %v1155_v33  ;;  %v5101_v7 = vadd.f32 %v11657_v52, %v11268_v21  ;;  %v900_v1 = vmul.f32 %v11273_v32, %v381_v61  ;;  %v382_v25 = vld [vmem:[%s9995_s9 + $0x3f0] sm:$0xff]  ;;  %v11778_v61 = vpop.f32.mrf.mxu0 }
 0x162   : > { %v2955_v49 = vsel %vm1930_vm12, %v1417_v53, %v2443_v5  ;;  %v6381_v20 = vadd.f32 %v11657_v52, %v11281_v16  ;;  %v1156_v13 = vmul.f32 %v11273_v32, %v637_v57  ;;  %v3211_v59 = vsel %vm2186_vm13, %v1673_v15, %v2699_v58  ;;  %v11780_v57 = vpop.f32.mrf.mxu1 }
 0x163   : > { %9308 = vmatmul.mubr.msk.f32.gmra.mxu0 %vm3352_vm0, %v2955_v49  ;;  %vm1931_vm14 = vcmp.ge.f32.partialorder %v1418_v30, 0.0  ;;  %v2444_v21 = vmul.f32 %v10011_v12, %v1418_v30  ;;  %vm2187_vm15 = vcmp.ge.f32.partialorder %v1674_v35, 0.0  ;;  %7544 = vst.msk [vmem:[%s11070_s25 + $0xe8] sm:$0xff] %vm7514_vm11, %v5101_v7  ;;  %9692 = vmatmul.mubr.msk.f32.gmra.mxu1 %vm3352_vm0, %v3211_v59  ;;  %v2700_v16 = vmul.f32 %v10011_v12, %v1674_v35 }
 0x164   : > { %v1419_v53 = vadd.f32 %v11295_v62, %v900_v1  ;;  %7800 = vst.msk [vmem:[%s11070_s25 + $0x8e8] sm:$0xff] %vm7514_vm11, %v6381_v20  ;;  %v1675_v33 = vadd.f32 %v11295_v62, %v1156_v13  ;;  %v5096_v15 = vadd.f32 %v11657_v52, %v11288_v42  ;;  %v6376_v58 = vadd.f32 %v11657_v52, %v11303_v44  ;;  %v383_v1 = vld [vmem:[%s9995_s9 + $0x3f8] sm:$0xff]  ;;  %v11795_v44 = vpop.f32.mrf.mxu1 }
 0x165   : > { %v2956_v5 = vsel %vm1931_vm14, %v1418_v30, %v2444_v21  ;;  %v901_v7 = vmul.f32 %v11273_v32, %v382_v25  ;;  %v1157_v49 = vmul.f32 %v11273_v32, %v638_v6  ;;  %v639_v20 = vld [vmem:[%s9995_s9 + $0xbf8] sm:$0xff]  ;;  %v3212_v13 = vsel %vm2187_vm15, %v1674_v35, %v2700_v16  ;;  %v11793_v30 = vpop.f32.mrf.mxu0  ;;  %15557 = vst [vmem:[#allocation8_spill] sm:$0xff] %v11795_v44  ;;  %v640_v44 = vld [vmem:[%s9995_s9 + $0xc00] sm:$0xff] }
 0x166   : > { %9310 = vmatprep.mubr.msk.f32.mxu0 %vm3352_vm0, %v2956_v5  ;;  %vm1932_vm1 = vcmp.ge.f32.partialorder %v1419_v53, 0.0  ;;  %v2445_v42 = vmul.f32 %v10011_v12, %v1419_v53  ;;  %vm2188_vm2 = vcmp.ge.f32.partialorder %v1675_v33, 0.0  ;;  %7543 = vst.msk [vmem:[%s11070_s25 + $0xe0] sm:$0xff] %vm7514_vm11, %v5096_v15  ;;  %9694 = vmatprep.mubr.msk.f32.mxu1 %vm3352_vm0, %v3212_v13  ;;  %v2701_v6 = vmul.f32 %v10011_v12, %v1675_v33  ;;  %v384_v13 = vld [vmem:[%s9995_s9 + $0x400] sm:$0xff] }
 0x167   : > { %7799 = vst.msk [vmem:[%s11070_s25 + $0x8e0] sm:$0xff] %vm7514_vm11, %v6376_v58  ;;  %v1420_v35 = vadd.f32 %v11295_v62, %v901_v7  ;;  %v1676_v25 = vadd.f32 %v11295_v62, %v1157_v49  ;;  %v5111_v59 = vadd.f32 %v11657_v52, %v11311_v0  ;;  %v902_v16 = vmul.f32 %v11273_v32, %v383_v1  ;;  %v11811_v58 = vpop.f32.mrf.mxu0  ;;  %v11813_v7 = vpop.f32.mrf.mxu1 }
 0x168   : > { %v2957_v21 = vsel %vm1932_vm1, %v1419_v53, %v2445_v42  ;;  %v6391_v15 = vadd.f32 %v11657_v52, %v11326_v60  ;;  %v1158_v5 = vmul.f32 %v11273_v32, %v639_v20  ;;  %v3213_v49 = vsel %vm2188_vm2, %v1675_v33, %v2701_v6 }
 0x169   : > { %9311 = vmatmul.mubr.msk.f32.gmra.mxu0 %vm3352_vm0, %v2957_v21  ;;  %vm1933_vm3 = vcmp.ge.f32.partialorder %v1420_v35, 0.0  ;;  %v2446_v0 = vmul.f32 %v10011_v12, %v1420_v35  ;;  %vm2189_vm4 = vcmp.ge.f32.partialorder %v1676_v25, 0.0  ;;  %7546 = vst.msk [vmem:[%s11070_s25 + $0xf8] sm:$0xff] %vm7514_vm11, %v5111_v59  ;;  %9695 = vmatmul.mubr.msk.f32.gmra.mxu1 %vm3352_vm0, %v3213_v49  ;;  %v2702_v60 = vmul.f32 %v10011_v12, %v1676_v25  ;;  %v11828_v20 = vpop.f32.mrf.mxu0  ;;  %v11830_v42 = vpop.f32.mrf.mxu1  ;;  %v641_v49 = vld [vmem:[%s9995_s9 + $0xc08] sm:$0xff] }
 0x16a   : > { %v1421_v53 = vadd.f32 %v11295_v62, %v902_v16  ;;  %7802 = vst.msk [vmem:[%s11070_s25 + $0x8f8] sm:$0xff] %vm7514_vm11, %v6391_v15  ;;  %v1677_v1 = vadd.f32 %v11295_v62, %v1158_v5  ;;  %v5106_v33 = vadd.f32 %v11657_v52, %v11328_v37  ;;  %v6386_v59 = vadd.f32 %v11657_v52, %v11341_v3  ;;  %v385_v15 = vld [vmem:[%s9995_s9 + $0x408] sm:$0xff] }
 0x16b   : > { %v2958_v6 = vsel %vm1933_vm3, %v1420_v35, %v2446_v0  ;;  %v903_v21 = vmul.f32 %v11273_v32, %v384_v13  ;;  %v1159_v16 = vmul.f32 %v11273_v32, %v640_v44  ;;  %v3214_v5 = vsel %vm2189_vm4, %v1676_v25, %v2702_v60  ;;  %v11851_v13 = vpop.f32.mrf.mxu0 }
 0x16c   : > { %9313 = vmatprep.mubr.msk.f32.mxu0 %vm3352_vm0, %v2958_v6  ;;  %vm1934_vm5 = vcmp.ge.f32.partialorder %v1421_v53, 0.0  ;;  %v2447_v37 = vmul.f32 %v10011_v12, %v1421_v53  ;;  %vm2190_vm6 = vcmp.ge.f32.partialorder %v1677_v1, 0.0  ;;  %7545 = vst.msk [vmem:[%s11070_s25 + $0xf0] sm:$0xff] %vm7514_vm11, %v5106_v33  ;;  %9697 = vmatprep.mubr.msk.f32.mxu1 %vm3352_vm0, %v3214_v5  ;;  %v2703_v3 = vmul.f32 %v10011_v12, %v1677_v1  ;;  %v642_v5 = vld [vmem:[%s9995_s9 + $0xc10] sm:$0xff] }
 0x16d   : > { %7801 = vst.msk [vmem:[%s11070_s25 + $0x8f0] sm:$0xff] %vm7514_vm11, %v6386_v59  ;;  %v1422_v44 = vadd.f32 %v11295_v62, %v903_v21  ;;  %v1678_v35 = vadd.f32 %v11295_v62, %v1159_v16  ;;  %v5121_v25 = vadd.f32 %v11657_v52, %v11357_v24  ;;  %v904_v60 = vmul.f32 %v11273_v32, %v385_v15  ;;  %v386_v59 = vld [vmem:[%s9995_s9 + $0x410] sm:$0xff]  ;;  %v11859_v21 = vpop.f32.mrf.mxu1 }
 0x16e   : > { %v2959_v0 = vsel %vm1934_vm5, %v1421_v53, %v2447_v37  ;;  %v6401_v33 = vadd.f32 %v11657_v52, %v11372_v17  ;;  %v1160_v6 = vmul.f32 %v11273_v32, %v641_v49  ;;  %v3215_v16 = vsel %vm2190_vm6, %v1677_v1, %v2703_v3  ;;  %v11866_v53 = vpop.f32.mrf.mxu0 }
 0x16f   : > { %9314 = vmatmul.mubr.msk.f32.gmra.mxu0 %vm3352_vm0, %v2959_v0  ;;  %vm1935_vm7 = vcmp.ge.f32.partialorder %v1422_v44, 0.0  ;;  %v2448_v24 = vmul.f32 %v10011_v12, %v1422_v44  ;;  %vm2191_vm8 = vcmp.ge.f32.partialorder %v1678_v35, 0.0  ;;  %7548 = vst.msk [vmem:[%s11070_s25 + $0x108] sm:$0xff] %vm7514_vm11, %v5121_v25  ;;  %15558 = vst [vmem:[#allocation9_spill] sm:$0xff] %v11866_v53  ;;  %9698 = vmatmul.mubr.msk.f32.gmra.mxu1 %vm3352_vm0, %v3215_v16  ;;  %v11876_v37 = vpop.f32.mrf.mxu1  ;;  %v643_v53 = vld [vmem:[%s9995_s9 + $0xc18] sm:$0xff] }
 0x170   : > { %v2704_v17 = vmul.f32 %v10011_v12, %v1678_v35  ;;  %v1423_v15 = vadd.f32 %v11295_v62, %v904_v60  ;;  %7804 = vst.msk [vmem:[%s11070_s25 + $0x908] sm:$0xff] %vm7514_vm11, %v6401_v33  ;;  %v1679_v1 = vadd.f32 %v11295_v62, %v1160_v6  ;;  %v5116_v49 = vadd.f32 %v11657_v52, %v11374_v34  ;;  %v387_v60 = vld [vmem:[%s9995_s9 + $0x418] sm:$0xff]  ;;  %v11884_v33 = vpop.f32.mrf.mxu0 }
 0x171   : > { %v2960_v3 = vsel %vm1935_vm7, %v1422_v44, %v2448_v24  ;;  %v6396_v25 = vadd.f32 %v11657_v52, %v11387_v54  ;;  %v905_v0 = vmul.f32 %v11273_v32, %v386_v59  ;;  %v1161_v16 = vmul.f32 %v11273_v32, %v642_v5  ;;  %v11899_v59 = vpop.f32.mrf.mxu1 }
 0x172   : > { %9316 = vmatprep.mubr.msk.f32.mxu0 %vm3352_vm0, %v2960_v3  ;;  %v3216_v6 = vsel %vm2191_vm8, %v1678_v35, %v2704_v17  ;;  %vm1936_vm9 = vcmp.ge.f32.partialorder %v1423_v15, 0.0  ;;  %v2449_v34 = vmul.f32 %v10011_v12, %v1423_v15  ;;  %vm2192_vm10 = vcmp.ge.f32.partialorder %v1679_v1, 0.0  ;;  %7547 = vst.msk [vmem:[%s11070_s25 + $0x100] sm:$0xff] %vm7514_vm11, %v5116_v49  ;;  %v11901_v5 = vpop.f32.mrf.mxu0  ;;  %v11906_v17 = vld [vmem:[%s15546_s1] ss:$0 sm:$0xff] }
 0x173   : > { %9700 = vmatprep.mubr.msk.f32.mxu1 %vm3352_vm0, %v3216_v6  ;;  %v2705_v32 = vmul.f32 %v10011_v12, %v1679_v1  ;;  %7803 = vst.msk [vmem:[%s11070_s25 + $0x900] sm:$0xff] %vm7514_vm11, %v6396_v25  ;;  %v1424_v54 = vadd.f32 %v11295_v62, %v905_v0  ;;  %v1680_v44 = vadd.f32 %v11295_v62, %v1161_v16  ;;  %v388_v25 = vld [vmem:[%s9995_s9 + $0x420] sm:$0xff]  ;;  %v11919_v16 = vpop.f32.mrf.mxu1 }
 0x174   : > { %v5131_v35 = vadd.f32 %v11657_v52, %v11397_v43  ;;  %v2961_v24 = vsel %vm1936_vm9, %v1423_v15, %v2449_v34  ;;  %v906_v49 = vmul.f32 %v11906_v17, %v387_v60  ;;  %v6411_v62 = vadd.f32 %v11657_v52, %v11420_v55  ;;  %v644_v43 = vld [vmem:[%s9995_s9 + $0xc20] sm:$0xff]  ;;  %15559 = vst [vmem:[#allocation10_spill] sm:$0xff] %v11919_v16  ;;  %v645_v16 = vld [vmem:[%s9995_s9 + $0xc28] sm:$0xff] }
 0x175   : > { %v1162_v3 = vmul.f32 %v11906_v17, %v643_v53  ;;  %9317 = vmatmul.mubr.msk.f32.gmra.mxu0 %vm3352_vm0, %v2961_v24  ;;  %v3217_v0 = vsel %vm2192_vm10, %v1679_v1, %v2705_v32  ;;  %vm1937_vm12 = vcmp.ge.f32.partialorder %v1424_v54, 0.0  ;;  %v2450_v15 = vmul.f32 %v10011_v12, %v1424_v54  ;;  %v11926_v53 = vld [vmem:[%s15547_s2] ss:$0 sm:$0xff] }
 0x176   : > { %vm2193_vm13 = vcmp.ge.f32.partialorder %v1680_v44, 0.0  ;;  %7550 = vst.msk [vmem:[%s11070_s25 + $0x118] sm:$0xff] %vm7514_vm11, %v5131_v35  ;;  %9701 = vmatmul.mubr.msk.f32.gmra.mxu1 %vm3352_vm0, %v3217_v0  ;;  %v2706_v55 = vmul.f32 %v10011_v12, %v1680_v44  ;;  %v1425_v1 = vadd.f32 %v11926_v53, %v906_v49  ;;  %7806 = vst.msk [vmem:[%s11070_s25 + $0x918] sm:$0xff] %vm7514_vm11, %v6411_v62  ;;  %v389_v0 = vld [vmem:[%s9995_s9 + $0x428] sm:$0xff]  ;;  %v11940_v49 = vpop.f32.mrf.mxu0 }
 0x177   : > { %v1681_v60 = vadd.f32 %v11926_v53, %v1162_v3  ;;  %v5126_v6 = vadd.f32 %v11657_v52, %v11410_v8  ;;  %v2962_v34 = vsel %vm1937_vm12, %v1424_v54, %v2450_v15  ;;  %v6406_v32 = vadd.f32 %v11657_v52, %v11433_v48 }
 0x178   : > { %v907_v35 = vmul.f32 %v11906_v17, %v388_v25  ;;  %v1163_v24 = vmul.f32 %v11906_v17, %v644_v43  ;;  %9319 = vmatprep.mubr.msk.f32.mxu0 %vm3352_vm0, %v2962_v34  ;;  %v3218_v62 = vsel %vm2193_vm13, %v1680_v44, %v2706_v55  ;;  %vm1938_vm14 = vcmp.ge.f32.partialorder %v1425_v1, 0.0  ;;  %v11955_v25 = vpop.f32.mrf.mxu1  ;;  %v11957_v43 = vpop.f32.mrf.mxu0 }
 0x179   : > { %v2451_v8 = vmul.f32 %v10011_v12, %v1425_v1  ;;  %vm2194_vm15 = vcmp.ge.f32.partialorder %v1681_v60, 0.0  ;;  %7549 = vst.msk [vmem:[%s11070_s25 + $0x110] sm:$0xff] %vm7514_vm11, %v5126_v6  ;;  %9703 = vmatprep.mubr.msk.f32.mxu1 %vm3352_vm0, %v3218_v62  ;;  %v2707_v48 = vmul.f32 %v10011_v12, %v1681_v60  ;;  %7805 = vst.msk [vmem:[%s11070_s25 + $0x910] sm:$0xff] %vm7514_vm11, %v6406_v32  ;;  %v390_v32 = vld [vmem:[%s9995_s9 + $0x430] sm:$0xff] }
 0x17a   : > { %v1426_v54 = vadd.f32 %v11926_v53, %v907_v35  ;;  %v1682_v3 = vadd.f32 %v11926_v53, %v1163_v24  ;;  %v5141_v44 = vadd.f32 %v11657_v52, %v11443_v27  ;;  %v908_v55 = vmul.f32 %v11906_v17, %v389_v0  ;;  %v646_v35 = vld [vmem:[%s9995_s9 + $0xc30] sm:$0xff]  ;;  %v15561_v0 = vld [vmem:[#allocation3_spill] sm:$0xff] }
 0x17b   : > { %v2963_v15 = vsel %vm1938_vm14, %v1425_v1, %v2451_v8  ;;  %v6421_v6 = vadd.f32 %v11657_v52, %v11451_v40  ;;  %v1164_v34 = vmul.f32 %v11906_v17, %v645_v16  ;;  %v3219_v24 = vsel %vm2194_vm15, %v1681_v60, %v2707_v48  ;;  %v11970_v1 = vpop.f32.mrf.mxu1  ;;  %v11980_v8 = vpop.f32.mrf.mxu0 }
 0x17c   : > { %9320 = vmatmul.mubr.msk.f32.gmra.mxu0 %vm3352_vm0, %v2963_v15  ;;  %vm1939_vm1 = vcmp.ge.f32.partialorder %v1426_v54, 0.0  ;;  %v2452_v27 = vmul.f32 %v10011_v12, %v1426_v54  ;;  %vm2195_vm2 = vcmp.ge.f32.partialorder %v1682_v3, 0.0  ;;  %7552 = vst.msk [vmem:[%s11070_s25 + $0x128] sm:$0xff] %vm7514_vm11, %v5141_v44  ;;  %15560 = vst [vmem:[#allocation11_spill] sm:$0xff] %v11970_v1  ;;  %9704 = vmatmul.mubr.msk.f32.gmra.mxu1 %vm3352_vm0, %v3219_v24  ;;  %v647_v1 = vld [vmem:[%s9995_s9 + $0xc38] sm:$0xff] }
 0x17d   : > { %v2708_v40 = vmul.f32 %v10011_v12, %v1682_v3  ;;  %v1427_v16 = vadd.f32 %v11926_v53, %v908_v55  ;;  %7808 = vst.msk [vmem:[%s11070_s25 + $0x928] sm:$0xff] %vm7514_vm11, %v6421_v6  ;;  %v1683_v60 = vadd.f32 %v11926_v53, %v1164_v34  ;;  %v5136_v62 = vadd.f32 %v11657_v52, %v15561_v0  ;;  %v391_v55 = vld [vmem:[%s9995_s9 + $0x438] sm:$0xff] }
 0x17e   : > { %v2964_v48 = vsel %vm1939_vm1, %v1426_v54, %v2452_v27  ;;  %v6416_v44 = vadd.f32 %v11657_v52, %v11468_v18  ;;  %v909_v15 = vmul.f32 %v11906_v17, %v390_v32  ;;  %v1165_v24 = vmul.f32 %v11906_v17, %v646_v35  ;;  %v11993_v54 = vpop.f32.mrf.mxu0  ;;  %v12003_v27 = vpop.f32.mrf.mxu1 }
 0x17f   : > { %9322 = vmatprep.mubr.msk.f32.mxu0 %vm3352_vm0, %v2964_v48  ;;  %v3220_v6 = vsel %vm2195_vm2, %v1682_v3, %v2708_v40  ;;  %vm1940_vm3 = vcmp.ge.f32.partialorder %v1427_v16, 0.0  ;;  %v2453_v34 = vmul.f32 %v10011_v12, %v1427_v16  ;;  %vm2196_vm4 = vcmp.ge.f32.partialorder %v1683_v60, 0.0  ;;  %7551 = vst.msk [vmem:[%s11070_s25 + $0x120] sm:$0xff] %vm7514_vm11, %v5136_v62 }
 0x180   : > { %9706 = vmatprep.mubr.msk.f32.mxu1 %vm3352_vm0, %v3220_v6  ;;  %v2709_v18 = vmul.f32 %v10011_v12, %v1683_v60  ;;  %7807 = vst.msk [vmem:[%s11070_s25 + $0x920] sm:$0xff] %vm7514_vm11, %v6416_v44  ;;  %v1428_v32 = vadd.f32 %v11926_v53, %v909_v15  ;;  %v1684_v3 = vadd.f32 %v11926_v53, %v1165_v24  ;;  %v392_v44 = vld [vmem:[%s9995_s9 + $0x440] sm:$0xff] }
 0x181   : > { %v5151_v35 = vadd.f32 %v11657_v52, %v11489_v41  ;;  %v2965_v40 = vsel %vm1940_vm3, %v1427_v16, %v2453_v34  ;;  %v910_v0 = vmul.f32 %v11906_v17, %v391_v55  ;;  %v6431_v62 = vadd.f32 %v11657_v52, %v11491_v23  ;;  %v648_v6 = vld [vmem:[%s9995_s9 + $0xc40] sm:$0xff]  ;;  %v12016_v16 = vpop.f32.mrf.mxu1  ;;  %v12026_v55 = vpop.f32.mrf.mxu0 }
 0x182   : > { %v1166_v48 = vmul.f32 %v11906_v17, %v647_v1  ;;  %9323 = vmatmul.mubr.msk.f32.gmra.mxu0 %vm3352_vm0, %v2965_v40  ;;  %v3221_v15 = vsel %vm2196_vm4, %v1683_v60, %v2709_v18  ;;  %vm1941_vm5 = vcmp.ge.f32.partialorder %v1428_v32, 0.0  ;;  %v2454_v41 = vmul.f32 %v10011_v12, %v1428_v32  ;;  %15562 = vst [vmem:[#allocation3_spill] sm:$0xff] %v12016_v16  ;;  %v15563_v18 = vld [vmem:[#allocation4_spill] sm:$0xff] }
 0x183   : > { %vm2197_vm6 = vcmp.ge.f32.partialorder %v1684_v3, 0.0  ;;  %7554 = vst.msk [vmem:[%s11070_s25 + $0x138] sm:$0xff] %vm7514_vm11, %v5151_v35  ;;  %9707 = vmatmul.mubr.msk.f32.gmra.mxu1 %vm3352_vm0, %v3221_v15  ;;  %v2710_v23 = vmul.f32 %v10011_v12, %v1684_v3  ;;  %v1429_v1 = vadd.f32 %v11926_v53, %v910_v0  ;;  %7810 = vst.msk [vmem:[%s11070_s25 + $0x938] sm:$0xff] %vm7514_vm11, %v6431_v62  ;;  %v393_v0 = vld [vmem:[%s9995_s9 + $0x448] sm:$0xff]  ;;  %v12034_v62 = vpop.f32.mrf.mxu1 }
 0x184   : > { %v1685_v60 = vadd.f32 %v11926_v53, %v1166_v48  ;;  %v5146_v24 = vadd.f32 %v11657_v52, %v11504_v29  ;;  %v2966_v34 = vsel %vm1941_vm5, %v1428_v32, %v2454_v41  ;;  %v6426_v35 = vadd.f32 %v11657_v52, %v15563_v18  ;;  %v649_v16 = vld [vmem:[%s9995_s9 + $0xc48] sm:$0xff]  ;;  %v12041_v32 = vpop.f32.mrf.mxu0 }
 0x185   : > { %v911_v40 = vmul.f32 %v11906_v17, %v392_v44  ;;  %v1167_v15 = vmul.f32 %v11906_v17, %v648_v6  ;;  %9325 = vmatprep.mubr.msk.f32.mxu0 %vm3352_vm0, %v2966_v34  ;;  %v3222_v48 = vsel %vm2197_vm6, %v1684_v3, %v2710_v23  ;;  %vm1942_vm7 = vcmp.ge.f32.partialorder %v1429_v1, 0.0  ;;  %15564 = vst [vmem:[#allocation4_spill] sm:$0xff] %v12041_v32  ;;  %v12051_v23 = vpop.f32.mrf.mxu1  ;;  %v650_v32 = vld [vmem:[%s9995_s9 + $0xc50] sm:$0xff] }
 0x186   : > { %v2455_v29 = vmul.f32 %v10011_v12, %v1429_v1  ;;  %vm2198_vm8 = vcmp.ge.f32.partialorder %v1685_v60, 0.0  ;;  %7553 = vst.msk [vmem:[%s11070_s25 + $0x130] sm:$0xff] %vm7514_vm11, %v5146_v24  ;;  %9709 = vmatprep.mubr.msk.f32.mxu1 %vm3352_vm0, %v3222_v48  ;;  %v2711_v44 = vmul.f32 %v10011_v12, %v1685_v60  ;;  %7809 = vst.msk [vmem:[%s11070_s25 + $0x930] sm:$0xff] %vm7514_vm11, %v6426_v35  ;;  %v394_v35 = vld [vmem:[%s9995_s9 + $0x450] sm:$0xff] }
 0x187   : > { %v1430_v6 = vadd.f32 %v11926_v53, %v911_v40  ;;  %v1686_v3 = vadd.f32 %v11926_v53, %v1167_v15  ;;  %v5161_v41 = vadd.f32 %v11657_v52, %v11522_v19  ;;  %v912_v34 = vmul.f32 %v11906_v17, %v393_v0  ;;  %v12072_v15 = vpop.f32.mrf.mxu0  ;;  %v12074_v0 = vpop.f32.mrf.mxu1 }
 0x188   : > { %v2967_v24 = vsel %vm1942_vm7, %v1429_v1, %v2455_v29  ;;  %v6441_v18 = vadd.f32 %v11657_v52, %v11524_v4  ;;  %v1168_v48 = vmul.f32 %v11906_v17, %v649_v16  ;;  %v3223_v40 = vsel %vm2198_vm8, %v1685_v60, %v2711_v44 }
 0x189   : > { %9326 = vmatmul.mubr.msk.f32.gmra.mxu0 %vm3352_vm0, %v2967_v24  ;;  %vm1943_vm9 = vcmp.ge.f32.partialorder %v1430_v6, 0.0  ;;  %v2456_v19 = vmul.f32 %v10011_v12, %v1430_v6  ;;  %vm2199_vm10 = vcmp.ge.f32.partialorder %v1686_v3, 0.0  ;;  %7556 = vst.msk [vmem:[%s11070_s25 + $0x148] sm:$0xff] %vm7514_vm11, %v5161_v41  ;;  %9710 = vmatmul.mubr.msk.f32.gmra.mxu1 %vm3352_vm0, %v3223_v40  ;;  %v2712_v4 = vmul.f32 %v10011_v12, %v1686_v3 }
 0x18a   : > { %v1431_v16 = vadd.f32 %v11926_v53, %v912_v34  ;;  %7812 = vst.msk [vmem:[%s11070_s25 + $0x948] sm:$0xff] %vm7514_vm11, %v6441_v18  ;;  %v1687_v1 = vadd.f32 %v11926_v53, %v1168_v48  ;;  %v5156_v60 = vadd.f32 %v11657_v52, %v11539_v56  ;;  %v6436_v44 = vadd.f32 %v11657_v52, %v11541_v9  ;;  %v395_v34 = vld [vmem:[%s9995_s9 + $0x458] sm:$0xff]  ;;  %v12089_v9 = vpop.f32.mrf.mxu1 }
 0x18b   : > { %v2968_v29 = vsel %vm1943_vm9, %v1430_v6, %v2456_v19  ;;  %v913_v41 = vmul.f32 %v11906_v17, %v394_v35  ;;  %v1169_v24 = vmul.f32 %v11906_v17, %v650_v32  ;;  %v651_v18 = vld [vmem:[%s9995_s9 + $0xc58] sm:$0xff]  ;;  %v3224_v48 = vsel %vm2199_vm10, %v1686_v3, %v2712_v4  ;;  %v12087_v6 = vpop.f32.mrf.mxu0  ;;  %15565 = vst [vmem:[#allocation12_spill] sm:$0xff] %v12089_v9  ;;  %v652_v9 = vld [vmem:[%s9995_s9 + $0xc60] sm:$0xff] }
 0x18c   : > { %9328 = vmatprep.mubr.msk.f32.mxu0 %vm3352_vm0, %v2968_v29  ;;  %vm1944_vm12 = vcmp.ge.f32.partialorder %v1431_v16, 0.0  ;;  %v2457_v56 = vmul.f32 %v10011_v12, %v1431_v16  ;;  %vm2200_vm13 = vcmp.ge.f32.partialorder %v1687_v1, 0.0  ;;  %7555 = vst.msk [vmem:[%s11070_s25 + $0x140] sm:$0xff] %vm7514_vm11, %v5156_v60  ;;  %9712 = vmatprep.mubr.msk.f32.mxu1 %vm3352_vm0, %v3224_v48  ;;  %v2713_v32 = vmul.f32 %v10011_v12, %v1687_v1  ;;  %v396_v48 = vld [vmem:[%s9995_s9 + $0x460] sm:$0xff] }
 0x18d   : > { %7811 = vst.msk [vmem:[%s11070_s25 + $0x940] sm:$0xff] %vm7514_vm11, %v6436_v44  ;;  %v1432_v3 = vadd.f32 %v11926_v53, %v913_v41  ;;  %v1688_v35 = vadd.f32 %v11926_v53, %v1169_v24  ;;  %v5171_v40 = vadd.f32 %v11657_v52, %v11562_v28  ;;  %v914_v4 = vmul.f32 %v11906_v17, %v395_v34  ;;  %v12105_v44 = vpop.f32.mrf.mxu0  ;;  %v12107_v41 = vpop.f32.mrf.mxu1 }
 0x18e   : > { %v2969_v19 = vsel %vm1944_vm12, %v1431_v16, %v2457_v56  ;;  %v6451_v60 = vadd.f32 %v11657_v52, %v11570_v51  ;;  %v1170_v29 = vmul.f32 %v11906_v17, %v651_v18  ;;  %15566 = vst [vmem:[#allocation13_spill] sm:$0xff] %v12107_v41  ;;  %v3225_v24 = vsel %vm2200_vm13, %v1687_v1, %v2713_v32  ;;  %v15567_v1 = vld [vmem:[#allocation5_spill] sm:$0xff]  ;;  %v653_v41 = vld [vmem:[%s9995_s9 + $0xc68] sm:$0xff] }
 0x18f   : > { %9329 = vmatmul.mubr.msk.f32.gmra.mxu0 %vm3352_vm0, %v2969_v19  ;;  %vm1945_vm14 = vcmp.ge.f32.partialorder %v1432_v3, 0.0  ;;  %v2458_v28 = vmul.f32 %v10011_v12, %v1432_v3  ;;  %vm2201_vm15 = vcmp.ge.f32.partialorder %v1688_v35, 0.0  ;;  %7558 = vst.msk [vmem:[%s11070_s25 + $0x158] sm:$0xff] %vm7514_vm11, %v5171_v40  ;;  %9713 = vmatmul.mubr.msk.f32.gmra.mxu1 %vm3352_vm0, %v3225_v24  ;;  %v2714_v51 = vmul.f32 %v10011_v12, %v1688_v35  ;;  %v12122_v56 = vpop.f32.mrf.mxu0  ;;  %v12124_v32 = vpop.f32.mrf.mxu1 }
 0x190   : > { %v1433_v16 = vadd.f32 %v11926_v53, %v914_v4  ;;  %7814 = vst.msk [vmem:[%s11070_s25 + $0x958] sm:$0xff] %vm7514_vm11, %v6451_v60  ;;  %v1689_v34 = vadd.f32 %v11926_v53, %v1170_v29  ;;  %v5166_v18 = vadd.f32 %v11657_v52, %v15567_v1  ;;  %v6446_v19 = vadd.f32 %v11657_v52, %v11587_v11  ;;  %v397_v60 = vld [vmem:[%s9995_s9 + $0x468] sm:$0xff] }
 0x191   : > { %v2970_v40 = vsel %vm1945_vm14, %v1432_v3, %v2458_v28  ;;  %v915_v24 = vmul.f32 %v11906_v17, %v396_v48  ;;  %v1171_v4 = vmul.f32 %v11906_v17, %v652_v9  ;;  %v3226_v29 = vsel %vm2201_vm15, %v1688_v35, %v2714_v51  ;;  %v12145_v48 = vpop.f32.mrf.mxu0 }
 0x192   : > { %9331 = vmatprep.mubr.msk.f32.mxu0 %vm3352_vm0, %v2970_v40  ;;  %vm1946_vm1 = vcmp.ge.f32.partialorder %v1433_v16, 0.0  ;;  %v2459_v1 = vmul.f32 %v10011_v12, %v1433_v16  ;;  %vm2202_vm2 = vcmp.ge.f32.partialorder %v1689_v34, 0.0  ;;  %7557 = vst.msk [vmem:[%s11070_s25 + $0x150] sm:$0xff] %vm7514_vm11, %v5166_v18  ;;  %9715 = vmatprep.mubr.msk.f32.mxu1 %vm3352_vm0, %v3226_v29  ;;  %v2715_v11 = vmul.f32 %v10011_v12, %v1689_v34  ;;  %v654_v29 = vld [vmem:[%s9995_s9 + $0xc70] sm:$0xff] }
 0x193   : > { %7813 = vst.msk [vmem:[%s11070_s25 + $0x950] sm:$0xff] %vm7514_vm11, %v6446_v19  ;;  %v1434_v9 = vadd.f32 %v11926_v53, %v915_v24  ;;  %v1690_v3 = vadd.f32 %v11926_v53, %v1171_v4  ;;  %v5181_v35 = vadd.f32 %v11657_v52, %v11595_v39  ;;  %v916_v51 = vmul.f32 %v11906_v17, %v397_v60  ;;  %v398_v19 = vld [vmem:[%s9995_s9 + $0x470] sm:$0xff]  ;;  %v12153_v24 = vpop.f32.mrf.mxu1 }
 0x194   : > { %v2971_v28 = vsel %vm1946_vm1, %v1433_v16, %v2459_v1  ;;  %v6461_v18 = vadd.f32 %v11657_v52, %v11610_v38  ;;  %v1172_v40 = vmul.f32 %v11906_v17, %v653_v41  ;;  %15568 = vst [vmem:[#allocation5_spill] sm:$0xff] %v12153_v24  ;;  %v3227_v4 = vsel %vm2202_vm2, %v1689_v34, %v2715_v11  ;;  %v12160_v16 = vpop.f32.mrf.mxu0  ;;  %v655_v24 = vld [vmem:[%s9995_s9 + $0xc78] sm:$0xff] }
 0x195   : > { %9332 = vmatmul.mubr.msk.f32.gmra.mxu0 %vm3352_vm0, %v2971_v28  ;;  %vm1947_vm3 = vcmp.ge.f32.partialorder %v1434_v9, 0.0  ;;  %v2460_v39 = vmul.f32 %v10011_v12, %v1434_v9  ;;  %vm2203_vm4 = vcmp.ge.f32.partialorder %v1690_v3, 0.0  ;;  %7560 = vst.msk [vmem:[%s11070_s25 + $0x168] sm:$0xff] %vm7514_vm11, %v5181_v35  ;;  %15569 = vst [vmem:[#allocation14_spill] sm:$0xff] %v12160_v16  ;;  %9716 = vmatmul.mubr.msk.f32.gmra.mxu1 %vm3352_vm0, %v3227_v4  ;;  %v12170_v1 = vpop.f32.mrf.mxu1  ;;  %v15570_v35 = vld [vmem:[#allocation6_spill] sm:$0xff] }
 0x196   : > { %v2716_v38 = vmul.f32 %v10011_v12, %v1690_v3  ;;  %v1435_v41 = vadd.f32 %v11926_v53, %v916_v51  ;;  %7816 = vst.msk [vmem:[%s11070_s25 + $0x968] sm:$0xff] %vm7514_vm11, %v6461_v18  ;;  %v1691_v34 = vadd.f32 %v11926_v53, %v1172_v40  ;;  %v5176_v60 = vadd.f32 %v11657_v52, %v11612_v47  ;;  %v399_v51 = vld [vmem:[%s9995_s9 + $0x478] sm:$0xff]  ;;  %v12178_v18 = vpop.f32.mrf.mxu0 }
 0x197   : > { %v2972_v11 = vsel %vm1947_vm3, %v1434_v9, %v2460_v39  ;;  %v6456_v28 = vadd.f32 %v11657_v52, %v15570_v35  ;;  %v917_v4 = vmul.f32 %v11906_v17, %v398_v19  ;;  %v1173_v16 = vmul.f32 %v11906_v17, %v654_v29  ;;  %v12193_v39 = vpop.f32.mrf.mxu1 }
 0x198   : > { %9334 = vmatprep.mubr.msk.f32.mxu0 %vm3352_vm0, %v2972_v11  ;;  %v3228_v40 = vsel %vm2203_vm4, %v1690_v3, %v2716_v38  ;;  %vm1948_vm5 = vcmp.ge.f32.partialorder %v1435_v41, 0.0  ;;  %v2461_v47 = vmul.f32 %v10011_v12, %v1435_v41  ;;  %vm2204_vm6 = vcmp.ge.f32.partialorder %v1691_v34, 0.0  ;;  %7559 = vst.msk [vmem:[%s11070_s25 + $0x160] sm:$0xff] %vm7514_vm11, %v5176_v60  ;;  %v12195_v38 = vpop.f32.mrf.mxu0 }
 0x199   : > { %9718 = vmatprep.mubr.msk.f32.mxu1 %vm3352_vm0, %v3228_v40  ;;  %v2717_v9 = vmul.f32 %v10011_v12, %v1691_v34  ;;  %7815 = vst.msk [vmem:[%s11070_s25 + $0x960] sm:$0xff] %vm7514_vm11, %v6456_v28  ;;  %v1436_v19 = vadd.f32 %v11926_v53, %v917_v4  ;;  %v1692_v29 = vadd.f32 %v11926_v53, %v1173_v16  ;;  %v400_v4 = vld [vmem:[%s9995_s9 + $0x480] sm:$0xff] }
 0x19a   : > { %v5191_v3 = vadd.f32 %v11657_v52, %v11641_v26  ;;  %v2973_v11 = vsel %vm1948_vm5, %v1435_v41, %v2461_v47  ;;  %v918_v60 = vmul.f32 %v11906_v17, %v399_v51  ;;  %v6471_v35 = vadd.f32 %v11657_v52, %v11661_v50  ;;  %v656_v40 = vld [vmem:[%s9995_s9 + $0xc80] sm:$0xff]  ;;  %v12208_v41 = vpop.f32.mrf.mxu1 }
 0x19b   : > { %v1174_v28 = vmul.f32 %v11906_v17, %v655_v24  ;;  %9335 = vmatmul.mubr.msk.f32.gmra.mxu0 %vm3352_vm0, %v2973_v11  ;;  %v3229_v16 = vsel %vm2204_vm6, %v1691_v34, %v2717_v9  ;;  %vm1949_vm7 = vcmp.ge.f32.partialorder %v1436_v19, 0.0  ;;  %v2462_v26 = vmul.f32 %v10011_v12, %v1436_v19  ;;  %15571 = vst [vmem:[#allocation6_spill] sm:$0xff] %v12208_v41  ;;  %v657_v41 = vld [vmem:[%s9995_s9 + $0xc88] sm:$0xff] }
 0x19c   : > { %vm2205_vm8 = vcmp.ge.f32.partialorder %v1692_v29, 0.0  ;;  %7562 = vst.msk [vmem:[%s11070_s25 + $0x178] sm:$0xff] %vm7514_vm11, %v5191_v3  ;;  %9719 = vmatmul.mubr.msk.f32.gmra.mxu1 %vm3352_vm0, %v3229_v16  ;;  %v2718_v50 = vmul.f32 %v10011_v12, %v1692_v29  ;;  %v1437_v24 = vadd.f32 %v11926_v53, %v918_v60  ;;  %7818 = vst.msk [vmem:[%s11070_s25 + $0x978] sm:$0xff] %vm7514_vm11, %v6471_v35  ;;  %v401_v16 = vld [vmem:[%s9995_s9 + $0x488] sm:$0xff]  ;;  %v12224_v60 = vpop.f32.mrf.mxu0 }
 0x19d   : > { %v1693_v34 = vadd.f32 %v11926_v53, %v1174_v28  ;;  %v5186_v51 = vadd.f32 %v11657_v52, %v11663_v45  ;;  %v2974_v47 = vsel %vm1949_vm7, %v1436_v19, %v2462_v26  ;;  %v6466_v9 = vadd.f32 %v11657_v52, %v11676_v14 }
 0x19e   : > { %v919_v3 = vmul.f32 %v11906_v17, %v400_v4  ;;  %v1175_v11 = vmul.f32 %v11906_v17, %v656_v40  ;;  %9337 = vmatprep.mubr.msk.f32.mxu0 %vm3352_vm0, %v2974_v47  ;;  %v3230_v35 = vsel %vm2205_vm8, %v1692_v29, %v2718_v50  ;;  %vm1950_vm9 = vcmp.ge.f32.partialorder %v1437_v24, 0.0  ;;  %v12239_v4 = vpop.f32.mrf.mxu1  ;;  %v12241_v40 = vpop.f32.mrf.mxu0 }
 0x19f   : > { %v2463_v45 = vmul.f32 %v10011_v12, %v1437_v24  ;;  %vm2206_vm10 = vcmp.ge.f32.partialorder %v1693_v34, 0.0  ;;  %7561 = vst.msk [vmem:[%s11070_s25 + $0x170] sm:$0xff] %vm7514_vm11, %v5186_v51  ;;  %9721 = vmatprep.mubr.msk.f32.mxu1 %vm3352_vm0, %v3230_v35  ;;  %v2719_v14 = vmul.f32 %v10011_v12, %v1693_v34  ;;  %7817 = vst.msk [vmem:[%s11070_s25 + $0x970] sm:$0xff] %vm7514_vm11, %v6466_v9  ;;  %v402_v9 = vld [vmem:[%s9995_s9 + $0x490] sm:$0xff] }
 0x1a0   : > { %v1438_v19 = vadd.f32 %v11926_v53, %v919_v3  ;;  %v1694_v28 = vadd.f32 %v11926_v53, %v1175_v11  ;;  %v5201_v29 = vadd.f32 %v11657_v52, %v11686_v36  ;;  %v920_v50 = vmul.f32 %v11906_v17, %v401_v16  ;;  %v658_v3 = vld [vmem:[%s9995_s9 + $0xc90] sm:$0xff]  ;;  %v12264_v35 = vpop.f32.mrf.mxu0 }
 0x1a1   : > { %v2975_v26 = vsel %vm1950_vm9, %v1437_v24, %v2463_v45  ;;  %v6481_v51 = vadd.f32 %v11657_v52, %v11709_v46  ;;  %v1176_v47 = vmul.f32 %v11906_v17, %v657_v41  ;;  %v3231_v11 = vsel %vm2206_vm10, %v1693_v34, %v2719_v14  ;;  %v12254_v24 = vpop.f32.mrf.mxu1  ;;  %v12269_v14 = vld [vmem:[%s15550_s5] ss:$0 sm:$0xff] }
 0x1a2   : > { %9338 = vmatmul.mubr.msk.f32.gmra.mxu0 %vm3352_vm0, %v2975_v26  ;;  %vm1951_vm12 = vcmp.ge.f32.partialorder %v1438_v19, 0.0  ;;  %v2464_v36 = vmul.f32 %v10011_v12, %v1438_v19  ;;  %vm2207_vm13 = vcmp.ge.f32.partialorder %v1694_v28, 0.0  ;;  %7564 = vst.msk [vmem:[%s11070_s25 + $0x188] sm:$0xff] %vm7514_vm11, %v5201_v29  ;;  %9722 = vmatmul.mubr.msk.f32.gmra.mxu1 %vm3352_vm0, %v3231_v11  ;;  %v2720_v46 = vmul.f32 %v10011_v12, %v1694_v28 }
 0x1a3   : > { %v1439_v41 = vadd.f32 %v11926_v53, %v920_v50  ;;  %7820 = vst.msk [vmem:[%s11070_s25 + $0x988] sm:$0xff] %vm7514_vm11, %v6481_v51  ;;  %v1695_v34 = vadd.f32 %v11926_v53, %v1176_v47  ;;  %v5196_v16 = vadd.f32 %v11657_v52, %v11699_v22  ;;  %v6476_v29 = vadd.f32 %v12269_v14, %v11722_v31  ;;  %v403_v51 = vld [vmem:[%s9995_s9 + $0x498] sm:$0xff]  ;;  %v12292_v11 = vpop.f32.mrf.mxu1 }
 0x1a4   : > { %v2976_v45 = vsel %vm1951_vm12, %v1438_v19, %v2464_v36  ;;  %v921_v26 = vmul.f32 %v11906_v17, %v402_v9  ;;  %v1177_v50 = vmul.f32 %v11906_v17, %v658_v3  ;;  %v659_v47 = vld [vmem:[%s9995_s9 + $0xc98] sm:$0xff]  ;;  %v3232_v52 = vsel %vm2207_vm13, %v1694_v28, %v2720_v46  ;;  %v12282_v19 = vpop.f32.mrf.mxu0 }
 0x1a5   : > { %9340 = vmatprep.mubr.msk.f32.mxu0 %vm3352_vm0, %v2976_v45  ;;  %vm1952_vm14 = vcmp.ge.f32.partialorder %v1439_v41, 0.0  ;;  %v2465_v22 = vmul.f32 %v10011_v12, %v1439_v41  ;;  %vm2208_vm15 = vcmp.ge.f32.partialorder %v1695_v34, 0.0  ;;  %7563 = vst.msk [vmem:[%s11070_s25 + $0x180] sm:$0xff] %vm7514_vm11, %v5196_v16  ;;  %9724 = vmatprep.mubr.msk.f32.mxu1 %vm3352_vm0, %v3232_v52  ;;  %v2721_v31 = vmul.f32 %v10011_v12, %v1695_v34  ;;  %v660_v52 = vld [vmem:[%s9995_s9 + $0xca0] sm:$0xff] }
 0x1a6   : > { %7819 = vst.msk [vmem:[%s11070_s25 + $0x980] sm:$0xff] %vm7514_vm11, %v6476_v29  ;;  %v1440_v9 = vadd.f32 %v11926_v53, %v921_v26  ;;  %v1696_v28 = vadd.f32 %v11926_v53, %v1177_v50  ;;  %v5211_v3 = vadd.f32 %v12269_v14, %v11732_v10  ;;  %v922_v46 = vmul.f32 %v11906_v17, %v403_v51  ;;  %v404_v29 = vld [vmem:[%s9995_s9 + $0x4a0] sm:$0xff] }
 0x1a7   : > { %v2977_v36 = vsel %vm1952_vm14, %v1439_v41, %v2465_v22  ;;  %v6491_v16 = vadd.f32 %v12269_v14, %v11740_v2  ;;  %v1178_v45 = vmul.f32 %v11906_v17, %v659_v47  ;;  %v3233_v26 = vsel %vm2208_vm15, %v1695_v34, %v2721_v31  ;;  %v12305_v41 = vpop.f32.mrf.mxu1  ;;  %v15573_v51 = vld [vmem:[#allocation7_spill] sm:$0xff]  ;;  %v12315_v22 = vpop.f32.mrf.mxu0 }
 0x1a8   : > { %9341 = vmatmul.mubr.msk.f32.gmra.mxu0 %vm3352_vm0, %v2977_v36  ;;  %vm1953_vm1 = vcmp.ge.f32.partialorder %v1440_v9, 0.0  ;;  %v2466_v10 = vmul.f32 %v10011_v12, %v1440_v9  ;;  %vm2209_vm2 = vcmp.ge.f32.partialorder %v1696_v28, 0.0  ;;  %7566 = vst.msk [vmem:[%s11070_s25 + $0x198] sm:$0xff] %vm7514_vm11, %v5211_v3  ;;  %15572 = vst [vmem:[#allocation15_spill] sm:$0xff] %v12305_v41  ;;  %9725 = vmatmul.mubr.msk.f32.gmra.mxu1 %vm3352_vm0, %v3233_v26  ;;  %v661_v41 = vld [vmem:[%s9995_s9 + $0xca8] sm:$0xff] }
 0x1a9   : > { %v2722_v2 = vmul.f32 %v10011_v12, %v1696_v28  ;;  %v1441_v50 = vadd.f32 %v11926_v53, %v922_v46  ;;  %7822 = vst.msk [vmem:[%s11070_s25 + $0x998] sm:$0xff] %vm7514_vm11, %v6491_v16  ;;  %v1697_v34 = vadd.f32 %v11926_v53, %v1178_v45  ;;  %v5206_v47 = vadd.f32 %v12269_v14, %v15573_v51  ;;  %v405_v46 = vld [vmem:[%s9995_s9 + $0x4a8] sm:$0xff]  ;;  %v12323_v16 = vpop.f32.mrf.mxu1 }
 0x1aa   : > { %v2978_v31 = vsel %vm1953_vm1, %v1440_v9, %v2466_v10  ;;  %v6486_v3 = vadd.f32 %v12269_v14, %v11757_v63  ;;  %v923_v36 = vmul.f32 %v11906_v17, %v404_v29  ;;  %v1179_v26 = vmul.f32 %v11906_v17, %v660_v52  ;;  %v12330_v63 = vpop.f32.mrf.mxu0 }
 0x1ab   : > { %9343 = vmatprep.mubr.msk.f32.mxu0 %vm3352_vm0, %v2978_v31  ;;  %v3234_v45 = vsel %vm2209_vm2, %v1696_v28, %v2722_v2  ;;  %vm1954_vm3 = vcmp.ge.f32.partialorder %v1441_v50, 0.0  ;;  %v2467_v9 = vmul.f32 %v10011_v12, %v1441_v50  ;;  %vm2210_vm4 = vcmp.ge.f32.partialorder %v1697_v34, 0.0  ;;  %7565 = vst.msk [vmem:[%s11070_s25 + $0x190] sm:$0xff] %vm7514_vm11, %v5206_v47  ;;  %15574 = vst [vmem:[#allocation7_spill] sm:$0xff] %v12330_v63  ;;  %v12340_v2 = vpop.f32.mrf.mxu1  ;;  %v662_v63 = vld [vmem:[%s9995_s9 + $0xcb0] sm:$0xff] }
 0x1ac   : > { %9727 = vmatprep.mubr.msk.f32.mxu1 %vm3352_vm0, %v3234_v45  ;;  %v2723_v29 = vmul.f32 %v10011_v12, %v1697_v34  ;;  %7821 = vst.msk [vmem:[%s11070_s25 + $0x990] sm:$0xff] %vm7514_vm11, %v6486_v3  ;;  %v1442_v52 = vadd.f32 %v11926_v53, %v923_v36  ;;  %v1698_v28 = vadd.f32 %v11926_v53, %v1179_v26  ;;  %v406_v3 = vld [vmem:[%s9995_s9 + $0x4b0] sm:$0xff]  ;;  %v12361_v26 = vpop.f32.mrf.mxu0 }
 0x1ad   : > { %v5221_v10 = vadd.f32 %v12269_v14, %v11778_v61  ;;  %v2979_v51 = vsel %vm1954_vm3, %v1441_v50, %v2467_v9  ;;  %v924_v47 = vmul.f32 %v11906_v17, %v405_v46  ;;  %v6501_v31 = vadd.f32 %v12269_v14, %v11780_v57  ;;  %v12363_v46 = vpop.f32.mrf.mxu1 }
 0x1ae   : > { %v1180_v45 = vmul.f32 %v11906_v17, %v661_v41  ;;  %9344 = vmatmul.mubr.msk.f32.gmra.mxu0 %vm3352_vm0, %v2979_v51  ;;  %v3235_v36 = vsel %vm2210_vm4, %v1697_v34, %v2723_v29  ;;  %vm1955_vm5 = vcmp.ge.f32.partialorder %v1442_v52, 0.0  ;;  %v2468_v61 = vmul.f32 %v10011_v12, %v1442_v52  ;;  %v15575_v29 = vld [vmem:[#allocation8_spill] sm:$0xff] }
 0x1af   : > { %vm2211_vm6 = vcmp.ge.f32.partialorder %v1698_v28, 0.0  ;;  %7568 = vst.msk [vmem:[%s11070_s25 + $0x1a8] sm:$0xff] %vm7514_vm11, %v5221_v10  ;;  %9728 = vmatmul.mubr.msk.f32.gmra.mxu1 %vm3352_vm0, %v3235_v36  ;;  %v2724_v57 = vmul.f32 %v10011_v12, %v1698_v28  ;;  %v1443_v41 = vadd.f32 %v11926_v53, %v924_v47  ;;  %7824 = vst.msk [vmem:[%s11070_s25 + $0x9a8] sm:$0xff] %vm7514_vm11, %v6501_v31  ;;  %v407_v31 = vld [vmem:[%s9995_s9 + $0x4b8] sm:$0xff] }
 0x1b0   : > { %v1699_v50 = vadd.f32 %v11926_v53, %v1180_v45  ;;  %v5216_v34 = vadd.f32 %v12269_v14, %v11793_v30  ;;  %v2980_v9 = vsel %vm1955_vm5, %v1442_v52, %v2468_v61  ;;  %v6496_v10 = vadd.f32 %v12269_v14, %v15575_v29  ;;  %v663_v36 = vld [vmem:[%s9995_s9 + $0xcb8] sm:$0xff]  ;;  %v12376_v52 = vpop.f32.mrf.mxu0  ;;  %v12378_v61 = vpop.f32.mrf.mxu1 }
 0x1b1   : > { %v925_v51 = vmul.f32 %v11906_v17, %v406_v3  ;;  %v1181_v47 = vmul.f32 %v11906_v17, %v662_v63  ;;  %9346 = vmatprep.mubr.msk.f32.mxu0 %vm3352_vm0, %v2980_v9  ;;  %v3236_v45 = vsel %vm2211_vm6, %v1698_v28, %v2724_v57  ;;  %vm1956_vm7 = vcmp.ge.f32.partialorder %v1443_v41, 0.0  ;;  %15576 = vst [vmem:[#allocation8_spill] sm:$0xff] %v12376_v52  ;;  %v664_v52 = vld [vmem:[%s9995_s9 + $0xcc0] sm:$0xff] }
 0x1b2   : > { %v2469_v30 = vmul.f32 %v10011_v12, %v1443_v41  ;;  %vm2212_vm8 = vcmp.ge.f32.partialorder %v1699_v50, 0.0  ;;  %7567 = vst.msk [vmem:[%s11070_s25 + $0x1a0] sm:$0xff] %vm7514_vm11, %v5216_v34  ;;  %15577 = vst [vmem:[#allocation16_spill] sm:$0xff] %v12378_v61  ;;  %9730 = vmatprep.mubr.msk.f32.mxu1 %vm3352_vm0, %v3236_v45  ;;  %v2725_v63 = vmul.f32 %v10011_v12, %v1699_v50  ;;  %v408_v61 = vld [vmem:[%s9995_s9 + $0x4c0] sm:$0xff] }
 0x1b3   : > { %7823 = vst.msk [vmem:[%s11070_s25 + $0x9a0] sm:$0xff] %vm7514_vm11, %v6496_v10  ;;  %v1444_v28 = vadd.f32 %v11926_v53, %v925_v51  ;;  %v1700_v3 = vadd.f32 %v11926_v53, %v1181_v47  ;;  %v5231_v57 = vadd.f32 %v12269_v14, %v11811_v58  ;;  %v926_v34 = vmul.f32 %v11906_v17, %v407_v31  ;;  %v12394_v10 = vpop.f32.mrf.mxu0  ;;  %v12396_v51 = vpop.f32.mrf.mxu1 }
 0x1b4   : > { %v2981_v9 = vsel %vm1956_vm7, %v1443_v41, %v2469_v30  ;;  %v6511_v29 = vadd.f32 %v12269_v14, %v11813_v7  ;;  %v1182_v45 = vmul.f32 %v11906_v17, %v663_v36  ;;  %v3237_v47 = vsel %vm2212_vm8, %v1699_v50, %v2725_v63 }
 0x1b5   : > { %9347 = vmatmul.mubr.msk.f32.gmra.mxu0 %vm3352_vm0, %v2981_v9  ;;  %vm1957_vm9 = vcmp.ge.f32.partialorder %v1444_v28, 0.0  ;;  %v2470_v58 = vmul.f32 %v10011_v12, %v1444_v28  ;;  %vm2213_vm10 = vcmp.ge.f32.partialorder %v1700_v3, 0.0  ;;  %7570 = vst.msk [vmem:[%s11070_s25 + $0x1b8] sm:$0xff] %vm7514_vm11, %v5231_v57  ;;  %9731 = vmatmul.mubr.msk.f32.gmra.mxu1 %vm3352_vm0, %v3237_v47  ;;  %v2726_v7 = vmul.f32 %v10011_v12, %v1700_v3  ;;  %v12411_v36 = vpop.f32.mrf.mxu0  ;;  %v12413_v30 = vpop.f32.mrf.mxu1  ;;  %v665_v47 = vld [vmem:[%s9995_s9 + $0xcc8] sm:$0xff] }
 0x1b6   : > { %v1445_v41 = vadd.f32 %v11926_v53, %v926_v34  ;;  %7826 = vst.msk [vmem:[%s11070_s25 + $0x9b8] sm:$0xff] %vm7514_vm11, %v6511_v29  ;;  %v1701_v31 = vadd.f32 %v11926_v53, %v1182_v45  ;;  %v5226_v50 = vadd.f32 %v12269_v14, %v11828_v20  ;;  %v6506_v57 = vadd.f32 %v12269_v14, %v11830_v42  ;;  %v409_v29 = vld [vmem:[%s9995_s9 + $0x4c8] sm:$0xff] }
 0x1b7   : > { %v2982_v63 = vsel %vm1957_vm9, %v1444_v28, %v2470_v58  ;;  %v927_v9 = vmul.f32 %v11906_v17, %v408_v61  ;;  %v1183_v34 = vmul.f32 %v11906_v17, %v664_v52  ;;  %v3238_v45 = vsel %vm2213_vm10, %v1700_v3, %v2726_v7  ;;  %v12434_v3 = vpop.f32.mrf.mxu0 }
 0x1b8   : > { %9349 = vmatprep.mubr.msk.f32.mxu0 %vm3352_vm0, %v2982_v63  ;;  %vm1958_vm12 = vcmp.ge.f32.partialorder %v1445_v41, 0.0  ;;  %v2471_v20 = vmul.f32 %v10011_v12, %v1445_v41  ;;  %vm2214_vm13 = vcmp.ge.f32.partialorder %v1701_v31, 0.0  ;;  %7569 = vst.msk [vmem:[%s11070_s25 + $0x1b0] sm:$0xff] %vm7514_vm11, %v5226_v50  ;;  %9733 = vmatprep.mubr.msk.f32.mxu1 %vm3352_vm0, %v3238_v45  ;;  %v2727_v42 = vmul.f32 %v10011_v12, %v1701_v31  ;;  %v666_v45 = vld [vmem:[%s9995_s9 + $0xcd0] sm:$0xff] }
 0x1b9   : > { %7825 = vst.msk [vmem:[%s11070_s25 + $0x9b0] sm:$0xff] %vm7514_vm11, %v6506_v57  ;;  %v1446_v52 = vadd.f32 %v11926_v53, %v927_v9  ;;  %v1702_v61 = vadd.f32 %v11926_v53, %v1183_v34  ;;  %v5241_v28 = vadd.f32 %v12269_v14, %v11851_v13  ;;  %v928_v7 = vmul.f32 %v11906_v17, %v409_v29  ;;  %v410_v57 = vld [vmem:[%s9995_s9 + $0x4d0] sm:$0xff]  ;;  %v12442_v9 = vpop.f32.mrf.mxu1 }
 0x1ba   : > { %v2983_v58 = vsel %vm1958_vm12, %v1445_v41, %v2471_v20  ;;  %v6521_v50 = vadd.f32 %v12269_v14, %v11859_v21  ;;  %v1184_v63 = vmul.f32 %v11906_v17, %v665_v47  ;;  %15578 = vst [vmem:[#allocation17_spill] sm:$0xff] %v12442_v9  ;;  %v3239_v34 = vsel %vm2214_vm13, %v1701_v31, %v2727_v42  ;;  %v12449_v41 = vpop.f32.mrf.mxu0  ;;  %v15580_v47 = vld [vmem:[#allocation9_spill] sm:$0xff]  ;;  %v667_v9 = vld [vmem:[%s9995_s9 + $0xcd8] sm:$0xff] }
 0x1bb   : > { %9350 = vmatmul.mubr.msk.f32.gmra.mxu0 %vm3352_vm0, %v2983_v58  ;;  %vm1959_vm14 = vcmp.ge.f32.partialorder %v1446_v52, 0.0  ;;  %v2472_v13 = vmul.f32 %v10011_v12, %v1446_v52  ;;  %vm2215_vm15 = vcmp.ge.f32.partialorder %v1702_v61, 0.0  ;;  %7572 = vst.msk [vmem:[%s11070_s25 + $0x1c8] sm:$0xff] %vm7514_vm11, %v5241_v28  ;;  %15579 = vst [vmem:[#allocation18_spill] sm:$0xff] %v12449_v41  ;;  %9734 = vmatmul.mubr.msk.f32.gmra.mxu1 %vm3352_vm0, %v3239_v34  ;;  %v12459_v42 = vpop.f32.mrf.mxu1 }
 0x1bc   : > { %v2728_v21 = vmul.f32 %v10011_v12, %v1702_v61  ;;  %v1447_v29 = vadd.f32 %v11926_v53, %v928_v7  ;;  %7828 = vst.msk [vmem:[%s11070_s25 + $0x9c8] sm:$0xff] %vm7514_vm11, %v6521_v50  ;;  %v1703_v31 = vadd.f32 %v11926_v53, %v1184_v63  ;;  %v5236_v20 = vadd.f32 %v12269_v14, %v15580_v47  ;;  %v411_v7 = vld [vmem:[%s9995_s9 + $0x4d8] sm:$0xff]  ;;  %v12467_v50 = vpop.f32.mrf.mxu0 }
 0x1bd   : > { %v2984_v28 = vsel %vm1959_vm14, %v1446_v52, %v2472_v13  ;;  %v6516_v58 = vadd.f32 %v12269_v14, %v11876_v37  ;;  %v929_v34 = vmul.f32 %v11906_v17, %v410_v57  ;;  %v1185_v41 = vmul.f32 %v11906_v17, %v666_v45  ;;  %v12482_v45 = vpop.f32.mrf.mxu1 }
 0x1be   : > { %9352 = vmatprep.mubr.msk.f32.mxu0 %vm3352_vm0, %v2984_v28  ;;  %v3240_v63 = vsel %vm2215_vm15, %v1702_v61, %v2728_v21  ;;  %vm1960_vm1 = vcmp.ge.f32.partialorder %v1447_v29, 0.0  ;;  %v2473_v47 = vmul.f32 %v10011_v12, %v1447_v29  ;;  %vm2216_vm2 = vcmp.ge.f32.partialorder %v1703_v31, 0.0  ;;  %7571 = vst.msk [vmem:[%s11070_s25 + $0x1c0] sm:$0xff] %vm7514_vm11, %v5236_v20  ;;  %v12484_v13 = vpop.f32.mrf.mxu0 }
 0x1bf   : > { %9736 = vmatprep.mubr.msk.f32.mxu1 %vm3352_vm0, %v3240_v63  ;;  %v2729_v37 = vmul.f32 %v10011_v12, %v1703_v31  ;;  %7827 = vst.msk [vmem:[%s11070_s25 + $0x9c0] sm:$0xff] %vm7514_vm11, %v6516_v58  ;;  %v1448_v52 = vadd.f32 %v11926_v53, %v929_v34  ;;  %v1704_v57 = vadd.f32 %v11926_v53, %v1185_v41  ;;  %15581 = vst [vmem:[#allocation9_spill] sm:$0xff] %v12484_v13  ;;  %v412_v34 = vld [vmem:[%s9995_s9 + $0x4e0] sm:$0xff]  ;;  %v669_v13 = vld [vmem:[%s9995_s9 + $0xce8] sm:$0xff] }
 0x1c0   : > { %v5251_v61 = vadd.f32 %v12269_v14, %v11884_v33  ;;  %v2985_v21 = vsel %vm1960_vm1, %v1447_v29, %v2473_v47  ;;  %v930_v20 = vmul.f32 %v11906_v17, %v411_v7  ;;  %v6531_v28 = vadd.f32 %v12269_v14, %v11899_v59  ;;  %v668_v63 = vld [vmem:[%s9995_s9 + $0xce0] sm:$0xff]  ;;  %v12497_v29 = vpop.f32.mrf.mxu1 }
 0x1c1   : > { %v1186_v58 = vmul.f32 %v11906_v17, %v667_v9  ;;  %9353 = vmatmul.mubr.msk.f32.gmra.mxu0 %vm3352_vm0, %v2985_v21  ;;  %v3241_v41 = vsel %vm2216_vm2, %v1703_v31, %v2729_v37  ;;  %vm1961_vm3 = vcmp.ge.f32.partialorder %v1448_v52, 0.0  ;;  %v2474_v33 = vmul.f32 %v10011_v12, %v1448_v52  ;;  %15582 = vst [vmem:[#allocation19_spill] sm:$0xff] %v12497_v29  ;;  %v15583_v37 = vld [vmem:[#allocation10_spill] sm:$0xff]  ;;  %v413_v29 = vld [vmem:[%s9995_s9 + $0x4e8] sm:$0xff] }
 0x1c2   : > { %vm2217_vm4 = vcmp.ge.f32.partialorder %v1704_v57, 0.0  ;;  %7574 = vst.msk [vmem:[%s11070_s25 + $0x1d8] sm:$0xff] %vm7514_vm11, %v5251_v61  ;;  %9737 = vmatmul.mubr.msk.f32.gmra.mxu1 %vm3352_vm0, %v3241_v41  ;;  %v2730_v59 = vmul.f32 %v10011_v12, %v1704_v57  ;;  %v1449_v9 = vadd.f32 %v11926_v53, %v930_v20  ;;  %7830 = vst.msk [vmem:[%s11070_s25 + $0x9d8] sm:$0xff] %vm7514_vm11, %v6531_v28  ;;  %v12513_v20 = vpop.f32.mrf.mxu0 }
 0x1c3   : > { %v1705_v31 = vadd.f32 %v11926_v53, %v1186_v58  ;;  %v5246_v7 = vadd.f32 %v12269_v14, %v11901_v5  ;;  %v2986_v47 = vsel %vm1961_vm3, %v1448_v52, %v2474_v33  ;;  %v6526_v61 = vadd.f32 %v12269_v14, %v15583_v37  ;;  %v414_v37 = vld [vmem:[%s9995_s9 + $0x4f0] sm:$0xff] }
 0x1c4   : > { %v931_v21 = vmul.f32 %v11906_v17, %v412_v34  ;;  %v1187_v41 = vmul.f32 %v11906_v17, %v668_v63  ;;  %9355 = vmatprep.mubr.msk.f32.mxu0 %vm3352_vm0, %v2986_v47  ;;  %v3242_v28 = vsel %vm2217_vm4, %v1704_v57, %v2730_v59  ;;  %vm1962_vm5 = vcmp.ge.f32.partialorder %v1449_v9, 0.0  ;;  %v12528_v34 = vpop.f32.mrf.mxu1  ;;  %v12530_v63 = vpop.f32.mrf.mxu0  ;;  %v12535_v59 = vld [vmem:[%s15546_s1] ss:$0 sm:$0xff] }
 0x1c5   : > { %v2475_v5 = vmul.f32 %v10011_v12, %v1449_v9  ;;  %vm2218_vm6 = vcmp.ge.f32.partialorder %v1705_v31, 0.0  ;;  %7573 = vst.msk [vmem:[%s11070_s25 + $0x1d0] sm:$0xff] %vm7514_vm11, %v5246_v7  ;;  %9739 = vmatprep.mubr.msk.f32.mxu1 %vm3352_vm0, %v3242_v28  ;;  %v2731_v17 = vmul.f32 %v10011_v12, %v1705_v31  ;;  %7829 = vst.msk [vmem:[%s11070_s25 + $0x9d0] sm:$0xff] %vm7514_vm11, %v6526_v61 }
 0x1c6   : > { %v1450_v52 = vadd.f32 %v11926_v53, %v931_v21  ;;  %v1706_v58 = vadd.f32 %v11926_v53, %v1187_v41  ;;  %v5261_v57 = vadd.f32 %v12269_v14, %v11940_v49  ;;  %v932_v7 = vmul.f32 %v12535_v59, %v413_v29  ;;  %v670_v49 = vld [vmem:[%s9995_s9 + $0xcf0] sm:$0xff]  ;;  %v12548_v29 = vpop.f32.mrf.mxu1  ;;  %v12563_v28 = vpop.f32.mrf.mxu0 }
 0x1c7   : > { %v2987_v33 = vsel %vm1962_vm5, %v1449_v9, %v2475_v5  ;;  %v6541_v53 = vadd.f32 %v12269_v14, %v11955_v25  ;;  %v1188_v47 = vmul.f32 %v12535_v59, %v669_v13  ;;  %v3243_v61 = vsel %vm2218_vm6, %v1705_v31, %v2731_v17  ;;  %15584 = vst [vmem:[#allocation10_spill] sm:$0xff] %v12548_v29  ;;  %v12555_v13 = vld [vmem:[%s15547_s2] ss:$0 sm:$0xff]  ;;  %v671_v29 = vld [vmem:[%s9995_s9 + $0xcf8] sm:$0xff] }
 0x1c8   : > { %9356 = vmatmul.mubr.msk.f32.gmra.mxu0 %vm3352_vm0, %v2987_v33  ;;  %vm1963_vm7 = vcmp.ge.f32.partialorder %v1450_v52, 0.0  ;;  %v2476_v9 = vmul.f32 %v10011_v12, %v1450_v52  ;;  %vm2219_vm8 = vcmp.ge.f32.partialorder %v1706_v58, 0.0  ;;  %7576 = vst.msk [vmem:[%s11070_s25 + $0x1e8] sm:$0xff] %vm7514_vm11, %v5261_v57  ;;  %9740 = vmatmul.mubr.msk.f32.gmra.mxu1 %vm3352_vm0, %v3243_v61  ;;  %v2732_v25 = vmul.f32 %v10011_v12, %v1706_v58  ;;  %v15585_v17 = vld [vmem:[#allocation11_spill] sm:$0xff] }
 0x1c9   : > { %v1451_v31 = vadd.f32 %v12555_v13, %v932_v7  ;;  %7832 = vst.msk [vmem:[%s11070_s25 + $0x9e8] sm:$0xff] %vm7514_vm11, %v6541_v53  ;;  %v1707_v21 = vadd.f32 %v12555_v13, %v1188_v47  ;;  %v5256_v41 = vadd.f32 %v12269_v14, %v11957_v43  ;;  %v6536_v57 = vadd.f32 %v12269_v14, %v15585_v17  ;;  %v415_v7 = vld [vmem:[%s9995_s9 + $0x4f8] sm:$0xff] }
 0x1ca   : > { %v2988_v5 = vsel %vm1963_vm7, %v1450_v52, %v2476_v9  ;;  %v933_v33 = vmul.f32 %v12535_v59, %v414_v37  ;;  %v1189_v61 = vmul.f32 %v12535_v59, %v670_v49  ;;  %v3244_v53 = vsel %vm2219_vm8, %v1706_v58, %v2732_v25  ;;  %v12576_v52 = vpop.f32.mrf.mxu0  ;;  %v12586_v9 = vpop.f32.mrf.mxu1 }
 0x1cb   : > { %9358 = vmatprep.mubr.msk.f32.mxu0 %vm3352_vm0, %v2988_v5  ;;  %vm1964_vm9 = vcmp.ge.f32.partialorder %v1451_v31, 0.0  ;;  %v2477_v43 = vmul.f32 %v10011_v12, %v1451_v31  ;;  %vm2220_vm10 = vcmp.ge.f32.partialorder %v1707_v21, 0.0  ;;  %7575 = vst.msk [vmem:[%s11070_s25 + $0x1e0] sm:$0xff] %vm7514_vm11, %v5256_v41  ;;  %9742 = vmatprep.mubr.msk.f32.mxu1 %vm3352_vm0, %v3244_v53  ;;  %v2733_v47 = vmul.f32 %v10011_v12, %v1707_v21  ;;  %v672_v53 = vld [vmem:[%s9995_s9 + $0xd00] sm:$0xff] }
 0x1cc   : > { %7831 = vst.msk [vmem:[%s11070_s25 + $0x9e0] sm:$0xff] %vm7514_vm11, %v6536_v57  ;;  %v1452_v37 = vadd.f32 %v12555_v13, %v933_v33  ;;  %v1708_v58 = vadd.f32 %v12555_v13, %v1189_v61  ;;  %v5271_v49 = vadd.f32 %v12269_v14, %v11980_v8  ;;  %v934_v41 = vmul.f32 %v12535_v59, %v415_v7  ;;  %v416_v57 = vld [vmem:[%s9995_s9 + $0x500] sm:$0xff]  ;;  %v12609_v7 = vpop.f32.mrf.mxu0 }
 0x1cd   : > { %v2989_v25 = vsel %vm1964_vm9, %v1451_v31, %v2477_v43  ;;  %v6551_v5 = vadd.f32 %v12269_v14, %v12003_v27  ;;  %v1190_v17 = vmul.f32 %v12535_v59, %v671_v29  ;;  %v3245_v33 = vsel %vm2220_vm10, %v1707_v21, %v2733_v47  ;;  %v12599_v31 = vpop.f32.mrf.mxu1  ;;  %v15587_v47 = vld [vmem:[#allocation3_spill] sm:$0xff] }
 0x1ce   : > { %9359 = vmatmul.mubr.msk.f32.gmra.mxu0 %vm3352_vm0, %v2989_v25  ;;  %vm1965_vm12 = vcmp.ge.f32.partialorder %v1452_v37, 0.0  ;;  %v2478_v8 = vmul.f32 %v10011_v12, %v1452_v37  ;;  %vm2221_vm13 = vcmp.ge.f32.partialorder %v1708_v58, 0.0  ;;  %7578 = vst.msk [vmem:[%s11070_s25 + $0x1f8] sm:$0xff] %vm7514_vm11, %v5271_v49  ;;  %15586 = vst [vmem:[#allocation11_spill] sm:$0xff] %v12599_v31  ;;  %9743 = vmatmul.mubr.msk.f32.gmra.mxu1 %vm3352_vm0, %v3245_v33  ;;  %v673_v31 = vld [vmem:[%s9995_s9 + $0xd08] sm:$0xff] }
 0x1cf   : > { %v2734_v27 = vmul.f32 %v10011_v12, %v1708_v58  ;;  %v1453_v29 = vadd.f32 %v12555_v13, %v934_v41  ;;  %7834 = vst.msk [vmem:[%s11070_s25 + $0x9f8] sm:$0xff] %vm7514_vm11, %v6551_v5  ;;  %v1709_v21 = vadd.f32 %v12555_v13, %v1190_v17  ;;  %v5266_v61 = vadd.f32 %v12269_v14, %v11993_v54  ;;  %v417_v41 = vld [vmem:[%s9995_s9 + $0x508] sm:$0xff]  ;;  %v12617_v5 = vpop.f32.mrf.mxu1 }
 0x1d0   : > { %v2990_v43 = vsel %vm1965_vm12, %v1452_v37, %v2478_v8  ;;  %v6546_v49 = vadd.f32 %v12269_v14, %v15587_v47  ;;  %v935_v25 = vmul.f32 %v12535_v59, %v416_v57  ;;  %v1191_v33 = vmul.f32 %v12535_v59, %v672_v53  ;;  %v12624_v37 = vpop.f32.mrf.mxu0 }
 0x1d1   : > { %9361 = vmatprep.mubr.msk.f32.mxu0 %vm3352_vm0, %v2990_v43  ;;  %v3246_v17 = vsel %vm2221_vm13, %v1708_v58, %v2734_v27  ;;  %vm1966_vm14 = vcmp.ge.f32.partialorder %v1453_v29, 0.0  ;;  %v2479_v54 = vmul.f32 %v10011_v12, %v1453_v29  ;;  %vm2222_vm15 = vcmp.ge.f32.partialorder %v1709_v21, 0.0  ;;  %7577 = vst.msk [vmem:[%s11070_s25 + $0x1f0] sm:$0xff] %vm7514_vm11, %v5266_v61  ;;  %15588 = vst [vmem:[#allocation3_spill] sm:$0xff] %v12624_v37  ;;  %v12634_v27 = vpop.f32.mrf.mxu1  ;;  %v674_v37 = vld [vmem:[%s9995_s9 + $0xd10] sm:$0xff] }
 0x1d2   : > { %9745 = vmatprep.mubr.msk.f32.mxu1 %vm3352_vm0, %v3246_v17  ;;  %v2735_v57 = vmul.f32 %v10011_v12, %v1709_v21  ;;  %7833 = vst.msk [vmem:[%s11070_s25 + $0x9f0] sm:$0xff] %vm7514_vm11, %v6546_v49  ;;  %v1454_v53 = vadd.f32 %v12555_v13, %v935_v25  ;;  %v1710_v58 = vadd.f32 %v12555_v13, %v1191_v33  ;;  %v418_v49 = vld [vmem:[%s9995_s9 + $0x510] sm:$0xff] }
 0x1d3   : > { %v5281_v8 = vadd.f32 %v12269_v14, %v12026_v55  ;;  %v2991_v61 = vsel %vm1966_vm14, %v1453_v29, %v2479_v54  ;;  %v936_v43 = vmul.f32 %v12535_v59, %v417_v41  ;;  %v6561_v47 = vadd.f32 %v12269_v14, %v12034_v62  ;;  %v12655_v41 = vpop.f32.mrf.mxu0  ;;  %v12657_v54 = vpop.f32.mrf.mxu1 }
 0x1d4   : > { %v1192_v17 = vmul.f32 %v12535_v59, %v673_v31  ;;  %9362 = vmatmul.mubr.msk.f32.gmra.mxu0 %vm3352_vm0, %v2991_v61  ;;  %v3247_v25 = vsel %vm2222_vm15, %v1709_v21, %v2735_v57  ;;  %vm1967_vm1 = vcmp.ge.f32.partialorder %v1454_v53, 0.0  ;;  %v2480_v55 = vmul.f32 %v10011_v12, %v1454_v53  ;;  %v15589_v21 = vld [vmem:[#allocation4_spill] sm:$0xff] }
 0x1d5   : > { %vm2223_vm2 = vcmp.ge.f32.partialorder %v1710_v58, 0.0  ;;  %7580 = vst.msk [vmem:[%s11070_s25 + $0x208] sm:$0xff] %vm7514_vm11, %v5281_v8  ;;  %9746 = vmatmul.mubr.msk.f32.gmra.mxu1 %vm3352_vm0, %v3247_v25  ;;  %v2736_v62 = vmul.f32 %v10011_v12, %v1710_v58  ;;  %v1455_v31 = vadd.f32 %v12555_v13, %v936_v43  ;;  %7836 = vst.msk [vmem:[%s11070_s25 + $0xa08] sm:$0xff] %vm7514_vm11, %v6561_v47  ;;  %v419_v47 = vld [vmem:[%s9995_s9 + $0x518] sm:$0xff] }
 0x1d6   : > { %v1711_v29 = vadd.f32 %v12555_v13, %v1192_v17  ;;  %v5276_v33 = vadd.f32 %v12269_v14, %v15589_v21  ;;  %v2992_v57 = vsel %vm1967_vm1, %v1454_v53, %v2480_v55  ;;  %v6556_v8 = vadd.f32 %v12269_v14, %v12051_v23  ;;  %v675_v25 = vld [vmem:[%s9995_s9 + $0xd18] sm:$0xff]  ;;  %v12670_v53 = vpop.f32.mrf.mxu0  ;;  %v12672_v23 = vpop.f32.mrf.mxu1 }
 0x1d7   : > { %v937_v61 = vmul.f32 %v12535_v59, %v418_v49  ;;  %v1193_v43 = vmul.f32 %v12535_v59, %v674_v37  ;;  %9364 = vmatprep.mubr.msk.f32.mxu0 %vm3352_vm0, %v2992_v57  ;;  %v3248_v17 = vsel %vm2223_vm2, %v1710_v58, %v2736_v62  ;;  %vm1968_vm3 = vcmp.ge.f32.partialorder %v1455_v31, 0.0  ;;  %15590 = vst [vmem:[#allocation4_spill] sm:$0xff] %v12670_v53  ;;  %v676_v53 = vld [vmem:[%s9995_s9 + $0xd20] sm:$0xff] }
 0x1d8   : > { %v2481_v21 = vmul.f32 %v10011_v12, %v1455_v31  ;;  %vm2224_vm4 = vcmp.ge.f32.partialorder %v1711_v29, 0.0  ;;  %7579 = vst.msk [vmem:[%s11070_s25 + $0x200] sm:$0xff] %vm7514_vm11, %v5276_v33  ;;  %15591 = vst [vmem:[#allocation20_spill] sm:$0xff] %v12672_v23  ;;  %9748 = vmatprep.mubr.msk.f32.mxu1 %vm3352_vm0, %v3248_v17  ;;  %v2737_v37 = vmul.f32 %v10011_v12, %v1711_v29  ;;  %v420_v23 = vld [vmem:[%s9995_s9 + $0x520] sm:$0xff] }
 0x1d9   : > { %7835 = vst.msk [vmem:[%s11070_s25 + $0xa00] sm:$0xff] %vm7514_vm11, %v6556_v8  ;;  %v1456_v58 = vadd.f32 %v12555_v13, %v937_v61  ;;  %v1712_v49 = vadd.f32 %v12555_v13, %v1193_v43  ;;  %v5291_v55 = vadd.f32 %v12269_v14, %v12072_v15  ;;  %v938_v33 = vmul.f32 %v12535_v59, %v419_v47  ;;  %v12688_v8 = vpop.f32.mrf.mxu0  ;;  %v12703_v47 = vpop.f32.mrf.mxu1 }
 0x1da   : > { %v2993_v62 = vsel %vm1968_vm3, %v1455_v31, %v2481_v21  ;;  %v6571_v57 = vadd.f32 %v12269_v14, %v12074_v0  ;;  %v1194_v17 = vmul.f32 %v12535_v59, %v675_v25  ;;  %v3249_v61 = vsel %vm2224_vm4, %v1711_v29, %v2737_v37  ;;  %v15593_v37 = vld [vmem:[#allocation12_spill] sm:$0xff] }
 0x1db   : > { %9365 = vmatmul.mubr.msk.f32.gmra.mxu0 %vm3352_vm0, %v2993_v62  ;;  %vm1969_vm5 = vcmp.ge.f32.partialorder %v1456_v58, 0.0  ;;  %v2482_v15 = vmul.f32 %v10011_v12, %v1456_v58  ;;  %vm2225_vm6 = vcmp.ge.f32.partialorder %v1712_v49, 0.0  ;;  %7582 = vst.msk [vmem:[%s11070_s25 + $0x218] sm:$0xff] %vm7514_vm11, %v5291_v55  ;;  %9749 = vmatmul.mubr.msk.f32.gmra.mxu1 %vm3352_vm0, %v3249_v61  ;;  %v2738_v0 = vmul.f32 %v10011_v12, %v1712_v49  ;;  %v12705_v25 = vpop.f32.mrf.mxu0  ;;  %v677_v61 = vld [vmem:[%s9995_s9 + $0xd28] sm:$0xff] }
 0x1dc   : > { %v1457_v31 = vadd.f32 %v12555_v13, %v938_v33  ;;  %7838 = vst.msk [vmem:[%s11070_s25 + $0xa18] sm:$0xff] %vm7514_vm11, %v6571_v57  ;;  %v1713_v43 = vadd.f32 %v12555_v13, %v1194_v17  ;;  %v5286_v29 = vadd.f32 %v12269_v14, %v12087_v6  ;;  %15592 = vst [vmem:[#allocation21_spill] sm:$0xff] %v12705_v25  ;;  %v421_v57 = vld [vmem:[%s9995_s9 + $0x528] sm:$0xff]  ;;  %v678_v25 = vld [vmem:[%s9995_s9 + $0xd30] sm:$0xff] }
 0x1dd   : > { %v2994_v21 = vsel %vm1969_vm5, %v1456_v58, %v2482_v15  ;;  %v6566_v55 = vadd.f32 %v12269_v14, %v15593_v37  ;;  %v939_v62 = vmul.f32 %v12535_v59, %v420_v23  ;;  %v1195_v33 = vmul.f32 %v12535_v59, %v676_v53  ;;  %v12718_v58 = vpop.f32.mrf.mxu1 }
 0x1de   : > { %9367 = vmatprep.mubr.msk.f32.mxu0 %vm3352_vm0, %v2994_v21  ;;  %v3250_v17 = vsel %vm2225_vm6, %v1712_v49, %v2738_v0  ;;  %vm1970_vm7 = vcmp.ge.f32.partialorder %v1457_v31, 0.0  ;;  %v2483_v6 = vmul.f32 %v10011_v12, %v1457_v31  ;;  %vm2226_vm8 = vcmp.ge.f32.partialorder %v1713_v43, 0.0  ;;  %7581 = vst.msk [vmem:[%s11070_s25 + $0x210] sm:$0xff] %vm7514_vm11, %v5286_v29  ;;  %15594 = vst [vmem:[#allocation12_spill] sm:$0xff] %v12718_v58  ;;  %v15595_v21 = vld [vmem:[#allocation13_spill] sm:$0xff] }
 0x1df   : > { %9751 = vmatprep.mubr.msk.f32.mxu1 %vm3352_vm0, %v3250_v17  ;;  %v2739_v53 = vmul.f32 %v10011_v12, %v1713_v43  ;;  %7837 = vst.msk [vmem:[%s11070_s25 + $0xa10] sm:$0xff] %vm7514_vm11, %v6566_v55  ;;  %v1458_v23 = vadd.f32 %v12555_v13, %v939_v62  ;;  %v1714_v49 = vadd.f32 %v12555_v13, %v1195_v33  ;;  %v422_v58 = vld [vmem:[%s9995_s9 + $0x530] sm:$0xff]  ;;  %v12734_v55 = vpop.f32.mrf.mxu0 }
 0x1e0   : > { %v5301_v15 = vadd.f32 %v12269_v14, %v12105_v44  ;;  %v2995_v0 = vsel %vm1970_vm7, %v1457_v31, %v2483_v6  ;;  %v940_v29 = vmul.f32 %v12535_v59, %v421_v57  ;;  %v6581_v37 = vadd.f32 %v12269_v14, %v15595_v21  ;;  %v679_v21 = vld [vmem:[%s9995_s9 + $0xd38] sm:$0xff] }
 0x1e1   : > { %v1196_v17 = vmul.f32 %v12535_v59, %v677_v61  ;;  %9368 = vmatmul.mubr.msk.f32.gmra.mxu0 %vm3352_vm0, %v2995_v0  ;;  %v3251_v62 = vsel %vm2226_vm8, %v1713_v43, %v2739_v53  ;;  %vm1971_vm9 = vcmp.ge.f32.partialorder %v1458_v23, 0.0  ;;  %v2484_v44 = vmul.f32 %v10011_v12, %v1458_v23  ;;  %v12749_v61 = vpop.f32.mrf.mxu1 }
 0x1e2   : > { %vm2227_vm10 = vcmp.ge.f32.partialorder %v1714_v49, 0.0  ;;  %7584 = vst.msk [vmem:[%s11070_s25 + $0x228] sm:$0xff] %vm7514_vm11, %v5301_v15  ;;  %9752 = vmatmul.mubr.msk.f32.gmra.mxu1 %vm3352_vm0, %v3251_v62  ;;  %v2740_v31 = vmul.f32 %v10011_v12, %v1714_v49  ;;  %v1459_v33 = vadd.f32 %v12555_v13, %v940_v29  ;;  %7840 = vst.msk [vmem:[%s11070_s25 + $0xa28] sm:$0xff] %vm7514_vm11, %v6581_v37  ;;  %v423_v29 = vld [vmem:[%s9995_s9 + $0x538] sm:$0xff]  ;;  %v12757_v37 = vpop.f32.mrf.mxu0 }
 0x1e3   : > { %v1715_v57 = vadd.f32 %v12555_v13, %v1196_v17  ;;  %v5296_v43 = vadd.f32 %v12269_v14, %v12122_v56  ;;  %v2996_v6 = vsel %vm1971_vm9, %v1458_v23, %v2484_v44  ;;  %v6576_v53 = vadd.f32 %v12269_v14, %v12124_v32  ;;  %v12764_v32 = vpop.f32.mrf.mxu1 }
 0x1e4   : > { %v941_v15 = vmul.f32 %v12535_v59, %v422_v58  ;;  %v1197_v0 = vmul.f32 %v12535_v59, %v678_v25  ;;  %9370 = vmatprep.mubr.msk.f32.mxu0 %vm3352_vm0, %v2996_v6  ;;  %v3252_v17 = vsel %vm2227_vm10, %v1714_v49, %v2740_v31  ;;  %vm1972_vm12 = vcmp.ge.f32.partialorder %v1459_v33, 0.0  ;;  %15596 = vst [vmem:[#allocation13_spill] sm:$0xff] %v12764_v32  ;;  %v15597_v31 = vld [vmem:[#allocation5_spill] sm:$0xff]  ;;  %v680_v32 = vld [vmem:[%s9995_s9 + $0xd40] sm:$0xff] }
 0x1e5   : > { %v2485_v56 = vmul.f32 %v10011_v12, %v1459_v33  ;;  %vm2228_vm13 = vcmp.ge.f32.partialorder %v1715_v57, 0.0  ;;  %7583 = vst.msk [vmem:[%s11070_s25 + $0x220] sm:$0xff] %vm7514_vm11, %v5296_v43  ;;  %9754 = vmatprep.mubr.msk.f32.mxu1 %vm3352_vm0, %v3252_v17  ;;  %v2741_v25 = vmul.f32 %v10011_v12, %v1715_v57  ;;  %7839 = vst.msk [vmem:[%s11070_s25 + $0xa20] sm:$0xff] %vm7514_vm11, %v6576_v53  ;;  %v424_v17 = vld [vmem:[%s9995_s9 + $0x540] sm:$0xff] }
 0x1e6   : > { %v1460_v58 = vadd.f32 %v12555_v13, %v941_v15  ;;  %v1716_v23 = vadd.f32 %v12555_v13, %v1197_v0  ;;  %v5311_v49 = vadd.f32 %v12269_v14, %v12145_v48  ;;  %v942_v44 = vmul.f32 %v12535_v59, %v423_v29  ;;  %v12785_v48 = vpop.f32.mrf.mxu0  ;;  %v15598_v29 = vld [vmem:[#allocation14_spill] sm:$0xff] }
 0x1e7   : > { %v2997_v62 = vsel %vm1972_vm12, %v1459_v33, %v2485_v56  ;;  %v6591_v43 = vadd.f32 %v12269_v14, %v15597_v31  ;;  %v1198_v6 = vmul.f32 %v12535_v59, %v679_v21  ;;  %v3253_v53 = vsel %vm2228_vm13, %v1715_v57, %v2741_v25  ;;  %v12795_v56 = vpop.f32.mrf.mxu1 }
 0x1e8   : > { %9371 = vmatmul.mubr.msk.f32.gmra.mxu0 %vm3352_vm0, %v2997_v62  ;;  %vm1973_vm14 = vcmp.ge.f32.partialorder %v1460_v58, 0.0  ;;  %v2486_v15 = vmul.f32 %v10011_v12, %v1460_v58  ;;  %vm2229_vm15 = vcmp.ge.f32.partialorder %v1716_v23, 0.0  ;;  %7586 = vst.msk [vmem:[%s11070_s25 + $0x238] sm:$0xff] %vm7514_vm11, %v5311_v49  ;;  %9755 = vmatmul.mubr.msk.f32.gmra.mxu1 %vm3352_vm0, %v3253_v53  ;;  %v2742_v33 = vmul.f32 %v10011_v12, %v1716_v23  ;;  %v681_v53 = vld [vmem:[%s9995_s9 + $0xd48] sm:$0xff] }
 0x1e9   : > { %v1461_v0 = vadd.f32 %v12555_v13, %v942_v44  ;;  %7842 = vst.msk [vmem:[%s11070_s25 + $0xa38] sm:$0xff] %vm7514_vm11, %v6591_v43  ;;  %v1717_v57 = vadd.f32 %v12555_v13, %v1198_v6  ;;  %v5306_v21 = vadd.f32 %v12269_v14, %v15598_v29  ;;  %v6586_v49 = vadd.f32 %v12269_v14, %v12170_v1  ;;  %v425_v44 = vld [vmem:[%s9995_s9 + $0x548] sm:$0xff]  ;;  %v12803_v43 = vpop.f32.mrf.mxu0  ;;  %v12810_v1 = vpop.f32.mrf.mxu1 }
 0x1ea   : > { %v2998_v25 = vsel %vm1973_vm14, %v1460_v58, %v2486_v15  ;;  %v943_v62 = vmul.f32 %v12535_v59, %v424_v17  ;;  %v1199_v31 = vmul.f32 %v12535_v59, %v680_v32  ;;  %v3254_v6 = vsel %vm2229_vm15, %v1716_v23, %v2742_v33  ;;  %15599 = vst [vmem:[#allocation5_spill] sm:$0xff] %v12810_v1  ;;  %v682_v1 = vld [vmem:[%s9995_s9 + $0xd50] sm:$0xff] }
 0x1eb   : > { %9373 = vmatprep.mubr.msk.f32.mxu0 %vm3352_vm0, %v2998_v25  ;;  %vm1974_vm1 = vcmp.ge.f32.partialorder %v1461_v0, 0.0  ;;  %v2487_v58 = vmul.f32 %v10011_v12, %v1461_v0  ;;  %vm2230_vm2 = vcmp.ge.f32.partialorder %v1717_v57, 0.0  ;;  %7585 = vst.msk [vmem:[%s11070_s25 + $0x230] sm:$0xff] %vm7514_vm11, %v5306_v21  ;;  %9757 = vmatprep.mubr.msk.f32.mxu1 %vm3352_vm0, %v3254_v6  ;;  %v2743_v32 = vmul.f32 %v10011_v12, %v1717_v57  ;;  %v426_v6 = vld [vmem:[%s9995_s9 + $0x550] sm:$0xff] }
 0x1ec   : > { %7841 = vst.msk [vmem:[%s11070_s25 + $0xa30] sm:$0xff] %vm7514_vm11, %v6586_v49  ;;  %v1462_v17 = vadd.f32 %v12555_v13, %v943_v62  ;;  %v1718_v23 = vadd.f32 %v12555_v13, %v1199_v31  ;;  %v5321_v15 = vadd.f32 %v12269_v14, %v12178_v18  ;;  %v944_v29 = vmul.f32 %v12535_v59, %v425_v44  ;;  %v12831_v18 = vpop.f32.mrf.mxu0  ;;  %v12841_v44 = vpop.f32.mrf.mxu1 }
 0x1ed   : > { %v2999_v33 = vsel %vm1974_vm1, %v1461_v0, %v2487_v58  ;;  %v6601_v21 = vadd.f32 %v12269_v14, %v12193_v39  ;;  %v1200_v25 = vmul.f32 %v12535_v59, %v681_v53  ;;  %v3255_v49 = vsel %vm2230_vm2, %v1717_v57, %v2743_v32  ;;  %v15600_v58 = vld [vmem:[#allocation6_spill] sm:$0xff] }
 0x1ee   : > { %9374 = vmatmul.mubr.msk.f32.gmra.mxu0 %vm3352_vm0, %v2999_v33  ;;  %vm1975_vm3 = vcmp.ge.f32.partialorder %v1462_v17, 0.0  ;;  %v2488_v62 = vmul.f32 %v10011_v12, %v1462_v17  ;;  %vm2231_vm4 = vcmp.ge.f32.partialorder %v1718_v23, 0.0  ;;  %7588 = vst.msk [vmem:[%s11070_s25 + $0x248] sm:$0xff] %vm7514_vm11, %v5321_v15  ;;  %9758 = vmatmul.mubr.msk.f32.gmra.mxu1 %vm3352_vm0, %v3255_v49  ;;  %v2744_v39 = vmul.f32 %v10011_v12, %v1718_v23  ;;  %v683_v49 = vld [vmem:[%s9995_s9 + $0xd58] sm:$0xff] }
 0x1ef   : > { %v1463_v0 = vadd.f32 %v12555_v13, %v944_v29  ;;  %7844 = vst.msk [vmem:[%s11070_s25 + $0xa48] sm:$0xff] %vm7514_vm11, %v6601_v21  ;;  %v1719_v57 = vadd.f32 %v12555_v13, %v1200_v25  ;;  %v5316_v31 = vadd.f32 %v12269_v14, %v12195_v38  ;;  %v6596_v32 = vadd.f32 %v12269_v14, %v15600_v58  ;;  %v427_v29 = vld [vmem:[%s9995_s9 + $0x558] sm:$0xff]  ;;  %v12849_v21 = vpop.f32.mrf.mxu0 }
 0x1f0   : > { %v3000_v53 = vsel %vm1975_vm3, %v1462_v17, %v2488_v62  ;;  %v945_v15 = vmul.f32 %v12535_v59, %v426_v6  ;;  %v1201_v33 = vmul.f32 %v12535_v59, %v682_v1  ;;  %v3256_v25 = vsel %vm2231_vm4, %v1718_v23, %v2744_v39  ;;  %v12856_v17 = vpop.f32.mrf.mxu1 }
 0x1f1   : > { %9376 = vmatprep.mubr.msk.f32.mxu0 %vm3352_vm0, %v3000_v53  ;;  %vm1976_vm5 = vcmp.ge.f32.partialorder %v1463_v0, 0.0  ;;  %v2489_v38 = vmul.f32 %v10011_v12, %v1463_v0  ;;  %vm2232_vm6 = vcmp.ge.f32.partialorder %v1719_v57, 0.0  ;;  %7587 = vst.msk [vmem:[%s11070_s25 + $0x240] sm:$0xff] %vm7514_vm11, %v5316_v31  ;;  %15601 = vst [vmem:[#allocation14_spill] sm:$0xff] %v12856_v17  ;;  %9760 = vmatprep.mubr.msk.f32.mxu1 %vm3352_vm0, %v3256_v25  ;;  %v428_v25 = vld [vmem:[%s9995_s9 + $0x560] sm:$0xff] }
 0x1f2   : > { %v2745_v1 = vmul.f32 %v10011_v12, %v1719_v57  ;;  %7843 = vst.msk [vmem:[%s11070_s25 + $0xa40] sm:$0xff] %vm7514_vm11, %v6596_v32  ;;  %v1464_v6 = vadd.f32 %v12555_v13, %v945_v15  ;;  %v1720_v23 = vadd.f32 %v12555_v13, %v1201_v33  ;;  %v5331_v62 = vadd.f32 %v12269_v14, %v12224_v60  ;;  %v684_v17 = vld [vmem:[%s9995_s9 + $0xd60] sm:$0xff]  ;;  %v12877_v60 = vpop.f32.mrf.mxu0 }
 0x1f3   : > { %v3001_v39 = vsel %vm1976_vm5, %v1463_v0, %v2489_v38  ;;  %v946_v31 = vmul.f32 %v12535_v59, %v427_v29  ;;  %v6611_v53 = vadd.f32 %v12269_v14, %v12239_v4  ;;  %v1202_v58 = vmul.f32 %v12535_v59, %v683_v49  ;;  %v12892_v29 = vpop.f32.mrf.mxu1 }
 0x1f4   : > { %9377 = vmatmul.mubr.msk.f32.gmra.mxu0 %vm3352_vm0, %v3001_v39  ;;  %v3257_v32 = vsel %vm2232_vm6, %v1719_v57, %v2745_v1  ;;  %vm1977_vm7 = vcmp.ge.f32.partialorder %v1464_v6, 0.0  ;;  %v2490_v15 = vmul.f32 %v10011_v12, %v1464_v6  ;;  %vm2233_vm8 = vcmp.ge.f32.partialorder %v1720_v23, 0.0  ;;  %7590 = vst.msk [vmem:[%s11070_s25 + $0x258] sm:$0xff] %vm7514_vm11, %v5331_v62  ;;  %v12888_v57 = vld [vmem:[%s15550_s5] ss:$0 sm:$0xff]  ;;  %v429_v39 = vld [vmem:[%s9995_s9 + $0x568] sm:$0xff] }
 0x1f5   : > { %9761 = vmatmul.mubr.msk.f32.gmra.mxu1 %vm3352_vm0, %v3257_v32  ;;  %v2746_v4 = vmul.f32 %v10011_v12, %v1720_v23  ;;  %v1465_v14 = vadd.f32 %v12555_v13, %v946_v31  ;;  %7846 = vst.msk [vmem:[%s11070_s25 + $0xa58] sm:$0xff] %vm7514_vm11, %v6611_v53  ;;  %v1721_v0 = vadd.f32 %v12555_v13, %v1202_v58  ;;  %v685_v31 = vld [vmem:[%s9995_s9 + $0xd68] sm:$0xff]  ;;  %v12900_v53 = vpop.f32.mrf.mxu0 }
 0x1f6   : > { %v5326_v33 = vadd.f32 %v12888_v57, %v12241_v40  ;;  %v3002_v49 = vsel %vm1977_vm7, %v1464_v6, %v2490_v15  ;;  %v6606_v38 = vadd.f32 %v12888_v57, %v12254_v24  ;;  %v947_v1 = vmul.f32 %v12535_v59, %v428_v25  ;;  %v12907_v24 = vpop.f32.mrf.mxu1 }
 0x1f7   : > { %v1203_v62 = vmul.f32 %v12535_v59, %v684_v17  ;;  %9379 = vmatprep.mubr.msk.f32.mxu0 %vm3352_vm0, %v3002_v49  ;;  %v3258_v58 = vsel %vm2233_vm8, %v1720_v23, %v2746_v4  ;;  %vm1978_vm9 = vcmp.ge.f32.partialorder %v1465_v14, 0.0  ;;  %v2491_v40 = vmul.f32 %v10011_v12, %v1465_v14  ;;  %v430_v49 = vld [vmem:[%s9995_s9 + $0x570] sm:$0xff] }
 0x1f8   : > { %vm2234_vm10 = vcmp.ge.f32.partialorder %v1721_v0, 0.0  ;;  %7589 = vst.msk [vmem:[%s11070_s25 + $0x250] sm:$0xff] %vm7514_vm11, %v5326_v33  ;;  %9763 = vmatprep.mubr.msk.f32.mxu1 %vm3352_vm0, %v3258_v58  ;;  %v2747_v17 = vmul.f32 %v10011_v12, %v1721_v0  ;;  %7845 = vst.msk [vmem:[%s11070_s25 + $0xa50] sm:$0xff] %vm7514_vm11, %v6606_v38  ;;  %v1466_v6 = vadd.f32 %v12555_v13, %v947_v1  ;;  %v686_v58 = vld [vmem:[%s9995_s9 + $0xd70] sm:$0xff] }
 0x1f9   : > { %v1722_v23 = vadd.f32 %v12555_v13, %v1203_v62  ;;  %v5341_v25 = vadd.f32 %v12888_v57, %v12264_v35  ;;  %v3003_v32 = vsel %vm1978_vm9, %v1465_v14, %v2491_v40  ;;  %v948_v15 = vmul.f32 %v12535_v59, %v429_v39  ;;  %v12928_v35 = vpop.f32.mrf.mxu0  ;;  %v12938_v39 = vpop.f32.mrf.mxu1  ;;  %v15602_v40 = vld [vmem:[#allocation15_spill] sm:$0xff] }
 0x1fa   : > { %v6621_v4 = vadd.f32 %v12888_v57, %v12292_v11  ;;  %v1204_v33 = vmul.f32 %v12535_v59, %v685_v31  ;;  %9380 = vmatmul.mubr.msk.f32.gmra.mxu0 %vm3352_vm0, %v3003_v32  ;;  %v3259_v38 = vsel %vm2234_vm10, %v1721_v0, %v2747_v17  ;;  %vm1979_vm12 = vcmp.ge.f32.partialorder %v1466_v6, 0.0 }
 0x1fb   : > { %v2492_v1 = vmul.f32 %v10011_v12, %v1466_v6  ;;  %vm2235_vm13 = vcmp.ge.f32.partialorder %v1722_v23, 0.0  ;;  %7592 = vst.msk [vmem:[%s11070_s25 + $0x268] sm:$0xff] %vm7514_vm11, %v5341_v25  ;;  %9764 = vmatmul.mubr.msk.f32.gmra.mxu1 %vm3352_vm0, %v3259_v38  ;;  %v2748_v11 = vmul.f32 %v10011_v12, %v1722_v23  ;;  %v1467_v14 = vadd.f32 %v12555_v13, %v948_v15  ;;  %v431_v15 = vld [vmem:[%s9995_s9 + $0x578] sm:$0xff] }
 0x1fc   : > { %7848 = vst.msk [vmem:[%s11070_s25 + $0xa68] sm:$0xff] %vm7514_vm11, %v6621_v4  ;;  %v1723_v0 = vadd.f32 %v12555_v13, %v1204_v33  ;;  %v5336_v62 = vadd.f32 %v12888_v57, %v12282_v19  ;;  %v6616_v17 = vadd.f32 %v12888_v57, %v15602_v40  ;;  %v949_v25 = vmul.f32 %v12535_v59, %v430_v49  ;;  %v687_v38 = vld [vmem:[%s9995_s9 + $0xd78] sm:$0xff]  ;;  %v12946_v4 = vpop.f32.mrf.mxu0 }
 0x1fd   : > { %v3004_v31 = vsel %vm1979_vm12, %v1466_v6, %v2492_v1  ;;  %v1205_v32 = vmul.f32 %v12535_v59, %v686_v58  ;;  %v3260_v33 = vsel %vm2235_vm13, %v1722_v23, %v2748_v11  ;;  %vm1980_vm14 = vcmp.ge.f32.partialorder %v1467_v14, 0.0  ;;  %v12953_v6 = vpop.f32.mrf.mxu1 }
 0x1fe   : > { %9382 = vmatprep.mubr.msk.f32.mxu0 %vm3352_vm0, %v3004_v31  ;;  %v2493_v19 = vmul.f32 %v10011_v12, %v1467_v14  ;;  %vm2236_vm15 = vcmp.ge.f32.partialorder %v1723_v0, 0.0  ;;  %7591 = vst.msk [vmem:[%s11070_s25 + $0x260] sm:$0xff] %vm7514_vm11, %v5336_v62  ;;  %15603 = vst [vmem:[#allocation6_spill] sm:$0xff] %v12953_v6  ;;  %9766 = vmatprep.mubr.msk.f32.mxu1 %vm3352_vm0, %v3260_v33  ;;  %v2749_v49 = vmul.f32 %v10011_v12, %v1723_v0  ;;  %v432_v33 = vld [vmem:[%s9995_s9 + $0x580] sm:$0xff] }
 0x1ff   : > { %7847 = vst.msk [vmem:[%s11070_s25 + $0xa60] sm:$0xff] %vm7514_vm11, %v6616_v17  ;;  %v1468_v58 = vadd.f32 %v12555_v13, %v949_v25  ;;  %v1724_v23 = vadd.f32 %v12555_v13, %v1205_v32  ;;  %v5351_v1 = vadd.f32 %v12888_v57, %v12315_v22  ;;  %v950_v62 = vmul.f32 %v12535_v59, %v431_v15  ;;  %v688_v6 = vld [vmem:[%s9995_s9 + $0xd80] sm:$0xff]  ;;  %v12974_v22 = vpop.f32.mrf.mxu0 }
 0x200   : > { %v3005_v11 = vsel %vm1980_vm14, %v1467_v14, %v2493_v19  ;;  %v6631_v31 = vadd.f32 %v12888_v57, %v12323_v16  ;;  %v1206_v40 = vmul.f32 %v12535_v59, %v687_v38  ;;  %v3261_v17 = vsel %vm2236_vm15, %v1723_v0, %v2749_v49  ;;  %v15604_v32 = vld [vmem:[#allocation7_spill] sm:$0xff]  ;;  %v12984_v38 = vpop.f32.mrf.mxu1 }
 0x201   : > { %9383 = vmatmul.mubr.msk.f32.gmra.mxu0 %vm3352_vm0, %v3005_v11  ;;  %vm1981_vm1 = vcmp.ge.f32.partialorder %v1468_v58, 0.0  ;;  %v2494_v25 = vmul.f32 %v10011_v12, %v1468_v58  ;;  %vm2237_vm2 = vcmp.ge.f32.partialorder %v1724_v23, 0.0  ;;  %7594 = vst.msk [vmem:[%s11070_s25 + $0x278] sm:$0xff] %vm7514_vm11, %v5351_v1  ;;  %9767 = vmatmul.mubr.msk.f32.gmra.mxu1 %vm3352_vm0, %v3261_v17  ;;  %v2750_v16 = vmul.f32 %v10011_v12, %v1724_v23  ;;  %v689_v17 = vld [vmem:[%s9995_s9 + $0xd88] sm:$0xff] }
 0x202   : > { %v1469_v14 = vadd.f32 %v12555_v13, %v950_v62  ;;  %7850 = vst.msk [vmem:[%s11070_s25 + $0xa78] sm:$0xff] %vm7514_vm11, %v6631_v31  ;;  %v1725_v0 = vadd.f32 %v12555_v13, %v1206_v40  ;;  %v5346_v15 = vadd.f32 %v12888_v57, %v15604_v32  ;;  %v6626_v49 = vadd.f32 %v12888_v57, %v12340_v2  ;;  %v433_v62 = vld [vmem:[%s9995_s9 + $0x588] sm:$0xff]  ;;  %v12992_v31 = vpop.f32.mrf.mxu0  ;;  %v12999_v2 = vpop.f32.mrf.mxu1 }
 0x203   : > { %v3006_v19 = vsel %vm1981_vm1, %v1468_v58, %v2494_v25  ;;  %v951_v1 = vmul.f32 %v12535_v59, %v432_v33  ;;  %v1207_v11 = vmul.f32 %v12535_v59, %v688_v6  ;;  %v3262_v40 = vsel %vm2237_vm2, %v1724_v23, %v2750_v16  ;;  %15605 = vst [vmem:[#allocation15_spill] sm:$0xff] %v12999_v2  ;;  %v690_v2 = vld [vmem:[%s9995_s9 + $0xd90] sm:$0xff] }
 0x204   : > { %9385 = vmatprep.mubr.msk.f32.mxu0 %vm3352_vm0, %v3006_v19  ;;  %vm1982_vm3 = vcmp.ge.f32.partialorder %v1469_v14, 0.0  ;;  %v2495_v58 = vmul.f32 %v10011_v12, %v1469_v14  ;;  %vm2238_vm4 = vcmp.ge.f32.partialorder %v1725_v0, 0.0  ;;  %7593 = vst.msk [vmem:[%s11070_s25 + $0x270] sm:$0xff] %vm7514_vm11, %v5346_v15  ;;  %9769 = vmatprep.mubr.msk.f32.mxu1 %vm3352_vm0, %v3262_v40  ;;  %v2751_v6 = vmul.f32 %v10011_v12, %v1725_v0  ;;  %v434_v40 = vld [vmem:[%s9995_s9 + $0x590] sm:$0xff] }
 0x205   : > { %7849 = vst.msk [vmem:[%s11070_s25 + $0xa70] sm:$0xff] %vm7514_vm11, %v6626_v49  ;;  %v1470_v33 = vadd.f32 %v12555_v13, %v951_v1  ;;  %v1726_v23 = vadd.f32 %v12555_v13, %v1207_v11  ;;  %v5361_v25 = vadd.f32 %v12888_v57, %v12361_v26  ;;  %v952_v32 = vmul.f32 %v12535_v59, %v433_v62  ;;  %v13020_v26 = vpop.f32.mrf.mxu0  ;;  %v15607_v11 = vld [vmem:[#allocation8_spill] sm:$0xff] }
 0x206   : > { %v3007_v16 = vsel %vm1982_vm3, %v1469_v14, %v2495_v58  ;;  %v6641_v15 = vadd.f32 %v12888_v57, %v12363_v46  ;;  %v1208_v19 = vmul.f32 %v12535_v59, %v689_v17  ;;  %v3263_v49 = vsel %vm2238_vm4, %v1725_v0, %v2751_v6  ;;  %15606 = vst [vmem:[#allocation7_spill] sm:$0xff] %v13020_v26  ;;  %v13030_v17 = vpop.f32.mrf.mxu1  ;;  %v15608_v6 = vld [vmem:[#allocation16_spill] sm:$0xff]  ;;  %v691_v26 = vld [vmem:[%s9995_s9 + $0xd98] sm:$0xff] }
 0x207   : > { %9386 = vmatmul.mubr.msk.f32.gmra.mxu0 %vm3352_vm0, %v3007_v16  ;;  %vm1983_vm5 = vcmp.ge.f32.partialorder %v1470_v33, 0.0  ;;  %v2496_v1 = vmul.f32 %v10011_v12, %v1470_v33  ;;  %vm2239_vm6 = vcmp.ge.f32.partialorder %v1726_v23, 0.0  ;;  %7596 = vst.msk [vmem:[%s11070_s25 + $0x288] sm:$0xff] %vm7514_vm11, %v5361_v25  ;;  %9770 = vmatmul.mubr.msk.f32.gmra.mxu1 %vm3352_vm0, %v3263_v49  ;;  %v2752_v46 = vmul.f32 %v10011_v12, %v1726_v23 }
 0x208   : > { %v1471_v14 = vadd.f32 %v12555_v13, %v952_v32  ;;  %7852 = vst.msk [vmem:[%s11070_s25 + $0xa88] sm:$0xff] %vm7514_vm11, %v6641_v15  ;;  %v1727_v0 = vadd.f32 %v12555_v13, %v1208_v19  ;;  %v5356_v62 = vadd.f32 %v12888_v57, %v15607_v11  ;;  %v6636_v25 = vadd.f32 %v12888_v57, %v15608_v6  ;;  %v435_v32 = vld [vmem:[%s9995_s9 + $0x598] sm:$0xff]  ;;  %v13038_v15 = vpop.f32.mrf.mxu0 }
 0x209   : > { %v3008_v58 = vsel %vm1983_vm5, %v1470_v33, %v2496_v1  ;;  %v953_v16 = vmul.f32 %v12535_v59, %v434_v40  ;;  %v1209_v49 = vmul.f32 %v12535_v59, %v690_v2  ;;  %v3264_v19 = vsel %vm2239_vm6, %v1726_v23, %v2752_v46  ;;  %v13045_v1 = vpop.f32.mrf.mxu1 }
 0x20a   : > { %9388 = vmatprep.mubr.msk.f32.mxu0 %vm3352_vm0, %v3008_v58  ;;  %vm1984_vm7 = vcmp.ge.f32.partialorder %v1471_v14, 0.0  ;;  %v2497_v33 = vmul.f32 %v10011_v12, %v1471_v14  ;;  %vm2240_vm8 = vcmp.ge.f32.partialorder %v1727_v0, 0.0  ;;  %7595 = vst.msk [vmem:[%s11070_s25 + $0x280] sm:$0xff] %vm7514_vm11, %v5356_v62  ;;  %15609 = vst [vmem:[#allocation8_spill] sm:$0xff] %v13045_v1  ;;  %9772 = vmatprep.mubr.msk.f32.mxu1 %vm3352_vm0, %v3264_v19  ;;  %v436_v19 = vld [vmem:[%s9995_s9 + $0x5a0] sm:$0xff] }
 0x20b   : > { %v2753_v2 = vmul.f32 %v10011_v12, %v1727_v0  ;;  %7851 = vst.msk [vmem:[%s11070_s25 + $0xa80] sm:$0xff] %vm7514_vm11, %v6636_v25  ;;  %v1472_v40 = vadd.f32 %v12555_v13, %v953_v16  ;;  %v1728_v23 = vadd.f32 %v12555_v13, %v1209_v49  ;;  %v5371_v46 = vadd.f32 %v12888_v57, %v12394_v10  ;;  %v692_v1 = vld [vmem:[%s9995_s9 + $0xda0] sm:$0xff]  ;;  %v13066_v10 = vpop.f32.mrf.mxu0  ;;  %v13076_v49 = vpop.f32.mrf.mxu1 }
 0x20c   : > { %v3009_v11 = vsel %vm1984_vm7, %v1471_v14, %v2497_v33  ;;  %v954_v62 = vmul.f32 %v12535_v59, %v435_v32  ;;  %v6651_v58 = vadd.f32 %v12888_v57, %v12396_v51  ;;  %v1210_v6 = vmul.f32 %v12535_v59, %v691_v26 }
 0x20d   : > { %9389 = vmatmul.mubr.msk.f32.gmra.mxu0 %vm3352_vm0, %v3009_v11  ;;  %v3265_v25 = vsel %vm2240_vm8, %v1727_v0, %v2753_v2  ;;  %vm1985_vm9 = vcmp.ge.f32.partialorder %v1472_v40, 0.0  ;;  %v2498_v16 = vmul.f32 %v10011_v12, %v1472_v40  ;;  %vm2241_vm10 = vcmp.ge.f32.partialorder %v1728_v23, 0.0  ;;  %7598 = vst.msk [vmem:[%s11070_s25 + $0x298] sm:$0xff] %vm7514_vm11, %v5371_v46  ;;  %v437_v11 = vld [vmem:[%s9995_s9 + $0x5a8] sm:$0xff] }
 0x20e   : > { %9773 = vmatmul.mubr.msk.f32.gmra.mxu1 %vm3352_vm0, %v3265_v25  ;;  %v2754_v51 = vmul.f32 %v10011_v12, %v1728_v23  ;;  %v1473_v26 = vadd.f32 %v12555_v13, %v954_v62  ;;  %7854 = vst.msk [vmem:[%s11070_s25 + $0xa98] sm:$0xff] %vm7514_vm11, %v6651_v58  ;;  %v1729_v14 = vadd.f32 %v12555_v13, %v1210_v6  ;;  %v693_v62 = vld [vmem:[%s9995_s9 + $0xda8] sm:$0xff]  ;;  %v13084_v58 = vpop.f32.mrf.mxu0 }
 0x20f   : > { %v5366_v0 = vadd.f32 %v12888_v57, %v12411_v36  ;;  %v3010_v32 = vsel %vm1985_vm9, %v1472_v40, %v2498_v16  ;;  %v6646_v33 = vadd.f32 %v12888_v57, %v12413_v30  ;;  %v955_v2 = vmul.f32 %v12535_v59, %v436_v19  ;;  %v13091_v30 = vpop.f32.mrf.mxu1 }
 0x210   : > { %v1211_v46 = vmul.f32 %v12535_v59, %v692_v1  ;;  %9391 = vmatprep.mubr.msk.f32.mxu0 %vm3352_vm0, %v3010_v32  ;;  %v3266_v6 = vsel %vm2241_vm10, %v1728_v23, %v2754_v51  ;;  %vm1986_vm12 = vcmp.ge.f32.partialorder %v1473_v26, 0.0  ;;  %v2499_v36 = vmul.f32 %v10011_v12, %v1473_v26  ;;  %15610 = vst [vmem:[#allocation16_spill] sm:$0xff] %v13091_v30  ;;  %v15611_v51 = vld [vmem:[#allocation17_spill] sm:$0xff] }
 0x211   : > { %vm2242_vm13 = vcmp.ge.f32.partialorder %v1729_v14, 0.0  ;;  %7597 = vst.msk [vmem:[%s11070_s25 + $0x290] sm:$0xff] %vm7514_vm11, %v5366_v0  ;;  %9775 = vmatprep.mubr.msk.f32.mxu1 %vm3352_vm0, %v3266_v6  ;;  %v2755_v1 = vmul.f32 %v10011_v12, %v1729_v14  ;;  %7853 = vst.msk [vmem:[%s11070_s25 + $0xa90] sm:$0xff] %vm7514_vm11, %v6646_v33  ;;  %v1474_v40 = vadd.f32 %v12555_v13, %v955_v2  ;;  %v438_v6 = vld [vmem:[%s9995_s9 + $0x5b0] sm:$0xff] }
 0x212   : > { %v1730_v23 = vadd.f32 %v12555_v13, %v1211_v46  ;;  %v5381_v19 = vadd.f32 %v12888_v57, %v12434_v3  ;;  %v3011_v25 = vsel %vm1986_vm12, %v1473_v26, %v2499_v36  ;;  %v956_v16 = vmul.f32 %v12535_v59, %v437_v11  ;;  %v694_v30 = vld [vmem:[%s9995_s9 + $0xdb0] sm:$0xff]  ;;  %v13112_v3 = vpop.f32.mrf.mxu0  ;;  %v15612_v11 = vld [vmem:[#allocation18_spill] sm:$0xff]  ;;  %v13122_v36 = vpop.f32.mrf.mxu1 }
 0x213   : > { %v6661_v0 = vadd.f32 %v12888_v57, %v15611_v51  ;;  %v1212_v32 = vmul.f32 %v12535_v59, %v693_v62  ;;  %9392 = vmatmul.mubr.msk.f32.gmra.mxu0 %vm3352_vm0, %v3011_v25  ;;  %v3267_v33 = vsel %vm2242_vm13, %v1729_v14, %v2755_v1  ;;  %vm1987_vm14 = vcmp.ge.f32.partialorder %v1474_v40, 0.0 }
 0x214   : > { %v2500_v2 = vmul.f32 %v10011_v12, %v1474_v40  ;;  %vm2243_vm15 = vcmp.ge.f32.partialorder %v1730_v23, 0.0  ;;  %7600 = vst.msk [vmem:[%s11070_s25 + $0x2a8] sm:$0xff] %vm7514_vm11, %v5381_v19  ;;  %9776 = vmatmul.mubr.msk.f32.gmra.mxu1 %vm3352_vm0, %v3267_v33  ;;  %v2756_v26 = vmul.f32 %v10011_v12, %v1730_v23  ;;  %v1475_v46 = vadd.f32 %v12555_v13, %v956_v16  ;;  %v439_v16 = vld [vmem:[%s9995_s9 + $0x5b8] sm:$0xff] }
 0x215   : > { %7856 = vst.msk [vmem:[%s11070_s25 + $0xaa8] sm:$0xff] %vm7514_vm11, %v6661_v0  ;;  %v1731_v14 = vadd.f32 %v12555_v13, %v1212_v32  ;;  %v5376_v62 = vadd.f32 %v12888_v57, %v15612_v11  ;;  %v6656_v19 = vadd.f32 %v12888_v57, %v12459_v42  ;;  %v957_v25 = vmul.f32 %v12535_v59, %v438_v6  ;;  %v695_v33 = vld [vmem:[%s9995_s9 + $0xdb8] sm:$0xff]  ;;  %v13130_v0 = vpop.f32.mrf.mxu0  ;;  %v13137_v42 = vpop.f32.mrf.mxu1 }
 0x216   : > { %v3012_v1 = vsel %vm1987_vm14, %v1474_v40, %v2500_v2  ;;  %v1213_v51 = vmul.f32 %v12535_v59, %v694_v30  ;;  %v3268_v32 = vsel %vm2243_vm15, %v1730_v23, %v2756_v26  ;;  %vm1988_vm1 = vcmp.ge.f32.partialorder %v1475_v46, 0.0  ;;  %15613 = vst [vmem:[#allocation17_spill] sm:$0xff] %v13137_v42  ;;  %v13150_v26 = vld [vmem:[%s15546_s1] ss:$0 sm:$0xff]  ;;  %v697_v42 = vld [vmem:[%s9995_s9 + $0xdc8] sm:$0xff] }
 0x217   : > { %9394 = vmatprep.mubr.msk.f32.mxu0 %vm3352_vm0, %v3012_v1  ;;  %v2501_v40 = vmul.f32 %v10011_v12, %v1475_v46  ;;  %vm2244_vm2 = vcmp.ge.f32.partialorder %v1731_v14, 0.0  ;;  %7599 = vst.msk [vmem:[%s11070_s25 + $0x2a0] sm:$0xff] %vm7514_vm11, %v5376_v62  ;;  %9778 = vmatprep.mubr.msk.f32.mxu1 %vm3352_vm0, %v3268_v32  ;;  %v2757_v59 = vmul.f32 %v10011_v12, %v1731_v14  ;;  %7855 = vst.msk [vmem:[%s11070_s25 + $0xaa0] sm:$0xff] %vm7514_vm11, %v6656_v19  ;;  %v440_v19 = vld [vmem:[%s9995_s9 + $0x5c0] sm:$0xff] }
 0x218   : > { %v1476_v30 = vadd.f32 %v12555_v13, %v957_v25  ;;  %v1732_v23 = vadd.f32 %v12555_v13, %v1213_v51  ;;  %v5391_v6 = vadd.f32 %v12888_v57, %v12467_v50  ;;  %v958_v11 = vmul.f32 %v13150_v26, %v439_v16  ;;  %v696_v25 = vld [vmem:[%s9995_s9 + $0xdc0] sm:$0xff] }
 0x219   : > { %v3013_v2 = vsel %vm1988_vm1, %v1475_v46, %v2501_v40  ;;  %v6671_v62 = vadd.f32 %v12888_v57, %v12482_v45  ;;  %v1214_v1 = vmul.f32 %v13150_v26, %v695_v33  ;;  %v3269_v50 = vsel %vm2244_vm2, %v1731_v14, %v2757_v59  ;;  %v13163_v46 = vpop.f32.mrf.mxu0  ;;  %v13170_v51 = vld [vmem:[%s15547_s2] ss:$0 sm:$0xff]  ;;  %v15615_v33 = vld [vmem:[#allocation9_spill] sm:$0xff]  ;;  %v13178_v40 = vpop.f32.mrf.mxu1 }
 0x21a   : > { %9395 = vmatmul.mubr.msk.f32.gmra.mxu0 %vm3352_vm0, %v3013_v2  ;;  %vm1989_vm3 = vcmp.ge.f32.partialorder %v1476_v30, 0.0  ;;  %v2502_v13 = vmul.f32 %v10011_v12, %v1476_v30  ;;  %vm2245_vm4 = vcmp.ge.f32.partialorder %v1732_v23, 0.0  ;;  %7602 = vst.msk [vmem:[%s11070_s25 + $0x2b8] sm:$0xff] %vm7514_vm11, %v5391_v6  ;;  %15614 = vst [vmem:[#allocation18_spill] sm:$0xff] %v13163_v46  ;;  %9779 = vmatmul.mubr.msk.f32.gmra.mxu1 %vm3352_vm0, %v3269_v50  ;;  %v15616_v6 = vld [vmem:[#allocation19_spill] sm:$0xff] }
 0x21b   : > { %v2758_v45 = vmul.f32 %v10011_v12, %v1732_v23  ;;  %v1477_v14 = vadd.f32 %v13170_v51, %v958_v11  ;;  %7858 = vst.msk [vmem:[%s11070_s25 + $0xab8] sm:$0xff] %vm7514_vm11, %v6671_v62  ;;  %v1733_v16 = vadd.f32 %v13170_v51, %v1214_v1  ;;  %v5386_v32 = vadd.f32 %v12888_v57, %v15615_v33  ;;  %v441_v11 = vld [vmem:[%s9995_s9 + $0x5c8] sm:$0xff]  ;;  %v13186_v62 = vpop.f32.mrf.mxu0 }
 0x21c   : > { %v3014_v59 = vsel %vm1989_vm3, %v1476_v30, %v2502_v13  ;;  %v6666_v2 = vadd.f32 %v12888_v57, %v15616_v6  ;;  %v959_v50 = vmul.f32 %v13150_v26, %v440_v19  ;;  %v1215_v46 = vmul.f32 %v13150_v26, %v696_v25  ;;  %v13193_v13 = vpop.f32.mrf.mxu1 }
 0x21d   : > { %9397 = vmatprep.mubr.msk.f32.mxu0 %vm3352_vm0, %v3014_v59  ;;  %v3270_v1 = vsel %vm2245_vm4, %v1732_v23, %v2758_v45  ;;  %vm1990_vm5 = vcmp.ge.f32.partialorder %v1477_v14, 0.0  ;;  %v2503_v30 = vmul.f32 %v10011_v12, %v1477_v14  ;;  %vm2246_vm6 = vcmp.ge.f32.partialorder %v1733_v16, 0.0  ;;  %7601 = vst.msk [vmem:[%s11070_s25 + $0x2b0] sm:$0xff] %vm7514_vm11, %v5386_v32  ;;  %15617 = vst [vmem:[#allocation9_spill] sm:$0xff] %v13193_v13  ;;  %v698_v13 = vld [vmem:[%s9995_s9 + $0xdd0] sm:$0xff] }
 0x21e   : > { %9781 = vmatprep.mubr.msk.f32.mxu1 %vm3352_vm0, %v3270_v1  ;;  %v2759_v19 = vmul.f32 %v10011_v12, %v1733_v16  ;;  %7857 = vst.msk [vmem:[%s11070_s25 + $0xab0] sm:$0xff] %vm7514_vm11, %v6666_v2  ;;  %v1478_v25 = vadd.f32 %v13170_v51, %v959_v50  ;;  %v1734_v23 = vadd.f32 %v13170_v51, %v1215_v46  ;;  %v442_v1 = vld [vmem:[%s9995_s9 + $0x5d0] sm:$0xff]  ;;  %v13224_v50 = vpop.f32.mrf.mxu1 }
 0x21f   : > { %v5401_v45 = vadd.f32 %v12888_v57, %v12513_v20  ;;  %v3015_v33 = vsel %vm1990_vm5, %v1477_v14, %v2503_v30  ;;  %v960_v32 = vmul.f32 %v13150_v26, %v441_v11  ;;  %v6681_v59 = vadd.f32 %v12888_v57, %v12528_v34  ;;  %v13214_v20 = vpop.f32.mrf.mxu0  ;;  %v15618_v30 = vld [vmem:[#allocation10_spill] sm:$0xff] }
 0x220   : > { %v1216_v6 = vmul.f32 %v13150_v26, %v697_v42  ;;  %9398 = vmatmul.mubr.msk.f32.gmra.mxu0 %vm3352_vm0, %v3015_v33  ;;  %v3271_v2 = vsel %vm2246_vm6, %v1733_v16, %v2759_v19  ;;  %vm1991_vm7 = vcmp.ge.f32.partialorder %v1478_v25, 0.0  ;;  %v2504_v46 = vmul.f32 %v10011_v12, %v1478_v25 }
 0x221   : > { %vm2247_vm8 = vcmp.ge.f32.partialorder %v1734_v23, 0.0  ;;  %7604 = vst.msk [vmem:[%s11070_s25 + $0x2c8] sm:$0xff] %vm7514_vm11, %v5401_v45  ;;  %9782 = vmatmul.mubr.msk.f32.gmra.mxu1 %vm3352_vm0, %v3271_v2  ;;  %v2760_v34 = vmul.f32 %v10011_v12, %v1734_v23  ;;  %v1479_v42 = vadd.f32 %v13170_v51, %v960_v32  ;;  %7860 = vst.msk [vmem:[%s11070_s25 + $0xac8] sm:$0xff] %vm7514_vm11, %v6681_v59  ;;  %v443_v32 = vld [vmem:[%s9995_s9 + $0x5d8] sm:$0xff]  ;;  %v13232_v59 = vpop.f32.mrf.mxu0 }
 0x222   : > { %v1735_v14 = vadd.f32 %v13170_v51, %v1216_v6  ;;  %v5396_v16 = vadd.f32 %v12888_v57, %v12530_v63  ;;  %v3016_v11 = vsel %vm1991_vm7, %v1478_v25, %v2504_v46  ;;  %v6676_v19 = vadd.f32 %v12888_v57, %v15618_v30  ;;  %v699_v2 = vld [vmem:[%s9995_s9 + $0xdd8] sm:$0xff]  ;;  %v13239_v25 = vpop.f32.mrf.mxu1 }
 0x223   : > { %v961_v45 = vmul.f32 %v13150_v26, %v442_v1  ;;  %v1217_v33 = vmul.f32 %v13150_v26, %v698_v13  ;;  %9400 = vmatprep.mubr.msk.f32.mxu0 %vm3352_vm0, %v3016_v11  ;;  %v3272_v6 = vsel %vm2247_vm8, %v1734_v23, %v2760_v34  ;;  %vm1992_vm9 = vcmp.ge.f32.partialorder %v1479_v42, 0.0  ;;  %15619 = vst [vmem:[#allocation19_spill] sm:$0xff] %v13239_v25  ;;  %v700_v25 = vld [vmem:[%s9995_s9 + $0xde0] sm:$0xff] }
 0x224   : > { %v2505_v63 = vmul.f32 %v10011_v12, %v1479_v42  ;;  %vm2248_vm10 = vcmp.ge.f32.partialorder %v1735_v14, 0.0  ;;  %7603 = vst.msk [vmem:[%s11070_s25 + $0x2c0] sm:$0xff] %vm7514_vm11, %v5396_v16  ;;  %9784 = vmatprep.mubr.msk.f32.mxu1 %vm3352_vm0, %v3272_v6  ;;  %v2761_v13 = vmul.f32 %v10011_v12, %v1735_v14  ;;  %7859 = vst.msk [vmem:[%s11070_s25 + $0xac0] sm:$0xff] %vm7514_vm11, %v6676_v19  ;;  %v444_v6 = vld [vmem:[%s9995_s9 + $0x5e0] sm:$0xff] }
 0x225   : > { %v1480_v1 = vadd.f32 %v13170_v51, %v961_v45  ;;  %v1736_v23 = vadd.f32 %v13170_v51, %v1217_v33  ;;  %v5411_v46 = vadd.f32 %v12888_v57, %v12563_v28  ;;  %v962_v16 = vmul.f32 %v13150_v26, %v443_v32  ;;  %v13260_v28 = vpop.f32.mrf.mxu0  ;;  %v13270_v32 = vpop.f32.mrf.mxu1 }
 0x226   : > { %v3017_v34 = vsel %vm1992_vm9, %v1479_v42, %v2505_v63  ;;  %v6691_v11 = vadd.f32 %v12888_v57, %v12586_v9  ;;  %v1218_v30 = vmul.f32 %v13150_v26, %v699_v2  ;;  %v3273_v19 = vsel %vm2248_vm10, %v1735_v14, %v2761_v13  ;;  %v15620_v63 = vld [vmem:[#allocation11_spill] sm:$0xff] }
 0x227   : > { %9401 = vmatmul.mubr.msk.f32.gmra.mxu0 %vm3352_vm0, %v3017_v34  ;;  %vm1993_vm12 = vcmp.ge.f32.partialorder %v1480_v1, 0.0  ;;  %v2506_v45 = vmul.f32 %v10011_v12, %v1480_v1  ;;  %vm2249_vm13 = vcmp.ge.f32.partialorder %v1736_v23, 0.0  ;;  %7606 = vst.msk [vmem:[%s11070_s25 + $0x2d8] sm:$0xff] %vm7514_vm11, %v5411_v46  ;;  %9785 = vmatmul.mubr.msk.f32.gmra.mxu1 %vm3352_vm0, %v3273_v19  ;;  %v2762_v9 = vmul.f32 %v10011_v12, %v1736_v23  ;;  %v701_v19 = vld [vmem:[%s9995_s9 + $0xde8] sm:$0xff] }
 0x228   : > { %v1481_v42 = vadd.f32 %v13170_v51, %v962_v16  ;;  %7862 = vst.msk [vmem:[%s11070_s25 + $0xad8] sm:$0xff] %vm7514_vm11, %v6691_v11  ;;  %v1737_v14 = vadd.f32 %v13170_v51, %v1218_v30  ;;  %v5406_v33 = vadd.f32 %v12888_v57, %v12576_v52  ;;  %v6686_v13 = vadd.f32 %v12888_v57, %v15620_v63  ;;  %v445_v16 = vld [vmem:[%s9995_s9 + $0x5e8] sm:$0xff]  ;;  %v13278_v11 = vpop.f32.mrf.mxu0 }
 0x229   : > { %v3018_v2 = vsel %vm1993_vm12, %v1480_v1, %v2506_v45  ;;  %v963_v46 = vmul.f32 %v13150_v26, %v444_v6  ;;  %v1219_v34 = vmul.f32 %v13150_v26, %v700_v25  ;;  %v3274_v30 = vsel %vm2249_vm13, %v1736_v23, %v2762_v9  ;;  %v13285_v1 = vpop.f32.mrf.mxu1 }
 0x22a   : > { %9403 = vmatprep.mubr.msk.f32.mxu0 %vm3352_vm0, %v3018_v2  ;;  %vm1994_vm14 = vcmp.ge.f32.partialorder %v1481_v42, 0.0  ;;  %v2507_v52 = vmul.f32 %v10011_v12, %v1481_v42  ;;  %vm2250_vm15 = vcmp.ge.f32.partialorder %v1737_v14, 0.0  ;;  %7605 = vst.msk [vmem:[%s11070_s25 + $0x2d0] sm:$0xff] %vm7514_vm11, %v5406_v33  ;;  %15621 = vst [vmem:[#allocation10_spill] sm:$0xff] %v13285_v1  ;;  %9787 = vmatprep.mubr.msk.f32.mxu1 %vm3352_vm0, %v3274_v30  ;;  %v446_v30 = vld [vmem:[%s9995_s9 + $0x5f0] sm:$0xff] }
 0x22b   : > { %v2763_v25 = vmul.f32 %v10011_v12, %v1737_v14  ;;  %7861 = vst.msk [vmem:[%s11070_s25 + $0xad0] sm:$0xff] %vm7514_vm11, %v6686_v13  ;;  %v1482_v6 = vadd.f32 %v13170_v51, %v963_v46  ;;  %v1738_v23 = vadd.f32 %v13170_v51, %v1219_v34  ;;  %v5421_v45 = vadd.f32 %v12888_v57, %v12609_v7  ;;  %v702_v1 = vld [vmem:[%s9995_s9 + $0xdf0] sm:$0xff]  ;;  %v13306_v7 = vpop.f32.mrf.mxu0  ;;  %v15622_v34 = vld [vmem:[#allocation3_spill] sm:$0xff] }
 0x22c   : > { %v3019_v9 = vsel %vm1994_vm14, %v1481_v42, %v2507_v52  ;;  %v964_v33 = vmul.f32 %v13150_v26, %v445_v16  ;;  %v6701_v2 = vadd.f32 %v12888_v57, %v12617_v5  ;;  %v1220_v63 = vmul.f32 %v13150_v26, %v701_v19  ;;  %v13316_v19 = vpop.f32.mrf.mxu1 }
 0x22d   : > { %9404 = vmatmul.mubr.msk.f32.gmra.mxu0 %vm3352_vm0, %v3019_v9  ;;  %v3275_v13 = vsel %vm2250_vm15, %v1737_v14, %v2763_v25  ;;  %vm1995_vm1 = vcmp.ge.f32.partialorder %v1482_v6, 0.0  ;;  %v2508_v46 = vmul.f32 %v10011_v12, %v1482_v6  ;;  %vm2251_vm2 = vcmp.ge.f32.partialorder %v1738_v23, 0.0  ;;  %7608 = vst.msk [vmem:[%s11070_s25 + $0x2e8] sm:$0xff] %vm7514_vm11, %v5421_v45 }
 0x22e   : > { %9788 = vmatmul.mubr.msk.f32.gmra.mxu1 %vm3352_vm0, %v3275_v13  ;;  %v2764_v5 = vmul.f32 %v10011_v12, %v1738_v23  ;;  %v1483_v42 = vadd.f32 %v13170_v51, %v964_v33  ;;  %7864 = vst.msk [vmem:[%s11070_s25 + $0xae8] sm:$0xff] %vm7514_vm11, %v6701_v2  ;;  %v1739_v14 = vadd.f32 %v13170_v51, %v1220_v63  ;;  %v447_v33 = vld [vmem:[%s9995_s9 + $0x5f8] sm:$0xff]  ;;  %v13324_v2 = vpop.f32.mrf.mxu0 }
 0x22f   : > { %v5416_v16 = vadd.f32 %v12888_v57, %v15622_v34  ;;  %v3020_v52 = vsel %vm1995_vm1, %v1482_v6, %v2508_v46  ;;  %v6696_v25 = vadd.f32 %v12888_v57, %v12634_v27  ;;  %v965_v45 = vmul.f32 %v13150_v26, %v446_v30  ;;  %v703_v13 = vld [vmem:[%s9995_s9 + $0xdf8] sm:$0xff]  ;;  %v13331_v27 = vpop.f32.mrf.mxu1 }
 0x230   : > { %v1221_v9 = vmul.f32 %v13150_v26, %v702_v1  ;;  %9406 = vmatprep.mubr.msk.f32.mxu0 %vm3352_vm0, %v3020_v52  ;;  %v3276_v63 = vsel %vm2251_vm2, %v1738_v23, %v2764_v5  ;;  %vm1996_vm3 = vcmp.ge.f32.partialorder %v1483_v42, 0.0  ;;  %v2509_v6 = vmul.f32 %v10011_v12, %v1483_v42  ;;  %15623 = vst [vmem:[#allocation11_spill] sm:$0xff] %v13331_v27  ;;  %v704_v27 = vld [vmem:[%s9995_s9 + $0xe00] sm:$0xff] }
 0x231   : > { %vm2252_vm4 = vcmp.ge.f32.partialorder %v1739_v14, 0.0  ;;  %7607 = vst.msk [vmem:[%s11070_s25 + $0x2e0] sm:$0xff] %vm7514_vm11, %v5416_v16  ;;  %9790 = vmatprep.mubr.msk.f32.mxu1 %vm3352_vm0, %v3276_v63  ;;  %v2765_v1 = vmul.f32 %v10011_v12, %v1739_v14  ;;  %7863 = vst.msk [vmem:[%s11070_s25 + $0xae0] sm:$0xff] %vm7514_vm11, %v6696_v25  ;;  %v1484_v30 = vadd.f32 %v13170_v51, %v965_v45  ;;  %v448_v63 = vld [vmem:[%s9995_s9 + $0x600] sm:$0xff] }
 0x232   : > { %v1740_v23 = vadd.f32 %v13170_v51, %v1221_v9  ;;  %v5431_v46 = vadd.f32 %v12888_v57, %v12655_v41  ;;  %v3021_v5 = vsel %vm1996_vm3, %v1483_v42, %v2509_v6  ;;  %v966_v34 = vmul.f32 %v13150_v26, %v447_v33  ;;  %v13352_v41 = vpop.f32.mrf.mxu0  ;;  %v15625_v9 = vld [vmem:[#allocation4_spill] sm:$0xff] }
 0x233   : > { %v6711_v16 = vadd.f32 %v12888_v57, %v12657_v54  ;;  %v1222_v52 = vmul.f32 %v13150_v26, %v703_v13  ;;  %9407 = vmatmul.mubr.msk.f32.gmra.mxu0 %vm3352_vm0, %v3021_v5  ;;  %v3277_v25 = vsel %vm2252_vm4, %v1739_v14, %v2765_v1  ;;  %vm1997_vm5 = vcmp.ge.f32.partialorder %v1484_v30, 0.0  ;;  %15624 = vst [vmem:[#allocation3_spill] sm:$0xff] %v13352_v41  ;;  %v13362_v13 = vpop.f32.mrf.mxu1  ;;  %v15626_v1 = vld [vmem:[#allocation20_spill] sm:$0xff] }
 0x234   : > { %v2510_v45 = vmul.f32 %v10011_v12, %v1484_v30  ;;  %vm2253_vm6 = vcmp.ge.f32.partialorder %v1740_v23, 0.0  ;;  %7610 = vst.msk [vmem:[%s11070_s25 + $0x2f8] sm:$0xff] %vm7514_vm11, %v5431_v46  ;;  %9791 = vmatmul.mubr.msk.f32.gmra.mxu1 %vm3352_vm0, %v3277_v25  ;;  %v2766_v54 = vmul.f32 %v10011_v12, %v1740_v23  ;;  %v1485_v42 = vadd.f32 %v13170_v51, %v966_v34  ;;  %v449_v34 = vld [vmem:[%s9995_s9 + $0x608] sm:$0xff] }
 0x235   : > { %7866 = vst.msk [vmem:[%s11070_s25 + $0xaf8] sm:$0xff] %vm7514_vm11, %v6711_v16  ;;  %v1741_v14 = vadd.f32 %v13170_v51, %v1222_v52  ;;  %v5426_v33 = vadd.f32 %v12888_v57, %v15625_v9  ;;  %v6706_v46 = vadd.f32 %v12888_v57, %v15626_v1  ;;  %v967_v5 = vmul.f32 %v13150_v26, %v448_v63  ;;  %v705_v41 = vld [vmem:[%s9995_s9 + $0xe08] sm:$0xff]  ;;  %v13370_v16 = vpop.f32.mrf.mxu0 }
 0x236   : > { %v3022_v6 = vsel %vm1997_vm5, %v1484_v30, %v2510_v45  ;;  %v1223_v25 = vmul.f32 %v13150_v26, %v704_v27  ;;  %v3278_v52 = vsel %vm2253_vm6, %v1740_v23, %v2766_v54  ;;  %vm1998_vm7 = vcmp.ge.f32.partialorder %v1485_v42, 0.0  ;;  %v13377_v45 = vpop.f32.mrf.mxu1 }
 0x237   : > { %9409 = vmatprep.mubr.msk.f32.mxu0 %vm3352_vm0, %v3022_v6  ;;  %v2511_v30 = vmul.f32 %v10011_v12, %v1485_v42  ;;  %vm2254_vm8 = vcmp.ge.f32.partialorder %v1741_v14, 0.0  ;;  %7609 = vst.msk [vmem:[%s11070_s25 + $0x2f0] sm:$0xff] %vm7514_vm11, %v5426_v33  ;;  %15627 = vst [vmem:[#allocation4_spill] sm:$0xff] %v13377_v45  ;;  %9793 = vmatprep.mubr.msk.f32.mxu1 %vm3352_vm0, %v3278_v52  ;;  %v2767_v27 = vmul.f32 %v10011_v12, %v1741_v14  ;;  %v450_v52 = vld [vmem:[%s9995_s9 + $0x610] sm:$0xff] }
 0x238   : > { %7865 = vst.msk [vmem:[%s11070_s25 + $0xaf0] sm:$0xff] %vm7514_vm11, %v6706_v46  ;;  %v1486_v63 = vadd.f32 %v13170_v51, %v967_v5  ;;  %v1742_v23 = vadd.f32 %v13170_v51, %v1223_v25  ;;  %v5441_v54 = vadd.f32 %v12888_v57, %v12688_v8  ;;  %v968_v33 = vmul.f32 %v13150_v26, %v449_v34  ;;  %v706_v45 = vld [vmem:[%s9995_s9 + $0xe10] sm:$0xff]  ;;  %v13398_v8 = vpop.f32.mrf.mxu0  ;;  %v13408_v34 = vpop.f32.mrf.mxu1 }
 0x239   : > { %v3023_v9 = vsel %vm1998_vm7, %v1485_v42, %v2511_v30  ;;  %v6721_v6 = vadd.f32 %v12888_v57, %v12703_v47  ;;  %v1224_v1 = vmul.f32 %v13150_v26, %v705_v41  ;;  %v3279_v46 = vsel %vm2254_vm8, %v1741_v14, %v2767_v27  ;;  %15628 = vst [vmem:[#allocation20_spill] sm:$0xff] %v13398_v8  ;;  %v15629_v14 = vld [vmem:[#allocation21_spill] sm:$0xff]  ;;  %v15630_v27 = vld [vmem:[#allocation12_spill] sm:$0xff]  ;;  %v707_v8 = vld [vmem:[%s9995_s9 + $0xe18] sm:$0xff] }
 0x23a   : > { %9410 = vmatmul.mubr.msk.f32.gmra.mxu0 %vm3352_vm0, %v3023_v9  ;;  %vm1999_vm9 = vcmp.ge.f32.partialorder %v1486_v63, 0.0  ;;  %v2512_v5 = vmul.f32 %v10011_v12, %v1486_v63  ;;  %vm2255_vm10 = vcmp.ge.f32.partialorder %v1742_v23, 0.0  ;;  %7612 = vst.msk [vmem:[%s11070_s25 + $0x308] sm:$0xff] %vm7514_vm11, %v5441_v54  ;;  %9794 = vmatmul.mubr.msk.f32.gmra.mxu1 %vm3352_vm0, %v3279_v46  ;;  %v2768_v47 = vmul.f32 %v10011_v12, %v1742_v23 }
 0x23b   : > { %v1487_v41 = vadd.f32 %v13170_v51, %v968_v33  ;;  %7868 = vst.msk [vmem:[%s11070_s25 + $0xb08] sm:$0xff] %vm7514_vm11, %v6721_v6  ;;  %v1743_v42 = vadd.f32 %v13170_v51, %v1224_v1  ;;  %v5436_v25 = vadd.f32 %v12888_v57, %v15629_v14  ;;  %v6716_v54 = vadd.f32 %v12888_v57, %v15630_v27  ;;  %v451_v33 = vld [vmem:[%s9995_s9 + $0x618] sm:$0xff]  ;;  %v13416_v6 = vpop.f32.mrf.mxu0 }
 0x23c   : > { %v3024_v30 = vsel %vm1999_vm9, %v1486_v63, %v2512_v5  ;;  %v969_v9 = vmul.f32 %v13150_v26, %v450_v52  ;;  %v1225_v46 = vmul.f32 %v13150_v26, %v706_v45  ;;  %v3280_v1 = vsel %vm2255_vm10, %v1742_v23, %v2768_v47  ;;  %v13423_v5 = vpop.f32.mrf.mxu1 }
 0x23d   : > { %9412 = vmatprep.mubr.msk.f32.mxu0 %vm3352_vm0, %v3024_v30  ;;  %vm2000_vm12 = vcmp.ge.f32.partialorder %v1487_v41, 0.0  ;;  %v2513_v63 = vmul.f32 %v10011_v12, %v1487_v41  ;;  %vm2256_vm13 = vcmp.ge.f32.partialorder %v1743_v42, 0.0  ;;  %7611 = vst.msk [vmem:[%s11070_s25 + $0x300] sm:$0xff] %vm7514_vm11, %v5436_v25  ;;  %15631 = vst [vmem:[#allocation21_spill] sm:$0xff] %v13423_v5  ;;  %9796 = vmatprep.mubr.msk.f32.mxu1 %vm3352_vm0, %v3280_v1  ;;  %v452_v1 = vld [vmem:[%s9995_s9 + $0x620] sm:$0xff] }
 0x23e   : > { %v2769_v45 = vmul.f32 %v10011_v12, %v1743_v42  ;;  %7867 = vst.msk [vmem:[%s11070_s25 + $0xb00] sm:$0xff] %vm7514_vm11, %v6716_v54  ;;  %v1488_v52 = vadd.f32 %v13170_v51, %v969_v9  ;;  %v1744_v23 = vadd.f32 %v13170_v51, %v1225_v46  ;;  %v5451_v47 = vadd.f32 %v12888_v57, %v12734_v55  ;;  %v708_v5 = vld [vmem:[%s9995_s9 + $0xe20] sm:$0xff]  ;;  %v13444_v55 = vpop.f32.mrf.mxu0  ;;  %v13454_v46 = vpop.f32.mrf.mxu1 }
 0x23f   : > { %v3025_v14 = vsel %vm2000_vm12, %v1487_v41, %v2513_v63  ;;  %v970_v25 = vmul.f32 %v13150_v26, %v451_v33  ;;  %v6731_v30 = vadd.f32 %v12888_v57, %v12749_v61  ;;  %v1226_v27 = vmul.f32 %v13150_v26, %v707_v8  ;;  %v15632_v63 = vld [vmem:[#allocation13_spill] sm:$0xff] }
 0x240   : > { %9413 = vmatmul.mubr.msk.f32.gmra.mxu0 %vm3352_vm0, %v3025_v14  ;;  %v3281_v54 = vsel %vm2256_vm13, %v1743_v42, %v2769_v45  ;;  %vm2001_vm14 = vcmp.ge.f32.partialorder %v1488_v52, 0.0  ;;  %v2514_v9 = vmul.f32 %v10011_v12, %v1488_v52  ;;  %vm2257_vm15 = vcmp.ge.f32.partialorder %v1744_v23, 0.0  ;;  %7614 = vst.msk [vmem:[%s11070_s25 + $0x318] sm:$0xff] %vm7514_vm11, %v5451_v47 }
 0x241   : > { %9797 = vmatmul.mubr.msk.f32.gmra.mxu1 %vm3352_vm0, %v3281_v54  ;;  %v2770_v61 = vmul.f32 %v10011_v12, %v1744_v23  ;;  %v1489_v8 = vadd.f32 %v13170_v51, %v970_v25  ;;  %7870 = vst.msk [vmem:[%s11070_s25 + $0xb18] sm:$0xff] %vm7514_vm11, %v6731_v30  ;;  %v1745_v41 = vadd.f32 %v13170_v51, %v1226_v27  ;;  %v453_v25 = vld [vmem:[%s9995_s9 + $0x628] sm:$0xff]  ;;  %v13462_v30 = vpop.f32.mrf.mxu0 }
 0x242   : > { %v5446_v42 = vadd.f32 %v12888_v57, %v12757_v37  ;;  %v3026_v33 = vsel %vm2001_vm14, %v1488_v52, %v2514_v9  ;;  %v6726_v45 = vadd.f32 %v12888_v57, %v15632_v63  ;;  %v971_v47 = vmul.f32 %v13150_v26, %v452_v1  ;;  %v709_v54 = vld [vmem:[%s9995_s9 + $0xe28] sm:$0xff]  ;;  %v13469_v52 = vpop.f32.mrf.mxu1 }
 0x243   : > { %v1227_v14 = vmul.f32 %v13150_v26, %v708_v5  ;;  %9415 = vmatprep.mubr.msk.f32.mxu0 %vm3352_vm0, %v3026_v33  ;;  %v3282_v27 = vsel %vm2257_vm15, %v1744_v23, %v2770_v61  ;;  %vm2002_vm1 = vcmp.ge.f32.partialorder %v1489_v8, 0.0  ;;  %v2515_v37 = vmul.f32 %v10011_v12, %v1489_v8  ;;  %15633 = vst [vmem:[#allocation12_spill] sm:$0xff] %v13469_v52  ;;  %v710_v52 = vld [vmem:[%s9995_s9 + $0xe30] sm:$0xff] }
 0x244   : > { %vm2258_vm2 = vcmp.ge.f32.partialorder %v1745_v41, 0.0  ;;  %7613 = vst.msk [vmem:[%s11070_s25 + $0x310] sm:$0xff] %vm7514_vm11, %v5446_v42  ;;  %9799 = vmatprep.mubr.msk.f32.mxu1 %vm3352_vm0, %v3282_v27  ;;  %v2771_v5 = vmul.f32 %v10011_v12, %v1745_v41  ;;  %7869 = vst.msk [vmem:[%s11070_s25 + $0xb10] sm:$0xff] %vm7514_vm11, %v6726_v45  ;;  %v1490_v1 = vadd.f32 %v13170_v51, %v971_v47  ;;  %v454_v27 = vld [vmem:[%s9995_s9 + $0x630] sm:$0xff] }
 0x245   : > { %v1746_v23 = vadd.f32 %v13170_v51, %v1227_v14  ;;  %v5461_v9 = vadd.f32 %v12888_v57, %v12785_v48  ;;  %v3027_v61 = vsel %vm2002_vm1, %v1489_v8, %v2515_v37  ;;  %v972_v42 = vmul.f32 %v13150_v26, %v453_v25  ;;  %v13490_v48 = vpop.f32.mrf.mxu0  ;;  %v13505_v25 = vpop.f32.mrf.mxu1  ;;  %v15634_v37 = vld [vmem:[#allocation5_spill] sm:$0xff] }
 0x246   : > { %v6741_v33 = vadd.f32 %v12888_v57, %v12795_v56  ;;  %v1228_v63 = vmul.f32 %v13150_v26, %v709_v54  ;;  %9416 = vmatmul.mubr.msk.f32.gmra.mxu0 %vm3352_vm0, %v3027_v61  ;;  %v3283_v45 = vsel %vm2258_vm2, %v1745_v41, %v2771_v5  ;;  %vm2003_vm3 = vcmp.ge.f32.partialorder %v1490_v1, 0.0  ;;  %v13501_v41 = vld [vmem:[%s15550_s5] ss:$0 sm:$0xff] }
 0x247   : > { %v2516_v47 = vmul.f32 %v10011_v12, %v1490_v1  ;;  %vm2259_vm4 = vcmp.ge.f32.partialorder %v1746_v23, 0.0  ;;  %7616 = vst.msk [vmem:[%s11070_s25 + $0x328] sm:$0xff] %vm7514_vm11, %v5461_v9  ;;  %9800 = vmatmul.mubr.msk.f32.gmra.mxu1 %vm3352_vm0, %v3283_v45  ;;  %v2772_v56 = vmul.f32 %v10011_v12, %v1746_v23  ;;  %v1491_v57 = vadd.f32 %v13170_v51, %v972_v42  ;;  %v455_v42 = vld [vmem:[%s9995_s9 + $0x638] sm:$0xff] }
 0x248   : > { %7872 = vst.msk [vmem:[%s11070_s25 + $0xb28] sm:$0xff] %vm7514_vm11, %v6741_v33  ;;  %v1747_v8 = vadd.f32 %v13170_v51, %v1228_v63  ;;  %v5456_v14 = vadd.f32 %v13501_v41, %v12803_v43  ;;  %v6736_v5 = vadd.f32 %v13501_v41, %v15634_v37  ;;  %v973_v9 = vmul.f32 %v13150_v26, %v454_v27  ;;  %v711_v33 = vld [vmem:[%s9995_s9 + $0xe38] sm:$0xff]  ;;  %v13513_v63 = vpop.f32.mrf.mxu0 }
 0x249   : > { %v3028_v54 = vsel %vm2003_vm3, %v1490_v1, %v2516_v47  ;;  %v1229_v61 = vmul.f32 %v13150_v26, %v710_v52  ;;  %v3284_v45 = vsel %vm2259_vm4, %v1746_v23, %v2772_v56  ;;  %vm2004_vm5 = vcmp.ge.f32.partialorder %v1491_v57, 0.0  ;;  %v13520_v1 = vpop.f32.mrf.mxu1 }
 0x24a   : > { %9418 = vmatprep.mubr.msk.f32.mxu0 %vm3352_vm0, %v3028_v54  ;;  %v2517_v43 = vmul.f32 %v10011_v12, %v1491_v57  ;;  %vm2260_vm6 = vcmp.ge.f32.partialorder %v1747_v8, 0.0  ;;  %7615 = vst.msk [vmem:[%s11070_s25 + $0x320] sm:$0xff] %vm7514_vm11, %v5456_v14  ;;  %15635 = vst [vmem:[#allocation13_spill] sm:$0xff] %v13520_v1  ;;  %9802 = vmatprep.mubr.msk.f32.mxu1 %vm3352_vm0, %v3284_v45  ;;  %v2773_v52 = vmul.f32 %v10011_v12, %v1747_v8  ;;  %v456_v45 = vld [vmem:[%s9995_s9 + $0x640] sm:$0xff] }
 0x24b   : > { %7871 = vst.msk [vmem:[%s11070_s25 + $0xb20] sm:$0xff] %vm7514_vm11, %v6736_v5  ;;  %v1492_v27 = vadd.f32 %v13170_v51, %v973_v9  ;;  %v1748_v23 = vadd.f32 %v13170_v51, %v1229_v61  ;;  %v5471_v47 = vadd.f32 %v13501_v41, %v12831_v18  ;;  %v974_v14 = vmul.f32 %v13150_v26, %v455_v42  ;;  %v712_v1 = vld [vmem:[%s9995_s9 + $0xe40] sm:$0xff]  ;;  %v13541_v18 = vpop.f32.mrf.mxu0  ;;  %v13551_v42 = vpop.f32.mrf.mxu1 }
 0x24c   : > { %v3029_v56 = vsel %vm2004_vm5, %v1491_v57, %v2517_v43  ;;  %v6751_v54 = vadd.f32 %v13501_v41, %v12841_v44  ;;  %v1230_v37 = vmul.f32 %v13150_v26, %v711_v33  ;;  %v3285_v5 = vsel %vm2260_vm6, %v1747_v8, %v2773_v52  ;;  %v15636_v43 = vld [vmem:[#allocation14_spill] sm:$0xff] }
 0x24d   : > { %9419 = vmatmul.mubr.msk.f32.gmra.mxu0 %vm3352_vm0, %v3029_v56  ;;  %vm2005_vm7 = vcmp.ge.f32.partialorder %v1492_v27, 0.0  ;;  %v2518_v9 = vmul.f32 %v10011_v12, %v1492_v27  ;;  %vm2261_vm8 = vcmp.ge.f32.partialorder %v1748_v23, 0.0  ;;  %7618 = vst.msk [vmem:[%s11070_s25 + $0x338] sm:$0xff] %vm7514_vm11, %v5471_v47  ;;  %9803 = vmatmul.mubr.msk.f32.gmra.mxu1 %vm3352_vm0, %v3285_v5  ;;  %v2774_v44 = vmul.f32 %v10011_v12, %v1748_v23  ;;  %v713_v5 = vld [vmem:[%s9995_s9 + $0xe48] sm:$0xff] }
 0x24e   : > { %v1493_v57 = vadd.f32 %v13170_v51, %v974_v14  ;;  %7874 = vst.msk [vmem:[%s11070_s25 + $0xb38] sm:$0xff] %vm7514_vm11, %v6751_v54  ;;  %v1749_v8 = vadd.f32 %v13170_v51, %v1230_v37  ;;  %v5466_v61 = vadd.f32 %v13501_v41, %v12849_v21  ;;  %v6746_v52 = vadd.f32 %v13501_v41, %v15636_v43  ;;  %v457_v14 = vld [vmem:[%s9995_s9 + $0x648] sm:$0xff]  ;;  %v13559_v54 = vpop.f32.mrf.mxu0 }
 0x24f   : > { %v3030_v33 = vsel %vm2005_vm7, %v1492_v27, %v2518_v9  ;;  %v975_v47 = vmul.f32 %v13150_v26, %v456_v45  ;;  %v1231_v56 = vmul.f32 %v13150_v26, %v712_v1  ;;  %v3286_v37 = vsel %vm2261_vm8, %v1748_v23, %v2774_v44  ;;  %v13566_v27 = vpop.f32.mrf.mxu1 }
 0x250   : > { %9421 = vmatprep.mubr.msk.f32.mxu0 %vm3352_vm0, %v3030_v33  ;;  %vm2006_vm9 = vcmp.ge.f32.partialorder %v1493_v57, 0.0  ;;  %v2519_v21 = vmul.f32 %v10011_v12, %v1493_v57  ;;  %vm2262_vm10 = vcmp.ge.f32.partialorder %v1749_v8, 0.0  ;;  %7617 = vst.msk [vmem:[%s11070_s25 + $0x330] sm:$0xff] %vm7514_vm11, %v5466_v61  ;;  %15637 = vst [vmem:[#allocation5_spill] sm:$0xff] %v13566_v27  ;;  %9805 = vmatprep.mubr.msk.f32.mxu1 %vm3352_vm0, %v3286_v37  ;;  %v458_v37 = vld [vmem:[%s9995_s9 + $0x650] sm:$0xff] }
 0x251   : > { %v2775_v1 = vmul.f32 %v10011_v12, %v1749_v8  ;;  %7873 = vst.msk [vmem:[%s11070_s25 + $0xb30] sm:$0xff] %vm7514_vm11, %v6746_v52  ;;  %v1494_v45 = vadd.f32 %v13170_v51, %v975_v47  ;;  %v1750_v23 = vadd.f32 %v13170_v51, %v1231_v56  ;;  %v5481_v9 = vadd.f32 %v13501_v41, %v12877_v60  ;;  %v714_v27 = vld [vmem:[%s9995_s9 + $0xe50] sm:$0xff]  ;;  %v13587_v60 = vpop.f32.mrf.mxu0 }
 0x252   : > { %v3031_v44 = vsel %vm2006_vm9, %v1493_v57, %v2519_v21  ;;  %v976_v61 = vmul.f32 %v13150_v26, %v457_v14  ;;  %v6761_v33 = vadd.f32 %v13501_v41, %v12892_v29  ;;  %v1232_v43 = vmul.f32 %v13150_v26, %v713_v5  ;;  %v13597_v14 = vpop.f32.mrf.mxu1 }
 0x253   : > { %9422 = vmatmul.mubr.msk.f32.gmra.mxu0 %vm3352_vm0, %v3031_v44  ;;  %v3287_v52 = vsel %vm2262_vm10, %v1749_v8, %v2775_v1  ;;  %vm2007_vm12 = vcmp.ge.f32.partialorder %v1494_v45, 0.0  ;;  %v2520_v47 = vmul.f32 %v10011_v12, %v1494_v45  ;;  %vm2263_vm13 = vcmp.ge.f32.partialorder %v1750_v23, 0.0  ;;  %7620 = vst.msk [vmem:[%s11070_s25 + $0x348] sm:$0xff] %vm7514_vm11, %v5481_v9  ;;  %v459_v44 = vld [vmem:[%s9995_s9 + $0x658] sm:$0xff] }
 0x254   : > { %9806 = vmatmul.mubr.msk.f32.gmra.mxu1 %vm3352_vm0, %v3287_v52  ;;  %v2776_v29 = vmul.f32 %v10011_v12, %v1750_v23  ;;  %v1495_v57 = vadd.f32 %v13170_v51, %v976_v61  ;;  %7876 = vst.msk [vmem:[%s11070_s25 + $0xb48] sm:$0xff] %vm7514_vm11, %v6761_v33  ;;  %v1751_v8 = vadd.f32 %v13170_v51, %v1232_v43  ;;  %v715_v61 = vld [vmem:[%s9995_s9 + $0xe58] sm:$0xff]  ;;  %v13605_v33 = vpop.f32.mrf.mxu0 }
 0x255   : > { %v5476_v56 = vadd.f32 %v13501_v41, %v12900_v53  ;;  %v3032_v5 = vsel %vm2007_vm12, %v1494_v45, %v2520_v47  ;;  %v6756_v21 = vadd.f32 %v13501_v41, %v12907_v24  ;;  %v977_v1 = vmul.f32 %v13150_v26, %v458_v37  ;;  %v13612_v24 = vpop.f32.mrf.mxu1 }
 0x256   : > { %v1233_v9 = vmul.f32 %v13150_v26, %v714_v27  ;;  %9424 = vmatprep.mubr.msk.f32.mxu0 %vm3352_vm0, %v3032_v5  ;;  %v3288_v43 = vsel %vm2263_vm13, %v1750_v23, %v2776_v29  ;;  %vm2008_vm14 = vcmp.ge.f32.partialorder %v1495_v57, 0.0  ;;  %v2521_v53 = vmul.f32 %v10011_v12, %v1495_v57  ;;  %v460_v5 = vld [vmem:[%s9995_s9 + $0x660] sm:$0xff] }
 0x257   : > { %vm2264_vm15 = vcmp.ge.f32.partialorder %v1751_v8, 0.0  ;;  %7619 = vst.msk [vmem:[%s11070_s25 + $0x340] sm:$0xff] %vm7514_vm11, %v5476_v56  ;;  %9808 = vmatprep.mubr.msk.f32.mxu1 %vm3352_vm0, %v3288_v43  ;;  %v2777_v27 = vmul.f32 %v10011_v12, %v1751_v8  ;;  %7875 = vst.msk [vmem:[%s11070_s25 + $0xb40] sm:$0xff] %vm7514_vm11, %v6756_v21  ;;  %v1496_v45 = vadd.f32 %v13170_v51, %v977_v1  ;;  %v716_v43 = vld [vmem:[%s9995_s9 + $0xe60] sm:$0xff] }
 0x258   : > { %v1752_v23 = vadd.f32 %v13170_v51, %v1233_v9  ;;  %v5491_v37 = vadd.f32 %v13501_v41, %v12928_v35  ;;  %v3033_v52 = vsel %vm2008_vm14, %v1495_v57, %v2521_v53  ;;  %v978_v47 = vmul.f32 %v13150_v26, %v459_v44  ;;  %v13633_v35 = vpop.f32.mrf.mxu0  ;;  %v13643_v44 = vpop.f32.mrf.mxu1  ;;  %v15638_v53 = vld [vmem:[#allocation6_spill] sm:$0xff] }
 0x259   : > { %v6771_v29 = vadd.f32 %v13501_v41, %v12938_v39  ;;  %v1234_v56 = vmul.f32 %v13150_v26, %v715_v61  ;;  %9425 = vmatmul.mubr.msk.f32.gmra.mxu0 %vm3352_vm0, %v3033_v52  ;;  %v3289_v21 = vsel %vm2264_vm15, %v1751_v8, %v2777_v27  ;;  %vm2009_vm1 = vcmp.ge.f32.partialorder %v1496_v45, 0.0 }
 0x25a   : > { %v2522_v1 = vmul.f32 %v10011_v12, %v1496_v45  ;;  %vm2265_vm2 = vcmp.ge.f32.partialorder %v1752_v23, 0.0  ;;  %7622 = vst.msk [vmem:[%s11070_s25 + $0x358] sm:$0xff] %vm7514_vm11, %v5491_v37  ;;  %9809 = vmatmul.mubr.msk.f32.gmra.mxu1 %vm3352_vm0, %v3289_v21  ;;  %v2778_v39 = vmul.f32 %v10011_v12, %v1752_v23  ;;  %v1497_v57 = vadd.f32 %v13170_v51, %v978_v47  ;;  %v461_v47 = vld [vmem:[%s9995_s9 + $0x668] sm:$0xff] }
 0x25b   : > { %7878 = vst.msk [vmem:[%s11070_s25 + $0xb58] sm:$0xff] %vm7514_vm11, %v6771_v29  ;;  %v1753_v8 = vadd.f32 %v13170_v51, %v1234_v56  ;;  %v5486_v9 = vadd.f32 %v13501_v41, %v12946_v4  ;;  %v6766_v27 = vadd.f32 %v13501_v41, %v15638_v53  ;;  %v979_v37 = vmul.f32 %v13150_v26, %v460_v5  ;;  %v717_v21 = vld [vmem:[%s9995_s9 + $0xe68] sm:$0xff]  ;;  %v13651_v29 = vpop.f32.mrf.mxu0 }
 0x25c   : > { %v3034_v61 = vsel %vm2009_vm1, %v1496_v45, %v2522_v1  ;;  %v1235_v52 = vmul.f32 %v13150_v26, %v716_v43  ;;  %v3290_v56 = vsel %vm2265_vm2, %v1752_v23, %v2778_v39  ;;  %vm2010_vm3 = vcmp.ge.f32.partialorder %v1497_v57, 0.0  ;;  %v13658_v45 = vpop.f32.mrf.mxu1 }
 0x25d   : > { %9427 = vmatprep.mubr.msk.f32.mxu0 %vm3352_vm0, %v3034_v61  ;;  %v2523_v4 = vmul.f32 %v10011_v12, %v1497_v57  ;;  %vm2266_vm4 = vcmp.ge.f32.partialorder %v1753_v8, 0.0  ;;  %7621 = vst.msk [vmem:[%s11070_s25 + $0x350] sm:$0xff] %vm7514_vm11, %v5486_v9  ;;  %15639 = vst [vmem:[#allocation14_spill] sm:$0xff] %v13658_v45  ;;  %9811 = vmatprep.mubr.msk.f32.mxu1 %vm3352_vm0, %v3290_v56  ;;  %v2779_v5 = vmul.f32 %v10011_v12, %v1753_v8  ;;  %v462_v56 = vld [vmem:[%s9995_s9 + $0x670] sm:$0xff] }
 0x25e   : > { %7877 = vst.msk [vmem:[%s11070_s25 + $0xb50] sm:$0xff] %vm7514_vm11, %v6766_v27  ;;  %v1498_v43 = vadd.f32 %v13170_v51, %v979_v37  ;;  %v1754_v23 = vadd.f32 %v13170_v51, %v1235_v52  ;;  %v5501_v1 = vadd.f32 %v13501_v41, %v12974_v22  ;;  %v980_v9 = vmul.f32 %v13150_v26, %v461_v47  ;;  %v718_v45 = vld [vmem:[%s9995_s9 + $0xe70] sm:$0xff]  ;;  %v13679_v22 = vpop.f32.mrf.mxu0  ;;  %v13689_v47 = vpop.f32.mrf.mxu1 }
 0x25f   : > { %v3035_v39 = vsel %vm2010_vm3, %v1497_v57, %v2523_v4  ;;  %v6781_v61 = vadd.f32 %v13501_v41, %v12984_v38  ;;  %v1236_v53 = vmul.f32 %v13150_v26, %v717_v21  ;;  %v3291_v27 = vsel %vm2266_vm4, %v1753_v8, %v2779_v5  ;;  %v15640_v4 = vld [vmem:[#allocation15_spill] sm:$0xff] }
 0x260   : > { %9428 = vmatmul.mubr.msk.f32.gmra.mxu0 %vm3352_vm0, %v3035_v39  ;;  %vm2011_vm5 = vcmp.ge.f32.partialorder %v1498_v43, 0.0  ;;  %v2524_v37 = vmul.f32 %v10011_v12, %v1498_v43  ;;  %vm2267_vm6 = vcmp.ge.f32.partialorder %v1754_v23, 0.0  ;;  %7624 = vst.msk [vmem:[%s11070_s25 + $0x368] sm:$0xff] %vm7514_vm11, %v5501_v1  ;;  %9812 = vmatmul.mubr.msk.f32.gmra.mxu1 %vm3352_vm0, %v3291_v27  ;;  %v2780_v38 = vmul.f32 %v10011_v12, %v1754_v23  ;;  %v719_v27 = vld [vmem:[%s9995_s9 + $0xe78] sm:$0xff] }
 0x261   : > { %v1499_v57 = vadd.f32 %v13170_v51, %v980_v9  ;;  %7880 = vst.msk [vmem:[%s11070_s25 + $0xb68] sm:$0xff] %vm7514_vm11, %v6781_v61  ;;  %v1755_v8 = vadd.f32 %v13170_v51, %v1236_v53  ;;  %v5496_v52 = vadd.f32 %v13501_v41, %v12992_v31  ;;  %v6776_v5 = vadd.f32 %v13501_v41, %v15640_v4  ;;  %v463_v9 = vld [vmem:[%s9995_s9 + $0x678] sm:$0xff]  ;;  %v13697_v61 = vpop.f32.mrf.mxu0 }
 0x262   : > { %v3036_v21 = vsel %vm2011_vm5, %v1498_v43, %v2524_v37  ;;  %v981_v1 = vmul.f32 %v13150_v26, %v462_v56  ;;  %v1237_v39 = vmul.f32 %v13150_v26, %v718_v45  ;;  %15641 = vst [vmem:[#allocation6_spill] sm:$0xff] %v13697_v61  ;;  %v3292_v53 = vsel %vm2267_vm6, %v1754_v23, %v2780_v38  ;;  %v13704_v43 = vpop.f32.mrf.mxu1  ;;  %v15643_v37 = vld [vmem:[#allocation7_spill] sm:$0xff] }
 0x263   : > { %9430 = vmatprep.mubr.msk.f32.mxu0 %vm3352_vm0, %v3036_v21  ;;  %vm2012_vm7 = vcmp.ge.f32.partialorder %v1499_v57, 0.0  ;;  %v2525_v31 = vmul.f32 %v10011_v12, %v1499_v57  ;;  %vm2268_vm8 = vcmp.ge.f32.partialorder %v1755_v8, 0.0  ;;  %7623 = vst.msk [vmem:[%s11070_s25 + $0x360] sm:$0xff] %vm7514_vm11, %v5496_v52  ;;  %15642 = vst [vmem:[#allocation15_spill] sm:$0xff] %v13704_v43  ;;  %9814 = vmatprep.mubr.msk.f32.mxu1 %vm3352_vm0, %v3292_v53  ;;  %v464_v43 = vld [vmem:[%s9995_s9 + $0x680] sm:$0xff] }
 0x264   : > { %v2781_v45 = vmul.f32 %v10011_v12, %v1755_v8  ;;  %7879 = vst.msk [vmem:[%s11070_s25 + $0xb60] sm:$0xff] %vm7514_vm11, %v6776_v5  ;;  %v1500_v56 = vadd.f32 %v13170_v51, %v981_v1  ;;  %v1756_v23 = vadd.f32 %v13170_v51, %v1237_v39  ;;  %v5511_v38 = vadd.f32 %v13501_v41, %v15643_v37  ;;  %v720_v61 = vld [vmem:[%s9995_s9 + $0xe80] sm:$0xff] }
 0x265   : > { %v3037_v21 = vsel %vm2012_vm7, %v1499_v57, %v2525_v31  ;;  %v982_v52 = vmul.f32 %v13150_v26, %v463_v9  ;;  %v6791_v4 = vadd.f32 %v13501_v41, %v13030_v17  ;;  %v1238_v53 = vmul.f32 %v13150_v26, %v719_v27  ;;  %v13725_v57 = vpop.f32.mrf.mxu0  ;;  %v13735_v27 = vpop.f32.mrf.mxu1 }
 0x266   : > { %9431 = vmatmul.mubr.msk.f32.gmra.mxu0 %vm3352_vm0, %v3037_v21  ;;  %v3293_v5 = vsel %vm2268_vm8, %v1755_v8, %v2781_v45  ;;  %vm2013_vm9 = vcmp.ge.f32.partialorder %v1500_v56, 0.0  ;;  %v2526_v1 = vmul.f32 %v10011_v12, %v1500_v56  ;;  %vm2269_vm10 = vcmp.ge.f32.partialorder %v1756_v23, 0.0  ;;  %7626 = vst.msk [vmem:[%s11070_s25 + $0x378] sm:$0xff] %vm7514_vm11, %v5511_v38  ;;  %v15644_v45 = vld [vmem:[#allocation8_spill] sm:$0xff] }
 0x267   : > { %9815 = vmatmul.mubr.msk.f32.gmra.mxu1 %vm3352_vm0, %v3293_v5  ;;  %v2782_v17 = vmul.f32 %v10011_v12, %v1756_v23  ;;  %v1501_v39 = vadd.f32 %v13170_v51, %v982_v52  ;;  %7882 = vst.msk [vmem:[%s11070_s25 + $0xb78] sm:$0xff] %vm7514_vm11, %v6791_v4  ;;  %v1757_v8 = vadd.f32 %v13170_v51, %v1238_v53  ;;  %v465_v52 = vld [vmem:[%s9995_s9 + $0x688] sm:$0xff]  ;;  %v13743_v4 = vpop.f32.mrf.mxu0 }
 0x268   : > { %v5506_v9 = vadd.f32 %v13501_v41, %v13038_v15  ;;  %v3038_v31 = vsel %vm2013_vm9, %v1500_v56, %v2526_v1  ;;  %v6786_v37 = vadd.f32 %v13501_v41, %v15644_v45  ;;  %v983_v38 = vmul.f32 %v13150_v26, %v464_v43  ;;  %v721_v5 = vld [vmem:[%s9995_s9 + $0xe88] sm:$0xff]  ;;  %v13750_v56 = vpop.f32.mrf.mxu1 }
 0x269   : > { %v1239_v21 = vmul.f32 %v13150_v26, %v720_v61  ;;  %9433 = vmatprep.mubr.msk.f32.mxu0 %vm3352_vm0, %v3038_v31  ;;  %v3294_v53 = vsel %vm2269_vm10, %v1756_v23, %v2782_v17  ;;  %vm2014_vm12 = vcmp.ge.f32.partialorder %v1501_v39, 0.0  ;;  %v2527_v15 = vmul.f32 %v10011_v12, %v1501_v39  ;;  %v13763_v17 = vld [vmem:[%s15546_s1] ss:$0 sm:$0xff] }
 0x26a   : > { %vm2270_vm13 = vcmp.ge.f32.partialorder %v1757_v8, 0.0  ;;  %7625 = vst.msk [vmem:[%s11070_s25 + $0x370] sm:$0xff] %vm7514_vm11, %v5506_v9  ;;  %9817 = vmatprep.mubr.msk.f32.mxu1 %vm3352_vm0, %v3294_v53  ;;  %v2783_v26 = vmul.f32 %v10011_v12, %v1757_v8  ;;  %7881 = vst.msk [vmem:[%s11070_s25 + $0xb70] sm:$0xff] %vm7514_vm11, %v6786_v37  ;;  %v1502_v61 = vadd.f32 %v13170_v51, %v983_v38  ;;  %v466_v37 = vld [vmem:[%s9995_s9 + $0x690] sm:$0xff]  ;;  %v13791_v53 = vpop.f32.mrf.mxu1 }
 0x26b   : > { %v1758_v43 = vadd.f32 %v13170_v51, %v1239_v21  ;;  %v5521_v23 = vadd.f32 %v13501_v41, %v13066_v10  ;;  %v3039_v1 = vsel %vm2014_vm12, %v1501_v39, %v2527_v15  ;;  %v984_v9 = vmul.f32 %v13763_v17, %v465_v52  ;;  %v722_v38 = vld [vmem:[%s9995_s9 + $0xe90] sm:$0xff]  ;;  %v13776_v39 = vpop.f32.mrf.mxu0  ;;  %v13783_v21 = vld [vmem:[%s15547_s2] ss:$0 sm:$0xff] }
 0x26c   : > { %v6801_v31 = vadd.f32 %v13501_v41, %v13076_v49  ;;  %v1240_v45 = vmul.f32 %v13763_v17, %v721_v5  ;;  %9434 = vmatmul.mubr.msk.f32.gmra.mxu0 %vm3352_vm0, %v3039_v1  ;;  %v3295_v10 = vsel %vm2270_vm13, %v1757_v8, %v2783_v26  ;;  %vm2015_vm14 = vcmp.ge.f32.partialorder %v1502_v61, 0.0  ;;  %15645 = vst [vmem:[#allocation7_spill] sm:$0xff] %v13776_v39  ;;  %v15646_v26 = vld [vmem:[#allocation16_spill] sm:$0xff]  ;;  %v723_v39 = vld [vmem:[%s9995_s9 + $0xe98] sm:$0xff] }
 0x26d   : > { %v2528_v51 = vmul.f32 %v10011_v12, %v1502_v61  ;;  %vm2271_vm15 = vcmp.ge.f32.partialorder %v1758_v43, 0.0  ;;  %7628 = vst.msk [vmem:[%s11070_s25 + $0x388] sm:$0xff] %vm7514_vm11, %v5521_v23  ;;  %9818 = vmatmul.mubr.msk.f32.gmra.mxu1 %vm3352_vm0, %v3295_v10  ;;  %v2784_v49 = vmul.f32 %v10011_v12, %v1758_v43  ;;  %v1503_v8 = vadd.f32 %v13783_v21, %v984_v9  ;;  %v467_v9 = vld [vmem:[%s9995_s9 + $0x698] sm:$0xff] }
 0x26e   : > { %7884 = vst.msk [vmem:[%s11070_s25 + $0xb88] sm:$0xff] %vm7514_vm11, %v6801_v31  ;;  %v1759_v52 = vadd.f32 %v13783_v21, %v1240_v45  ;;  %v5516_v5 = vadd.f32 %v13501_v41, %v13084_v58  ;;  %v6796_v23 = vadd.f32 %v13501_v41, %v15646_v26  ;;  %v985_v1 = vmul.f32 %v13763_v17, %v466_v37  ;;  %v13799_v31 = vpop.f32.mrf.mxu0 }
 0x26f   : > { %v3040_v15 = vsel %vm2015_vm14, %v1502_v61, %v2528_v51  ;;  %v1241_v10 = vmul.f32 %v13763_v17, %v722_v38  ;;  %v3296_v45 = vsel %vm2271_vm15, %v1758_v43, %v2784_v49  ;;  %vm2016_vm1 = vcmp.ge.f32.partialorder %v1503_v8, 0.0  ;;  %v13806_v61 = vpop.f32.mrf.mxu1 }
 0x270   : > { %9436 = vmatprep.mubr.msk.f32.mxu0 %vm3352_vm0, %v3040_v15  ;;  %v2529_v58 = vmul.f32 %v10011_v12, %v1503_v8  ;;  %vm2272_vm2 = vcmp.ge.f32.partialorder %v1759_v52, 0.0  ;;  %7627 = vst.msk [vmem:[%s11070_s25 + $0x380] sm:$0xff] %vm7514_vm11, %v5516_v5  ;;  %15647 = vst [vmem:[#allocation8_spill] sm:$0xff] %v13806_v61  ;;  %9820 = vmatprep.mubr.msk.f32.mxu1 %vm3352_vm0, %v3296_v45  ;;  %v2785_v37 = vmul.f32 %v10011_v12, %v1759_v52  ;;  %v468_v45 = vld [vmem:[%s9995_s9 + $0x6a0] sm:$0xff] }
 0x271   : > { %7883 = vst.msk [vmem:[%s11070_s25 + $0xb80] sm:$0xff] %vm7514_vm11, %v6796_v23  ;;  %v1504_v38 = vadd.f32 %v13783_v21, %v985_v1  ;;  %v1760_v43 = vadd.f32 %v13783_v21, %v1241_v10  ;;  %v5531_v51 = vadd.f32 %v13501_v41, %v13112_v3  ;;  %v986_v5 = vmul.f32 %v13763_v17, %v467_v9  ;;  %v724_v61 = vld [vmem:[%s9995_s9 + $0xea0] sm:$0xff]  ;;  %v13827_v3 = vpop.f32.mrf.mxu0  ;;  %v13837_v10 = vpop.f32.mrf.mxu1 }
 0x272   : > { %v3041_v49 = vsel %vm2016_vm1, %v1503_v8, %v2529_v58  ;;  %v6811_v15 = vadd.f32 %v13501_v41, %v13122_v36  ;;  %v1242_v26 = vmul.f32 %v13763_v17, %v723_v39  ;;  %v3297_v23 = vsel %vm2272_vm2, %v1759_v52, %v2785_v37  ;;  %v15648_v58 = vld [vmem:[#allocation17_spill] sm:$0xff] }
 0x273   : > { %9437 = vmatmul.mubr.msk.f32.gmra.mxu0 %vm3352_vm0, %v3041_v49  ;;  %vm2017_vm3 = vcmp.ge.f32.partialorder %v1504_v38, 0.0  ;;  %v2530_v1 = vmul.f32 %v10011_v12, %v1504_v38  ;;  %vm2273_vm4 = vcmp.ge.f32.partialorder %v1760_v43, 0.0  ;;  %7630 = vst.msk [vmem:[%s11070_s25 + $0x398] sm:$0xff] %vm7514_vm11, %v5531_v51  ;;  %9821 = vmatmul.mubr.msk.f32.gmra.mxu1 %vm3352_vm0, %v3297_v23  ;;  %v2786_v36 = vmul.f32 %v10011_v12, %v1760_v43  ;;  %v725_v23 = vld [vmem:[%s9995_s9 + $0xea8] sm:$0xff] }
 0x274   : > { %v1505_v39 = vadd.f32 %v13783_v21, %v986_v5  ;;  %7886 = vst.msk [vmem:[%s11070_s25 + $0xb98] sm:$0xff] %vm7514_vm11, %v6811_v15  ;;  %v1761_v8 = vadd.f32 %v13783_v21, %v1242_v26  ;;  %v5526_v52 = vadd.f32 %v13501_v41, %v13130_v0  ;;  %v6806_v37 = vadd.f32 %v13501_v41, %v15648_v58  ;;  %v469_v5 = vld [vmem:[%s9995_s9 + $0x6a8] sm:$0xff]  ;;  %v13845_v15 = vpop.f32.mrf.mxu0 }
 0x275   : > { %v3042_v9 = vsel %vm2017_vm3, %v1504_v38, %v2530_v1  ;;  %v987_v51 = vmul.f32 %v13763_v17, %v468_v45  ;;  %v1243_v49 = vmul.f32 %v13763_v17, %v724_v61  ;;  %15649 = vst [vmem:[#allocation16_spill] sm:$0xff] %v13845_v15  ;;  %v3298_v26 = vsel %vm2273_vm4, %v1760_v43, %v2786_v36  ;;  %v13852_v38 = vpop.f32.mrf.mxu1  ;;  %v15651_v1 = vld [vmem:[#allocation18_spill] sm:$0xff]  ;;  %v726_v15 = vld [vmem:[%s9995_s9 + $0xeb0] sm:$0xff] }
 0x276   : > { %9439 = vmatprep.mubr.msk.f32.mxu0 %vm3352_vm0, %v3042_v9  ;;  %vm2018_vm5 = vcmp.ge.f32.partialorder %v1505_v39, 0.0  ;;  %v2531_v0 = vmul.f32 %v10011_v12, %v1505_v39  ;;  %vm2274_vm6 = vcmp.ge.f32.partialorder %v1761_v8, 0.0  ;;  %7629 = vst.msk [vmem:[%s11070_s25 + $0x390] sm:$0xff] %vm7514_vm11, %v5526_v52  ;;  %15650 = vst [vmem:[#allocation17_spill] sm:$0xff] %v13852_v38  ;;  %9823 = vmatprep.mubr.msk.f32.mxu1 %vm3352_vm0, %v3298_v26  ;;  %v470_v38 = vld [vmem:[%s9995_s9 + $0x6b0] sm:$0xff] }
 0x277   : > { %v2787_v61 = vmul.f32 %v10011_v12, %v1761_v8  ;;  %7885 = vst.msk [vmem:[%s11070_s25 + $0xb90] sm:$0xff] %vm7514_vm11, %v6806_v37  ;;  %v1506_v45 = vadd.f32 %v13783_v21, %v987_v51  ;;  %v1762_v43 = vadd.f32 %v13783_v21, %v1243_v49  ;;  %v5541_v36 = vadd.f32 %v13501_v41, %v15651_v1 }
 0x278   : > { %v3043_v9 = vsel %vm2018_vm5, %v1505_v39, %v2531_v0  ;;  %v988_v52 = vmul.f32 %v13763_v17, %v469_v5  ;;  %v6821_v58 = vadd.f32 %v13501_v41, %v13178_v40  ;;  %v1244_v26 = vmul.f32 %v13763_v17, %v725_v23  ;;  %v13873_v39 = vpop.f32.mrf.mxu0  ;;  %v13883_v23 = vpop.f32.mrf.mxu1 }
 0x279   : > { %9440 = vmatmul.mubr.msk.f32.gmra.mxu0 %vm3352_vm0, %v3043_v9  ;;  %v3299_v37 = vsel %vm2274_vm6, %v1761_v8, %v2787_v61  ;;  %vm2019_vm7 = vcmp.ge.f32.partialorder %v1506_v45, 0.0  ;;  %v2532_v51 = vmul.f32 %v10011_v12, %v1506_v45  ;;  %vm2275_vm8 = vcmp.ge.f32.partialorder %v1762_v43, 0.0  ;;  %7632 = vst.msk [vmem:[%s11070_s25 + $0x3a8] sm:$0xff] %vm7514_vm11, %v5541_v36  ;;  %v15652_v61 = vld [vmem:[#allocation9_spill] sm:$0xff] }
 0x27a   : > { %9824 = vmatmul.mubr.msk.f32.gmra.mxu1 %vm3352_vm0, %v3299_v37  ;;  %v2788_v40 = vmul.f32 %v10011_v12, %v1762_v43  ;;  %v1507_v49 = vadd.f32 %v13783_v21, %v988_v52  ;;  %7888 = vst.msk [vmem:[%s11070_s25 + $0xba8] sm:$0xff] %vm7514_vm11, %v6821_v58  ;;  %v1763_v8 = vadd.f32 %v13783_v21, %v1244_v26  ;;  %v471_v52 = vld [vmem:[%s9995_s9 + $0x6b8] sm:$0xff]  ;;  %v13891_v58 = vpop.f32.mrf.mxu0 }
 0x27b   : > { %v5536_v5 = vadd.f32 %v13501_v41, %v13186_v62  ;;  %v3044_v0 = vsel %vm2019_vm7, %v1506_v45, %v2532_v51  ;;  %v6816_v1 = vadd.f32 %v13501_v41, %v15652_v61  ;;  %v989_v36 = vmul.f32 %v13763_v17, %v470_v38  ;;  %v727_v37 = vld [vmem:[%s9995_s9 + $0xeb8] sm:$0xff]  ;;  %v13898_v45 = vpop.f32.mrf.mxu1 }
 0x27c   : > { %v1245_v9 = vmul.f32 %v13763_v17, %v726_v15  ;;  %9442 = vmatprep.mubr.msk.f32.mxu0 %vm3352_vm0, %v3044_v0  ;;  %v3300_v26 = vsel %vm2275_vm8, %v1762_v43, %v2788_v40  ;;  %vm2020_vm9 = vcmp.ge.f32.partialorder %v1507_v49, 0.0  ;;  %v2533_v62 = vmul.f32 %v10011_v12, %v1507_v49  ;;  %15653 = vst [vmem:[#allocation18_spill] sm:$0xff] %v13898_v45  ;;  %v728_v45 = vld [vmem:[%s9995_s9 + $0xec0] sm:$0xff] }
 0x27d   : > { %vm2276_vm10 = vcmp.ge.f32.partialorder %v1763_v8, 0.0  ;;  %7631 = vst.msk [vmem:[%s11070_s25 + $0x3a0] sm:$0xff] %vm7514_vm11, %v5536_v5  ;;  %9826 = vmatprep.mubr.msk.f32.mxu1 %vm3352_vm0, %v3300_v26  ;;  %v2789_v15 = vmul.f32 %v10011_v12, %v1763_v8  ;;  %7887 = vst.msk [vmem:[%s11070_s25 + $0xba0] sm:$0xff] %vm7514_vm11, %v6816_v1  ;;  %v1508_v38 = vadd.f32 %v13783_v21, %v989_v36  ;;  %v472_v26 = vld [vmem:[%s9995_s9 + $0x6c0] sm:$0xff] }
 0x27e   : > { %v1764_v43 = vadd.f32 %v13783_v21, %v1245_v9  ;;  %v5551_v51 = vadd.f32 %v13501_v41, %v13214_v20  ;;  %v3045_v40 = vsel %vm2020_vm9, %v1507_v49, %v2533_v62  ;;  %v990_v5 = vmul.f32 %v13763_v17, %v471_v52  ;;  %v13919_v20 = vpop.f32.mrf.mxu0  ;;  %v13929_v52 = vpop.f32.mrf.mxu1  ;;  %v15654_v62 = vld [vmem:[#allocation19_spill] sm:$0xff] }
 0x27f   : > { %v6831_v0 = vadd.f32 %v13501_v41, %v13224_v50  ;;  %v1246_v61 = vmul.f32 %v13763_v17, %v727_v37  ;;  %9443 = vmatmul.mubr.msk.f32.gmra.mxu0 %vm3352_vm0, %v3045_v40  ;;  %v3301_v1 = vsel %vm2276_vm10, %v1763_v8, %v2789_v15  ;;  %vm2021_vm12 = vcmp.ge.f32.partialorder %v1508_v38, 0.0 }
 0x280   : > { %v2534_v36 = vmul.f32 %v10011_v12, %v1508_v38  ;;  %vm2277_vm13 = vcmp.ge.f32.partialorder %v1764_v43, 0.0  ;;  %7634 = vst.msk [vmem:[%s11070_s25 + $0x3b8] sm:$0xff] %vm7514_vm11, %v5551_v51  ;;  %9827 = vmatmul.mubr.msk.f32.gmra.mxu1 %vm3352_vm0, %v3301_v1  ;;  %v2790_v50 = vmul.f32 %v10011_v12, %v1764_v43  ;;  %v1509_v49 = vadd.f32 %v13783_v21, %v990_v5  ;;  %v473_v5 = vld [vmem:[%s9995_s9 + $0x6c8] sm:$0xff] }
 0x281   : > { %7890 = vst.msk [vmem:[%s11070_s25 + $0xbb8] sm:$0xff] %vm7514_vm11, %v6831_v0  ;;  %v1765_v8 = vadd.f32 %v13783_v21, %v1246_v61  ;;  %v5546_v9 = vadd.f32 %v13501_v41, %v13232_v59  ;;  %v6826_v15 = vadd.f32 %v13501_v41, %v15654_v62  ;;  %v991_v51 = vmul.f32 %v13763_v17, %v472_v26  ;;  %v729_v1 = vld [vmem:[%s9995_s9 + $0xec8] sm:$0xff]  ;;  %v13937_v0 = vpop.f32.mrf.mxu0 }
 0x282   : > { %v3046_v37 = vsel %vm2021_vm12, %v1508_v38, %v2534_v36  ;;  %v1247_v40 = vmul.f32 %v13763_v17, %v728_v45  ;;  %v3302_v61 = vsel %vm2277_vm13, %v1764_v43, %v2790_v50  ;;  %vm2022_vm14 = vcmp.ge.f32.partialorder %v1509_v49, 0.0  ;;  %v13944_v38 = vpop.f32.mrf.mxu1 }
 0x283   : > { %9445 = vmatprep.mubr.msk.f32.mxu0 %vm3352_vm0, %v3046_v37  ;;  %v2535_v59 = vmul.f32 %v10011_v12, %v1509_v49  ;;  %vm2278_vm15 = vcmp.ge.f32.partialorder %v1765_v8, 0.0  ;;  %7633 = vst.msk [vmem:[%s11070_s25 + $0x3b0] sm:$0xff] %vm7514_vm11, %v5546_v9  ;;  %15655 = vst [vmem:[#allocation9_spill] sm:$0xff] %v13944_v38  ;;  %9829 = vmatprep.mubr.msk.f32.mxu1 %vm3352_vm0, %v3302_v61  ;;  %v2791_v45 = vmul.f32 %v10011_v12, %v1765_v8  ;;  %v474_v61 = vld [vmem:[%s9995_s9 + $0x6d0] sm:$0xff] }
 0x284   : > { %7889 = vst.msk [vmem:[%s11070_s25 + $0xbb0] sm:$0xff] %vm7514_vm11, %v6826_v15  ;;  %v1510_v26 = vadd.f32 %v13783_v21, %v991_v51  ;;  %v1766_v43 = vadd.f32 %v13783_v21, %v1247_v40  ;;  %v5561_v36 = vadd.f32 %v13501_v41, %v13260_v28  ;;  %v992_v9 = vmul.f32 %v13763_v17, %v473_v5  ;;  %v730_v38 = vld [vmem:[%s9995_s9 + $0xed0] sm:$0xff]  ;;  %v13965_v28 = vpop.f32.mrf.mxu0  ;;  %v13975_v5 = vpop.f32.mrf.mxu1 }
 0x285   : > { %v3047_v50 = vsel %vm2022_vm14, %v1509_v49, %v2535_v59  ;;  %v6841_v37 = vadd.f32 %v13501_v41, %v13270_v32  ;;  %v1248_v62 = vmul.f32 %v13763_v17, %v729_v1  ;;  %v3303_v15 = vsel %vm2278_vm15, %v1765_v8, %v2791_v45  ;;  %v15656_v59 = vld [vmem:[#allocation10_spill] sm:$0xff] }
 0x286   : > { %9446 = vmatmul.mubr.msk.f32.gmra.mxu0 %vm3352_vm0, %v3047_v50  ;;  %vm2023_vm1 = vcmp.ge.f32.partialorder %v1510_v26, 0.0  ;;  %v2536_v51 = vmul.f32 %v10011_v12, %v1510_v26  ;;  %vm2279_vm2 = vcmp.ge.f32.partialorder %v1766_v43, 0.0  ;;  %7636 = vst.msk [vmem:[%s11070_s25 + $0x3c8] sm:$0xff] %vm7514_vm11, %v5561_v36  ;;  %9830 = vmatmul.mubr.msk.f32.gmra.mxu1 %vm3352_vm0, %v3303_v15  ;;  %v2792_v32 = vmul.f32 %v10011_v12, %v1766_v43  ;;  %v731_v15 = vld [vmem:[%s9995_s9 + $0xed8] sm:$0xff] }
 0x287   : > { %v1511_v49 = vadd.f32 %v13783_v21, %v992_v9  ;;  %7892 = vst.msk [vmem:[%s11070_s25 + $0xbc8] sm:$0xff] %vm7514_vm11, %v6841_v37  ;;  %v1767_v8 = vadd.f32 %v13783_v21, %v1248_v62  ;;  %v5556_v40 = vadd.f32 %v13501_v41, %v13278_v11  ;;  %v6836_v45 = vadd.f32 %v13501_v41, %v15656_v59  ;;  %v475_v9 = vld [vmem:[%s9995_s9 + $0x6d8] sm:$0xff]  ;;  %v13983_v37 = vpop.f32.mrf.mxu0 }
 0x288   : > { %v3048_v1 = vsel %vm2023_vm1, %v1510_v26, %v2536_v51  ;;  %v993_v36 = vmul.f32 %v13763_v17, %v474_v61  ;;  %v1249_v50 = vmul.f32 %v13763_v17, %v730_v38  ;;  %v3304_v62 = vsel %vm2279_vm2, %v1766_v43, %v2792_v32  ;;  %v13990_v26 = vpop.f32.mrf.mxu1 }
 0x289   : > { %9448 = vmatprep.mubr.msk.f32.mxu0 %vm3352_vm0, %v3048_v1  ;;  %vm2024_vm3 = vcmp.ge.f32.partialorder %v1511_v49, 0.0  ;;  %v2537_v11 = vmul.f32 %v10011_v12, %v1511_v49  ;;  %vm2280_vm4 = vcmp.ge.f32.partialorder %v1767_v8, 0.0  ;;  %7635 = vst.msk [vmem:[%s11070_s25 + $0x3c0] sm:$0xff] %vm7514_vm11, %v5556_v40  ;;  %15657 = vst [vmem:[#allocation19_spill] sm:$0xff] %v13990_v26  ;;  %9832 = vmatprep.mubr.msk.f32.mxu1 %vm3352_vm0, %v3304_v62  ;;  %v476_v62 = vld [vmem:[%s9995_s9 + $0x6e0] sm:$0xff] }
 0x28a   : > { %v2793_v38 = vmul.f32 %v10011_v12, %v1767_v8  ;;  %7891 = vst.msk [vmem:[%s11070_s25 + $0xbc0] sm:$0xff] %vm7514_vm11, %v6836_v45  ;;  %v1512_v61 = vadd.f32 %v13783_v21, %v993_v36  ;;  %v1768_v43 = vadd.f32 %v13783_v21, %v1249_v50  ;;  %v5571_v51 = vadd.f32 %v13501_v41, %v13306_v7  ;;  %v732_v26 = vld [vmem:[%s9995_s9 + $0xee0] sm:$0xff]  ;;  %v14011_v7 = vpop.f32.mrf.mxu0 }
 0x28b   : > { %v3049_v32 = vsel %vm2024_vm3, %v1511_v49, %v2537_v11  ;;  %v994_v40 = vmul.f32 %v13763_v17, %v475_v9  ;;  %v6851_v1 = vadd.f32 %v13501_v41, %v13316_v19  ;;  %v1250_v59 = vmul.f32 %v13763_v17, %v731_v15  ;;  %v14021_v9 = vpop.f32.mrf.mxu1  ;;  %v15658_v11 = vld [vmem:[#allocation11_spill] sm:$0xff] }
 0x28c   : > { %9449 = vmatmul.mubr.msk.f32.gmra.mxu0 %vm3352_vm0, %v3049_v32  ;;  %v3305_v45 = vsel %vm2280_vm4, %v1767_v8, %v2793_v38  ;;  %vm2025_vm5 = vcmp.ge.f32.partialorder %v1512_v61, 0.0  ;;  %v2538_v36 = vmul.f32 %v10011_v12, %v1512_v61  ;;  %vm2281_vm6 = vcmp.ge.f32.partialorder %v1768_v43, 0.0  ;;  %7638 = vst.msk [vmem:[%s11070_s25 + $0x3d8] sm:$0xff] %vm7514_vm11, %v5571_v51 }
 0x28d   : > { %9833 = vmatmul.mubr.msk.f32.gmra.mxu1 %vm3352_vm0, %v3305_v45  ;;  %v2794_v19 = vmul.f32 %v10011_v12, %v1768_v43  ;;  %v1513_v49 = vadd.f32 %v13783_v21, %v994_v40  ;;  %7894 = vst.msk [vmem:[%s11070_s25 + $0xbd8] sm:$0xff] %vm7514_vm11, %v6851_v1  ;;  %v1769_v8 = vadd.f32 %v13783_v21, %v1250_v59  ;;  %v477_v40 = vld [vmem:[%s9995_s9 + $0x6e8] sm:$0xff]  ;;  %v14029_v1 = vpop.f32.mrf.mxu0 }
 0x28e   : > { %v5566_v50 = vadd.f32 %v13501_v41, %v13324_v2  ;;  %v3050_v15 = vsel %vm2025_vm5, %v1512_v61, %v2538_v36  ;;  %v6846_v38 = vadd.f32 %v13501_v41, %v15658_v11  ;;  %v995_v51 = vmul.f32 %v13763_v17, %v476_v62  ;;  %v733_v45 = vld [vmem:[%s9995_s9 + $0xee8] sm:$0xff]  ;;  %15659 = vst [vmem:[#allocation10_spill] sm:$0xff] %v14029_v1  ;;  %v14036_v61 = vpop.f32.mrf.mxu1  ;;  %v15661_v36 = vld [vmem:[#allocation3_spill] sm:$0xff]  ;;  %v734_v1 = vld [vmem:[%s9995_s9 + $0xef0] sm:$0xff] }
 0x28f   : > { %v1251_v32 = vmul.f32 %v13763_v17, %v732_v26  ;;  %9451 = vmatprep.mubr.msk.f32.mxu0 %vm3352_vm0, %v3050_v15  ;;  %v3306_v59 = vsel %vm2281_vm6, %v1768_v43, %v2794_v19  ;;  %vm2026_vm7 = vcmp.ge.f32.partialorder %v1513_v49, 0.0  ;;  %v2539_v2 = vmul.f32 %v10011_v12, %v1513_v49  ;;  %15660 = vst [vmem:[#allocation11_spill] sm:$0xff] %v14036_v61  ;;  %v478_v61 = vld [vmem:[%s9995_s9 + $0x6f0] sm:$0xff] }
 0x290   : > { %vm2282_vm8 = vcmp.ge.f32.partialorder %v1769_v8, 0.0  ;;  %7637 = vst.msk [vmem:[%s11070_s25 + $0x3d0] sm:$0xff] %vm7514_vm11, %v5566_v50  ;;  %9835 = vmatprep.mubr.msk.f32.mxu1 %vm3352_vm0, %v3306_v59  ;;  %v2795_v26 = vmul.f32 %v10011_v12, %v1769_v8  ;;  %7893 = vst.msk [vmem:[%s11070_s25 + $0xbd0] sm:$0xff] %vm7514_vm11, %v6846_v38  ;;  %v1514_v62 = vadd.f32 %v13783_v21, %v995_v51 }
 0x291   : > { %v1770_v43 = vadd.f32 %v13783_v21, %v1251_v32  ;;  %v5581_v19 = vadd.f32 %v13501_v41, %v15661_v36  ;;  %v3051_v15 = vsel %vm2026_vm7, %v1513_v49, %v2539_v2  ;;  %v996_v50 = vmul.f32 %v13763_v17, %v477_v40  ;;  %v14057_v49 = vpop.f32.mrf.mxu0 }
 0x292   : > { %v6861_v11 = vadd.f32 %v13501_v41, %v13362_v13  ;;  %v1252_v59 = vmul.f32 %v13763_v17, %v733_v45  ;;  %9452 = vmatmul.mubr.msk.f32.gmra.mxu0 %vm3352_vm0, %v3051_v15  ;;  %v3307_v38 = vsel %vm2282_vm8, %v1769_v8, %v2795_v26  ;;  %vm2027_vm9 = vcmp.ge.f32.partialorder %v1514_v62, 0.0  ;;  %v14067_v45 = vpop.f32.mrf.mxu1  ;;  %v15662_v26 = vld [vmem:[#allocation4_spill] sm:$0xff] }
 0x293   : > { %v2540_v51 = vmul.f32 %v10011_v12, %v1514_v62  ;;  %vm2283_vm10 = vcmp.ge.f32.partialorder %v1770_v43, 0.0  ;;  %7640 = vst.msk [vmem:[%s11070_s25 + $0x3e8] sm:$0xff] %vm7514_vm11, %v5581_v19  ;;  %9836 = vmatmul.mubr.msk.f32.gmra.mxu1 %vm3352_vm0, %v3307_v38  ;;  %v2796_v13 = vmul.f32 %v10011_v12, %v1770_v43  ;;  %v1515_v32 = vadd.f32 %v13783_v21, %v996_v50  ;;  %v479_v50 = vld [vmem:[%s9995_s9 + $0x6f8] sm:$0xff] }
 0x294   : > { %7896 = vst.msk [vmem:[%s11070_s25 + $0xbe8] sm:$0xff] %vm7514_vm11, %v6861_v11  ;;  %v1771_v8 = vadd.f32 %v13783_v21, %v1252_v59  ;;  %v5576_v40 = vadd.f32 %v13501_v41, %v13370_v16  ;;  %v6856_v36 = vadd.f32 %v13501_v41, %v15662_v26  ;;  %v997_v19 = vmul.f32 %v13763_v17, %v478_v61  ;;  %v735_v38 = vld [vmem:[%s9995_s9 + $0xef8] sm:$0xff]  ;;  %v14075_v11 = vpop.f32.mrf.mxu0 }
 0x295   : > { %v3052_v2 = vsel %vm2027_vm9, %v1514_v62, %v2540_v51  ;;  %v1253_v15 = vmul.f32 %v13763_v17, %v734_v1  ;;  %15663 = vst [vmem:[#allocation3_spill] sm:$0xff] %v14075_v11  ;;  %v3308_v59 = vsel %vm2283_vm10, %v1770_v43, %v2796_v13  ;;  %vm2028_vm12 = vcmp.ge.f32.partialorder %v1515_v32, 0.0  ;;  %v14082_v62 = vpop.f32.mrf.mxu1  ;;  %v15665_v51 = vld [vmem:[#allocation20_spill] sm:$0xff]  ;;  %v736_v11 = vld [vmem:[%s9995_s9 + $0xf00] sm:$0xff] }
 0x296   : > { %9454 = vmatprep.mubr.msk.f32.mxu0 %vm3352_vm0, %v3052_v2  ;;  %v2541_v16 = vmul.f32 %v10011_v12, %v1515_v32  ;;  %vm2284_vm13 = vcmp.ge.f32.partialorder %v1771_v8, 0.0  ;;  %7639 = vst.msk [vmem:[%s11070_s25 + $0x3e0] sm:$0xff] %vm7514_vm11, %v5576_v40  ;;  %15664 = vst [vmem:[#allocation4_spill] sm:$0xff] %v14082_v62  ;;  %9838 = vmatprep.mubr.msk.f32.mxu1 %vm3352_vm0, %v3308_v59  ;;  %v2797_v1 = vmul.f32 %v10011_v12, %v1771_v8  ;;  %v480_v62 = vld [vmem:[%s9995_s9 + $0x700] sm:$0xff] }
 0x297   : > { %7895 = vst.msk [vmem:[%s11070_s25 + $0xbe0] sm:$0xff] %vm7514_vm11, %v6856_v36  ;;  %v1516_v61 = vadd.f32 %v13783_v21, %v997_v19  ;;  %v1772_v43 = vadd.f32 %v13783_v21, %v1253_v15  ;;  %v5591_v13 = vadd.f32 %v13501_v41, %v15665_v51  ;;  %v998_v40 = vmul.f32 %v13763_v17, %v479_v50  ;;  %v14114_v15 = vld [vmem:[%s15550_s5] ss:$0 sm:$0xff] }
 0x298   : > { %v3053_v2 = vsel %vm2028_vm12, %v1515_v32, %v2541_v16  ;;  %v6871_v26 = vadd.f32 %v13501_v41, %v13408_v34  ;;  %v1254_v59 = vmul.f32 %v13763_v17, %v735_v38  ;;  %v3309_v36 = vsel %vm2284_vm13, %v1771_v8, %v2797_v1  ;;  %v14103_v32 = vpop.f32.mrf.mxu0  ;;  %v14118_v38 = vpop.f32.mrf.mxu1  ;;  %v15666_v1 = vld [vmem:[#allocation21_spill] sm:$0xff] }
 0x299   : > { %9455 = vmatmul.mubr.msk.f32.gmra.mxu0 %vm3352_vm0, %v3053_v2  ;;  %vm2029_vm14 = vcmp.ge.f32.partialorder %v1516_v61, 0.0  ;;  %v2542_v19 = vmul.f32 %v10011_v12, %v1516_v61  ;;  %vm2285_vm15 = vcmp.ge.f32.partialorder %v1772_v43, 0.0  ;;  %7642 = vst.msk [vmem:[%s11070_s25 + $0x3f8] sm:$0xff] %vm7514_vm11, %v5591_v13  ;;  %9839 = vmatmul.mubr.msk.f32.gmra.mxu1 %vm3352_vm0, %v3309_v36  ;;  %v2798_v34 = vmul.f32 %v10011_v12, %v1772_v43 }
 0x29a   : > { %v1517_v41 = vadd.f32 %v13783_v21, %v998_v40  ;;  %7898 = vst.msk [vmem:[%s11070_s25 + $0xbf8] sm:$0xff] %vm7514_vm11, %v6871_v26  ;;  %v1773_v8 = vadd.f32 %v13783_v21, %v1254_v59  ;;  %v5586_v50 = vadd.f32 %v14114_v15, %v13416_v6  ;;  %v6866_v51 = vadd.f32 %v14114_v15, %v15666_v1  ;;  %v481_v40 = vld [vmem:[%s9995_s9 + $0x708] sm:$0xff]  ;;  %v14126_v59 = vpop.f32.mrf.mxu0 }
 0x29b   : > { %v3054_v16 = vsel %vm2029_vm14, %v1516_v61, %v2542_v19  ;;  %v999_v13 = vmul.f32 %v13763_v17, %v480_v62  ;;  %v1255_v2 = vmul.f32 %v13763_v17, %v736_v11  ;;  %v737_v26 = vld [vmem:[%s9995_s9 + $0xf08] sm:$0xff]  ;;  %v3310_v36 = vsel %vm2285_vm15, %v1772_v43, %v2798_v34  ;;  %v14133_v61 = vpop.f32.mrf.mxu1 }
 0x29c   : > { %9457 = vmatprep.mubr.msk.f32.mxu0 %vm3352_vm0, %v3054_v16  ;;  %vm2030_vm1 = vcmp.ge.f32.partialorder %v1517_v41, 0.0  ;;  %v2543_v6 = vmul.f32 %v10011_v12, %v1517_v41  ;;  %vm2286_vm2 = vcmp.ge.f32.partialorder %v1773_v8, 0.0  ;;  %7641 = vst.msk [vmem:[%s11070_s25 + $0x3f0] sm:$0xff] %vm7514_vm11, %v5586_v50  ;;  %15667 = vst [vmem:[#allocation20_spill] sm:$0xff] %v14133_v61  ;;  %9841 = vmatprep.mubr.msk.f32.mxu1 %vm3352_vm0, %v3310_v36  ;;  %v482_v36 = vld [vmem:[%s9995_s9 + $0x710] sm:$0xff] }
 0x29d   : > { %v2799_v11 = vmul.f32 %v10011_v12, %v1773_v8  ;;  %7897 = vst.msk [vmem:[%s11070_s25 + $0xbf0] sm:$0xff] %vm7514_vm11, %v6866_v51  ;;  %v1518_v62 = vadd.f32 %v13783_v21, %v999_v13  ;;  %v1774_v43 = vadd.f32 %v13783_v21, %v1255_v2  ;;  %v5601_v19 = vadd.f32 %v14114_v15, %v13444_v55  ;;  %v738_v61 = vld [vmem:[%s9995_s9 + $0xf10] sm:$0xff]  ;;  %v14154_v55 = vpop.f32.mrf.mxu0 }
 0x29e   : > { %v3055_v34 = vsel %vm2030_vm1, %v1517_v41, %v2543_v6  ;;  %v1000_v50 = vmul.f32 %v13763_v17, %v481_v40  ;;  %v6881_v16 = vadd.f32 %v14114_v15, %v13454_v46  ;;  %v1256_v1 = vmul.f32 %v13763_v17, %v737_v26  ;;  %v14164_v40 = vpop.f32.mrf.mxu1  ;;  %v15668_v6 = vld [vmem:[#allocation12_spill] sm:$0xff] }
 0x29f   : > { %9458 = vmatmul.mubr.msk.f32.gmra.mxu0 %vm3352_vm0, %v3055_v34  ;;  %v3311_v51 = vsel %vm2286_vm2, %v1773_v8, %v2799_v11  ;;  %vm2031_vm3 = vcmp.ge.f32.partialorder %v1518_v62, 0.0  ;;  %v2544_v13 = vmul.f32 %v10011_v12, %v1518_v62  ;;  %vm2287_vm4 = vcmp.ge.f32.partialorder %v1774_v43, 0.0  ;;  %7644 = vst.msk [vmem:[%s11070_s25 + $0x408] sm:$0xff] %vm7514_vm11, %v5601_v19 }
 0x2a0   : > { %9842 = vmatmul.mubr.msk.f32.gmra.mxu1 %vm3352_vm0, %v3311_v51  ;;  %v2800_v46 = vmul.f32 %v10011_v12, %v1774_v43  ;;  %v1519_v41 = vadd.f32 %v13783_v21, %v1000_v50  ;;  %7900 = vst.msk [vmem:[%s11070_s25 + $0xc08] sm:$0xff] %vm7514_vm11, %v6881_v16  ;;  %v1775_v8 = vadd.f32 %v13783_v21, %v1256_v1  ;;  %v483_v50 = vld [vmem:[%s9995_s9 + $0x718] sm:$0xff]  ;;  %v14172_v16 = vpop.f32.mrf.mxu0 }
 0x2a1   : > { %v5596_v2 = vadd.f32 %v14114_v15, %v13462_v30  ;;  %v3056_v26 = vsel %vm2031_vm3, %v1518_v62, %v2544_v13  ;;  %v6876_v11 = vadd.f32 %v14114_v15, %v15668_v6  ;;  %v1001_v19 = vmul.f32 %v13763_v17, %v482_v36  ;;  %v739_v51 = vld [vmem:[%s9995_s9 + $0xf18] sm:$0xff]  ;;  %v14179_v62 = vpop.f32.mrf.mxu1 }
 0x2a2   : > { %v1257_v34 = vmul.f32 %v13763_v17, %v738_v61  ;;  %9460 = vmatprep.mubr.msk.f32.mxu0 %vm3352_vm0, %v3056_v26  ;;  %v3312_v1 = vsel %vm2287_vm4, %v1774_v43, %v2800_v46  ;;  %vm2032_vm5 = vcmp.ge.f32.partialorder %v1519_v41, 0.0  ;;  %v2545_v30 = vmul.f32 %v10011_v12, %v1519_v41  ;;  %15669 = vst [vmem:[#allocation21_spill] sm:$0xff] %v14179_v62  ;;  %v740_v62 = vld [vmem:[%s9995_s9 + $0xf20] sm:$0xff] }
 0x2a3   : > { %vm2288_vm6 = vcmp.ge.f32.partialorder %v1775_v8, 0.0  ;;  %7643 = vst.msk [vmem:[%s11070_s25 + $0x400] sm:$0xff] %vm7514_vm11, %v5596_v2  ;;  %9844 = vmatprep.mubr.msk.f32.mxu1 %vm3352_vm0, %v3312_v1  ;;  %v2801_v61 = vmul.f32 %v10011_v12, %v1775_v8  ;;  %7899 = vst.msk [vmem:[%s11070_s25 + $0xc00] sm:$0xff] %vm7514_vm11, %v6876_v11  ;;  %v1520_v36 = vadd.f32 %v13783_v21, %v1001_v19  ;;  %v484_v1 = vld [vmem:[%s9995_s9 + $0x720] sm:$0xff] }
 0x2a4   : > { %v1776_v43 = vadd.f32 %v13783_v21, %v1257_v34  ;;  %v5611_v13 = vadd.f32 %v14114_v15, %v13490_v48  ;;  %v3057_v46 = vsel %vm2032_vm5, %v1519_v41, %v2545_v30  ;;  %v1002_v2 = vmul.f32 %v13763_v17, %v483_v50  ;;  %v14200_v48 = vpop.f32.mrf.mxu0  ;;  %v14210_v50 = vpop.f32.mrf.mxu1  ;;  %v15670_v30 = vld [vmem:[#allocation13_spill] sm:$0xff] }
 0x2a5   : > { %v6891_v26 = vadd.f32 %v14114_v15, %v13505_v25  ;;  %v1258_v6 = vmul.f32 %v13763_v17, %v739_v51  ;;  %9461 = vmatmul.mubr.msk.f32.gmra.mxu0 %vm3352_vm0, %v3057_v46  ;;  %v3313_v11 = vsel %vm2288_vm6, %v1775_v8, %v2801_v61  ;;  %vm2033_vm7 = vcmp.ge.f32.partialorder %v1520_v36, 0.0 }
 0x2a6   : > { %v2546_v19 = vmul.f32 %v10011_v12, %v1520_v36  ;;  %vm2289_vm8 = vcmp.ge.f32.partialorder %v1776_v43, 0.0  ;;  %7646 = vst.msk [vmem:[%s11070_s25 + $0x418] sm:$0xff] %vm7514_vm11, %v5611_v13  ;;  %9845 = vmatmul.mubr.msk.f32.gmra.mxu1 %vm3352_vm0, %v3313_v11  ;;  %v2802_v25 = vmul.f32 %v10011_v12, %v1776_v43  ;;  %v1521_v41 = vadd.f32 %v13783_v21, %v1002_v2  ;;  %v485_v2 = vld [vmem:[%s9995_s9 + $0x728] sm:$0xff] }
 0x2a7   : > { %7902 = vst.msk [vmem:[%s11070_s25 + $0xc18] sm:$0xff] %vm7514_vm11, %v6891_v26  ;;  %v1777_v8 = vadd.f32 %v13783_v21, %v1258_v6  ;;  %v5606_v34 = vadd.f32 %v14114_v15, %v13513_v63  ;;  %v6886_v61 = vadd.f32 %v14114_v15, %v15670_v30  ;;  %v1003_v13 = vmul.f32 %v13763_v17, %v484_v1  ;;  %v741_v11 = vld [vmem:[%s9995_s9 + $0xf28] sm:$0xff]  ;;  %v14218_v26 = vpop.f32.mrf.mxu0 }
 0x2a8   : > { %v3058_v51 = vsel %vm2033_vm7, %v1520_v36, %v2546_v19  ;;  %v1259_v46 = vmul.f32 %v13763_v17, %v740_v62  ;;  %v3314_v6 = vsel %vm2289_vm8, %v1776_v43, %v2802_v25  ;;  %vm2034_vm9 = vcmp.ge.f32.partialorder %v1521_v41, 0.0  ;;  %v14225_v36 = vpop.f32.mrf.mxu1 }
 0x2a9   : > { %9463 = vmatprep.mubr.msk.f32.mxu0 %vm3352_vm0, %v3058_v51  ;;  %v2547_v63 = vmul.f32 %v10011_v12, %v1521_v41  ;;  %vm2290_vm10 = vcmp.ge.f32.partialorder %v1777_v8, 0.0  ;;  %7645 = vst.msk [vmem:[%s11070_s25 + $0x410] sm:$0xff] %vm7514_vm11, %v5606_v34  ;;  %15671 = vst [vmem:[#allocation12_spill] sm:$0xff] %v14225_v36  ;;  %9847 = vmatprep.mubr.msk.f32.mxu1 %vm3352_vm0, %v3314_v6  ;;  %v2803_v62 = vmul.f32 %v10011_v12, %v1777_v8  ;;  %v486_v6 = vld [vmem:[%s9995_s9 + $0x730] sm:$0xff] }
 0x2aa   : > { %7901 = vst.msk [vmem:[%s11070_s25 + $0xc10] sm:$0xff] %vm7514_vm11, %v6886_v61  ;;  %v1522_v1 = vadd.f32 %v13783_v21, %v1003_v13  ;;  %v1778_v43 = vadd.f32 %v13783_v21, %v1259_v46  ;;  %v5621_v19 = vadd.f32 %v14114_v15, %v13541_v18  ;;  %v1004_v34 = vmul.f32 %v13763_v17, %v485_v2  ;;  %v742_v36 = vld [vmem:[%s9995_s9 + $0xf30] sm:$0xff]  ;;  %v14246_v18 = vpop.f32.mrf.mxu0  ;;  %v14256_v2 = vpop.f32.mrf.mxu1 }
 0x2ab   : > { %v3059_v25 = vsel %vm2034_vm9, %v1521_v41, %v2547_v63  ;;  %v6901_v51 = vadd.f32 %v14114_v15, %v13551_v42  ;;  %v1260_v30 = vmul.f32 %v13763_v17, %v741_v11  ;;  %v3315_v61 = vsel %vm2290_vm10, %v1777_v8, %v2803_v62  ;;  %v15672_v63 = vld [vmem:[#allocation5_spill] sm:$0xff] }
 0x2ac   : > { %9464 = vmatmul.mubr.msk.f32.gmra.mxu0 %vm3352_vm0, %v3059_v25  ;;  %vm2035_vm12 = vcmp.ge.f32.partialorder %v1522_v1, 0.0  ;;  %v2548_v13 = vmul.f32 %v10011_v12, %v1522_v1  ;;  %vm2291_vm13 = vcmp.ge.f32.partialorder %v1778_v43, 0.0  ;;  %7648 = vst.msk [vmem:[%s11070_s25 + $0x428] sm:$0xff] %vm7514_vm11, %v5621_v19  ;;  %9848 = vmatmul.mubr.msk.f32.gmra.mxu1 %vm3352_vm0, %v3315_v61  ;;  %v2804_v42 = vmul.f32 %v10011_v12, %v1778_v43  ;;  %v743_v61 = vld [vmem:[%s9995_s9 + $0xf38] sm:$0xff] }
 0x2ad   : > { %v1523_v41 = vadd.f32 %v13783_v21, %v1004_v34  ;;  %7904 = vst.msk [vmem:[%s11070_s25 + $0xc28] sm:$0xff] %vm7514_vm11, %v6901_v51  ;;  %v1779_v8 = vadd.f32 %v13783_v21, %v1260_v30  ;;  %v5616_v46 = vadd.f32 %v14114_v15, %v13559_v54  ;;  %v6896_v62 = vadd.f32 %v14114_v15, %v15672_v63  ;;  %v487_v34 = vld [vmem:[%s9995_s9 + $0x738] sm:$0xff]  ;;  %v14264_v51 = vpop.f32.mrf.mxu0 }
 0x2ae   : > { %v3060_v11 = vsel %vm2035_vm12, %v1522_v1, %v2548_v13  ;;  %v1005_v19 = vmul.f32 %v13763_v17, %v486_v6  ;;  %v1261_v25 = vmul.f32 %v13763_v17, %v742_v36  ;;  %v3316_v30 = vsel %vm2291_vm13, %v1778_v43, %v2804_v42  ;;  %v14271_v1 = vpop.f32.mrf.mxu1 }
 0x2af   : > { %9466 = vmatprep.mubr.msk.f32.mxu0 %vm3352_vm0, %v3060_v11  ;;  %vm2036_vm14 = vcmp.ge.f32.partialorder %v1523_v41, 0.0  ;;  %v2549_v54 = vmul.f32 %v10011_v12, %v1523_v41  ;;  %vm2292_vm15 = vcmp.ge.f32.partialorder %v1779_v8, 0.0  ;;  %7647 = vst.msk [vmem:[%s11070_s25 + $0x420] sm:$0xff] %vm7514_vm11, %v5616_v46  ;;  %15673 = vst [vmem:[#allocation13_spill] sm:$0xff] %v14271_v1  ;;  %9850 = vmatprep.mubr.msk.f32.mxu1 %vm3352_vm0, %v3316_v30  ;;  %v488_v30 = vld [vmem:[%s9995_s9 + $0x740] sm:$0xff] }
 0x2b0   : > { %v2805_v36 = vmul.f32 %v10011_v12, %v1779_v8  ;;  %7903 = vst.msk [vmem:[%s11070_s25 + $0xc20] sm:$0xff] %vm7514_vm11, %v6896_v62  ;;  %v1524_v6 = vadd.f32 %v13783_v21, %v1005_v19  ;;  %v1780_v43 = vadd.f32 %v13783_v21, %v1261_v25  ;;  %v5631_v13 = vadd.f32 %v14114_v15, %v13587_v60  ;;  %v744_v1 = vld [vmem:[%s9995_s9 + $0xf40] sm:$0xff]  ;;  %v14292_v60 = vpop.f32.mrf.mxu0 }
 0x2b1   : > { %v3061_v42 = vsel %vm2036_vm14, %v1523_v41, %v2549_v54  ;;  %v1006_v46 = vmul.f32 %v13763_v17, %v487_v34  ;;  %v6911_v11 = vadd.f32 %v14114_v15, %v13597_v14  ;;  %v1262_v63 = vmul.f32 %v13763_v17, %v743_v61  ;;  %v14302_v34 = vpop.f32.mrf.mxu1 }
 0x2b2   : > { %9467 = vmatmul.mubr.msk.f32.gmra.mxu0 %vm3352_vm0, %v3061_v42  ;;  %v3317_v62 = vsel %vm2292_vm15, %v1779_v8, %v2805_v36  ;;  %vm2037_vm1 = vcmp.ge.f32.partialorder %v1524_v6, 0.0  ;;  %v2550_v19 = vmul.f32 %v10011_v12, %v1524_v6  ;;  %vm2293_vm2 = vcmp.ge.f32.partialorder %v1780_v43, 0.0  ;;  %7650 = vst.msk [vmem:[%s11070_s25 + $0x438] sm:$0xff] %vm7514_vm11, %v5631_v13  ;;  %v489_v42 = vld [vmem:[%s9995_s9 + $0x748] sm:$0xff] }
 0x2b3   : > { %9851 = vmatmul.mubr.msk.f32.gmra.mxu1 %vm3352_vm0, %v3317_v62  ;;  %v2806_v14 = vmul.f32 %v10011_v12, %v1780_v43  ;;  %v1525_v41 = vadd.f32 %v13783_v21, %v1006_v46  ;;  %7906 = vst.msk [vmem:[%s11070_s25 + $0xc38] sm:$0xff] %vm7514_vm11, %v6911_v11  ;;  %v1781_v8 = vadd.f32 %v13783_v21, %v1262_v63  ;;  %v745_v46 = vld [vmem:[%s9995_s9 + $0xf48] sm:$0xff]  ;;  %v14310_v11 = vpop.f32.mrf.mxu0 }
 0x2b4   : > { %v5626_v25 = vadd.f32 %v14114_v15, %v13605_v33  ;;  %v3062_v61 = vsel %vm2037_vm1, %v1524_v6, %v2550_v19  ;;  %v6906_v54 = vadd.f32 %v14114_v15, %v13612_v24  ;;  %v1007_v36 = vmul.f32 %v13763_v17, %v488_v30  ;;  %v14317_v24 = vpop.f32.mrf.mxu1 }
 0x2b5   : > { %v1263_v13 = vmul.f32 %v13763_v17, %v744_v1  ;;  %9469 = vmatprep.mubr.msk.f32.mxu0 %vm3352_vm0, %v3062_v61  ;;  %v3318_v63 = vsel %vm2293_vm2, %v1780_v43, %v2806_v14  ;;  %vm2038_vm3 = vcmp.ge.f32.partialorder %v1525_v41, 0.0  ;;  %v2551_v33 = vmul.f32 %v10011_v12, %v1525_v41  ;;  %v490_v61 = vld [vmem:[%s9995_s9 + $0x750] sm:$0xff] }
 0x2b6   : > { %vm2294_vm4 = vcmp.ge.f32.partialorder %v1781_v8, 0.0  ;;  %7649 = vst.msk [vmem:[%s11070_s25 + $0x430] sm:$0xff] %vm7514_vm11, %v5626_v25  ;;  %9853 = vmatprep.mubr.msk.f32.mxu1 %vm3352_vm0, %v3318_v63  ;;  %v2807_v1 = vmul.f32 %v10011_v12, %v1781_v8  ;;  %7905 = vst.msk [vmem:[%s11070_s25 + $0xc30] sm:$0xff] %vm7514_vm11, %v6906_v54  ;;  %v1526_v6 = vadd.f32 %v13783_v21, %v1007_v36  ;;  %v746_v63 = vld [vmem:[%s9995_s9 + $0xf50] sm:$0xff] }
 0x2b7   : > { %v1782_v43 = vadd.f32 %v13783_v21, %v1263_v13  ;;  %v5641_v30 = vadd.f32 %v14114_v15, %v13633_v35  ;;  %v3063_v62 = vsel %vm2038_vm3, %v1525_v41, %v2551_v33  ;;  %v1008_v19 = vmul.f32 %v13763_v17, %v489_v42  ;;  %v14338_v35 = vpop.f32.mrf.mxu0  ;;  %v14348_v42 = vpop.f32.mrf.mxu1  ;;  %v15674_v33 = vld [vmem:[#allocation14_spill] sm:$0xff] }
 0x2b8   : > { %v6921_v14 = vadd.f32 %v14114_v15, %v13643_v44  ;;  %v1264_v25 = vmul.f32 %v13763_v17, %v745_v46  ;;  %9470 = vmatmul.mubr.msk.f32.gmra.mxu0 %vm3352_vm0, %v3063_v62  ;;  %v3319_v54 = vsel %vm2294_vm4, %v1781_v8, %v2807_v1  ;;  %vm2039_vm5 = vcmp.ge.f32.partialorder %v1526_v6, 0.0 }
 0x2b9   : > { %v2552_v36 = vmul.f32 %v10011_v12, %v1526_v6  ;;  %vm2295_vm6 = vcmp.ge.f32.partialorder %v1782_v43, 0.0  ;;  %7652 = vst.msk [vmem:[%s11070_s25 + $0x448] sm:$0xff] %vm7514_vm11, %v5641_v30  ;;  %9854 = vmatmul.mubr.msk.f32.gmra.mxu1 %vm3352_vm0, %v3319_v54  ;;  %v2808_v44 = vmul.f32 %v10011_v12, %v1782_v43  ;;  %v1527_v41 = vadd.f32 %v13783_v21, %v1008_v19  ;;  %v491_v19 = vld [vmem:[%s9995_s9 + $0x758] sm:$0xff] }
 0x2ba   : > { %7908 = vst.msk [vmem:[%s11070_s25 + $0xc48] sm:$0xff] %vm7514_vm11, %v6921_v14  ;;  %v1783_v8 = vadd.f32 %v13783_v21, %v1264_v25  ;;  %v5636_v13 = vadd.f32 %v14114_v15, %v13651_v29  ;;  %v6916_v1 = vadd.f32 %v14114_v15, %v15674_v33  ;;  %v1009_v30 = vmul.f32 %v13763_v17, %v490_v61  ;;  %v747_v54 = vld [vmem:[%s9995_s9 + $0xf58] sm:$0xff]  ;;  %v14356_v14 = vpop.f32.mrf.mxu0 }
 0x2bb   : > { %v3064_v46 = vsel %vm2039_vm5, %v1526_v6, %v2552_v36  ;;  %v1265_v62 = vmul.f32 %v13763_v17, %v746_v63  ;;  %v3320_v25 = vsel %vm2295_vm6, %v1782_v43, %v2808_v44  ;;  %vm2040_vm7 = vcmp.ge.f32.partialorder %v1527_v41, 0.0  ;;  %v14363_v6 = vpop.f32.mrf.mxu1  ;;  %v14376_v44 = vld [vmem:[%s15546_s1] ss:$0 sm:$0xff] }
 0x2bc   : > { %9472 = vmatprep.mubr.msk.f32.mxu0 %vm3352_vm0, %v3064_v46  ;;  %v2553_v29 = vmul.f32 %v10011_v12, %v1527_v41  ;;  %vm2296_vm8 = vcmp.ge.f32.partialorder %v1783_v8, 0.0  ;;  %7651 = vst.msk [vmem:[%s11070_s25 + $0x440] sm:$0xff] %vm7514_vm11, %v5636_v13  ;;  %15675 = vst [vmem:[#allocation5_spill] sm:$0xff] %v14363_v6  ;;  %9856 = vmatprep.mubr.msk.f32.mxu1 %vm3352_vm0, %v3320_v25  ;;  %v2809_v17 = vmul.f32 %v10011_v12, %v1783_v8  ;;  %v749_v6 = vld [vmem:[%s9995_s9 + $0xf68] sm:$0xff] }
 0x2bd   : > { %7907 = vst.msk [vmem:[%s11070_s25 + $0xc40] sm:$0xff] %vm7514_vm11, %v6916_v1  ;;  %v1528_v61 = vadd.f32 %v13783_v21, %v1009_v30  ;;  %v1784_v43 = vadd.f32 %v13783_v21, %v1265_v62  ;;  %v5651_v63 = vadd.f32 %v14114_v15, %v13679_v22  ;;  %v1010_v13 = vmul.f32 %v14376_v44, %v491_v19  ;;  %v492_v1 = vld [vmem:[%s9995_s9 + $0x760] sm:$0xff] }
 0x2be   : > { %v3065_v36 = vsel %vm2040_vm7, %v1527_v41, %v2553_v29  ;;  %v6931_v46 = vadd.f32 %v14114_v15, %v13689_v47  ;;  %v1266_v33 = vmul.f32 %v14376_v44, %v747_v54  ;;  %v748_v30 = vld [vmem:[%s9995_s9 + $0xf60] sm:$0xff]  ;;  %v3321_v22 = vsel %vm2296_vm8, %v1783_v8, %v2809_v17  ;;  %v14389_v41 = vpop.f32.mrf.mxu0  ;;  %v15677_v54 = vld [vmem:[#allocation6_spill] sm:$0xff]  ;;  %v14404_v29 = vpop.f32.mrf.mxu1 }
 0x2bf   : > { %9473 = vmatmul.mubr.msk.f32.gmra.mxu0 %vm3352_vm0, %v3065_v36  ;;  %vm2041_vm9 = vcmp.ge.f32.partialorder %v1528_v61, 0.0  ;;  %v2554_v21 = vmul.f32 %v10011_v12, %v1528_v61  ;;  %vm2297_vm10 = vcmp.ge.f32.partialorder %v1784_v43, 0.0  ;;  %7654 = vst.msk [vmem:[%s11070_s25 + $0x458] sm:$0xff] %vm7514_vm11, %v5651_v63  ;;  %15676 = vst [vmem:[#allocation14_spill] sm:$0xff] %v14389_v41  ;;  %9857 = vmatmul.mubr.msk.f32.gmra.mxu1 %vm3352_vm0, %v3321_v22  ;;  %v14396_v62 = vld [vmem:[%s15547_s2] ss:$0 sm:$0xff] }
 0x2c0   : > { %v2810_v47 = vmul.f32 %v10011_v12, %v1784_v43  ;;  %v1529_v8 = vadd.f32 %v14396_v62, %v1010_v13  ;;  %7910 = vst.msk [vmem:[%s11070_s25 + $0xc58] sm:$0xff] %vm7514_vm11, %v6931_v46  ;;  %v1785_v19 = vadd.f32 %v14396_v62, %v1266_v33  ;;  %v5646_v25 = vadd.f32 %v14114_v15, %v15677_v54  ;;  %v15678_v63 = vld [vmem:[#allocation15_spill] sm:$0xff]  ;;  %v493_v13 = vld [vmem:[%s9995_s9 + $0x768] sm:$0xff]  ;;  %v14412_v46 = vpop.f32.mrf.mxu0 }
 0x2c1   : > { %v3066_v17 = vsel %vm2041_vm9, %v1528_v61, %v2554_v21  ;;  %v6926_v36 = vadd.f32 %v14114_v15, %v15678_v63  ;;  %v1011_v22 = vmul.f32 %v14376_v44, %v492_v1  ;;  %v1267_v41 = vmul.f32 %v14376_v44, %v748_v30  ;;  %v14419_v21 = vpop.f32.mrf.mxu1 }
 0x2c2   : > { %9475 = vmatprep.mubr.msk.f32.mxu0 %vm3352_vm0, %v3066_v17  ;;  %v3322_v33 = vsel %vm2297_vm10, %v1784_v43, %v2810_v47  ;;  %vm2042_vm12 = vcmp.ge.f32.partialorder %v1529_v8, 0.0  ;;  %v2555_v61 = vmul.f32 %v10011_v12, %v1529_v8  ;;  %vm2298_vm13 = vcmp.ge.f32.partialorder %v1785_v19, 0.0  ;;  %7653 = vst.msk [vmem:[%s11070_s25 + $0x450] sm:$0xff] %vm7514_vm11, %v5646_v25  ;;  %15679 = vst [vmem:[#allocation6_spill] sm:$0xff] %v14419_v21  ;;  %v750_v21 = vld [vmem:[%s9995_s9 + $0xf70] sm:$0xff] }
 0x2c3   : > { %9859 = vmatprep.mubr.msk.f32.mxu1 %vm3352_vm0, %v3322_v33  ;;  %v2811_v1 = vmul.f32 %v10011_v12, %v1785_v19  ;;  %7909 = vst.msk [vmem:[%s11070_s25 + $0xc50] sm:$0xff] %vm7514_vm11, %v6926_v36  ;;  %v1530_v30 = vadd.f32 %v14396_v62, %v1011_v22  ;;  %v1786_v43 = vadd.f32 %v14396_v62, %v1267_v41  ;;  %v494_v33 = vld [vmem:[%s9995_s9 + $0x770] sm:$0xff]  ;;  %v14450_v22 = vpop.f32.mrf.mxu1 }
 0x2c4   : > { %v5661_v47 = vadd.f32 %v14114_v15, %v13725_v57  ;;  %v3067_v54 = vsel %vm2042_vm12, %v1529_v8, %v2555_v61  ;;  %v1012_v25 = vmul.f32 %v14376_v44, %v493_v13  ;;  %v6941_v17 = vadd.f32 %v14114_v15, %v13735_v27  ;;  %v14440_v57 = vpop.f32.mrf.mxu0 }
 0x2c5   : > { %v1268_v63 = vmul.f32 %v14376_v44, %v749_v6  ;;  %9476 = vmatmul.mubr.msk.f32.gmra.mxu0 %vm3352_vm0, %v3067_v54  ;;  %v3323_v36 = vsel %vm2298_vm13, %v1785_v19, %v2811_v1  ;;  %vm2043_vm14 = vcmp.ge.f32.partialorder %v1530_v30, 0.0  ;;  %v2556_v41 = vmul.f32 %v10011_v12, %v1530_v30  ;;  %v495_v54 = vld [vmem:[%s9995_s9 + $0x778] sm:$0xff] }
 0x2c6   : > { %vm2299_vm15 = vcmp.ge.f32.partialorder %v1786_v43, 0.0  ;;  %7656 = vst.msk [vmem:[%s11070_s25 + $0x468] sm:$0xff] %vm7514_vm11, %v5661_v47  ;;  %9860 = vmatmul.mubr.msk.f32.gmra.mxu1 %vm3352_vm0, %v3323_v36  ;;  %v2812_v27 = vmul.f32 %v10011_v12, %v1786_v43  ;;  %v1531_v6 = vadd.f32 %v14396_v62, %v1012_v25  ;;  %7912 = vst.msk [vmem:[%s11070_s25 + $0xc68] sm:$0xff] %vm7514_vm11, %v6941_v17  ;;  %v751_v25 = vld [vmem:[%s9995_s9 + $0xf78] sm:$0xff]  ;;  %v14458_v17 = vpop.f32.mrf.mxu0 }
 0x2c7   : > { %v1787_v8 = vadd.f32 %v14396_v62, %v1268_v63  ;;  %v5656_v19 = vadd.f32 %v14114_v15, %v13743_v4  ;;  %v3068_v13 = vsel %vm2043_vm14, %v1530_v30, %v2556_v41  ;;  %v6936_v61 = vadd.f32 %v14114_v15, %v13750_v56  ;;  %v14465_v56 = vpop.f32.mrf.mxu1 }
 0x2c8   : > { %v1013_v1 = vmul.f32 %v14376_v44, %v494_v33  ;;  %v1269_v47 = vmul.f32 %v14376_v44, %v750_v21  ;;  %9478 = vmatprep.mubr.msk.f32.mxu0 %vm3352_vm0, %v3068_v13  ;;  %v3324_v63 = vsel %vm2299_vm15, %v1786_v43, %v2812_v27  ;;  %vm2044_vm1 = vcmp.ge.f32.partialorder %v1531_v6, 0.0  ;;  %15680 = vst [vmem:[#allocation15_spill] sm:$0xff] %v14465_v56  ;;  %v15681_v33 = vld [vmem:[#allocation7_spill] sm:$0xff] }
 0x2c9   : > { %v2557_v4 = vmul.f32 %v10011_v12, %v1531_v6  ;;  %vm2300_vm2 = vcmp.ge.f32.partialorder %v1787_v8, 0.0  ;;  %7655 = vst.msk [vmem:[%s11070_s25 + $0x460] sm:$0xff] %vm7514_vm11, %v5656_v19  ;;  %9862 = vmatprep.mubr.msk.f32.mxu1 %vm3352_vm0, %v3324_v63  ;;  %v2813_v21 = vmul.f32 %v10011_v12, %v1787_v8  ;;  %7911 = vst.msk [vmem:[%s11070_s25 + $0xc60] sm:$0xff] %vm7514_vm11, %v6936_v61  ;;  %v496_v63 = vld [vmem:[%s9995_s9 + $0x780] sm:$0xff] }
 0x2ca   : > { %v1532_v30 = vadd.f32 %v14396_v62, %v1013_v1  ;;  %v1788_v43 = vadd.f32 %v14396_v62, %v1269_v47  ;;  %v5671_v36 = vadd.f32 %v14114_v15, %v15681_v33  ;;  %v1014_v27 = vmul.f32 %v14376_v44, %v495_v54  ;;  %v752_v56 = vld [vmem:[%s9995_s9 + $0xf80] sm:$0xff] }
 0x2cb   : > { %v3069_v41 = vsel %vm2044_vm1, %v1531_v6, %v2557_v4  ;;  %v6951_v19 = vadd.f32 %v14114_v15, %v13791_v53  ;;  %v1270_v13 = vmul.f32 %v14376_v44, %v751_v25  ;;  %v3325_v61 = vsel %vm2300_vm2, %v1787_v8, %v2813_v21  ;;  %v14486_v6 = vpop.f32.mrf.mxu0  ;;  %v14496_v25 = vpop.f32.mrf.mxu1  ;;  %v15682_v21 = vld [vmem:[#allocation8_spill] sm:$0xff] }
 0x2cc   : > { %9479 = vmatmul.mubr.msk.f32.gmra.mxu0 %vm3352_vm0, %v3069_v41  ;;  %vm2045_vm3 = vcmp.ge.f32.partialorder %v1532_v30, 0.0  ;;  %v2558_v1 = vmul.f32 %v10011_v12, %v1532_v30  ;;  %vm2301_vm4 = vcmp.ge.f32.partialorder %v1788_v43, 0.0  ;;  %7658 = vst.msk [vmem:[%s11070_s25 + $0x478] sm:$0xff] %vm7514_vm11, %v5671_v36  ;;  %9863 = vmatmul.mubr.msk.f32.gmra.mxu1 %vm3352_vm0, %v3325_v61  ;;  %v2814_v53 = vmul.f32 %v10011_v12, %v1788_v43  ;;  %v753_v61 = vld [vmem:[%s9995_s9 + $0xf88] sm:$0xff] }
 0x2cd   : > { %v1533_v47 = vadd.f32 %v14396_v62, %v1014_v27  ;;  %7914 = vst.msk [vmem:[%s11070_s25 + $0xc78] sm:$0xff] %vm7514_vm11, %v6951_v19  ;;  %v1789_v8 = vadd.f32 %v14396_v62, %v1270_v13  ;;  %v5666_v54 = vadd.f32 %v14114_v15, %v13799_v31  ;;  %v6946_v33 = vadd.f32 %v14114_v15, %v15682_v21  ;;  %v497_v27 = vld [vmem:[%s9995_s9 + $0x788] sm:$0xff]  ;;  %v14504_v19 = vpop.f32.mrf.mxu0 }
 0x2ce   : > { %v3070_v4 = vsel %vm2045_vm3, %v1532_v30, %v2558_v1  ;;  %v1015_v36 = vmul.f32 %v14376_v44, %v496_v63  ;;  %v1271_v41 = vmul.f32 %v14376_v44, %v752_v56  ;;  %v3326_v13 = vsel %vm2301_vm4, %v1788_v43, %v2814_v53  ;;  %v14511_v30 = vpop.f32.mrf.mxu1 }
 0x2cf   : > { %9481 = vmatprep.mubr.msk.f32.mxu0 %vm3352_vm0, %v3070_v4  ;;  %vm2046_vm5 = vcmp.ge.f32.partialorder %v1533_v47, 0.0  ;;  %v2559_v31 = vmul.f32 %v10011_v12, %v1533_v47  ;;  %vm2302_vm6 = vcmp.ge.f32.partialorder %v1789_v8, 0.0  ;;  %7657 = vst.msk [vmem:[%s11070_s25 + $0x470] sm:$0xff] %vm7514_vm11, %v5666_v54  ;;  %15683 = vst [vmem:[#allocation7_spill] sm:$0xff] %v14511_v30  ;;  %9865 = vmatprep.mubr.msk.f32.mxu1 %vm3352_vm0, %v3326_v13  ;;  %v498_v13 = vld [vmem:[%s9995_s9 + $0x790] sm:$0xff] }
 0x2d0   : > { %v2815_v56 = vmul.f32 %v10011_v12, %v1789_v8  ;;  %7913 = vst.msk [vmem:[%s11070_s25 + $0xc70] sm:$0xff] %vm7514_vm11, %v6946_v33  ;;  %v1534_v63 = vadd.f32 %v14396_v62, %v1015_v36  ;;  %v1790_v43 = vadd.f32 %v14396_v62, %v1271_v41  ;;  %v5681_v1 = vadd.f32 %v14114_v15, %v13827_v3  ;;  %v754_v30 = vld [vmem:[%s9995_s9 + $0xf90] sm:$0xff]  ;;  %v14532_v3 = vpop.f32.mrf.mxu0  ;;  %v15685_v41 = vld [vmem:[#allocation16_spill] sm:$0xff] }
 0x2d1   : > { %v3071_v53 = vsel %vm2046_vm5, %v1533_v47, %v2559_v31  ;;  %v1016_v54 = vmul.f32 %v14376_v44, %v497_v27  ;;  %v6961_v4 = vadd.f32 %v14114_v15, %v13837_v10  ;;  %v1272_v21 = vmul.f32 %v14376_v44, %v753_v61  ;;  %15684 = vst [vmem:[#allocation8_spill] sm:$0xff] %v14532_v3  ;;  %v14542_v61 = vpop.f32.mrf.mxu1  ;;  %v755_v3 = vld [vmem:[%s9995_s9 + $0xf98] sm:$0xff] }
 0x2d2   : > { %9482 = vmatmul.mubr.msk.f32.gmra.mxu0 %vm3352_vm0, %v3071_v53  ;;  %v3327_v33 = vsel %vm2302_vm6, %v1789_v8, %v2815_v56  ;;  %vm2047_vm7 = vcmp.ge.f32.partialorder %v1534_v63, 0.0  ;;  %v2560_v36 = vmul.f32 %v10011_v12, %v1534_v63  ;;  %vm2303_vm8 = vcmp.ge.f32.partialorder %v1790_v43, 0.0  ;;  %7660 = vst.msk [vmem:[%s11070_s25 + $0x488] sm:$0xff] %vm7514_vm11, %v5681_v1  ;;  %v15686_v56 = vld [vmem:[#allocation17_spill] sm:$0xff] }
 0x2d3   : > { %9866 = vmatmul.mubr.msk.f32.gmra.mxu1 %vm3352_vm0, %v3327_v33  ;;  %v2816_v10 = vmul.f32 %v10011_v12, %v1790_v43  ;;  %v1535_v47 = vadd.f32 %v14396_v62, %v1016_v54  ;;  %7916 = vst.msk [vmem:[%s11070_s25 + $0xc88] sm:$0xff] %vm7514_vm11, %v6961_v4  ;;  %v1791_v8 = vadd.f32 %v14396_v62, %v1272_v21  ;;  %v499_v54 = vld [vmem:[%s9995_s9 + $0x798] sm:$0xff]  ;;  %v14550_v4 = vpop.f32.mrf.mxu0 }
 0x2d4   : > { %v5676_v27 = vadd.f32 %v14114_v15, %v15685_v41  ;;  %v3072_v31 = vsel %vm2047_vm7, %v1534_v63, %v2560_v36  ;;  %v6956_v1 = vadd.f32 %v14114_v15, %v15686_v56  ;;  %v1017_v53 = vmul.f32 %v14376_v44, %v498_v13  ;;  %v14557_v36 = vpop.f32.mrf.mxu1 }
 0x2d5   : > { %v1273_v33 = vmul.f32 %v14376_v44, %v754_v30  ;;  %9484 = vmatprep.mubr.msk.f32.mxu0 %vm3352_vm0, %v3072_v31  ;;  %v3328_v21 = vsel %vm2303_vm8, %v1790_v43, %v2816_v10  ;;  %vm2048_vm9 = vcmp.ge.f32.partialorder %v1535_v47, 0.0  ;;  %v2561_v63 = vmul.f32 %v10011_v12, %v1535_v47  ;;  %15687 = vst [vmem:[#allocation16_spill] sm:$0xff] %v14557_v36  ;;  %v756_v36 = vld [vmem:[%s9995_s9 + $0xfa0] sm:$0xff] }
 0x2d6   : > { %vm2304_vm10 = vcmp.ge.f32.partialorder %v1791_v8, 0.0  ;;  %7659 = vst.msk [vmem:[%s11070_s25 + $0x480] sm:$0xff] %vm7514_vm11, %v5676_v27  ;;  %9868 = vmatprep.mubr.msk.f32.mxu1 %vm3352_vm0, %v3328_v21  ;;  %v2817_v30 = vmul.f32 %v10011_v12, %v1791_v8  ;;  %7915 = vst.msk [vmem:[%s11070_s25 + $0xc80] sm:$0xff] %vm7514_vm11, %v6956_v1  ;;  %v1536_v13 = vadd.f32 %v14396_v62, %v1017_v53  ;;  %v500_v21 = vld [vmem:[%s9995_s9 + $0x7a0] sm:$0xff] }
 0x2d7   : > { %v1792_v43 = vadd.f32 %v14396_v62, %v1273_v33  ;;  %v5691_v10 = vadd.f32 %v14114_v15, %v13873_v39  ;;  %v3073_v41 = vsel %vm2048_vm9, %v1535_v47, %v2561_v63  ;;  %v1018_v27 = vmul.f32 %v14376_v44, %v499_v54  ;;  %v14578_v39 = vpop.f32.mrf.mxu0  ;;  %v14588_v33 = vpop.f32.mrf.mxu1  ;;  %v15688_v63 = vld [vmem:[#allocation18_spill] sm:$0xff] }
 0x2d8   : > { %v6971_v31 = vadd.f32 %v14114_v15, %v13883_v23  ;;  %v1274_v56 = vmul.f32 %v14376_v44, %v755_v3  ;;  %9485 = vmatmul.mubr.msk.f32.gmra.mxu0 %vm3352_vm0, %v3073_v41  ;;  %v3329_v1 = vsel %vm2304_vm10, %v1791_v8, %v2817_v30  ;;  %vm2049_vm12 = vcmp.ge.f32.partialorder %v1536_v13, 0.0 }
 0x2d9   : > { %v2562_v53 = vmul.f32 %v10011_v12, %v1536_v13  ;;  %vm2305_vm13 = vcmp.ge.f32.partialorder %v1792_v43, 0.0  ;;  %7662 = vst.msk [vmem:[%s11070_s25 + $0x498] sm:$0xff] %vm7514_vm11, %v5691_v10  ;;  %9869 = vmatmul.mubr.msk.f32.gmra.mxu1 %vm3352_vm0, %v3329_v1  ;;  %v2818_v23 = vmul.f32 %v10011_v12, %v1792_v43  ;;  %v1537_v3 = vadd.f32 %v14396_v62, %v1018_v27  ;;  %v501_v27 = vld [vmem:[%s9995_s9 + $0x7a8] sm:$0xff] }
 0x2da   : > { %7918 = vst.msk [vmem:[%s11070_s25 + $0xc98] sm:$0xff] %vm7514_vm11, %v6971_v31  ;;  %v1793_v47 = vadd.f32 %v14396_v62, %v1274_v56  ;;  %v5686_v8 = vadd.f32 %v14114_v15, %v13891_v58  ;;  %v6966_v30 = vadd.f32 %v14114_v15, %v15688_v63  ;;  %v1019_v10 = vmul.f32 %v14376_v44, %v500_v21  ;;  %v757_v1 = vld [vmem:[%s9995_s9 + $0xfa8] sm:$0xff]  ;;  %v14596_v31 = vpop.f32.mrf.mxu0 }
 0x2db   : > { %v3074_v54 = vsel %vm2049_vm12, %v1536_v13, %v2562_v53  ;;  %v1275_v41 = vmul.f32 %v14376_v44, %v756_v36  ;;  %v3330_v56 = vsel %vm2305_vm13, %v1792_v43, %v2818_v23  ;;  %vm2050_vm14 = vcmp.ge.f32.partialorder %v1537_v3, 0.0  ;;  %v14603_v13 = vpop.f32.mrf.mxu1 }
 0x2dc   : > { %9487 = vmatprep.mubr.msk.f32.mxu0 %vm3352_vm0, %v3074_v54  ;;  %v2563_v58 = vmul.f32 %v10011_v12, %v1537_v3  ;;  %vm2306_vm15 = vcmp.ge.f32.partialorder %v1793_v47, 0.0  ;;  %7661 = vst.msk [vmem:[%s11070_s25 + $0x490] sm:$0xff] %vm7514_vm11, %v5686_v8  ;;  %15689 = vst [vmem:[#allocation17_spill] sm:$0xff] %v14603_v13  ;;  %9871 = vmatprep.mubr.msk.f32.mxu1 %vm3352_vm0, %v3330_v56  ;;  %v2819_v36 = vmul.f32 %v10011_v12, %v1793_v47  ;;  %v502_v56 = vld [vmem:[%s9995_s9 + $0x7b0] sm:$0xff] }
 0x2dd   : > { %7917 = vst.msk [vmem:[%s11070_s25 + $0xc90] sm:$0xff] %vm7514_vm11, %v6966_v30  ;;  %v1538_v21 = vadd.f32 %v14396_v62, %v1019_v10  ;;  %v1794_v43 = vadd.f32 %v14396_v62, %v1275_v41  ;;  %v5701_v53 = vadd.f32 %v14114_v15, %v13919_v20  ;;  %v1020_v8 = vmul.f32 %v14376_v44, %v501_v27  ;;  %v758_v13 = vld [vmem:[%s9995_s9 + $0xfb0] sm:$0xff]  ;;  %v14624_v20 = vpop.f32.mrf.mxu0  ;;  %v14634_v27 = vpop.f32.mrf.mxu1 }
 0x2de   : > { %v3075_v23 = vsel %vm2050_vm14, %v1537_v3, %v2563_v58  ;;  %v6981_v54 = vadd.f32 %v14114_v15, %v13929_v52  ;;  %v1276_v63 = vmul.f32 %v14376_v44, %v757_v1  ;;  %v3331_v30 = vsel %vm2306_vm15, %v1793_v47, %v2819_v36  ;;  %v15690_v58 = vld [vmem:[#allocation9_spill] sm:$0xff] }
 0x2df   : > { %9488 = vmatmul.mubr.msk.f32.gmra.mxu0 %vm3352_vm0, %v3075_v23  ;;  %vm2051_vm1 = vcmp.ge.f32.partialorder %v1538_v21, 0.0  ;;  %v2564_v10 = vmul.f32 %v10011_v12, %v1538_v21  ;;  %vm2307_vm2 = vcmp.ge.f32.partialorder %v1794_v43, 0.0  ;;  %7664 = vst.msk [vmem:[%s11070_s25 + $0x4a8] sm:$0xff] %vm7514_vm11, %v5701_v53  ;;  %9872 = vmatmul.mubr.msk.f32.gmra.mxu1 %vm3352_vm0, %v3331_v30  ;;  %v2820_v52 = vmul.f32 %v10011_v12, %v1794_v43  ;;  %v759_v30 = vld [vmem:[%s9995_s9 + $0xfb8] sm:$0xff] }
 0x2e0   : > { %v1539_v3 = vadd.f32 %v14396_v62, %v1020_v8  ;;  %7920 = vst.msk [vmem:[%s11070_s25 + $0xca8] sm:$0xff] %vm7514_vm11, %v6981_v54  ;;  %v1795_v47 = vadd.f32 %v14396_v62, %v1276_v63  ;;  %v5696_v41 = vadd.f32 %v14114_v15, %v13937_v0  ;;  %v6976_v36 = vadd.f32 %v14114_v15, %v15690_v58  ;;  %v503_v8 = vld [vmem:[%s9995_s9 + $0x7b8] sm:$0xff]  ;;  %v14642_v54 = vpop.f32.mrf.mxu0 }
 0x2e1   : > { %v3076_v1 = vsel %vm2051_vm1, %v1538_v21, %v2564_v10  ;;  %v1021_v53 = vmul.f32 %v14376_v44, %v502_v56  ;;  %v1277_v23 = vmul.f32 %v14376_v44, %v758_v13  ;;  %v3332_v63 = vsel %vm2307_vm2, %v1794_v43, %v2820_v52  ;;  %v14649_v21 = vpop.f32.mrf.mxu1 }
 0x2e2   : > { %9490 = vmatprep.mubr.msk.f32.mxu0 %vm3352_vm0, %v3076_v1  ;;  %vm2052_vm3 = vcmp.ge.f32.partialorder %v1539_v3, 0.0  ;;  %v2565_v0 = vmul.f32 %v10011_v12, %v1539_v3  ;;  %vm2308_vm4 = vcmp.ge.f32.partialorder %v1795_v47, 0.0  ;;  %7663 = vst.msk [vmem:[%s11070_s25 + $0x4a0] sm:$0xff] %vm7514_vm11, %v5696_v41  ;;  %15691 = vst [vmem:[#allocation18_spill] sm:$0xff] %v14649_v21  ;;  %9874 = vmatprep.mubr.msk.f32.mxu1 %vm3352_vm0, %v3332_v63  ;;  %v504_v63 = vld [vmem:[%s9995_s9 + $0x7c0] sm:$0xff] }
 0x2e3   : > { %v2821_v13 = vmul.f32 %v10011_v12, %v1795_v47  ;;  %7919 = vst.msk [vmem:[%s11070_s25 + $0xca0] sm:$0xff] %vm7514_vm11, %v6976_v36  ;;  %v1540_v56 = vadd.f32 %v14396_v62, %v1021_v53  ;;  %v1796_v43 = vadd.f32 %v14396_v62, %v1277_v23  ;;  %v5711_v10 = vadd.f32 %v14114_v15, %v13965_v28  ;;  %v760_v21 = vld [vmem:[%s9995_s9 + $0xfc0] sm:$0xff]  ;;  %v14670_v28 = vpop.f32.mrf.mxu0 }
 0x2e4   : > { %v3077_v52 = vsel %vm2052_vm3, %v1539_v3, %v2565_v0  ;;  %v1022_v41 = vmul.f32 %v14376_v44, %v503_v8  ;;  %v6991_v1 = vadd.f32 %v14114_v15, %v13975_v5  ;;  %v1278_v58 = vmul.f32 %v14376_v44, %v759_v30  ;;  %v14680_v8 = vpop.f32.mrf.mxu1  ;;  %v15692_v0 = vld [vmem:[#allocation19_spill] sm:$0xff] }
 0x2e5   : > { %9491 = vmatmul.mubr.msk.f32.gmra.mxu0 %vm3352_vm0, %v3077_v52  ;;  %v3333_v36 = vsel %vm2308_vm4, %v1795_v47, %v2821_v13  ;;  %vm2053_vm5 = vcmp.ge.f32.partialorder %v1540_v56, 0.0  ;;  %v2566_v53 = vmul.f32 %v10011_v12, %v1540_v56  ;;  %vm2309_vm6 = vcmp.ge.f32.partialorder %v1796_v43, 0.0  ;;  %7666 = vst.msk [vmem:[%s11070_s25 + $0x4b8] sm:$0xff] %vm7514_vm11, %v5711_v10 }
 0x2e6   : > { %9875 = vmatmul.mubr.msk.f32.gmra.mxu1 %vm3352_vm0, %v3333_v36  ;;  %v2822_v5 = vmul.f32 %v10011_v12, %v1796_v43  ;;  %v1541_v3 = vadd.f32 %v14396_v62, %v1022_v41  ;;  %7922 = vst.msk [vmem:[%s11070_s25 + $0xcb8] sm:$0xff] %vm7514_vm11, %v6991_v1  ;;  %v1797_v47 = vadd.f32 %v14396_v62, %v1278_v58  ;;  %v505_v41 = vld [vmem:[%s9995_s9 + $0x7c8] sm:$0xff]  ;;  %v14688_v1 = vpop.f32.mrf.mxu0 }
 0x2e7   : > { %v5706_v23 = vadd.f32 %v14114_v15, %v13983_v37  ;;  %v3078_v30 = vsel %vm2053_vm5, %v1540_v56, %v2566_v53  ;;  %v6986_v13 = vadd.f32 %v14114_v15, %v15692_v0  ;;  %v1023_v10 = vmul.f32 %v14376_v44, %v504_v63  ;;  %v761_v36 = vld [vmem:[%s9995_s9 + $0xfc8] sm:$0xff]  ;;  %v14695_v56 = vpop.f32.mrf.mxu1 }
 0x2e8   : > { %v1279_v52 = vmul.f32 %v14376_v44, %v760_v21  ;;  %9493 = vmatprep.mubr.msk.f32.mxu0 %vm3352_vm0, %v3078_v30  ;;  %v3334_v58 = vsel %vm2309_vm6, %v1796_v43, %v2822_v5  ;;  %vm2054_vm7 = vcmp.ge.f32.partialorder %v1541_v3, 0.0  ;;  %v2567_v37 = vmul.f32 %v10011_v12, %v1541_v3  ;;  %15693 = vst [vmem:[#allocation9_spill] sm:$0xff] %v14695_v56  ;;  %v762_v56 = vld [vmem:[%s9995_s9 + $0xfd0] sm:$0xff] }
 0x2e9   : > { %vm2310_vm8 = vcmp.ge.f32.partialorder %v1797_v47, 0.0  ;;  %7665 = vst.msk [vmem:[%s11070_s25 + $0x4b0] sm:$0xff] %vm7514_vm11, %v5706_v23  ;;  %9877 = vmatprep.mubr.msk.f32.mxu1 %vm3352_vm0, %v3334_v58  ;;  %v2823_v21 = vmul.f32 %v10011_v12, %v1797_v47  ;;  %7921 = vst.msk [vmem:[%s11070_s25 + $0xcb0] sm:$0xff] %vm7514_vm11, %v6986_v13  ;;  %v1542_v63 = vadd.f32 %v14396_v62, %v1023_v10  ;;  %v506_v58 = vld [vmem:[%s9995_s9 + $0x7d0] sm:$0xff] }
 0x2ea   : > { %v1798_v43 = vadd.f32 %v14396_v62, %v1279_v52  ;;  %v5721_v53 = vadd.f32 %v14114_v15, %v14011_v7  ;;  %v3079_v5 = vsel %vm2054_vm7, %v1541_v3, %v2567_v37  ;;  %v1024_v23 = vmul.f32 %v14376_v44, %v505_v41  ;;  %v14716_v7 = vpop.f32.mrf.mxu0  ;;  %v15695_v52 = vld [vmem:[#allocation10_spill] sm:$0xff] }
 0x2eb   : > { %v7001_v30 = vadd.f32 %v14114_v15, %v14021_v9  ;;  %v1280_v0 = vmul.f32 %v14376_v44, %v761_v36  ;;  %9494 = vmatmul.mubr.msk.f32.gmra.mxu0 %vm3352_vm0, %v3079_v5  ;;  %v3335_v13 = vsel %vm2310_vm8, %v1797_v47, %v2823_v21  ;;  %vm2055_vm9 = vcmp.ge.f32.partialorder %v1542_v63, 0.0  ;;  %15694 = vst [vmem:[#allocation19_spill] sm:$0xff] %v14716_v7  ;;  %v14727_v47 = vld [vmem:[%s15550_s5] ss:$0 sm:$0xff]  ;;  %v14731_v36 = vpop.f32.mrf.mxu1 }
 0x2ec   : > { %v2568_v10 = vmul.f32 %v10011_v12, %v1542_v63  ;;  %vm2311_vm10 = vcmp.ge.f32.partialorder %v1798_v43, 0.0  ;;  %7668 = vst.msk [vmem:[%s11070_s25 + $0x4c8] sm:$0xff] %vm7514_vm11, %v5721_v53  ;;  %9878 = vmatmul.mubr.msk.f32.gmra.mxu1 %vm3352_vm0, %v3335_v13  ;;  %v2824_v9 = vmul.f32 %v10011_v12, %v1798_v43  ;;  %v1543_v15 = vadd.f32 %v14396_v62, %v1024_v23  ;;  %v15696_v21 = vld [vmem:[#allocation11_spill] sm:$0xff]  ;;  %v14739_v13 = vpop.f32.mrf.mxu0 }
 0x2ed   : > { %7924 = vst.msk [vmem:[%s11070_s25 + $0xcc8] sm:$0xff] %vm7514_vm11, %v7001_v30  ;;  %v1799_v3 = vadd.f32 %v14396_v62, %v1280_v0  ;;  %v5716_v41 = vadd.f32 %v14727_v47, %v15695_v52  ;;  %v6996_v53 = vadd.f32 %v14727_v47, %v15696_v21  ;;  %v1025_v5 = vmul.f32 %v14376_v44, %v506_v58  ;;  %v507_v30 = vld [vmem:[%s9995_s9 + $0x7d8] sm:$0xff]  ;;  %v508_v21 = vld [vmem:[%s9995_s9 + $0x7e0] sm:$0xff] }
 0x2ee   : > { %v3080_v37 = vsel %vm2055_vm9, %v1542_v63, %v2568_v10  ;;  %v1281_v23 = vmul.f32 %v14376_v44, %v762_v56  ;;  %v763_v0 = vld [vmem:[%s9995_s9 + $0xfd8] sm:$0xff]  ;;  %v3336_v7 = vsel %vm2311_vm10, %v1798_v43, %v2824_v9  ;;  %vm2056_vm12 = vcmp.ge.f32.partialorder %v1543_v15, 0.0  ;;  %v14746_v10 = vpop.f32.mrf.mxu1 }
 0x2ef   : > { %9496 = vmatprep.mubr.msk.f32.mxu0 %vm3352_vm0, %v3080_v37  ;;  %v2569_v63 = vmul.f32 %v10011_v12, %v1543_v15  ;;  %vm2312_vm13 = vcmp.ge.f32.partialorder %v1799_v3, 0.0  ;;  %7667 = vst.msk [vmem:[%s11070_s25 + $0x4c0] sm:$0xff] %vm7514_vm11, %v5716_v41  ;;  %15697 = vst [vmem:[#allocation10_spill] sm:$0xff] %v14746_v10  ;;  %9880 = vmatprep.mubr.msk.f32.mxu1 %vm3352_vm0, %v3336_v7  ;;  %v2825_v56 = vmul.f32 %v10011_v12, %v1799_v3  ;;  %v764_v10 = vld [vmem:[%s9995_s9 + $0xfe0] sm:$0xff] }
 0x2f0   : > { %7923 = vst.msk [vmem:[%s11070_s25 + $0xcc0] sm:$0xff] %vm7514_vm11, %v6996_v53  ;;  %v1544_v58 = vadd.f32 %v14396_v62, %v1025_v5  ;;  %v1800_v43 = vadd.f32 %v14396_v62, %v1281_v23  ;;  %v5731_v9 = vadd.f32 %v14727_v47, %v14057_v49  ;;  %v1026_v41 = vmul.f32 %v14376_v44, %v507_v30  ;;  %v14767_v49 = vpop.f32.mrf.mxu0  ;;  %v15699_v23 = vld [vmem:[#allocation3_spill] sm:$0xff] }
 0x2f1   : > { %v3081_v52 = vsel %vm2056_vm12, %v1543_v15, %v2569_v63  ;;  %v7011_v37 = vadd.f32 %v14727_v47, %v14067_v45  ;;  %v1282_v7 = vmul.f32 %v14376_v44, %v763_v0  ;;  %v3337_v53 = vsel %vm2312_vm13, %v1799_v3, %v2825_v56  ;;  %15698 = vst [vmem:[#allocation11_spill] sm:$0xff] %v14767_v49  ;;  %v14777_v0 = vpop.f32.mrf.mxu1  ;;  %v15700_v56 = vld [vmem:[#allocation4_spill] sm:$0xff] }
 0x2f2   : > { %9497 = vmatmul.mubr.msk.f32.gmra.mxu0 %vm3352_vm0, %v3081_v52  ;;  %vm2057_vm14 = vcmp.ge.f32.partialorder %v1544_v58, 0.0  ;;  %v2570_v5 = vmul.f32 %v10011_v12, %v1544_v58  ;;  %vm2313_vm15 = vcmp.ge.f32.partialorder %v1800_v43, 0.0  ;;  %7670 = vst.msk [vmem:[%s11070_s25 + $0x4d8] sm:$0xff] %vm7514_vm11, %v5731_v9  ;;  %9881 = vmatmul.mubr.msk.f32.gmra.mxu1 %vm3352_vm0, %v3337_v53  ;;  %v2826_v45 = vmul.f32 %v10011_v12, %v1800_v43  ;;  %v765_v49 = vld [vmem:[%s9995_s9 + $0xfe8] sm:$0xff] }
 0x2f3   : > { %v1545_v15 = vadd.f32 %v14396_v62, %v1026_v41  ;;  %7926 = vst.msk [vmem:[%s11070_s25 + $0xcd8] sm:$0xff] %vm7514_vm11, %v7011_v37  ;;  %v1801_v3 = vadd.f32 %v14396_v62, %v1282_v7  ;;  %v5726_v30 = vadd.f32 %v14727_v47, %v15699_v23  ;;  %v7006_v9 = vadd.f32 %v14727_v47, %v15700_v56  ;;  %v509_v41 = vld [vmem:[%s9995_s9 + $0x7e8] sm:$0xff]  ;;  %v14785_v37 = vpop.f32.mrf.mxu0 }
 0x2f4   : > { %v3082_v63 = vsel %vm2057_vm14, %v1544_v58, %v2570_v5  ;;  %v1027_v52 = vmul.f32 %v14376_v44, %v508_v21  ;;  %v1283_v53 = vmul.f32 %v14376_v44, %v764_v10  ;;  %v3338_v7 = vsel %vm2313_vm15, %v1800_v43, %v2826_v45  ;;  %v14792_v5 = vpop.f32.mrf.mxu1 }
 0x2f5   : > { %9499 = vmatprep.mubr.msk.f32.mxu0 %vm3352_vm0, %v3082_v63  ;;  %vm2058_vm1 = vcmp.ge.f32.partialorder %v1545_v15, 0.0  ;;  %v2571_v58 = vmul.f32 %v10011_v12, %v1545_v15  ;;  %vm2314_vm2 = vcmp.ge.f32.partialorder %v1801_v3, 0.0  ;;  %7669 = vst.msk [vmem:[%s11070_s25 + $0x4d0] sm:$0xff] %vm7514_vm11, %v5726_v30  ;;  %15701 = vst [vmem:[#allocation3_spill] sm:$0xff] %v14792_v5  ;;  %9883 = vmatprep.mubr.msk.f32.mxu1 %vm3352_vm0, %v3338_v7  ;;  %v510_v7 = vld [vmem:[%s9995_s9 + $0x7f0] sm:$0xff] }
 0x2f6   : > { %v2827_v10 = vmul.f32 %v10011_v12, %v1801_v3  ;;  %7925 = vst.msk [vmem:[%s11070_s25 + $0xcd0] sm:$0xff] %vm7514_vm11, %v7006_v9  ;;  %v1546_v21 = vadd.f32 %v14396_v62, %v1027_v52  ;;  %v1802_v43 = vadd.f32 %v14396_v62, %v1283_v53  ;;  %v5741_v45 = vadd.f32 %v14727_v47, %v14103_v32  ;;  %v766_v5 = vld [vmem:[%s9995_s9 + $0xff0] sm:$0xff]  ;;  %v14813_v32 = vpop.f32.mrf.mxu0  ;;  %v14823_v53 = vpop.f32.mrf.mxu1 }
 0x2f7   : > { %v3083_v23 = vsel %vm2058_vm1, %v1545_v15, %v2571_v58  ;;  %v1028_v30 = vmul.f32 %v14376_v44, %v509_v41  ;;  %v7021_v63 = vadd.f32 %v14727_v47, %v14118_v38  ;;  %v1284_v56 = vmul.f32 %v14376_v44, %v765_v49  ;;  %v15702_v58 = vld [vmem:[#allocation20_spill] sm:$0xff] }
 0x2f8   : > { %9500 = vmatmul.mubr.msk.f32.gmra.mxu0 %vm3352_vm0, %v3083_v23  ;;  %v3339_v9 = vsel %vm2314_vm2, %v1801_v3, %v2827_v10  ;;  %vm2059_vm3 = vcmp.ge.f32.partialorder %v1546_v21, 0.0  ;;  %v2572_v52 = vmul.f32 %v10011_v12, %v1546_v21  ;;  %vm2315_vm4 = vcmp.ge.f32.partialorder %v1802_v43, 0.0  ;;  %7672 = vst.msk [vmem:[%s11070_s25 + $0x4e8] sm:$0xff] %vm7514_vm11, %v5741_v45 }
 0x2f9   : > { %9884 = vmatmul.mubr.msk.f32.gmra.mxu1 %vm3352_vm0, %v3339_v9  ;;  %v2828_v38 = vmul.f32 %v10011_v12, %v1802_v43  ;;  %v1547_v49 = vadd.f32 %v14396_v62, %v1028_v30  ;;  %7928 = vst.msk [vmem:[%s11070_s25 + $0xce8] sm:$0xff] %vm7514_vm11, %v7021_v63  ;;  %v1803_v15 = vadd.f32 %v14396_v62, %v1284_v56  ;;  %v511_v30 = vld [vmem:[%s9995_s9 + $0x7f8] sm:$0xff]  ;;  %v14831_v63 = vpop.f32.mrf.mxu0 }
 0x2fa   : > { %v5736_v3 = vadd.f32 %v14727_v47, %v14126_v59  ;;  %v3084_v41 = vsel %vm2059_vm3, %v1546_v21, %v2572_v52  ;;  %v7016_v10 = vadd.f32 %v14727_v47, %v15702_v58  ;;  %v1029_v45 = vmul.f32 %v14376_v44, %v510_v7  ;;  %v767_v9 = vld [vmem:[%s9995_s9 + $0xff8] sm:$0xff]  ;;  %v14838_v21 = vpop.f32.mrf.mxu1 }
 0x2fb   : > { %v1285_v23 = vmul.f32 %v14376_v44, %v766_v5  ;;  %9502 = vmatprep.mubr.msk.f32.mxu0 %vm3352_vm0, %v3084_v41  ;;  %v3340_v56 = vsel %vm2315_vm4, %v1802_v43, %v2828_v38  ;;  %vm2060_vm5 = vcmp.ge.f32.partialorder %v1547_v49, 0.0  ;;  %v2573_v59 = vmul.f32 %v10011_v12, %v1547_v49 }
 0x2fc   : > { %vm2316_vm6 = vcmp.ge.f32.partialorder %v1803_v15, 0.0  ;;  %7671 = vst.msk [vmem:[%s11070_s25 + $0x4e0] sm:$0xff] %vm7514_vm11, %v5736_v3  ;;  %9886 = vmatprep.mubr.msk.f32.mxu1 %vm3352_vm0, %v3340_v56  ;;  %v2829_v5 = vmul.f32 %v10011_v12, %v1803_v15  ;;  %7927 = vst.msk [vmem:[%s11070_s25 + $0xce0] sm:$0xff] %vm7514_vm11, %v7016_v10  ;;  %v1548_v7 = vadd.f32 %v14396_v62, %v1029_v45  ;;  %v14856_v45 = vpop.f32.mrf.mxu0 }
 0x2fd   : > { %v1804_v52 = vadd.f32 %v14396_v62, %v1285_v23  ;;  %v5751_v43 = vadd.f32 %v14727_v47, %v14154_v55  ;;  %v3085_v38 = vsel %vm2060_vm5, %v1547_v49, %v2573_v59  ;;  %v1030_v3 = vmul.f32 %v14376_v44, %v511_v30  ;;  %v15703_v30 = vld [vmem:[#allocation21_spill] sm:$0xff] }
 0x2fe   : > { %v7031_v41 = vadd.f32 %v14727_v47, %v14164_v40  ;;  %v1286_v58 = vmul.f32 %v14376_v44, %v767_v9  ;;  %9503 = vmatmul.mubr.msk.f32.gmra.mxu0 %vm3352_vm0, %v3085_v38  ;;  %v3341_v56 = vsel %vm2316_vm6, %v1803_v15, %v2829_v5  ;;  %vm2061_vm7 = vcmp.ge.f32.partialorder %v1548_v7, 0.0  ;;  %v14866_v15 = vpop.f32.mrf.mxu1 }
 0x2ff   : > { %v2574_v10 = vmul.f32 %v10011_v12, %v1548_v7  ;;  %vm2317_vm8 = vcmp.ge.f32.partialorder %v1804_v52, 0.0  ;;  %7674 = vst.msk [vmem:[%s11070_s25 + $0x4f8] sm:$0xff] %vm7514_vm11, %v5751_v43  ;;  %9887 = vmatmul.mubr.msk.f32.gmra.mxu1 %vm3352_vm0, %v3341_v56  ;;  %v2830_v55 = vmul.f32 %v10011_v12, %v1804_v52  ;;  %v1549_v40 = vadd.f32 %v14396_v62, %v1030_v3  ;;  %v14874_v43 = vpop.f32.mrf.mxu0  ;;  %v15705_v56 = vld [vmem:[#allocation13_spill] sm:$0xff] }
 0x300   : > { %7930 = vst.msk [vmem:[%s11070_s25 + $0xcf8] sm:$0xff] %vm7514_vm11, %v7031_v41  ;;  %v1805_v44 = vadd.f32 %v14396_v62, %v1286_v58  ;;  %v5746_v49 = vadd.f32 %v14727_v47, %v14172_v16  ;;  %v7026_v9 = vadd.f32 %v14727_v47, %v15703_v30  ;;  %v5761_v59 = vadd.f32 %v14727_v47, %v14200_v48 }
 0x301   : > { %v3086_v23 = vsel %vm2061_vm7, %v1548_v7, %v2574_v10  ;;  %v7041_v5 = vadd.f32 %v14727_v47, %v14210_v50  ;;  %v3342_v16 = vsel %vm2317_vm8, %v1804_v52, %v2830_v55  ;;  %vm2062_vm9 = vcmp.ge.f32.partialorder %v1549_v40, 0.0  ;;  %v14881_v7 = vpop.f32.mrf.mxu1  ;;  %v15704_v52 = vld [vmem:[#allocation12_spill] sm:$0xff]  ;;  %v14917_v55 = vpop.f32.mrf.mxu0 }
 0x302   : > { %9505 = vmatprep.mubr.msk.f32.mxu0 %vm3352_vm0, %v3086_v23  ;;  %v2575_v62 = vmul.f32 %v10011_v12, %v1549_v40  ;;  %vm2318_vm10 = vcmp.ge.f32.partialorder %v1805_v44, 0.0  ;;  %7673 = vst.msk [vmem:[%s11070_s25 + $0x4f0] sm:$0xff] %vm7514_vm11, %v5746_v49  ;;  %9889 = vmatprep.mubr.msk.f32.mxu1 %vm3352_vm0, %v3342_v16  ;;  %v2831_v48 = vmul.f32 %v10011_v12, %v1805_v44  ;;  %7929 = vst.msk [vmem:[%s11070_s25 + $0xcf0] sm:$0xff] %vm7514_vm11, %v7026_v9  ;;  %v15708_v9 = vld [vmem:[#allocation6_spill] sm:$0xff] }
 0x303   : > { %7676 = vst.msk [vmem:[%s11070_s25 + $0x508] sm:$0xff] %vm7514_vm11, %v5761_v59  ;;  %7932 = vst.msk [vmem:[%s11070_s25 + $0xd08] sm:$0xff] %vm7514_vm11, %v7041_v5  ;;  %v5756_v50 = vadd.f32 %v14727_v47, %v14218_v26  ;;  %v7036_v38 = vadd.f32 %v14727_v47, %v15704_v52  ;;  %v5771_v3 = vadd.f32 %v14727_v47, %v14246_v18  ;;  %v14950_v30 = vpop.f32.mrf.mxu0  ;;  %v15711_v52 = vld [vmem:[#allocation8_spill] sm:$0xff] }
 0x304   : > { %v3087_v41 = vsel %vm2062_vm9, %v1549_v40, %v2575_v62  ;;  %v7051_v12 = vadd.f32 %v14727_v47, %v14256_v2  ;;  %v5766_v58 = vadd.f32 %v14727_v47, %v14264_v51  ;;  %v7046_v10 = vadd.f32 %v14727_v47, %v15705_v56  ;;  %v15713_v56 = vld [vmem:[#allocation17_spill] sm:$0xff] }
 0x305   : > { %9506 = vmatmul.mubr.msk.f32.gmra.mxu0 %vm3352_vm0, %v3087_v41  ;;  %v3343_v26 = vsel %vm2318_vm10, %v1805_v44, %v2831_v48  ;;  %7675 = vst.msk [vmem:[%s11070_s25 + $0x500] sm:$0xff] %vm7514_vm11, %v5756_v50  ;;  %7931 = vst.msk [vmem:[%s11070_s25 + $0xd00] sm:$0xff] %vm7514_vm11, %v7036_v38  ;;  %v5781_v18 = vadd.f32 %v14727_v47, %v14292_v60  ;;  %v7061_v2 = vadd.f32 %v14727_v47, %v14302_v34  ;;  %v14934_v44 = vpop.f32.mrf.mxu1  ;;  %v15710_v50 = vld [vmem:[#allocation7_spill] sm:$0xff] }
 0x306   : > { %7678 = vst.msk [vmem:[%s11070_s25 + $0x518] sm:$0xff] %vm7514_vm11, %v5771_v3  ;;  %v5776_v51 = vadd.f32 %v14727_v47, %v14310_v11  ;;  %9890 = vmatmul.mubr.msk.f32.gmra.mxu1 %vm3352_vm0, %v3343_v26  ;;  %7934 = vst.msk [vmem:[%s11070_s25 + $0xd18] sm:$0xff] %vm7514_vm11, %v7051_v12  ;;  %v7056_v60 = vadd.f32 %v14727_v47, %v14317_v24  ;;  %v5791_v34 = vadd.f32 %v14727_v47, %v14338_v35  ;;  %v15706_v24 = vld [vmem:[#allocation5_spill] sm:$0xff]  ;;  %v15707_v35 = vld [vmem:[#allocation14_spill] sm:$0xff] }
 0x307   : > { %7677 = vst.msk [vmem:[%s11070_s25 + $0x510] sm:$0xff] %vm7514_vm11, %v5766_v58  ;;  %7933 = vst.msk [vmem:[%s11070_s25 + $0xd10] sm:$0xff] %vm7514_vm11, %v7046_v10  ;;  %v7071_v11 = vadd.f32 %v14727_v47, %v14348_v42  ;;  %v5786_v40 = vadd.f32 %v14727_v47, %v14356_v14  ;;  %v7066_v49 = vadd.f32 %v14727_v47, %v15706_v24  ;;  %v14968_v16 = vpop.f32.mrf.mxu1  ;;  %v15712_v3 = vld [vmem:[#allocation16_spill] sm:$0xff]  ;;  %v15018_v58 = vpop.f32.mrf.mxu0  ;;  %v15717_v24 = vld [vmem:[#allocation10_spill] sm:$0xff] }
 0x308   : > { %7680 = vst.msk [vmem:[%s11070_s25 + $0x528] sm:$0xff] %vm7514_vm11, %v5781_v18  ;;  %7936 = vst.msk [vmem:[%s11070_s25 + $0xd28] sm:$0xff] %vm7514_vm11, %v7061_v2  ;;  %v5801_v42 = vadd.f32 %v14727_v47, %v15707_v35  ;;  %v7081_v14 = vadd.f32 %v14727_v47, %v14404_v29  ;;  %v5796_v23 = vadd.f32 %v14727_v47, %v14412_v46  ;;  %v15714_v18 = vld [vmem:[#allocation18_spill] sm:$0xff] }
 0x309   : > { %7679 = vst.msk [vmem:[%s11070_s25 + $0x520] sm:$0xff] %vm7514_vm11, %v5776_v51  ;;  %7935 = vst.msk [vmem:[%s11070_s25 + $0xd20] sm:$0xff] %vm7514_vm11, %v7056_v60  ;;  %v7076_v59 = vadd.f32 %v14727_v47, %v15708_v9  ;;  %v5811_v29 = vadd.f32 %v14727_v47, %v14440_v57  ;;  %v7091_v46 = vadd.f32 %v14727_v47, %v14450_v22  ;;  %v15709_v57 = vld [vmem:[#allocation15_spill] sm:$0xff]  ;;  %v9798_v26 = vpop.f32.mrf.mxu1  ;;  %v5915_v51 = vpop.f32.mrf.mxu0  ;;  %v15715_v60 = vld [vmem:[#allocation9_spill] sm:$0xff] }
 0x30a   : > { %7682 = vst.msk [vmem:[%s11070_s25 + $0x538] sm:$0xff] %vm7514_vm11, %v5791_v34  ;;  %7938 = vst.msk [vmem:[%s11070_s25 + $0xd38] sm:$0xff] %vm7514_vm11, %v7071_v11  ;;  %v5806_v5 = vadd.f32 %v14727_v47, %v14458_v17  ;;  %v7086_v22 = vadd.f32 %v14727_v47, %v15709_v57  ;;  %v5821_v17 = vadd.f32 %v14727_v47, %v14486_v6  ;;  %v15716_v34 = vld [vmem:[#allocation19_spill] sm:$0xff] }
 0x30b   : > { %7681 = vst.msk [vmem:[%s11070_s25 + $0x530] sm:$0xff] %vm7514_vm11, %v5786_v40  ;;  %7937 = vst.msk [vmem:[%s11070_s25 + $0xd30] sm:$0xff] %vm7514_vm11, %v7066_v49  ;;  %v7101_v62 = vadd.f32 %v14727_v47, %v14496_v25  ;;  %v5816_v48 = vadd.f32 %v14727_v47, %v14504_v19  ;;  %v7096_v6 = vadd.f32 %v14727_v47, %v15710_v50  ;;  %v7195_v40 = vpop.f32.mrf.mxu1 }
 0x30c   : > { %7684 = vst.msk [vmem:[%s11070_s25 + $0x548] sm:$0xff] %vm7514_vm11, %v5801_v42  ;;  %7940 = vst.msk [vmem:[%s11070_s25 + $0xd48] sm:$0xff] %vm7514_vm11, %v7081_v14  ;;  %v5831_v25 = vadd.f32 %v14727_v47, %v15711_v52  ;;  %v7111_v19 = vadd.f32 %v14727_v47, %v14542_v61  ;;  %v5826_v38 = vadd.f32 %v14727_v47, %v14550_v4  ;;  %v15719_v14 = vld [vmem:[#allocation3_spill] sm:$0xff] }
 0x30d   : > { %7683 = vst.msk [vmem:[%s11070_s25 + $0x540] sm:$0xff] %vm7514_vm11, %v5796_v23  ;;  %7939 = vst.msk [vmem:[%s11070_s25 + $0xd40] sm:$0xff] %vm7514_vm11, %v7076_v59  ;;  %v7106_v41 = vadd.f32 %v14727_v47, %v15712_v3  ;;  %v5841_v61 = vadd.f32 %v14727_v47, %v14578_v39  ;;  %v7121_v4 = vadd.f32 %v14727_v47, %v14588_v33 }
 0x30e   : > { %7686 = vst.msk [vmem:[%s11070_s25 + $0x558] sm:$0xff] %vm7514_vm11, %v5811_v29  ;;  %7942 = vst.msk [vmem:[%s11070_s25 + $0xd58] sm:$0xff] %vm7514_vm11, %v7091_v46  ;;  %v5836_v12 = vadd.f32 %v14727_v47, %v14596_v31  ;;  %v7116_v39 = vadd.f32 %v14727_v47, %v15713_v56  ;;  %v5851_v33 = vadd.f32 %v14727_v47, %v14624_v20  ;;  %v9417_v29 = vpop.f32.mrf.mxu0  ;;  %v9801_v46 = vpop.f32.mrf.mxu1 }
 0x30f   : > { %7685 = vst.msk [vmem:[%s11070_s25 + $0x550] sm:$0xff] %vm7514_vm11, %v5806_v5  ;;  %7941 = vst.msk [vmem:[%s11070_s25 + $0xd50] sm:$0xff] %vm7514_vm11, %v7086_v22  ;;  %v7131_v31 = vadd.f32 %v14727_v47, %v14634_v27  ;;  %v5846_v10 = vadd.f32 %v14727_v47, %v14642_v54  ;;  %v7126_v20 = vadd.f32 %v14727_v47, %v15714_v18 }
 0x310   : > { %7688 = vst.msk [vmem:[%s11070_s25 + $0x568] sm:$0xff] %vm7514_vm11, %v5821_v17  ;;  %7944 = vst.msk [vmem:[%s11070_s25 + $0xd68] sm:$0xff] %vm7514_vm11, %v7101_v62  ;;  %v5861_v27 = vadd.f32 %v14727_v47, %v14670_v28  ;;  %v7141_v54 = vadd.f32 %v14727_v47, %v14680_v8  ;;  %v5856_v2 = vadd.f32 %v14727_v47, %v14688_v1  ;;  %v5925_v5 = vpop.f32.mrf.mxu0  ;;  %v7205_v62 = vpop.f32.mrf.mxu1 }
 0x311   : > { %7687 = vst.msk [vmem:[%s11070_s25 + $0x560] sm:$0xff] %vm7514_vm11, %v5816_v48  ;;  %7943 = vst.msk [vmem:[%s11070_s25 + $0xd60] sm:$0xff] %vm7514_vm11, %v7096_v6  ;;  %v7136_v28 = vadd.f32 %v14727_v47, %v15715_v60  ;;  %v5871_v8 = vadd.f32 %v14727_v47, %v15716_v34  ;;  %v7151_v1 = vadd.f32 %v14727_v47, %v14731_v36  ;;  %v15718_v36 = vld [vmem:[#allocation11_spill] sm:$0xff] }
 0x312   : > { %7690 = vst.msk [vmem:[%s11070_s25 + $0x578] sm:$0xff] %vm7514_vm11, %v5831_v25  ;;  %7946 = vst.msk [vmem:[%s11070_s25 + $0xd78] sm:$0xff] %vm7514_vm11, %v7111_v19  ;;  %v5866_v11 = vadd.f32 %v14727_v47, %v14739_v13  ;;  %v7146_v49 = vadd.f32 %v14727_v47, %v15717_v24  ;;  %v5881_v35 = vadd.f32 %v14727_v47, %v15718_v36  ;;  %v9420_v50 = vpop.f32.mrf.mxu0  ;;  %v9804_v52 = vpop.f32.mrf.mxu1 }
 0x313   : > { %7689 = vst.msk [vmem:[%s11070_s25 + $0x570] sm:$0xff] %vm7514_vm11, %v5826_v38  ;;  %7945 = vst.msk [vmem:[%s11070_s25 + $0xd70] sm:$0xff] %vm7514_vm11, %v7106_v41  ;;  %v7161_v13 = vadd.f32 %v14727_v47, %v14777_v0  ;;  %v5876_v42 = vadd.f32 %v14727_v47, %v14785_v37  ;;  %v7156_v23 = vadd.f32 %v14727_v47, %v15719_v14 }
 0x314   : > { %7692 = vst.msk [vmem:[%s11070_s25 + $0x588] sm:$0xff] %vm7514_vm11, %v5841_v61  ;;  %7948 = vst.msk [vmem:[%s11070_s25 + $0xd88] sm:$0xff] %vm7514_vm11, %v7121_v4  ;;  %v5891_v0 = vadd.f32 %v14727_v47, %v14813_v32  ;;  %v7171_v37 = vadd.f32 %v14727_v47, %v14823_v53  ;;  %v5886_v9 = vadd.f32 %v14727_v47, %v14831_v63  ;;  %v5935_v19 = vpop.f32.mrf.mxu0  ;;  %v7215_v3 = vpop.f32.mrf.mxu1 }
 0x315   : > { %7691 = vst.msk [vmem:[%s11070_s25 + $0x580] sm:$0xff] %vm7514_vm11, %v5836_v12  ;;  %7947 = vst.msk [vmem:[%s11070_s25 + $0xd80] sm:$0xff] %vm7514_vm11, %v7116_v39  ;;  %v7166_v59 = vadd.f32 %v14727_v47, %v14838_v21  ;;  %v5901_v32 = vadd.f32 %v14727_v47, %v14856_v45  ;;  %v7181_v53 = vadd.f32 %v14727_v47, %v14866_v15 }
 0x316   : > { %7694 = vst.msk [vmem:[%s11070_s25 + $0x598] sm:$0xff] %vm7514_vm11, %v5851_v33  ;;  %7950 = vst.msk [vmem:[%s11070_s25 + $0xd98] sm:$0xff] %vm7514_vm11, %v7131_v31  ;;  %v5896_v63 = vadd.f32 %v14727_v47, %v14874_v43  ;;  %v7176_v21 = vadd.f32 %v14727_v47, %v14881_v7  ;;  %v5911_v45 = vadd.f32 %v14727_v47, %v14917_v55  ;;  %v9423_v61 = vpop.f32.mrf.mxu0  ;;  %v9807_v12 = vpop.f32.mrf.mxu1 }
 0x317   : > { %7693 = vst.msk [vmem:[%s11070_s25 + $0x590] sm:$0xff] %vm7514_vm11, %v5846_v10  ;;  %7949 = vst.msk [vmem:[%s11070_s25 + $0xd90] sm:$0xff] %vm7514_vm11, %v7126_v20  ;;  %v7191_v15 = vadd.f32 %v14727_v47, %v14934_v44  ;;  %v5906_v43 = vadd.f32 %v14727_v47, %v14950_v30  ;;  %v7186_v7 = vadd.f32 %v14727_v47, %v14968_v16 }
 0x318   : > { %7696 = vst.msk [vmem:[%s11070_s25 + $0x5a8] sm:$0xff] %vm7514_vm11, %v5861_v27  ;;  %7952 = vst.msk [vmem:[%s11070_s25 + $0xda8] sm:$0xff] %vm7514_vm11, %v7141_v54  ;;  %v5921_v55 = vadd.f32 %v14727_v47, %v15018_v58  ;;  %v7201_v44 = vadd.f32 %v14727_v47, %v9798_v26  ;;  %v5916_v30 = vadd.f32 %v14727_v47, %v5915_v51  ;;  %v5945_v56 = vpop.f32.mrf.mxu0  ;;  %v7225_v33 = vpop.f32.mrf.mxu1 }
 0x319   : > { %7695 = vst.msk [vmem:[%s11070_s25 + $0x5a0] sm:$0xff] %vm7514_vm11, %v5856_v2  ;;  %7951 = vst.msk [vmem:[%s11070_s25 + $0xda0] sm:$0xff] %vm7514_vm11, %v7136_v28  ;;  %v7196_v16 = vadd.f32 %v14727_v47, %v7195_v40  ;;  %v5931_v57 = vadd.f32 %v14727_v47, %v9417_v29  ;;  %v7211_v22 = vadd.f32 %v14727_v47, %v9801_v46 }
 0x31a   : > { %7698 = vst.msk [vmem:[%s11070_s25 + $0x5b8] sm:$0xff] %vm7514_vm11, %v5871_v8  ;;  %7954 = vst.msk [vmem:[%s11070_s25 + $0xdb8] sm:$0xff] %vm7514_vm11, %v7151_v1  ;;  %v5926_v17 = vadd.f32 %v14727_v47, %v5925_v5  ;;  %v7206_v48 = vadd.f32 %v14727_v47, %v7205_v62  ;;  %v5941_v6 = vadd.f32 %v14727_v47, %v9420_v50  ;;  %v9426_v10 = vpop.f32.mrf.mxu0  ;;  %v9810_v18 = vpop.f32.mrf.mxu1 }
 0x31b   : > { %7697 = vst.msk [vmem:[%s11070_s25 + $0x5b0] sm:$0xff] %vm7514_vm11, %v5866_v11  ;;  %7953 = vst.msk [vmem:[%s11070_s25 + $0xdb0] sm:$0xff] %vm7514_vm11, %v7146_v49  ;;  %v7221_v25 = vadd.f32 %v14727_v47, %v9804_v52  ;;  %v5936_v38 = vadd.f32 %v14727_v47, %v5935_v19  ;;  %v7216_v41 = vadd.f32 %v14727_v47, %v7215_v3 }
 0x31c   : > { %7700 = vst.msk [vmem:[%s11070_s25 + $0x5c8] sm:$0xff] %vm7514_vm11, %v5881_v35  ;;  %7956 = vst.msk [vmem:[%s11070_s25 + $0xdc8] sm:$0xff] %vm7514_vm11, %v7161_v13  ;;  %v5951_v4 = vadd.f32 %v14727_v47, %v9423_v61  ;;  %v7231_v58 = vadd.f32 %v14727_v47, %v9807_v12  ;;  %v5946_v39 = vadd.f32 %v14727_v47, %v5945_v56  ;;  %v5955_v27 = vpop.f32.mrf.mxu0  ;;  %v7235_v2 = vpop.f32.mrf.mxu1 }
 0x31d   : > { %7699 = vst.msk [vmem:[%s11070_s25 + $0x5c0] sm:$0xff] %vm7514_vm11, %v5876_v42  ;;  %7955 = vst.msk [vmem:[%s11070_s25 + $0xdc0] sm:$0xff] %vm7514_vm11, %v7156_v23  ;;  %v7226_v31 = vadd.f32 %v14727_v47, %v7225_v33  ;;  %v5961_v26 = vadd.f32 %v14727_v47, %v9426_v10  ;;  %v7241_v20 = vadd.f32 %v14727_v47, %v9810_v18 }
 0x31e   : > { %7702 = vst.msk [vmem:[%s11070_s25 + $0x5d8] sm:$0xff] %vm7514_vm11, %v5891_v0  ;;  %7958 = vst.msk [vmem:[%s11070_s25 + $0xdd8] sm:$0xff] %vm7514_vm11, %v7171_v37  ;;  %v5956_v54 = vadd.f32 %v14727_v47, %v5955_v27  ;;  %v7236_v51 = vadd.f32 %v14727_v47, %v7235_v2 }
 0x31f   : > { %7701 = vst.msk [vmem:[%s11070_s25 + $0x5d0] sm:$0xff] %vm7514_vm11, %v5886_v9  ;;  %7957 = vst.msk [vmem:[%s11070_s25 + $0xdd0] sm:$0xff] %vm7514_vm11, %v7166_v59 }
 0x320   : > { %7704 = vst.msk [vmem:[%s11070_s25 + $0x5e8] sm:$0xff] %vm7514_vm11, %v5901_v32  ;;  %7960 = vst.msk [vmem:[%s11070_s25 + $0xde8] sm:$0xff] %vm7514_vm11, %v7181_v53  ;;  %v9429_v60 = vpop.f32.mrf.mxu0  ;;  %v9813_v34 = vpop.f32.mrf.mxu1 }
 0x321   : > { %7703 = vst.msk [vmem:[%s11070_s25 + $0x5e0] sm:$0xff] %vm7514_vm11, %v5896_v63  ;;  %7959 = vst.msk [vmem:[%s11070_s25 + $0xde0] sm:$0xff] %vm7514_vm11, %v7176_v21  ;;  %v5971_v28 = vadd.f32 %v14727_v47, %v9429_v60  ;;  %v7251_v8 = vadd.f32 %v14727_v47, %v9813_v34 }
 0x322   : > { %7706 = vst.msk [vmem:[%s11070_s25 + $0x5f8] sm:$0xff] %vm7514_vm11, %v5911_v45  ;;  %7962 = vst.msk [vmem:[%s11070_s25 + $0xdf8] sm:$0xff] %vm7514_vm11, %v7191_v15  ;;  %v5965_v1 = vpop.f32.mrf.mxu0  ;;  %v7245_v40 = vpop.f32.mrf.mxu1 }
 0x323   : > { %7705 = vst.msk [vmem:[%s11070_s25 + $0x5f0] sm:$0xff] %vm7514_vm11, %v5906_v43  ;;  %7961 = vst.msk [vmem:[%s11070_s25 + $0xdf0] sm:$0xff] %vm7514_vm11, %v7186_v7  ;;  %v5966_v11 = vadd.f32 %v14727_v47, %v5965_v1  ;;  %v7246_v24 = vadd.f32 %v14727_v47, %v7245_v40 }
 0x324   : > { %7708 = vst.msk [vmem:[%s11070_s25 + $0x608] sm:$0xff] %vm7514_vm11, %v5921_v55  ;;  %7964 = vst.msk [vmem:[%s11070_s25 + $0xe08] sm:$0xff] %vm7514_vm11, %v7201_v44 }
 0x325   : > { %7707 = vst.msk [vmem:[%s11070_s25 + $0x600] sm:$0xff] %vm7514_vm11, %v5916_v30  ;;  %7963 = vst.msk [vmem:[%s11070_s25 + $0xe00] sm:$0xff] %vm7514_vm11, %v7196_v16 }
 0x326   : > { %7710 = vst.msk [vmem:[%s11070_s25 + $0x618] sm:$0xff] %vm7514_vm11, %v5931_v57  ;;  %7966 = vst.msk [vmem:[%s11070_s25 + $0xe18] sm:$0xff] %vm7514_vm11, %v7211_v22  ;;  %v9432_v49 = vpop.f32.mrf.mxu0 }
 0x327   : > { %7709 = vst.msk [vmem:[%s11070_s25 + $0x610] sm:$0xff] %vm7514_vm11, %v5926_v17  ;;  %7965 = vst.msk [vmem:[%s11070_s25 + $0xe10] sm:$0xff] %vm7514_vm11, %v7206_v48  ;;  %v5981_v36 = vadd.f32 %v14727_v47, %v9432_v49  ;;  %v9816_v35 = vpop.f32.mrf.mxu1 }
 0x328   : > { %7712 = vst.msk [vmem:[%s11070_s25 + $0x628] sm:$0xff] %vm7514_vm11, %v5941_v6  ;;  %7968 = vst.msk [vmem:[%s11070_s25 + $0xe28] sm:$0xff] %vm7514_vm11, %v7221_v25  ;;  %v7261_v13 = vadd.f32 %v14727_v47, %v9816_v35  ;;  %v5975_v42 = vpop.f32.mrf.mxu0 }
 0x329   : > { %7711 = vst.msk [vmem:[%s11070_s25 + $0x620] sm:$0xff] %vm7514_vm11, %v5936_v38  ;;  %7967 = vst.msk [vmem:[%s11070_s25 + $0xe20] sm:$0xff] %vm7514_vm11, %v7216_v41  ;;  %v5976_v14 = vadd.f32 %v14727_v47, %v5975_v42  ;;  %v7255_v23 = vpop.f32.mrf.mxu1 }
 0x32a   : > { %7714 = vst.msk [vmem:[%s11070_s25 + $0x638] sm:$0xff] %vm7514_vm11, %v5951_v4  ;;  %7970 = vst.msk [vmem:[%s11070_s25 + $0xe38] sm:$0xff] %vm7514_vm11, %v7231_v58  ;;  %v7256_v0 = vadd.f32 %v14727_v47, %v7255_v23 }
 0x32b   : > { %7713 = vst.msk [vmem:[%s11070_s25 + $0x630] sm:$0xff] %vm7514_vm11, %v5946_v39  ;;  %7969 = vst.msk [vmem:[%s11070_s25 + $0xe30] sm:$0xff] %vm7514_vm11, %v7226_v31 }
 0x32c   : > { %7716 = vst.msk [vmem:[%s11070_s25 + $0x648] sm:$0xff] %vm7514_vm11, %v5961_v26  ;;  %7972 = vst.msk [vmem:[%s11070_s25 + $0xe48] sm:$0xff] %vm7514_vm11, %v7241_v20  ;;  %v9435_v37 = vpop.f32.mrf.mxu0 }
 0x32d   : > { %7715 = vst.msk [vmem:[%s11070_s25 + $0x640] sm:$0xff] %vm7514_vm11, %v5956_v54  ;;  %7971 = vst.msk [vmem:[%s11070_s25 + $0xe40] sm:$0xff] %vm7514_vm11, %v7236_v51  ;;  %v5991_v9 = vadd.f32 %v14727_v47, %v9435_v37  ;;  %v9819_v59 = vpop.f32.mrf.mxu1 }
 0x32e   : > { %7718 = vst.msk [vmem:[%s11070_s25 + $0x658] sm:$0xff] %vm7514_vm11, %v5971_v28  ;;  %7974 = vst.msk [vmem:[%s11070_s25 + $0xe58] sm:$0xff] %vm7514_vm11, %v7251_v8  ;;  %v7271_v32 = vadd.f32 %v14727_v47, %v9819_v59  ;;  %v5985_v53 = vpop.f32.mrf.mxu0 }
 0x32f   : > { %7717 = vst.msk [vmem:[%s11070_s25 + $0x650] sm:$0xff] %vm7514_vm11, %v5966_v11  ;;  %7973 = vst.msk [vmem:[%s11070_s25 + $0xe50] sm:$0xff] %vm7514_vm11, %v7246_v24  ;;  %v5986_v63 = vadd.f32 %v14727_v47, %v5985_v53  ;;  %v7265_v29 = vpop.f32.mrf.mxu1 }
 0x330   : > { %7720 = vst.msk [vmem:[%s11070_s25 + $0x668] sm:$0xff] %vm7514_vm11, %v5981_v36  ;;  %7976 = vst.msk [vmem:[%s11070_s25 + $0xe68] sm:$0xff] %vm7514_vm11, %v7261_v13  ;;  %v7266_v21 = vadd.f32 %v14727_v47, %v7265_v29 }
 0x331   : > { %7719 = vst.msk [vmem:[%s11070_s25 + $0x660] sm:$0xff] %vm7514_vm11, %v5976_v14  ;;  %7975 = vst.msk [vmem:[%s11070_s25 + $0xe60] sm:$0xff] %vm7514_vm11, %v7256_v0 }
 0x332   : > { %7722 = vst.msk [vmem:[%s11070_s25 + $0x678] sm:$0xff] %vm7514_vm11, %v5991_v9  ;;  %7978 = vst.msk [vmem:[%s11070_s25 + $0xe78] sm:$0xff] %vm7514_vm11, %v7271_v32 }
 0x333   : > { %7721 = vst.msk [vmem:[%s11070_s25 + $0x670] sm:$0xff] %vm7514_vm11, %v5986_v63  ;;  %7977 = vst.msk [vmem:[%s11070_s25 + $0xe70] sm:$0xff] %vm7514_vm11, %v7266_v21  ;;  %v9438_v45 = vpop.f32.mrf.mxu0  ;;  %v9822_v43 = vpop.f32.mrf.mxu1 }
 0x334   : > { %v6001_v15 = vadd.f32 %v14727_v47, %v9438_v45  ;;  %v7281_v46 = vadd.f32 %v14727_v47, %v9822_v43 }
 0x335   : > { %v5995_v7 = vpop.f32.mrf.mxu0  ;;  %v7275_v44 = vpop.f32.mrf.mxu1 }
 0x336   : > { %7724 = vst.msk [vmem:[%s11070_s25 + $0x688] sm:$0xff] %vm7514_vm11, %v6001_v15  ;;  %v5996_v55 = vadd.f32 %v14727_v47, %v5995_v7  ;;  %7980 = vst.msk [vmem:[%s11070_s25 + $0xe88] sm:$0xff] %vm7514_vm11, %v7281_v46  ;;  %v7276_v30 = vadd.f32 %v14727_v47, %v7275_v44 }
 0x338   : > { %7723 = vst.msk [vmem:[%s11070_s25 + $0x680] sm:$0xff] %vm7514_vm11, %v5996_v55  ;;  %7979 = vst.msk [vmem:[%s11070_s25 + $0xe80] sm:$0xff] %vm7514_vm11, %v7276_v30 }
 0x339   : > { %v9441_v5 = vpop.f32.mrf.mxu0 }
 0x33a   : > { %v6011_v16 = vadd.f32 %v14727_v47, %v9441_v5  ;;  %v9825_v57 = vpop.f32.mrf.mxu1 }
 0x33b   : > { %v7291_v22 = vadd.f32 %v14727_v47, %v9825_v57  ;;  %v6005_v17 = vpop.f32.mrf.mxu0 }
 0x33c   : > { %7726 = vst.msk [vmem:[%s11070_s25 + $0x698] sm:$0xff] %vm7514_vm11, %v6011_v16  ;;  %v6006_v62 = vadd.f32 %v14727_v47, %v6005_v17  ;;  %v7285_v48 = vpop.f32.mrf.mxu1 }
 0x33d   : > { %7982 = vst.msk [vmem:[%s11070_s25 + $0xe98] sm:$0xff] %vm7514_vm11, %v7291_v22  ;;  %v7286_v50 = vadd.f32 %v14727_v47, %v7285_v48 }
 0x33e   : > { %7725 = vst.msk [vmem:[%s11070_s25 + $0x690] sm:$0xff] %vm7514_vm11, %v6006_v62 }
 0x33f   : > { %7981 = vst.msk [vmem:[%s11070_s25 + $0xe90] sm:$0xff] %vm7514_vm11, %v7286_v50  ;;  %v9444_v6 = vpop.f32.mrf.mxu0 }
 0x340   : > { %v6021_v52 = vadd.f32 %v14727_v47, %v9444_v6  ;;  %v9828_v25 = vpop.f32.mrf.mxu1 }
 0x341   : > { %v7301_v19 = vadd.f32 %v14727_v47, %v9828_v25  ;;  %v6015_v38 = vpop.f32.mrf.mxu0 }
 0x342   : > { %7728 = vst.msk [vmem:[%s11070_s25 + $0x6a8] sm:$0xff] %vm7514_vm11, %v6021_v52  ;;  %v6016_v3 = vadd.f32 %v14727_v47, %v6015_v38  ;;  %v7295_v41 = vpop.f32.mrf.mxu1 }
 0x343   : > { %7984 = vst.msk [vmem:[%s11070_s25 + $0xea8] sm:$0xff] %vm7514_vm11, %v7301_v19  ;;  %v7296_v61 = vadd.f32 %v14727_v47, %v7295_v41 }
 0x344   : > { %7727 = vst.msk [vmem:[%s11070_s25 + $0x6a0] sm:$0xff] %vm7514_vm11, %v6016_v3 }
 0x345   : > { %7983 = vst.msk [vmem:[%s11070_s25 + $0xea0] sm:$0xff] %vm7514_vm11, %v7296_v61 }
 0x346   : > { %v9447_v4 = vpop.f32.mrf.mxu0  ;;  %v9831_v58 = vpop.f32.mrf.mxu1 }
 0x347   : > { %v6031_v12 = vadd.f32 %v14727_v47, %v9447_v4  ;;  %v7311_v56 = vadd.f32 %v14727_v47, %v9831_v58 }
 0x348   : > { %v6025_v39 = vpop.f32.mrf.mxu0  ;;  %v7305_v31 = vpop.f32.mrf.mxu1 }
 0x349   : > { %7730 = vst.msk [vmem:[%s11070_s25 + $0x6b8] sm:$0xff] %vm7514_vm11, %v6031_v12  ;;  %v6026_v33 = vadd.f32 %v14727_v47, %v6025_v39  ;;  %7986 = vst.msk [vmem:[%s11070_s25 + $0xeb8] sm:$0xff] %vm7514_vm11, %v7311_v56  ;;  %v7306_v10 = vadd.f32 %v14727_v47, %v7305_v31 }
 0x34b   : > { %7729 = vst.msk [vmem:[%s11070_s25 + $0x6b0] sm:$0xff] %vm7514_vm11, %v6026_v33  ;;  %7985 = vst.msk [vmem:[%s11070_s25 + $0xeb0] sm:$0xff] %vm7514_vm11, %v7306_v10 }
 0x34c   : > { %v9450_v26 = vpop.f32.mrf.mxu0 }
 0x34d   : > { %v6041_v18 = vadd.f32 %v14727_v47, %v9450_v26  ;;  %v9834_v20 = vpop.f32.mrf.mxu1 }
 0x34e   : > { %v7321_v27 = vadd.f32 %v14727_v47, %v9834_v20  ;;  %v6035_v54 = vpop.f32.mrf.mxu0 }
 0x34f   : > { %7732 = vst.msk [vmem:[%s11070_s25 + $0x6c8] sm:$0xff] %vm7514_vm11, %v6041_v18  ;;  %v6036_v2 = vadd.f32 %v14727_v47, %v6035_v54  ;;  %v7315_v51 = vpop.f32.mrf.mxu1  ;;  %v15397_v54 = vld [vmem:[%s15550_s5] ss:$0 sm:$0xff] }
 0x350   : > { %7988 = vst.msk [vmem:[%s11070_s25 + $0xec8] sm:$0xff] %vm7514_vm11, %v7321_v27  ;;  %v7316_v60 = vadd.f32 %v14727_v47, %v7315_v51 }
 0x351   : > { %7731 = vst.msk [vmem:[%s11070_s25 + $0x6c0] sm:$0xff] %vm7514_vm11, %v6036_v2 }
 0x352   : > { %7987 = vst.msk [vmem:[%s11070_s25 + $0xec0] sm:$0xff] %vm7514_vm11, %v7316_v60  ;;  %v9453_v28 = vpop.f32.mrf.mxu0 }
 0x353   : > { %v6051_v34 = vadd.f32 %v14727_v47, %v9453_v28  ;;  %v9837_v8 = vpop.f32.mrf.mxu1 }
 0x354   : > { %v7331_v1 = vadd.f32 %v14727_v47, %v9837_v8  ;;  %v6045_v11 = vpop.f32.mrf.mxu0 }
 0x355   : > { %7734 = vst.msk [vmem:[%s11070_s25 + $0x6d8] sm:$0xff] %vm7514_vm11, %v6051_v34  ;;  %v6046_v40 = vadd.f32 %v14727_v47, %v6045_v11  ;;  %v7325_v24 = vpop.f32.mrf.mxu1 }
 0x356   : > { %7990 = vst.msk [vmem:[%s11070_s25 + $0xed8] sm:$0xff] %vm7514_vm11, %v7331_v1  ;;  %v7326_v49 = vadd.f32 %v14727_v47, %v7325_v24 }
 0x357   : > { %7733 = vst.msk [vmem:[%s11070_s25 + $0x6d0] sm:$0xff] %vm7514_vm11, %v6046_v40 }
 0x358   : > { %7989 = vst.msk [vmem:[%s11070_s25 + $0xed0] sm:$0xff] %vm7514_vm11, %v7326_v49 }
 0x359   : > { %v9456_v36 = vpop.f32.mrf.mxu0  ;;  %v9840_v13 = vpop.f32.mrf.mxu1 }
 0x35a   : > { %v6061_v35 = vadd.f32 %v14727_v47, %v9456_v36  ;;  %v7341_v42 = vadd.f32 %v14727_v47, %v9840_v13 }
 0x35b   : > { %v6055_v14 = vpop.f32.mrf.mxu0  ;;  %v7335_v0 = vpop.f32.mrf.mxu1 }
 0x35c   : > { %7736 = vst.msk [vmem:[%s11070_s25 + $0x6e8] sm:$0xff] %vm7514_vm11, %v6061_v35  ;;  %v6056_v23 = vadd.f32 %v14727_v47, %v6055_v14  ;;  %7992 = vst.msk [vmem:[%s11070_s25 + $0xee8] sm:$0xff] %vm7514_vm11, %v7341_v42  ;;  %v7336_v37 = vadd.f32 %v14727_v47, %v7335_v0 }
 0x35e   : > { %7735 = vst.msk [vmem:[%s11070_s25 + $0x6e0] sm:$0xff] %vm7514_vm11, %v6056_v23  ;;  %7991 = vst.msk [vmem:[%s11070_s25 + $0xee0] sm:$0xff] %vm7514_vm11, %v7336_v37 }
 0x35f   : > { %v9459_v9 = vpop.f32.mrf.mxu0 }
 0x360   : > { %v6071_v59 = vadd.f32 %v14727_v47, %v9459_v9  ;;  %v9843_v32 = vpop.f32.mrf.mxu1 }
 0x361   : > { %v7351_v53 = vadd.f32 %v14727_v47, %v9843_v32  ;;  %v6065_v63 = vpop.f32.mrf.mxu0 }
 0x362   : > { %7738 = vst.msk [vmem:[%s11070_s25 + $0x6f8] sm:$0xff] %vm7514_vm11, %v6071_v59  ;;  %v6066_v29 = vadd.f32 %v14727_v47, %v6065_v63  ;;  %v7345_v21 = vpop.f32.mrf.mxu1 }
 0x363   : > { %7994 = vst.msk [vmem:[%s11070_s25 + $0xef8] sm:$0xff] %vm7514_vm11, %v7351_v53  ;;  %v7346_v45 = vadd.f32 %v14727_v47, %v7345_v21 }
 0x364   : > { %7737 = vst.msk [vmem:[%s11070_s25 + $0x6f0] sm:$0xff] %vm7514_vm11, %v6066_v29 }
 0x365   : > { %7993 = vst.msk [vmem:[%s11070_s25 + $0xef0] sm:$0xff] %vm7514_vm11, %v7346_v45  ;;  %v9462_v15 = vpop.f32.mrf.mxu0 }
 0x366   : > { %v6081_v43 = vadd.f32 %v14727_v47, %v9462_v15  ;;  %v9846_v46 = vpop.f32.mrf.mxu1 }
 0x367   : > { %v7361_v7 = vadd.f32 %v14727_v47, %v9846_v46  ;;  %v6075_v55 = vpop.f32.mrf.mxu0 }
 0x368   : > { %7740 = vst.msk [vmem:[%s11070_s25 + $0x708] sm:$0xff] %vm7514_vm11, %v6081_v43  ;;  %v6076_v44 = vadd.f32 %v14727_v47, %v6075_v55  ;;  %v7355_v30 = vpop.f32.mrf.mxu1 }
 0x369   : > { %7996 = vst.msk [vmem:[%s11070_s25 + $0xf08] sm:$0xff] %vm7514_vm11, %v7361_v7  ;;  %v7356_v5 = vadd.f32 %v14727_v47, %v7355_v30 }
 0x36a   : > { %7739 = vst.msk [vmem:[%s11070_s25 + $0x700] sm:$0xff] %vm7514_vm11, %v6076_v44 }
 0x36b   : > { %7995 = vst.msk [vmem:[%s11070_s25 + $0xf00] sm:$0xff] %vm7514_vm11, %v7356_v5 }
 0x36c   : > { %v9465_v16 = vpop.f32.mrf.mxu0  ;;  %v9849_v22 = vpop.f32.mrf.mxu1 }
 0x36d   : > { %v6091_v57 = vadd.f32 %v14727_v47, %v9465_v16  ;;  %v7371_v17 = vadd.f32 %v14727_v47, %v9849_v22 }
 0x36e   : > { %v6085_v62 = vpop.f32.mrf.mxu0  ;;  %v7365_v50 = vpop.f32.mrf.mxu1 }
 0x36f   : > { %7742 = vst.msk [vmem:[%s11070_s25 + $0x718] sm:$0xff] %vm7514_vm11, %v6091_v57  ;;  %v6086_v48 = vadd.f32 %v14727_v47, %v6085_v62  ;;  %7998 = vst.msk [vmem:[%s11070_s25 + $0xf18] sm:$0xff] %vm7514_vm11, %v7371_v17  ;;  %v7366_v6 = vadd.f32 %v14727_v47, %v7365_v50 }
 0x371   : > { %7741 = vst.msk [vmem:[%s11070_s25 + $0x710] sm:$0xff] %vm7514_vm11, %v6086_v48  ;;  %7997 = vst.msk [vmem:[%s11070_s25 + $0xf10] sm:$0xff] %vm7514_vm11, %v7366_v6 }
 0x372   : > { %v9468_v52 = vpop.f32.mrf.mxu0 }
 0x373   : > { %v6101_v25 = vadd.f32 %v14727_v47, %v9468_v52  ;;  %v9852_v19 = vpop.f32.mrf.mxu1 }
 0x374   : > { %v7381_v38 = vadd.f32 %v14727_v47, %v9852_v19  ;;  %v6095_v3 = vpop.f32.mrf.mxu0 }
 0x375   : > { %7744 = vst.msk [vmem:[%s11070_s25 + $0x728] sm:$0xff] %vm7514_vm11, %v6101_v25  ;;  %v6096_v41 = vadd.f32 %v14727_v47, %v6095_v3  ;;  %v7375_v61 = vpop.f32.mrf.mxu1 }
 0x376   : > { %8000 = vst.msk [vmem:[%s11070_s25 + $0xf28] sm:$0xff] %vm7514_vm11, %v7381_v38  ;;  %v7376_v4 = vadd.f32 %v14727_v47, %v7375_v61 }
 0x377   : > { %7743 = vst.msk [vmem:[%s11070_s25 + $0x720] sm:$0xff] %vm7514_vm11, %v6096_v41 }
 0x378   : > { %7999 = vst.msk [vmem:[%s11070_s25 + $0xf20] sm:$0xff] %vm7514_vm11, %v7376_v4  ;;  %v9471_v12 = vpop.f32.mrf.mxu0 }
 0x379   : > { %v6111_v58 = vadd.f32 %v14727_v47, %v9471_v12  ;;  %v9855_v56 = vpop.f32.mrf.mxu1 }
 0x37a   : > { %v7391_v39 = vadd.f32 %v14727_v47, %v9855_v56  ;;  %v6105_v33 = vpop.f32.mrf.mxu0 }
 0x37b   : > { %7746 = vst.msk [vmem:[%s11070_s25 + $0x738] sm:$0xff] %vm7514_vm11, %v6111_v58  ;;  %v6106_v31 = vadd.f32 %v14727_v47, %v6105_v33  ;;  %v7385_v10 = vpop.f32.mrf.mxu1 }
 0x37c   : > { %8002 = vst.msk [vmem:[%s11070_s25 + $0xf38] sm:$0xff] %vm7514_vm11, %v7391_v39  ;;  %v7386_v26 = vadd.f32 %v14727_v47, %v7385_v10 }
 0x37d   : > { %7745 = vst.msk [vmem:[%s11070_s25 + $0x730] sm:$0xff] %vm7514_vm11, %v6106_v31 }
 0x37e   : > { %8001 = vst.msk [vmem:[%s11070_s25 + $0xf30] sm:$0xff] %vm7514_vm11, %v7386_v26 }
 0x37f   : > { %v9474_v18 = vpop.f32.mrf.mxu0  ;;  %v9858_v27 = vpop.f32.mrf.mxu1 }
 0x380   : > { %v6121_v20 = vadd.f32 %v14727_v47, %v9474_v18  ;;  %v7401_v2 = vadd.f32 %v15397_v54, %v9858_v27 }
 0x381   : > { %v6115_v51 = vpop.f32.mrf.mxu0  ;;  %v7395_v28 = vpop.f32.mrf.mxu1 }
 0x382   : > { %7748 = vst.msk [vmem:[%s11070_s25 + $0x748] sm:$0xff] %vm7514_vm11, %v6121_v20  ;;  %v6116_v60 = vadd.f32 %v15397_v54, %v6115_v51  ;;  %8004 = vst.msk [vmem:[%s11070_s25 + $0xf48] sm:$0xff] %vm7514_vm11, %v7401_v2  ;;  %v7396_v47 = vadd.f32 %v15397_v54, %v7395_v28 }
 0x384   : > { %7747 = vst.msk [vmem:[%s11070_s25 + $0x740] sm:$0xff] %vm7514_vm11, %v6116_v60  ;;  %8003 = vst.msk [vmem:[%s11070_s25 + $0xf40] sm:$0xff] %vm7514_vm11, %v7396_v47 }
 0x385   : > { %v9477_v34 = vpop.f32.mrf.mxu0 }
 0x386   : > { %v6131_v8 = vadd.f32 %v15397_v54, %v9477_v34  ;;  %v9861_v1 = vpop.f32.mrf.mxu1 }
 0x387   : > { %v7411_v11 = vadd.f32 %v15397_v54, %v9861_v1  ;;  %v6125_v40 = vpop.f32.mrf.mxu0 }
 0x388   : > { %7750 = vst.msk [vmem:[%s11070_s25 + $0x758] sm:$0xff] %vm7514_vm11, %v6131_v8  ;;  %v6126_v24 = vadd.f32 %v15397_v54, %v6125_v40  ;;  %v7405_v49 = vpop.f32.mrf.mxu1 }
 0x389   : > { %8006 = vst.msk [vmem:[%s11070_s25 + $0xf58] sm:$0xff] %vm7514_vm11, %v7411_v11  ;;  %v7406_v36 = vadd.f32 %v15397_v54, %v7405_v49 }
 0x38a   : > { %7749 = vst.msk [vmem:[%s11070_s25 + $0x750] sm:$0xff] %vm7514_vm11, %v6126_v24 }
 0x38b   : > { %8005 = vst.msk [vmem:[%s11070_s25 + $0xf50] sm:$0xff] %vm7514_vm11, %v7406_v36 }
 0x38c   : > { %v9480_v35 = vpop.f32.mrf.mxu0  ;;  %v9864_v42 = vpop.f32.mrf.mxu1 }
 0x38d   : > { %v6141_v13 = vadd.f32 %v15397_v54, %v9480_v35  ;;  %v7421_v14 = vadd.f32 %v15397_v54, %v9864_v42 }
 0x38e   : > { %v6135_v23 = vpop.f32.mrf.mxu0  ;;  %v7415_v37 = vpop.f32.mrf.mxu1 }
 0x38f   : > { %7752 = vst.msk [vmem:[%s11070_s25 + $0x768] sm:$0xff] %vm7514_vm11, %v6141_v13  ;;  %v6136_v0 = vadd.f32 %v15397_v54, %v6135_v23  ;;  %8008 = vst.msk [vmem:[%s11070_s25 + $0xf68] sm:$0xff] %vm7514_vm11, %v7421_v14  ;;  %v7416_v9 = vadd.f32 %v15397_v54, %v7415_v37 }
 0x391   : > { %7751 = vst.msk [vmem:[%s11070_s25 + $0x760] sm:$0xff] %vm7514_vm11, %v6136_v0  ;;  %8007 = vst.msk [vmem:[%s11070_s25 + $0xf60] sm:$0xff] %vm7514_vm11, %v7416_v9 }
 0x392   : > { %v9483_v59 = vpop.f32.mrf.mxu0 }
 0x393   : > { %v6151_v32 = vadd.f32 %v15397_v54, %v9483_v59  ;;  %v9867_v53 = vpop.f32.mrf.mxu1 }
 0x394   : > { %v7431_v63 = vadd.f32 %v15397_v54, %v9867_v53  ;;  %v6145_v29 = vpop.f32.mrf.mxu0 }
 0x395   : > { %7754 = vst.msk [vmem:[%s11070_s25 + $0x778] sm:$0xff] %vm7514_vm11, %v6151_v32  ;;  %v6146_v21 = vadd.f32 %v15397_v54, %v6145_v29  ;;  %v7425_v45 = vpop.f32.mrf.mxu1 }
 0x396   : > { %8010 = vst.msk [vmem:[%s11070_s25 + $0xf78] sm:$0xff] %vm7514_vm11, %v7431_v63  ;;  %v7426_v15 = vadd.f32 %v15397_v54, %v7425_v45 }
 0x397   : > { %7753 = vst.msk [vmem:[%s11070_s25 + $0x770] sm:$0xff] %vm7514_vm11, %v6146_v21 }
 0x398   : > { %8009 = vst.msk [vmem:[%s11070_s25 + $0xf70] sm:$0xff] %vm7514_vm11, %v7426_v15  ;;  %v9486_v43 = vpop.f32.mrf.mxu0 }
 0x399   : > { %v6161_v46 = vadd.f32 %v15397_v54, %v9486_v43  ;;  %v9870_v7 = vpop.f32.mrf.mxu1 }
 0x39a   : > { %v7441_v55 = vadd.f32 %v15397_v54, %v9870_v7  ;;  %v6155_v44 = vpop.f32.mrf.mxu0 }
 0x39b   : > { %7756 = vst.msk [vmem:[%s11070_s25 + $0x788] sm:$0xff] %vm7514_vm11, %v6161_v46  ;;  %v6156_v30 = vadd.f32 %v15397_v54, %v6155_v44  ;;  %v7435_v5 = vpop.f32.mrf.mxu1 }
 0x39c   : > { %8012 = vst.msk [vmem:[%s11070_s25 + $0xf88] sm:$0xff] %vm7514_vm11, %v7441_v55  ;;  %v7436_v16 = vadd.f32 %v15397_v54, %v7435_v5 }
 0x39d   : > { %7755 = vst.msk [vmem:[%s11070_s25 + $0x780] sm:$0xff] %vm7514_vm11, %v6156_v30 }
 0x39e   : > { %8011 = vst.msk [vmem:[%s11070_s25 + $0xf80] sm:$0xff] %vm7514_vm11, %v7436_v16 }
 0x39f   : > { %v9489_v57 = vpop.f32.mrf.mxu0  ;;  %v9873_v17 = vpop.f32.mrf.mxu1 }
 0x3a0   : > { %v6171_v22 = vadd.f32 %v15397_v54, %v9489_v57  ;;  %v7451_v62 = vadd.f32 %v15397_v54, %v9873_v17 }
 0x3a1   : > { %v6165_v48 = vpop.f32.mrf.mxu0  ;;  %v7445_v6 = vpop.f32.mrf.mxu1 }
 0x3a2   : > { %7758 = vst.msk [vmem:[%s11070_s25 + $0x798] sm:$0xff] %vm7514_vm11, %v6171_v22  ;;  %v6166_v50 = vadd.f32 %v15397_v54, %v6165_v48  ;;  %8014 = vst.msk [vmem:[%s11070_s25 + $0xf98] sm:$0xff] %vm7514_vm11, %v7451_v62  ;;  %v7446_v52 = vadd.f32 %v15397_v54, %v7445_v6 }
 0x3a4   : > { %7757 = vst.msk [vmem:[%s11070_s25 + $0x790] sm:$0xff] %vm7514_vm11, %v6166_v50  ;;  %8013 = vst.msk [vmem:[%s11070_s25 + $0xf90] sm:$0xff] %vm7514_vm11, %v7446_v52 }
 0x3a5   : > { %v9492_v25 = vpop.f32.mrf.mxu0 }
 0x3a6   : > { %v6181_v19 = vadd.f32 %v15397_v54, %v9492_v25  ;;  %v9876_v38 = vpop.f32.mrf.mxu1 }
 0x3a7   : > { %v7461_v3 = vadd.f32 %v15397_v54, %v9876_v38  ;;  %v6175_v41 = vpop.f32.mrf.mxu0 }
 0x3a8   : > { %7760 = vst.msk [vmem:[%s11070_s25 + $0x7a8] sm:$0xff] %vm7514_vm11, %v6181_v19  ;;  %v6176_v61 = vadd.f32 %v15397_v54, %v6175_v41  ;;  %v7455_v4 = vpop.f32.mrf.mxu1 }
 0x3a9   : > { %8016 = vst.msk [vmem:[%s11070_s25 + $0xfa8] sm:$0xff] %vm7514_vm11, %v7461_v3  ;;  %v7456_v12 = vadd.f32 %v15397_v54, %v7455_v4 }
 0x3aa   : > { %7759 = vst.msk [vmem:[%s11070_s25 + $0x7a0] sm:$0xff] %vm7514_vm11, %v6176_v61 }
 0x3ab   : > { %8015 = vst.msk [vmem:[%s11070_s25 + $0xfa0] sm:$0xff] %vm7514_vm11, %v7456_v12  ;;  %v9495_v58 = vpop.f32.mrf.mxu0 }
 0x3ac   : > { %v6191_v56 = vadd.f32 %v15397_v54, %v9495_v58  ;;  %v9879_v39 = vpop.f32.mrf.mxu1 }
 0x3ad   : > { %v7471_v33 = vadd.f32 %v15397_v54, %v9879_v39  ;;  %v6185_v31 = vpop.f32.mrf.mxu0 }
 0x3ae   : > { %7762 = vst.msk [vmem:[%s11070_s25 + $0x7b8] sm:$0xff] %vm7514_vm11, %v6191_v56  ;;  %v6186_v10 = vadd.f32 %v15397_v54, %v6185_v31  ;;  %v7465_v26 = vpop.f32.mrf.mxu1 }
 0x3af   : > { %8018 = vst.msk [vmem:[%s11070_s25 + $0xfb8] sm:$0xff] %vm7514_vm11, %v7471_v33  ;;  %v7466_v18 = vadd.f32 %v15397_v54, %v7465_v26 }
 0x3b0   : > { %7761 = vst.msk [vmem:[%s11070_s25 + $0x7b0] sm:$0xff] %vm7514_vm11, %v6186_v10 }
 0x3b1   : > { %8017 = vst.msk [vmem:[%s11070_s25 + $0xfb0] sm:$0xff] %vm7514_vm11, %v7466_v18 }
 0x3b2   : > { %v9498_v20 = vpop.f32.mrf.mxu0  ;;  %v9882_v2 = vpop.f32.mrf.mxu1 }
 0x3b3   : > { %v6201_v27 = vadd.f32 %v15397_v54, %v9498_v20  ;;  %v7481_v51 = vadd.f32 %v15397_v54, %v9882_v2 }
 0x3b4   : > { %v6195_v60 = vpop.f32.mrf.mxu0  ;;  %v7475_v47 = vpop.f32.mrf.mxu1 }
 0x3b5   : > { %7764 = vst.msk [vmem:[%s11070_s25 + $0x7c8] sm:$0xff] %vm7514_vm11, %v6201_v27  ;;  %v6196_v28 = vadd.f32 %v15397_v54, %v6195_v60  ;;  %8020 = vst.msk [vmem:[%s11070_s25 + $0xfc8] sm:$0xff] %vm7514_vm11, %v7481_v51  ;;  %v7476_v34 = vadd.f32 %v15397_v54, %v7475_v47 }
 0x3b7   : > { %7763 = vst.msk [vmem:[%s11070_s25 + $0x7c0] sm:$0xff] %vm7514_vm11, %v6196_v28  ;;  %8019 = vst.msk [vmem:[%s11070_s25 + $0xfc0] sm:$0xff] %vm7514_vm11, %v7476_v34 }
 0x3b8   : > { %v9501_v8 = vpop.f32.mrf.mxu0 }
 0x3b9   : > { %v6211_v1 = vadd.f32 %v15397_v54, %v9501_v8  ;;  %v9885_v11 = vpop.f32.mrf.mxu1 }
 0x3ba   : > { %v7491_v40 = vadd.f32 %v15397_v54, %v9885_v11  ;;  %v6205_v24 = vpop.f32.mrf.mxu0 }
 0x3bb   : > { %7766 = vst.msk [vmem:[%s11070_s25 + $0x7d8] sm:$0xff] %vm7514_vm11, %v6211_v1  ;;  %v6206_v49 = vadd.f32 %v15397_v54, %v6205_v24  ;;  %v7485_v36 = vpop.f32.mrf.mxu1 }
 0x3bc   : > { %8022 = vst.msk [vmem:[%s11070_s25 + $0xfd8] sm:$0xff] %vm7514_vm11, %v7491_v40  ;;  %v7486_v35 = vadd.f32 %v15397_v54, %v7485_v36 }
 0x3bd   : > { %7765 = vst.msk [vmem:[%s11070_s25 + $0x7d0] sm:$0xff] %vm7514_vm11, %v6206_v49 }
 0x3be   : > { %8021 = vst.msk [vmem:[%s11070_s25 + $0xfd0] sm:$0xff] %vm7514_vm11, %v7486_v35  ;;  %v9504_v13 = vpop.f32.mrf.mxu0 }
 0x3bf   : > { %v6221_v42 = vadd.f32 %v15397_v54, %v9504_v13  ;;  %v9888_v14 = vpop.f32.mrf.mxu1 }
 0x3c0   : > { %v7501_v23 = vadd.f32 %v15397_v54, %v9888_v14  ;;  %v6215_v0 = vpop.f32.mrf.mxu0 }
 0x3c1   : > { %7768 = vst.msk [vmem:[%s11070_s25 + $0x7e8] sm:$0xff] %vm7514_vm11, %v6221_v42  ;;  %v6216_v37 = vadd.f32 %v15397_v54, %v6215_v0  ;;  %v7495_v9 = vpop.f32.mrf.mxu1 }
 0x3c2   : > { %8024 = vst.msk [vmem:[%s11070_s25 + $0xfe8] sm:$0xff] %vm7514_vm11, %v7501_v23  ;;  %v7496_v59 = vadd.f32 %v15397_v54, %v7495_v9 }
 0x3c3   : > { %7767 = vst.msk [vmem:[%s11070_s25 + $0x7e0] sm:$0xff] %vm7514_vm11, %v6216_v37 }
 0x3c4   : > { %8023 = vst.msk [vmem:[%s11070_s25 + $0xfe0] sm:$0xff] %vm7514_vm11, %v7496_v59 }
 0x3c5   : > { %v9507_v32 = vpop.f32.mrf.mxu0 }
 0x3c6   : > { %v6231_v53 = vadd.f32 %v15397_v54, %v9507_v32  ;;  %v9891_v63 = vpop.f32.mrf.mxu1 }
 0x3c7   : > { %v7511_v29 = vadd.f32 %v15397_v54, %v9891_v63  ;;  %v6225_v21 = vpop.f32.mrf.mxu0 }
 0x3c8   : > { %7770 = vst.msk [vmem:[%s11070_s25 + $0x7f8] sm:$0xff] %vm7514_vm11, %v6231_v53  ;;  %v6226_v45 = vadd.f32 %v15397_v54, %v6225_v21  ;;  %v7505_v15 = vpop.f32.mrf.mxu1 }
 0x3c9   : > { %8026 = vst.msk [vmem:[%s11070_s25 + $0xff8] sm:$0xff] %vm7514_vm11, %v7511_v29  ;;  %v7506_v43 = vadd.f32 %v15397_v54, %v7505_v15 }
 0x3ca   : > { %7769 = vst.msk [vmem:[%s11070_s25 + $0x7f0] sm:$0xff] %vm7514_vm11, %v6226_v45 }
 0x3cb   : > { %8025 = vst.msk [vmem:[%s11070_s25 + $0xff0] sm:$0xff] %vm7514_vm11, %v7506_v43 }
 0x3cc PF: > { %s17_s23 = sadd.s32 1, %s9931_s23  }
 0x3cd   : > { %p14_p4 = scmp.ge.s32.totalorder %s17_s23, 4  }
 0x3cf   :  { %16 = sbr.rel (!%p14_p4) target bundleno = 2 (0x2), region = 74 }

</bundles_post_ra>
